<compile_context>
chip_gen: v7x
topology: tpu7x:2x2x1
jax: 0.10.0
libtpu: 0.0.40
codegen_flags: <defaults>
</compile_context>

<pallas_src>
import functools
import math

import jax
import jax.numpy as jnp
from jax import lax
from jax.experimental import pallas as pl
from jax.experimental.pallas import tpu as pltpu


# ----------------------------------------------------------------------------
# Pallas kernels
# ----------------------------------------------------------------------------
def _matmul_bias_act_kernel(x_ref, w_ref, b_ref, o_ref, *, activation):
    # x, w arrive in bf16; accumulate, bias and activation in f32.
    acc = jnp.dot(x_ref[...], w_ref[...], preferred_element_type=jnp.float32)
    acc = acc + b_ref[...]                          # (1, N) broadcasts over rows
    if activation == "relu":
        acc = jnp.maximum(acc, 0.0)
    elif activation == "sigmoid":
        acc = jax.nn.sigmoid(acc)
    o_ref[...] = acc.astype(o_ref.dtype)


def _latent_kernel(h_ref, hw_ref, hb_ref, e_ref, lw_ref, lb_ref,
                   h2_ref, mu_ref, sg_ref, *, latent):
    """Fused (miu|sigma) heads + z = miu + e*sigma + latent_to_hidden matmul."""
    acc = jnp.dot(h_ref[...], hw_ref[...],
                  preferred_element_type=jnp.float32) + hb_ref[...]
    mu = acc[:, :latent]                            # lane-aligned split
    sg = acc[:, latent:]
    mu_ref[...] = mu
    sg_ref[...] = sg
    z = mu + e_ref[...] * sg                        # reparameterization (raw sigma,
                                                    # exactly as in the reference)
    h2 = jnp.dot(z.astype(jnp.bfloat16), lw_ref[...],
                 preferred_element_type=jnp.float32) + lb_ref[...]
    h2_ref[...] = h2.astype(h2_ref.dtype)


# ----------------------------------------------------------------------------
# Pallas wrappers
# ----------------------------------------------------------------------------
def _round_up(v, m):
    return ((v + m - 1) // m) * m


def _pick_tm(mp):
    # Prefer a few grid steps (megacore sharding on v7x + DMA/compute overlap)
    # instead of one giant tile; weights stay VMEM-resident across steps because
    # their block index is constant.
    for tm in (128, 64, 32, 16, 8):
        if mp % tm == 0 and mp // tm >= 2:
            return tm
    return mp


def matmul_bias_act(x, w, b, activation="none", out_dtype=jnp.bfloat16):
    """y = act(x @ w + b).  x:(M,K) bf16, w:(K,N) bf16, b:(1,N) f32."""
    M, K = x.shape
    N = w.shape[1]
    Mp = _round_up(max(M, 8), 8)
    if Mp != M:
        x = jnp.pad(x, ((0, Mp - M), (0, 0)))
    tm = _pick_tm(Mp)
    grid = Mp // tm

    out = pl.pallas_call(
        functools.partial(_matmul_bias_act_kernel, activation=activation),
        out_shape=jax.ShapeDtypeStruct((Mp, N), out_dtype),
        grid=(grid,),
        in_specs=[
            pl.BlockSpec((tm, K), lambda i: (i, 0)),
            pl.BlockSpec((K, N), lambda i: (0, 0)),
            pl.BlockSpec((1, N), lambda i: (0, 0)),
        ],
        out_specs=pl.BlockSpec((tm, N), lambda i: (i, 0)),
        compiler_params=pltpu.CompilerParams(
            dimension_semantics=("parallel",) if grid > 1 else ("arbitrary",)),
    )(x, w, b)
    return out if Mp == M else out[:M]


def latent_block(h, heads_w, heads_b, l2h_w, l2h_b, e):
    """One pallas_call: heads matmul, reparameterization, latent_to_hidden."""
    M, K = h.shape
    latent = heads_w.shape[1] // 2
    hid = l2h_w.shape[1]
    Mp = _round_up(max(M, 8), 8)
    if Mp != M:
        h = jnp.pad(h, ((0, Mp - M), (0, 0)))
        e = jnp.pad(e, ((0, Mp - M), (0, 0)))

    h2, mu, sg = pl.pallas_call(
        functools.partial(_latent_kernel, latent=latent),
        out_shape=(jax.ShapeDtypeStruct((Mp, hid), jnp.bfloat16),
                   jax.ShapeDtypeStruct((Mp, latent), jnp.float32),
                   jax.ShapeDtypeStruct((Mp, latent), jnp.float32)),
        grid=(1,),
        in_specs=[
            pl.BlockSpec((Mp, K), lambda i: (0, 0)),
            pl.BlockSpec((K, 2 * latent), lambda i: (0, 0)),
            pl.BlockSpec((1, 2 * latent), lambda i: (0, 0)),
            pl.BlockSpec((Mp, latent), lambda i: (0, 0)),
            pl.BlockSpec((latent, hid), lambda i: (0, 0)),
            pl.BlockSpec((1, hid), lambda i: (0, 0)),
        ],
        out_specs=(pl.BlockSpec((Mp, hid), lambda i: (0, 0)),
                   pl.BlockSpec((Mp, latent), lambda i: (0, 0)),
                   pl.BlockSpec((Mp, latent), lambda i: (0, 0))),
        compiler_params=pltpu.CompilerParams(dimension_semantics=("arbitrary",)),
    )(h, heads_w, heads_b, e, l2h_w, l2h_b)
    return h2[:M], mu[:M], sg[:M]


# ----------------------------------------------------------------------------
# Conv / ConvTranspose (NHWC, bf16) via one im2col + one Pallas matmul per layer
# ----------------------------------------------------------------------------
def _patches(x_nhwc, k, stride, pad):
    # Patch feature ordering is channel-major (c, ky, kx), matching the
    # PyTorch weight reshape (Cout, Cin*k*k).  Input/output are bf16.
    return lax.conv_general_dilated_patches(
        x_nhwc, filter_shape=(k, k), window_strides=(stride, stride),
        padding=((pad, pad), (pad, pad)),
        dimension_numbers=("NHWC", "HWIO", "NHWC"))        # (B, OH, OW, Cin*k*k)


def conv2d(x_nhwc, w_mat, b, stride, pad, k, activation):
    """PyTorch-semantics Conv2d.  w_mat: matmul-ready (Cin*k*k, Cout) bf16."""
    B, _, _, cin = x_nhwc.shape
    cout = w_mat.shape[1]
    p = _patches(x_nhwc, k, stride, pad)
    OH, OW = p.shape[1], p.shape[2]
    y = matmul_bias_act(p.reshape(B * OH * OW, cin * k * k), w_mat, b, activation)
    return y.reshape(B, OH, OW, cout)


def conv_transpose2d(x_nhwc, w_fused, b_fused, cout, activation,
                     out_dtype=jnp.bfloat16):
    """PyTorch ConvTranspose2d(k=4, s=2, p=1) via sub-pixel decomposition."""
    B, H, W, cin = x_nhwc.shape
    p = _patches(x_nhwc, 3, 1, 1)                          # (B, H, W, Cin*9)
    y = matmul_bias_act(p.reshape(B * H * W, cin * 9), w_fused, b_fused,
                        activation, out_dtype=out_dtype)
    # pixel shuffle: column index = (ry*2 + rx)*Cout + co  ->  (2H, 2W, Cout)
    y = y.reshape(B, H, W, 2, 2, cout)
    y = y.transpose(0, 1, 3, 2, 4, 5).reshape(B, 2 * H, 2 * W, cout)
    return y


# ----------------------------------------------------------------------------
# Parameter init (PyTorch-default-style uniform(+-1/sqrt(fan_in))) + pre-layout
# ----------------------------------------------------------------------------
def _uniform(key, shape, fan_in):
    bound = 1.0 / math.sqrt(fan_in)
    return jax.random.uniform(key, shape, jnp.float32, -bound, bound)


def _subpixel_weight(w_t, b):
    """Fold ConvTranspose2d(k=4, s=2, p=1) weight (Cin, Cout, 4, 4) into a
    (Cin*9, 4*Cout) matrix acting on 3x3 stride-1 patches of the input.
    Output column (ry*2+rx)*Cout + co is the (ry, rx) output-parity plane."""
    cin, cout = w_t.shape[0], w_t.shape[1]
    wf = jnp.zeros((cin, 3, 3, 4, cout), jnp.float32)
    for ry in range(2):
        for rx in range(2):
            for dy in (-1, 0, 1):
                ky = ry + 1 - 2 * dy
                if not 0 <= ky < 4:
                    continue
                for dx in (-1, 0, 1):
                    kx = rx + 1 - 2 * dx
                    if not 0 <= kx < 4:
                        continue
                    wf = wf.at[:, dy + 1, dx + 1, 2 * ry + rx, :].set(w_t[:, :, ky, kx])
    return wf.reshape(cin * 9, 4 * cout), jnp.tile(b, 4)


def init_vae_params(key, input_channels=3, latent_dim=128):
    ks = jax.random.split(key, 18)
    p = {}
    # encoder convs: PyTorch layout (Cout, Cin, 4, 4) -> matmul-ready (Cin*16, Cout) bf16
    enc = [(64, input_channels), (128, 64), (256, 128)]
    for i, (co, ci) in enumerate(enc):
        fan = ci * 16
        w = _uniform(ks[2 * i], (co, ci, 4, 4), fan)
        b = _uniform(ks[2 * i + 1], (co,), fan)
        p[f"enc{i}_w"] = w.reshape(co, ci * 16).T.astype(jnp.bfloat16)
        p[f"enc{i}_b"] = b.reshape(1, co)                              # f32
    # latent heads: fuse miu & sigma into one (4096, 2*latent) bf16 weight.
    hid = 256 * 4 * 4
    miu_w = _uniform(ks[6], (latent_dim, hid), hid)
    miu_b = _uniform(ks[7], (latent_dim,), hid)
    sig_w = _uniform(ks[8], (latent_dim, hid), hid)
    sig_b = _uniform(ks[9], (latent_dim,), hid)
    l2h_w = _uniform(ks[10], (hid, latent_dim), latent_dim)
    l2h_b = _uniform(ks[11], (hid,), latent_dim)
    # perm maps NHWC-flat index (y, x, c) to PyTorch-flat index (c, y, x)
    perm = jnp.arange(hid).reshape(256, 4, 4).transpose(1, 2, 0).reshape(-1)
    p["heads_w"] = jnp.concatenate(
        [miu_w.T[perm, :], sig_w.T[perm, :]], axis=1).astype(jnp.bfloat16)
    p["heads_b"] = jnp.concatenate([miu_b, sig_b]).reshape(1, 2 * latent_dim)
    p["l2h_w"] = l2h_w.T[:, perm].astype(jnp.bfloat16)
    p["l2h_b"] = l2h_b[perm].reshape(1, hid)
    # decoder conv-transposes: PyTorch layout (Cin, Cout, 4, 4); fan_in = Cout*16
    dec = [(256, 128), (128, 64), (64, input_channels)]
    for i, (ci, co) in enumerate(dec):
        fan = co * 16
        w = _uniform(ks[12 + 2 * i], (ci, co, 4, 4), fan)
        b = _uniform(ks[13 + 2 * i], (co,), fan)
        wf, bf = _subpixel_weight(w, b)
        p[f"dec{i}_w"] = wf.astype(jnp.bfloat16)
        p[f"dec{i}_b"] = bf.reshape(1, 4 * co)                         # f32
    return p


# ----------------------------------------------------------------------------
# VAE forward
# ----------------------------------------------------------------------------
def vae_forward(params, x, noise_key):
    B, C, _, _ = x.shape
    latent = params["heads_w"].shape[1] // 2
    x = jnp.transpose(x, (0, 2, 3, 1)).astype(jnp.bfloat16)           # NCHW -> NHWC

    # encoder
    h = conv2d(x, params["enc0_w"], params["enc0_b"], 2, 1, 4, "relu")
    h = conv2d(h, params["enc1_w"], params["enc1_b"], 2, 1, 4, "relu")
    h = conv2d(h, params["enc2_w"], params["enc2_b"], 2, 1, 4, "relu")
    h = h.reshape(B, -1)               # (B, 256*4*4) NHWC order (weights permuted)

    # fused latent heads + reparameterization + latent_to_hidden (one pallas_call)
    e = jax.random.normal(noise_key, (B, latent), jnp.float32)
    h2, miu, sigma = latent_block(h, params["heads_w"], params["heads_b"],
                                  params["l2h_w"], params["l2h_b"], e)

    # decoder
    h = h2.reshape(B, 4, 4, 256)                                        # NHWC bottleneck
    h = conv_transpose2d(h, params["dec0_w"], params["dec0_b"], 128, "relu")
    h = conv_transpose2d(h, params["dec1_w"], params["dec1_b"], 64, "relu")
    r = conv_transpose2d(h, params["dec2_w"], params["dec2_b"], C, "sigmoid",
                         out_dtype=jnp.float32)

    recon = jnp.transpose(r, (0, 3, 1, 2))                              # NHWC -> NCHW
    return recon, miu, sigma


if __name__ == "__main__":
    key = jax.random.PRNGKey(0)
    pkey, xkey, nkey = jax.random.split(key, 3)

    # forward requires 32x32 spatial so the bottleneck is 256*4*4
    B, C, H, W = 2, 3, 32, 32
    x = jax.random.normal(xkey, (B, C, H, W), jnp.float32)
    params = init_vae_params(pkey, input_channels=C, latent_dim=128)

    recon, miu, sigma = jax.jit(vae_forward)(params, x, nkey)
    jax.block_until_ready((recon, miu, sigma))

    assert recon.shape == (B, C, H, W)
    assert miu.shape == (B, 128) and sigma.shape == (B, 128)
    assert bool(jnp.all(jnp.isfinite(recon)))
    assert bool(jnp.all((recon >= 0.0) & (recon <= 1.0)))
    print("KERNEL_OK")
</pallas_src>

<mosaic_0001>
module attributes {stable_mosaic.version = 11 : i64} {
  func.func @_matmul_bias_act_kernel(%arg0: i32, %arg1: memref<128x48xbf16, #tpu.memory_space<vmem>>, %arg2: memref<48x64xbf16, #tpu.memory_space<vmem>>, %arg3: memref<1x64xf32, #tpu.memory_space<vmem>>, %arg4: memref<128x64xbf16, #tpu.memory_space<vmem>>) attributes {dimension_semantics = [#tpu.dimension_semantics<parallel>], iteration_bounds = array<i64: 4>, scalar_prefetch = 0 : i64, scratch_operands = 0 : i64, tpu.core_type = #tpu.core_type<tc>, window_params = [{transform_indices = @transform_0, window_bounds = array<i64: 128, 48>}, {pipeline_mode = #tpu.pipeline_mode<synchronous>, transform_indices = @transform_1, window_bounds = array<i64: 48, 64>}, {pipeline_mode = #tpu.pipeline_mode<synchronous>, transform_indices = @transform_2, window_bounds = array<i64: 1, 64>}, {transform_indices = @transform_3, window_bounds = array<i64: 128, 64>}]} {
    %c0 = arith.constant 0 : index
    %c0_0 = arith.constant 0 : index
    %0 = vector.load %arg1[%c0, %c0_0] : memref<128x48xbf16, #tpu.memory_space<vmem>>, vector<128x48xbf16>
    %c0_1 = arith.constant 0 : index
    %c0_2 = arith.constant 0 : index
    %1 = vector.load %arg2[%c0_1, %c0_2] : memref<48x64xbf16, #tpu.memory_space<vmem>>, vector<48x64xbf16>
    %cst = arith.constant dense<0.000000e+00> : vector<128x64xf32>
    %2 = tpu.matmul %0, %1, %cst {dimension_numbers = #tpu.dot_dimension_numbers<[1], [0], [0], [1], [0, 0, 1, 1], [], []>} : vector<128x48xbf16>, vector<48x64xbf16>, vector<128x64xf32> -> vector<128x64xf32>
    %c0_3 = arith.constant 0 : index
    %c0_4 = arith.constant 0 : index
    %3 = vector.load %arg3[%c0_3, %c0_4] : memref<1x64xf32, #tpu.memory_space<vmem>>, vector<1x64xf32>
    %4 = vector.broadcast %3 : vector<1x64xf32> to vector<128x64xf32>
    %5 = arith.addf %2, %4 : vector<128x64xf32>
    %cst_5 = arith.constant 0.000000e+00 : f32
    %6 = vector.broadcast %cst_5 : f32 to vector<128x64xf32>
    %7 = arith.maximumf %5, %6 : vector<128x64xf32>
    %8 = arith.truncf %7 : vector<128x64xf32> to vector<128x64xbf16>
    %c0_6 = arith.constant 0 : index
    %c0_7 = arith.constant 0 : index
    %9 = vector.load %arg4[%c0_6, %c0_7] : memref<128x64xbf16, #tpu.memory_space<vmem>>, vector<128x64xbf16>
    tpu.vector_store %arg4[%c0_6, %c0_7], %8 {strides = array<i32>} : memref<128x64xbf16, #tpu.memory_space<vmem>>, vector<128x64xbf16>,
    return
  }
  func.func @transform_0(%arg0: i32) -> (i32, i32) {
    %c0_i32 = arith.constant 0 : i32
    %c0_i32_0 = arith.constant 0 : i32
    return %arg0, %c0_i32 : i32, i32
  }
  func.func @transform_1(%arg0: i32) -> (i32, i32) {
    %c0_i32 = arith.constant 0 : i32
    %c0_i32_0 = arith.constant 0 : i32
    %c0_i32_1 = arith.constant 0 : i32
    return %c0_i32, %c0_i32_0 : i32, i32
  }
  func.func @transform_2(%arg0: i32) -> (i32, i32) {
    %c0_i32 = arith.constant 0 : i32
    %c0_i32_0 = arith.constant 0 : i32
    %c0_i32_1 = arith.constant 0 : i32
    return %c0_i32, %c0_i32_0 : i32, i32
  }
  func.func @transform_3(%arg0: i32) -> (i32, i32) {
    %c0_i32 = arith.constant 0 : i32
    %c0_i32_0 = arith.constant 0 : i32
    return %arg0, %c0_i32 : i32, i32
  }
}

module attributes {stable_mosaic.version = 11 : i64} {
  func.func @_matmul_bias_act_kernel(%arg0: i32, %arg1: memref<64x1024xbf16, #tpu.memory_space<vmem>>, %arg2: memref<1024x128xbf16, #tpu.memory_space<vmem>>, %arg3: memref<1x128xf32, #tpu.memory_space<vmem>>, %arg4: memref<64x128xbf16, #tpu.memory_space<vmem>>) attributes {dimension_semantics = [#tpu.dimension_semantics<parallel>], iteration_bounds = array<i64: 2>, scalar_prefetch = 0 : i64, scratch_operands = 0 : i64, tpu.core_type = #tpu.core_type<tc>, window_params = [{transform_indices = @transform_0, window_bounds = array<i64: 64, 1024>}, {pipeline_mode = #tpu.pipeline_mode<synchronous>, transform_indices = @transform_1, window_bounds = array<i64: 1024, 128>}, {pipeline_mode = #tpu.pipeline_mode<synchronous>, transform_indices = @transform_2, window_bounds = array<i64: 1, 128>}, {transform_indices = @transform_3, window_bounds = array<i64: 64, 128>}]} {
    %c0 = arith.constant 0 : index
    %c0_0 = arith.constant 0 : index
    %0 = vector.load %arg1[%c0, %c0_0] : memref<64x1024xbf16, #tpu.memory_space<vmem>>, vector<64x1024xbf16>
    %c0_1 = arith.constant 0 : index
    %c0_2 = arith.constant 0 : index
    %1 = vector.load %arg2[%c0_1, %c0_2] : memref<1024x128xbf16, #tpu.memory_space<vmem>>, vector<1024x128xbf16>
    %cst = arith.constant dense<0.000000e+00> : vector<64x128xf32>
    %2 = tpu.matmul %0, %1, %cst {dimension_numbers = #tpu.dot_dimension_numbers<[1], [0], [0], [1], [0, 0, 1, 1], [], []>} : vector<64x1024xbf16>, vector<1024x128xbf16>, vector<64x128xf32> -> vector<64x128xf32>
    %c0_3 = arith.constant 0 : index
    %c0_4 = arith.constant 0 : index
    %3 = vector.load %arg3[%c0_3, %c0_4] : memref<1x128xf32, #tpu.memory_space<vmem>>, vector<1x128xf32>
    %4 = vector.broadcast %3 : vector<1x128xf32> to vector<64x128xf32>
    %5 = arith.addf %2, %4 : vector<64x128xf32>
    %cst_5 = arith.constant 0.000000e+00 : f32
    %6 = vector.broadcast %cst_5 : f32 to vector<64x128xf32>
    %7 = arith.maximumf %5, %6 : vector<64x128xf32>
    %8 = arith.truncf %7 : vector<64x128xf32> to vector<64x128xbf16>
    %c0_6 = arith.constant 0 : index
    %c0_7 = arith.constant 0 : index
    %9 = vector.load %arg4[%c0_6, %c0_7] : memref<64x128xbf16, #tpu.memory_space<vmem>>, vector<64x128xbf16>
    tpu.vector_store %arg4[%c0_6, %c0_7], %8 {strides = array<i32>} : memref<64x128xbf16, #tpu.memory_space<vmem>>, vector<64x128xbf16>,
    return
  }
  func.func @transform_0(%arg0: i32) -> (i32, i32) {
    %c0_i32 = arith.constant 0 : i32
    %c0_i32_0 = arith.constant 0 : i32
    return %arg0, %c0_i32 : i32, i32
  }
  func.func @transform_1(%arg0: i32) -> (i32, i32) {
    %c0_i32 = arith.constant 0 : i32
    %c0_i32_0 = arith.constant 0 : i32
    %c0_i32_1 = arith.constant 0 : i32
    return %c0_i32, %c0_i32_0 : i32, i32
  }
  func.func @transform_2(%arg0: i32) -> (i32, i32) {
    %c0_i32 = arith.constant 0 : i32
    %c0_i32_0 = arith.constant 0 : i32
    %c0_i32_1 = arith.constant 0 : i32
    return %c0_i32, %c0_i32_0 : i32, i32
  }
  func.func @transform_3(%arg0: i32) -> (i32, i32) {
    %c0_i32 = arith.constant 0 : i32
    %c0_i32_0 = arith.constant 0 : i32
    return %arg0, %c0_i32 : i32, i32
  }
}

module attributes {stable_mosaic.version = 11 : i64} {
  func.func @_matmul_bias_act_kernel(%arg0: i32, %arg1: memref<16x2048xbf16, #tpu.memory_space<vmem>>, %arg2: memref<2048x256xbf16, #tpu.memory_space<vmem>>, %arg3: memref<1x256xf32, #tpu.memory_space<vmem>>, %arg4: memref<16x256xbf16, #tpu.memory_space<vmem>>) attributes {dimension_semantics = [#tpu.dimension_semantics<parallel>], iteration_bounds = array<i64: 2>, scalar_prefetch = 0 : i64, scratch_operands = 0 : i64, tpu.core_type = #tpu.core_type<tc>, window_params = [{transform_indices = @transform_0, window_bounds = array<i64: 16, 2048>}, {pipeline_mode = #tpu.pipeline_mode<synchronous>, transform_indices = @transform_1, window_bounds = array<i64: 2048, 256>}, {pipeline_mode = #tpu.pipeline_mode<synchronous>, transform_indices = @transform_2, window_bounds = array<i64: 1, 256>}, {transform_indices = @transform_3, window_bounds = array<i64: 16, 256>}]} {
    %c0 = arith.constant 0 : index
    %c0_0 = arith.constant 0 : index
    %0 = vector.load %arg1[%c0, %c0_0] : memref<16x2048xbf16, #tpu.memory_space<vmem>>, vector<16x2048xbf16>
    %c0_1 = arith.constant 0 : index
    %c0_2 = arith.constant 0 : index
    %1 = vector.load %arg2[%c0_1, %c0_2] : memref<2048x256xbf16, #tpu.memory_space<vmem>>, vector<2048x256xbf16>
    %cst = arith.constant dense<0.000000e+00> : vector<16x256xf32>
    %2 = tpu.matmul %0, %1, %cst {dimension_numbers = #tpu.dot_dimension_numbers<[1], [0], [0], [1], [0, 0, 1, 1], [], []>} : vector<16x2048xbf16>, vector<2048x256xbf16>, vector<16x256xf32> -> vector<16x256xf32>
    %c0_3 = arith.constant 0 : index
    %c0_4 = arith.constant 0 : index
    %3 = vector.load %arg3[%c0_3, %c0_4] : memref<1x256xf32, #tpu.memory_space<vmem>>, vector<1x256xf32>
    %4 = vector.broadcast %3 : vector<1x256xf32> to vector<16x256xf32>
    %5 = arith.addf %2, %4 : vector<16x256xf32>
    %cst_5 = arith.constant 0.000000e+00 : f32
    %6 = vector.broadcast %cst_5 : f32 to vector<16x256xf32>
    %7 = arith.maximumf %5, %6 : vector<16x256xf32>
    %8 = arith.truncf %7 : vector<16x256xf32> to vector<16x256xbf16>
    %c0_6 = arith.constant 0 : index
    %c0_7 = arith.constant 0 : index
    %9 = vector.load %arg4[%c0_6, %c0_7] : memref<16x256xbf16, #tpu.memory_space<vmem>>, vector<16x256xbf16>
    tpu.vector_store %arg4[%c0_6, %c0_7], %8 {strides = array<i32>} : memref<16x256xbf16, #tpu.memory_space<vmem>>, vector<16x256xbf16>,
    return
  }
  func.func @transform_0(%arg0: i32) -> (i32, i32) {
    %c0_i32 = arith.constant 0 : i32
    %c0_i32_0 = arith.constant 0 : i32
    return %arg0, %c0_i32 : i32, i32
  }
  func.func @transform_1(%arg0: i32) -> (i32, i32) {
    %c0_i32 = arith.constant 0 : i32
    %c0_i32_0 = arith.constant 0 : i32
    %c0_i32_1 = arith.constant 0 : i32
    return %c0_i32, %c0_i32_0 : i32, i32
  }
  func.func @transform_2(%arg0: i32) -> (i32, i32) {
    %c0_i32 = arith.constant 0 : i32
    %c0_i32_0 = arith.constant 0 : i32
    %c0_i32_1 = arith.constant 0 : i32
    return %c0_i32, %c0_i32_0 : i32, i32
  }
  func.func @transform_3(%arg0: i32) -> (i32, i32) {
    %c0_i32 = arith.constant 0 : i32
    %c0_i32_0 = arith.constant 0 : i32
    return %arg0, %c0_i32 : i32, i32
  }
}

module attributes {stable_mosaic.version = 11 : i64} {
  func.func @_latent_kernel(%arg0: i32, %arg1: memref<8x4096xbf16, #tpu.memory_space<vmem>>, %arg2: memref<4096x256xbf16, #tpu.memory_space<vmem>>, %arg3: memref<1x256xf32, #tpu.memory_space<vmem>>, %arg4: memref<8x128xf32, #tpu.memory_space<vmem>>, %arg5: memref<128x4096xbf16, #tpu.memory_space<vmem>>, %arg6: memref<1x4096xf32, #tpu.memory_space<vmem>>, %arg7: memref<8x4096xbf16, #tpu.memory_space<vmem>>, %arg8: memref<8x128xf32, #tpu.memory_space<vmem>>, %arg9: memref<8x128xf32, #tpu.memory_space<vmem>>) attributes {dimension_semantics = [#tpu.dimension_semantics<arbitrary>], iteration_bounds = array<i64: 1>, scalar_prefetch = 0 : i64, scratch_operands = 0 : i64, tpu.core_type = #tpu.core_type<tc>, window_params = [{pipeline_mode = #tpu.pipeline_mode<synchronous>, transform_indices = @transform_0, window_bounds = array<i64: 8, 4096>}, {pipeline_mode = #tpu.pipeline_mode<synchronous>, transform_indices = @transform_1, window_bounds = array<i64: 4096, 256>}, {pipeline_mode = #tpu.pipeline_mode<synchronous>, transform_indices = @transform_2, window_bounds = array<i64: 1, 256>}, {pipeline_mode = #tpu.pipeline_mode<synchronous>, transform_indices = @transform_3, window_bounds = array<i64: 8, 128>}, {pipeline_mode = #tpu.pipeline_mode<synchronous>, transform_indices = @transform_4, window_bounds = array<i64: 128, 4096>}, {pipeline_mode = #tpu.pipeline_mode<synchronous>, transform_indices = @transform_5, window_bounds = array<i64: 1, 4096>}, {pipeline_mode = #tpu.pipeline_mode<synchronous>, transform_indices = @transform_6, window_bounds = array<i64: 8, 4096>}, {pipeline_mode = #tpu.pipeline_mode<synchronous>, transform_indices = @transform_7, window_bounds = array<i64: 8, 128>}, {pipeline_mode = #tpu.pipeline_mode<synchronous>, transform_indices = @transform_8, window_bounds = array<i64: 8, 128>}]} {
    %c0 = arith.constant 0 : index
    %c0_0 = arith.constant 0 : index
    %0 = vector.load %arg1[%c0, %c0_0] : memref<8x4096xbf16, #tpu.memory_space<vmem>>, vector<8x4096xbf16>
    %c0_1 = arith.constant 0 : index
    %c0_2 = arith.constant 0 : index
    %1 = vector.load %arg2[%c0_1, %c0_2] : memref<4096x256xbf16, #tpu.memory_space<vmem>>, vector<4096x256xbf16>
    %cst = arith.constant dense<0.000000e+00> : vector<8x256xf32>
    %2 = tpu.matmul %0, %1, %cst {dimension_numbers = #tpu.dot_dimension_numbers<[1], [0], [0], [1], [0, 0, 1, 1], [], []>} : vector<8x4096xbf16>, vector<4096x256xbf16>, vector<8x256xf32> -> vector<8x256xf32>
    %c0_3 = arith.constant 0 : index
    %c0_4 = arith.constant 0 : index
    %3 = vector.load %arg3[%c0_3, %c0_4] : memref<1x256xf32, #tpu.memory_space<vmem>>, vector<1x256xf32>
    %4 = vector.broadcast %3 : vector<1x256xf32> to vector<8x256xf32>
    %5 = arith.addf %2, %4 : vector<8x256xf32>
    %6 = vector.extract_strided_slice %5 {offsets = [0, 0], sizes = [8, 128], strides = [1, 1]} : vector<8x256xf32> to vector<8x128xf32>
    %7 = vector.extract_strided_slice %5 {offsets = [0, 128], sizes = [8, 128], strides = [1, 1]} : vector<8x256xf32> to vector<8x128xf32>
    %c0_5 = arith.constant 0 : index
    %c0_6 = arith.constant 0 : index
    %8 = vector.load %arg8[%c0_5, %c0_6] : memref<8x128xf32, #tpu.memory_space<vmem>>, vector<8x128xf32>
    tpu.vector_store %arg8[%c0_5, %c0_6], %6 {strides = array<i32>} : memref<8x128xf32, #tpu.memory_space<vmem>>, vector<8x128xf32>,
    %c0_7 = arith.constant 0 : index
    %c0_8 = arith.constant 0 : index
    %9 = vector.load %arg9[%c0_7, %c0_8] : memref<8x128xf32, #tpu.memory_space<vmem>>, vector<8x128xf32>
    tpu.vector_store %arg9[%c0_7, %c0_8], %7 {strides = array<i32>} : memref<8x128xf32, #tpu.memory_space<vmem>>, vector<8x128xf32>,
    %c0_9 = arith.constant 0 : index
    %c0_10 = arith.constant 0 : index
    %10 = vector.load %arg4[%c0_9, %c0_10] : memref<8x128xf32, #tpu.memory_space<vmem>>, vector<8x128xf32>
    %11 = arith.mulf %10, %7 : vector<8x128xf32>
    %12 = arith.addf %6, %11 : vector<8x128xf32>
    %13 = arith.truncf %12 : vector<8x128xf32> to vector<8x128xbf16>
    %c0_11 = arith.constant 0 : index
    %c0_12 = arith.constant 0 : index
    %14 = vector.load %arg5[%c0_11, %c0_12] : memref<128x4096xbf16, #tpu.memory_space<vmem>>, vector<128x4096xbf16>
    %cst_13 = arith.constant dense<0.000000e+00> : vector<8x4096xf32>
    %15 = tpu.matmul %13, %14, %cst_13 {dimension_numbers = #tpu.dot_dimension_numbers<[1], [0], [0], [1], [0, 0, 1, 1], [], []>} : vector<8x128xbf16>, vector<128x4096xbf16>, vector<8x4096xf32> -> vector<8x4096xf32>
    %c0_14 = arith.constant 0 : index
    %c0_15 = arith.constant 0 : index
    %16 = vector.load %arg6[%c0_14, %c0_15] : memref<1x4096xf32, #tpu.memory_space<vmem>>, vector<1x4096xf32>
    %17 = vector.broadcast %16 : vector<1x4096xf32> to vector<8x4096xf32>
    %18 = arith.addf %15, %17 : vector<8x4096xf32>
    %19 = arith.truncf %18 : vector<8x4096xf32> to vector<8x4096xbf16>
    %c0_16 = arith.constant 0 : index
    %c0_17 = arith.constant 0 : index
    %20 = vector.load %arg7[%c0_16, %c0_17] : memref<8x4096xbf16, #tpu.memory_space<vmem>>, vector<8x4096xbf16>
    tpu.vector_store %arg7[%c0_16, %c0_17], %19 {strides = array<i32>} : memref<8x4096xbf16, #tpu.memory_space<vmem>>, vector<8x4096xbf16>,
    return
  }
  func.func @transform_0(%arg0: i32) -> (i32, i32) {
    %c0_i32 = arith.constant 0 : i32
    %c0_i32_0 = arith.constant 0 : i32
    %c0_i32_1 = arith.constant 0 : i32
    return %c0_i32, %c0_i32_0 : i32, i32
  }
  func.func @transform_1(%arg0: i32) -> (i32, i32) {
    %c0_i32 = arith.constant 0 : i32
    %c0_i32_0 = arith.constant 0 : i32
    %c0_i32_1 = arith.constant 0 : i32
    return %c0_i32, %c0_i32_0 : i32, i32
  }
  func.func @transform_2(%arg0: i32) -> (i32, i32) {
    %c0_i32 = arith.constant 0 : i32
    %c0_i32_0 = arith.constant 0 : i32
    %c0_i32_1 = arith.constant 0 : i32
    return %c0_i32, %c0_i32_0 : i32, i32
  }
  func.func @transform_3(%arg0: i32) -> (i32, i32) {
    %c0_i32 = arith.constant 0 : i32
    %c0_i32_0 = arith.constant 0 : i32
    %c0_i32_1 = arith.constant 0 : i32
    return %c0_i32, %c0_i32_0 : i32, i32
  }
  func.func @transform_4(%arg0: i32) -> (i32, i32) {
    %c0_i32 = arith.constant 0 : i32
    %c0_i32_0 = arith.constant 0 : i32
    %c0_i32_1 = arith.constant 0 : i32
    return %c0_i32, %c0_i32_0 : i32, i32
  }
  func.func @transform_5(%arg0: i32) -> (i32, i32) {
    %c0_i32 = arith.constant 0 : i32
    %c0_i32_0 = arith.constant 0 : i32
    %c0_i32_1 = arith.constant 0 : i32
    return %c0_i32, %c0_i32_0 : i32, i32
  }
  func.func @transform_6(%arg0: i32) -> (i32, i32) {
    %c0_i32 = arith.constant 0 : i32
    %c0_i32_0 = arith.constant 0 : i32
    %c0_i32_1 = arith.constant 0 : i32
    return %c0_i32, %c0_i32_0 : i32, i32
  }
  func.func @transform_7(%arg0: i32) -> (i32, i32) {
    %c0_i32 = arith.constant 0 : i32
    %c0_i32_0 = arith.constant 0 : i32
    %c0_i32_1 = arith.constant 0 : i32
    return %c0_i32, %c0_i32_0 : i32, i32
  }
  func.func @transform_8(%arg0: i32) -> (i32, i32) {
    %c0_i32 = arith.constant 0 : i32
    %c0_i32_0 = arith.constant 0 : i32
    %c0_i32_1 = arith.constant 0 : i32
    return %c0_i32, %c0_i32_0 : i32, i32
  }
}

module attributes {stable_mosaic.version = 11 : i64} {
  func.func @_matmul_bias_act_kernel(%arg0: i32, %arg1: memref<16x2304xbf16, #tpu.memory_space<vmem>>, %arg2: memref<2304x512xbf16, #tpu.memory_space<vmem>>, %arg3: memref<1x512xf32, #tpu.memory_space<vmem>>, %arg4: memref<16x512xbf16, #tpu.memory_space<vmem>>) attributes {dimension_semantics = [#tpu.dimension_semantics<parallel>], iteration_bounds = array<i64: 2>, scalar_prefetch = 0 : i64, scratch_operands = 0 : i64, tpu.core_type = #tpu.core_type<tc>, window_params = [{transform_indices = @transform_0, window_bounds = array<i64: 16, 2304>}, {pipeline_mode = #tpu.pipeline_mode<synchronous>, transform_indices = @transform_1, window_bounds = array<i64: 2304, 512>}, {pipeline_mode = #tpu.pipeline_mode<synchronous>, transform_indices = @transform_2, window_bounds = array<i64: 1, 512>}, {transform_indices = @transform_3, window_bounds = array<i64: 16, 512>}]} {
    %c0 = arith.constant 0 : index
    %c0_0 = arith.constant 0 : index
    %0 = vector.load %arg1[%c0, %c0_0] : memref<16x2304xbf16, #tpu.memory_space<vmem>>, vector<16x2304xbf16>
    %c0_1 = arith.constant 0 : index
    %c0_2 = arith.constant 0 : index
    %1 = vector.load %arg2[%c0_1, %c0_2] : memref<2304x512xbf16, #tpu.memory_space<vmem>>, vector<2304x512xbf16>
    %cst = arith.constant dense<0.000000e+00> : vector<16x512xf32>
    %2 = tpu.matmul %0, %1, %cst {dimension_numbers = #tpu.dot_dimension_numbers<[1], [0], [0], [1], [0, 0, 1, 1], [], []>} : vector<16x2304xbf16>, vector<2304x512xbf16>, vector<16x512xf32> -> vector<16x512xf32>
    %c0_3 = arith.constant 0 : index
    %c0_4 = arith.constant 0 : index
    %3 = vector.load %arg3[%c0_3, %c0_4] : memref<1x512xf32, #tpu.memory_space<vmem>>, vector<1x512xf32>
    %4 = vector.broadcast %3 : vector<1x512xf32> to vector<16x512xf32>
    %5 = arith.addf %2, %4 : vector<16x512xf32>
    %cst_5 = arith.constant 0.000000e+00 : f32
    %6 = vector.broadcast %cst_5 : f32 to vector<16x512xf32>
    %7 = arith.maximumf %5, %6 : vector<16x512xf32>
    %8 = arith.truncf %7 : vector<16x512xf32> to vector<16x512xbf16>
    %c0_6 = arith.constant 0 : index
    %c0_7 = arith.constant 0 : index
    %9 = vector.load %arg4[%c0_6, %c0_7] : memref<16x512xbf16, #tpu.memory_space<vmem>>, vector<16x512xbf16>
    tpu.vector_store %arg4[%c0_6, %c0_7], %8 {strides = array<i32>} : memref<16x512xbf16, #tpu.memory_space<vmem>>, vector<16x512xbf16>,
    return
  }
  func.func @transform_0(%arg0: i32) -> (i32, i32) {
    %c0_i32 = arith.constant 0 : i32
    %c0_i32_0 = arith.constant 0 : i32
    return %arg0, %c0_i32 : i32, i32
  }
  func.func @transform_1(%arg0: i32) -> (i32, i32) {
    %c0_i32 = arith.constant 0 : i32
    %c0_i32_0 = arith.constant 0 : i32
    %c0_i32_1 = arith.constant 0 : i32
    return %c0_i32, %c0_i32_0 : i32, i32
  }
  func.func @transform_2(%arg0: i32) -> (i32, i32) {
    %c0_i32 = arith.constant 0 : i32
    %c0_i32_0 = arith.constant 0 : i32
    %c0_i32_1 = arith.constant 0 : i32
    return %c0_i32, %c0_i32_0 : i32, i32
  }
  func.func @transform_3(%arg0: i32) -> (i32, i32) {
    %c0_i32 = arith.constant 0 : i32
    %c0_i32_0 = arith.constant 0 : i32
    return %arg0, %c0_i32 : i32, i32
  }
}

module attributes {stable_mosaic.version = 11 : i64} {
  func.func @_matmul_bias_act_kernel(%arg0: i32, %arg1: memref<64x1152xbf16, #tpu.memory_space<vmem>>, %arg2: memref<1152x256xbf16, #tpu.memory_space<vmem>>, %arg3: memref<1x256xf32, #tpu.memory_space<vmem>>, %arg4: memref<64x256xbf16, #tpu.memory_space<vmem>>) attributes {dimension_semantics = [#tpu.dimension_semantics<parallel>], iteration_bounds = array<i64: 2>, scalar_prefetch = 0 : i64, scratch_operands = 0 : i64, tpu.core_type = #tpu.core_type<tc>, window_params = [{transform_indices = @transform_0, window_bounds = array<i64: 64, 1152>}, {pipeline_mode = #tpu.pipeline_mode<synchronous>, transform_indices = @transform_1, window_bounds = array<i64: 1152, 256>}, {pipeline_mode = #tpu.pipeline_mode<synchronous>, transform_indices = @transform_2, window_bounds = array<i64: 1, 256>}, {transform_indices = @transform_3, window_bounds = array<i64: 64, 256>}]} {
    %c0 = arith.constant 0 : index
    %c0_0 = arith.constant 0 : index
    %0 = vector.load %arg1[%c0, %c0_0] : memref<64x1152xbf16, #tpu.memory_space<vmem>>, vector<64x1152xbf16>
    %c0_1 = arith.constant 0 : index
    %c0_2 = arith.constant 0 : index
    %1 = vector.load %arg2[%c0_1, %c0_2] : memref<1152x256xbf16, #tpu.memory_space<vmem>>, vector<1152x256xbf16>
    %cst = arith.constant dense<0.000000e+00> : vector<64x256xf32>
    %2 = tpu.matmul %0, %1, %cst {dimension_numbers = #tpu.dot_dimension_numbers<[1], [0], [0], [1], [0, 0, 1, 1], [], []>} : vector<64x1152xbf16>, vector<1152x256xbf16>, vector<64x256xf32> -> vector<64x256xf32>
    %c0_3 = arith.constant 0 : index
    %c0_4 = arith.constant 0 : index
    %3 = vector.load %arg3[%c0_3, %c0_4] : memref<1x256xf32, #tpu.memory_space<vmem>>, vector<1x256xf32>
    %4 = vector.broadcast %3 : vector<1x256xf32> to vector<64x256xf32>
    %5 = arith.addf %2, %4 : vector<64x256xf32>
    %cst_5 = arith.constant 0.000000e+00 : f32
    %6 = vector.broadcast %cst_5 : f32 to vector<64x256xf32>
    %7 = arith.maximumf %5, %6 : vector<64x256xf32>
    %8 = arith.truncf %7 : vector<64x256xf32> to vector<64x256xbf16>
    %c0_6 = arith.constant 0 : index
    %c0_7 = arith.constant 0 : index
    %9 = vector.load %arg4[%c0_6, %c0_7] : memref<64x256xbf16, #tpu.memory_space<vmem>>, vector<64x256xbf16>
    tpu.vector_store %arg4[%c0_6, %c0_7], %8 {strides = array<i32>} : memref<64x256xbf16, #tpu.memory_space<vmem>>, vector<64x256xbf16>,
    return
  }
  func.func @transform_0(%arg0: i32) -> (i32, i32) {
    %c0_i32 = arith.constant 0 : i32
    %c0_i32_0 = arith.constant 0 : i32
    return %arg0, %c0_i32 : i32, i32
  }
  func.func @transform_1(%arg0: i32) -> (i32, i32) {
    %c0_i32 = arith.constant 0 : i32
    %c0_i32_0 = arith.constant 0 : i32
    %c0_i32_1 = arith.constant 0 : i32
    return %c0_i32, %c0_i32_0 : i32, i32
  }
  func.func @transform_2(%arg0: i32) -> (i32, i32) {
    %c0_i32 = arith.constant 0 : i32
    %c0_i32_0 = arith.constant 0 : i32
    %c0_i32_1 = arith.constant 0 : i32
    return %c0_i32, %c0_i32_0 : i32, i32
  }
  func.func @transform_3(%arg0: i32) -> (i32, i32) {
    %c0_i32 = arith.constant 0 : i32
    %c0_i32_0 = arith.constant 0 : i32
    return %arg0, %c0_i32 : i32, i32
  }
}

module attributes {stable_mosaic.version = 11 : i64} {
  func.func @_matmul_bias_act_kernel(%arg0: i32, %arg1: memref<128x576xbf16, #tpu.memory_space<vmem>>, %arg2: memref<576x12xbf16, #tpu.memory_space<vmem>>, %arg3: memref<1x12xf32, #tpu.memory_space<vmem>>, %arg4: memref<128x12xf32, #tpu.memory_space<vmem>>) attributes {dimension_semantics = [#tpu.dimension_semantics<parallel>], iteration_bounds = array<i64: 4>, scalar_prefetch = 0 : i64, scratch_operands = 0 : i64, tpu.core_type = #tpu.core_type<tc>, window_params = [{transform_indices = @transform_0, window_bounds = array<i64: 128, 576>}, {pipeline_mode = #tpu.pipeline_mode<synchronous>, transform_indices = @transform_1, window_bounds = array<i64: 576, 12>}, {pipeline_mode = #tpu.pipeline_mode<synchronous>, transform_indices = @transform_2, window_bounds = array<i64: 1, 12>}, {transform_indices = @transform_3, window_bounds = array<i64: 128, 12>}]} {
    %c0 = arith.constant 0 : index
    %c0_0 = arith.constant 0 : index
    %0 = vector.load %arg1[%c0, %c0_0] : memref<128x576xbf16, #tpu.memory_space<vmem>>, vector<128x576xbf16>
    %c0_1 = arith.constant 0 : index
    %c0_2 = arith.constant 0 : index
    %1 = vector.load %arg2[%c0_1, %c0_2] : memref<576x12xbf16, #tpu.memory_space<vmem>>, vector<576x12xbf16>
    %cst = arith.constant dense<0.000000e+00> : vector<128x12xf32>
    %2 = tpu.matmul %0, %1, %cst {dimension_numbers = #tpu.dot_dimension_numbers<[1], [0], [0], [1], [0, 0, 1, 1], [], []>} : vector<128x576xbf16>, vector<576x12xbf16>, vector<128x12xf32> -> vector<128x12xf32>
    %c0_3 = arith.constant 0 : index
    %c0_4 = arith.constant 0 : index
    %3 = vector.load %arg3[%c0_3, %c0_4] : memref<1x12xf32, #tpu.memory_space<vmem>>, vector<1x12xf32>
    %4 = vector.broadcast %3 : vector<1x12xf32> to vector<128x12xf32>
    %5 = arith.addf %2, %4 : vector<128x12xf32>
    %6 = arith.negf %5 : vector<128x12xf32>
    %7 = math.exp %6 : vector<128x12xf32>
    %cst_5 = arith.constant 1.000000e+00 : f32
    %8 = vector.broadcast %cst_5 : f32 to vector<128x12xf32>
    %9 = arith.addf %8, %7 : vector<128x12xf32>
    %10 = arith.divf %8, %9 : vector<128x12xf32>
    %c0_6 = arith.constant 0 : index
    %c0_7 = arith.constant 0 : index
    %11 = vector.load %arg4[%c0_6, %c0_7] : memref<128x12xf32, #tpu.memory_space<vmem>>, vector<128x12xf32>
    tpu.vector_store %arg4[%c0_6, %c0_7], %10 {strides = array<i32>} : memref<128x12xf32, #tpu.memory_space<vmem>>, vector<128x12xf32>,
    return
  }
  func.func @transform_0(%arg0: i32) -> (i32, i32) {
    %c0_i32 = arith.constant 0 : i32
    %c0_i32_0 = arith.constant 0 : i32
    return %arg0, %c0_i32 : i32, i32
  }
  func.func @transform_1(%arg0: i32) -> (i32, i32) {
    %c0_i32 = arith.constant 0 : i32
    %c0_i32_0 = arith.constant 0 : i32
    %c0_i32_1 = arith.constant 0 : i32
    return %c0_i32, %c0_i32_0 : i32, i32
  }
  func.func @transform_2(%arg0: i32) -> (i32, i32) {
    %c0_i32 = arith.constant 0 : i32
    %c0_i32_0 = arith.constant 0 : i32
    %c0_i32_1 = arith.constant 0 : i32
    return %c0_i32, %c0_i32_0 : i32, i32
  }
  func.func @transform_3(%arg0: i32) -> (i32, i32) {
    %c0_i32 = arith.constant 0 : i32
    %c0_i32_0 = arith.constant 0 : i32
    return %arg0, %c0_i32 : i32, i32
  }
}

</mosaic_0001>

<bundles_post_ra>
// kernel: vae_forward.7
= control target key start
LH: loop header
LB: loop body
LE: loop exit
PB: predicated region body
PF: predicated region fallthrough
CT: control target
= control target key end

     0   :  { %s686_s12 = smov 0   ;;  %s764_s0 = inlined_call_operand.vmem [shape: bf16[512,48], index: 0, kind: input, shape index: {}]   ;;  %s765_s1 = inlined_call_operand.vmem [shape: bf16[48,64], index: 1, kind: input, shape index: {}]   ;;  %s766_s2 = inlined_call_operand.vmem [shape: f32[1,64], index: 2, kind: input, shape index: {}]   ;;  %s767_s3 = inlined_call_operand.vmem [shape: bf16[512,64], index: 3, kind: output, shape index: {}]  }
   0x1 LB: > { %s537_s13 = sadd.s32 4294967295, %s664_s12   ;;  %p541_p0 = scmp.ge.s32.totalorder %s664_s12, 1  ;;  %s664_s12 = sphi %s686_s12, %s13_s12  }
   0x2   : > { %p138_p1 = scmp.lt.s32.totalorder %s664_s12, 5 }
   0x4   : > { %p139_p2 = pnand %p541_p0, %p138_p1 }
   0x5   : > { %v647_v0 = vld [vmem:[%s765_s1] sm:$0xff] (!%p139_p2)   ;;  %s542_s16 = sshll.u32 (!%p139_p2), %s537_s13, 4  ;;  %v648_v1 = vld [vmem:[%s765_s1 + $0x8] sm:$0xff] (!%p139_p2)   ;;  %v649_v2 = vld [vmem:[%s765_s1 + $0x10] sm:$0xff] (!%p139_p2)   ;;  %vm262_vm0 = vcmask (!%p139_p2), 392192   ;;  %vm464_vm1 = vcmask (!%p139_p2), 519168  }
   0x6   : > { %142 = sbr.rel (%p139_p2) target bundleno = 249 (0xf9), region = 32  ;;  %p163_p3 = scmp.lt.s32.totalorder (!%p139_p2), %s542_s16, 63  ;;  %611 = vmatprep.subr.bf16.mxu0 (!%p139_p2), %v647_v0  ;;  %633 = vmatprep.subr.bf16.mxu1 (!%p139_p2), %v647_v0  ;;  %v546_v11 = vld [vmem:[%s766_s2] ss:$0 sm:$0xff] (!%p139_p2) }
   0x7   : > { %612 = vmatpush3.bf16.msra.mxu0 (!%p139_p2), %v647_v0  ;;  %636 = vmatpush3.bf16.msra.mxu1 (!%p139_p2), %v647_v0 }
   0x8   : > { %613 = vmatprep.subr.bf16.mxu0 (!%p139_p2), %v648_v1  ;;  %634 = vmatprep.subr.bf16.mxu1 (!%p139_p2), %v648_v1 }
   0xb   : > { %614 = vmatpush3.bf16.msra.mxu0 (!%p139_p2), %v648_v1  ;;  %637 = vmatpush3.bf16.msra.mxu1 (!%p139_p2), %v648_v1 }
   0xc   : > { %615 = vmatprep.subr.bf16.mxu0 (!%p139_p2), %v649_v2  ;;  %635 = vmatprep.subr.bf16.mxu1 (!%p139_p2), %v649_v2 }
   0xd   : > { %s769_s16 = smov (!%p163_p3, %s542_s16), 63 }
   0xe   : > { %s543_s21 = sshll.u32 %s769_s16, 2 }
   0xf   : > { %s166_s24 = scalar_lea.vmem %s764_s0, %s543_s21  ;;  %616 = vmatpush3.bf16.msra.mxu0 %v649_v2  ;;  %638 = vmatpush3.bf16.msra.mxu1 %v649_v2  ;;  %s727_s29 = scalar_lea.vmem %s767_s3, %s543_s21 }
  0x10   : > { %v650_v3 = vld [vmem:[%s166_s24] sm:$0xff]   ;;  %v652_v5 = vld [vmem:[%s166_s24 + $0x8] sm:$0xff]   ;;  %v654_v7 = vld [vmem:[%s166_s24 + $0x10] sm:$0xff]  }
  0x11   : > { %v651_v4 = vld [vmem:[%s166_s24 + $0x20] sm:$0xff]   ;;  %617 = vmatprep.mubr.msk.bf16.mxu0 %vm262_vm0, %v650_v3  ;;  %v653_v6 = vld [vmem:[%s166_s24 + $0x28] sm:$0xff]   ;;  %v655_v8 = vld [vmem:[%s166_s24 + $0x30] sm:$0xff]  }
  0x12   : > { %625 = vmatprep.mubr.msk.bf16.mxu1 %vm262_vm0, %v651_v4  ;;  %618 = vmatmul.mubr.msk.bf16.vlgmr.msra.gmra.mrb[0].mxu0 %vm262_vm0, %v652_v5  ;;  %v656_v9 = vld [vmem:[%s166_s24 + $0x18] sm:$0xff]  }
  0x13   : > { %626 = vmatmul.mubr.msk.bf16.vlgmr.msra.gmra.mrb[0].mxu1 %vm262_vm0, %v653_v6  ;;  %621 = vmatprep.mubr.msk.bf16.mxu0 %vm262_vm0, %v654_v7  ;;  %v657_v10 = vld [vmem:[%s166_s24 + $0x38] sm:$0xff]  }
  0x14   : > { %629 = vmatprep.mubr.msk.bf16.mxu1 %vm262_vm0, %v655_v8 }
  0x1a   : > { %622 = vmatmul.mubr.msk.bf16.gmra.mrb[4].mxu0 %vm262_vm0, %v656_v9 }
  0x1b   : > { %630 = vmatmul.mubr.msk.bf16.gmra.mrb[4].mxu1 %vm262_vm0, %v657_v10 }
  0xe5   : > { %v619_v12 = vpop.f32.mrb[0].mxu0 }
  0xe6   : > { %v627_v13 = vpop.f32.mrb[0].mxu1  ;;  %v330_v14 = vadd.f32 %v619_v12, %v546_v11  ;;  %v321_v16 = vpop.f32.mrb[1].mxu0 }
  0xe7   : > { %v362_v15 = vadd.f32 %v627_v13, %v546_v11  ;;  %v353_v17 = vpop.f32.mrb[1].mxu1  ;;  %v322_v18 = vadd.f32 %v546_v11, %v321_v16  ;;  %v620_v20 = vpop.f32.mrb[2].mxu0 }
  0xe8   : > { %v354_v19 = vadd.f32 %v546_v11, %v353_v17  ;;  %v628_v21 = vpop.f32.mrb[2].mxu1  ;;  %v386_v22 = vmax.f32 %v330_v14, 0.0  ;;  %v333_v24 = vadd.f32 %v620_v20, %v546_v11  ;;  %v324_v26 = vpop.f32.mrb[3].mxu0 }
  0xe9   : > { %v394_v23 = vmax.f32 %v362_v15, 0.0  ;;  %v365_v25 = vadd.f32 %v628_v21, %v546_v11  ;;  %v356_v27 = vpop.f32.mrb[3].mxu1  ;;  %v384_v28 = vmax.f32 %v322_v18, 0.0  ;;  %v325_v30 = vadd.f32 %v546_v11, %v324_v26 }
  0xea   : > { %v392_v29 = vmax.f32 %v354_v19, 0.0  ;;  %v357_v31 = vadd.f32 %v546_v11, %v356_v27  ;;  %v586_v32 = vpack.c.bf16 %v386_v22, %v386_v22  ;;  %v387_v34 = vmax.f32 %v333_v24, 0.0 }
  0xeb   : > { %v594_v33 = vpack.c.bf16 %v394_v23, %v394_v23  ;;  %v395_v35 = vmax.f32 %v365_v25, 0.0  ;;  %v584_v36 = vpack.c.bf16 %v384_v28, %v384_v28  ;;  %v385_v38 = vmax.f32 %v325_v30, 0.0 }
  0xec   : > { %v592_v37 = vpack.c.bf16 %v392_v29, %v392_v29  ;;  %v393_v39 = vmax.f32 %v357_v31, 0.0  ;;  %467 = vst.msk [vmem:[%s727_s29 + $0x8] sm:$0xf] %vm464_vm1, %v586_v32  ;;  %v587_v40 = vpack.c.bf16 %v387_v34, %v387_v34 }
  0xed   : > { %475 = vst.msk [vmem:[%s727_s29 + $0x28] sm:$0xf] %vm464_vm1, %v594_v33  ;;  %v595_v41 = vpack.c.bf16 %v395_v35, %v395_v35  ;;  %465 = vst.msk [vmem:[%s727_s29] sm:$0xf] %vm464_vm1, %v584_v36  ;;  %v585_v42 = vpack.c.bf16 %v385_v38, %v385_v38  ;;  %v623_v44 = vpop.f32.mrb[4].mxu0 }
  0xee   : > { %473 = vst.msk [vmem:[%s727_s29 + $0x20] sm:$0xf] %vm464_vm1, %v592_v37  ;;  %v593_v43 = vpack.c.bf16 %v393_v39, %v393_v39  ;;  %v631_v45 = vpop.f32.mrb[4].mxu1  ;;  %468 = vst.msk [vmem:[%s727_s29 + $0xc] sm:$0xf] %vm464_vm1, %v587_v40  ;;  %v346_v46 = vadd.f32 %v623_v44, %v546_v11  ;;  %v337_v48 = vpop.f32.mrb[5].mxu0 }
  0xef   : > { %476 = vst.msk [vmem:[%s727_s29 + $0x2c] sm:$0xf] %vm464_vm1, %v595_v41  ;;  %v378_v47 = vadd.f32 %v631_v45, %v546_v11  ;;  %v369_v49 = vpop.f32.mrb[5].mxu1  ;;  %466 = vst.msk [vmem:[%s727_s29 + $0x4] sm:$0xf] %vm464_vm1, %v585_v42  ;;  %v338_v50 = vadd.f32 %v546_v11, %v337_v48  ;;  %v624_v52 = vpop.f32.mrb[6].mxu0 }
  0xf0   : > { %474 = vst.msk [vmem:[%s727_s29 + $0x24] sm:$0xf] %vm464_vm1, %v593_v43  ;;  %v370_v51 = vadd.f32 %v546_v11, %v369_v49  ;;  %v632_v53 = vpop.f32.mrb[6].mxu1  ;;  %v390_v54 = vmax.f32 %v346_v46, 0.0  ;;  %v349_v56 = vadd.f32 %v624_v52, %v546_v11  ;;  %v340_v58 = vpop.f32.mrb[7].mxu0 }
  0xf1   : > { %v398_v55 = vmax.f32 %v378_v47, 0.0  ;;  %v381_v57 = vadd.f32 %v632_v53, %v546_v11  ;;  %v372_v59 = vpop.f32.mrb[7].mxu1  ;;  %v388_v60 = vmax.f32 %v338_v50, 0.0  ;;  %v341_v62 = vadd.f32 %v546_v11, %v340_v58 }
  0xf2   : > { %v396_v61 = vmax.f32 %v370_v51, 0.0  ;;  %v373_v63 = vadd.f32 %v546_v11, %v372_v59  ;;  %v590_v0 = vpack.c.bf16 %v390_v54, %v390_v54  ;;  %v391_v2 = vmax.f32 %v349_v56, 0.0 }
  0xf3   : > { %v598_v1 = vpack.c.bf16 %v398_v55, %v398_v55  ;;  %v399_v3 = vmax.f32 %v381_v57, 0.0  ;;  %v588_v4 = vpack.c.bf16 %v388_v60, %v388_v60  ;;  %v389_v6 = vmax.f32 %v341_v62, 0.0 }
  0xf4   : > { %v596_v5 = vpack.c.bf16 %v396_v61, %v396_v61  ;;  %v397_v7 = vmax.f32 %v373_v63, 0.0  ;;  %471 = vst.msk [vmem:[%s727_s29 + $0x18] sm:$0xf] %vm464_vm1, %v590_v0  ;;  %v591_v8 = vpack.c.bf16 %v391_v2, %v391_v2 }
  0xf5   : > { %479 = vst.msk [vmem:[%s727_s29 + $0x38] sm:$0xf] %vm464_vm1, %v598_v1  ;;  %v599_v9 = vpack.c.bf16 %v399_v3, %v399_v3  ;;  %469 = vst.msk [vmem:[%s727_s29 + $0x10] sm:$0xf] %vm464_vm1, %v588_v4  ;;  %v589_v10 = vpack.c.bf16 %v389_v6, %v389_v6 }
  0xf6   : > { %477 = vst.msk [vmem:[%s727_s29 + $0x30] sm:$0xf] %vm464_vm1, %v596_v5  ;;  %v597_v11 = vpack.c.bf16 %v397_v7, %v397_v7  ;;  %472 = vst.msk [vmem:[%s727_s29 + $0x1c] sm:$0xf] %vm464_vm1, %v591_v8 }
  0xf7   : > { %480 = vst.msk [vmem:[%s727_s29 + $0x3c] sm:$0xf] %vm464_vm1, %v599_v9  ;;  %470 = vst.msk [vmem:[%s727_s29 + $0x14] sm:$0xf] %vm464_vm1, %v589_v10 }
  0xf8   : > { %478 = vst.msk [vmem:[%s727_s29 + $0x34] sm:$0xf] %vm464_vm1, %v597_v11 }
  0xf9 PF: > { %s13_s12 = sadd.s32 1, %s664_s12  }
  0xfa   : > { %p10_p4 = scmp.ge.s32.totalorder %s13_s12, 6  }
  0xfc   :  { %12 = sbr.rel (!%p10_p4) target bundleno = 1 (0x1), region = 62 }

// kernel: vae_forward.8
= control target key start
LH: loop header
LB: loop body
LE: loop exit
PB: predicated region body
PF: predicated region fallthrough
CT: control target
= control target key end

     0   :  { %s1662_s12 = smov 0   ;;  %s1941_s0 = inlined_call_operand.vmem [shape: bf16[128,1024], index: 0, kind: input, shape index: {}]   ;;  %s1942_s1 = inlined_call_operand.vmem [shape: bf16[1024,128], index: 1, kind: input, shape index: {}]   ;;  %s1943_s2 = inlined_call_operand.vmem [shape: f32[1,128], index: 2, kind: input, shape index: {}]   ;;  %s1944_s3 = inlined_call_operand.vmem [shape: bf16[128,128], index: 3, kind: output, shape index: {}]  }
   0x1 LB: > { %s1253_s13 = sadd.s32 4294967295, %s1640_s12   ;;  %p1257_p0 = scmp.ge.s32.totalorder %s1640_s12, 1  ;;  %s1640_s12 = sphi %s1662_s12, %s13_s12  }
   0x2   : > { %p139_p1 = scmp.lt.s32.totalorder %s1640_s12, 3 }
   0x4   : > { %p140_p2 = pnand %p1257_p0, %p139_p1 }
   0x5   : > { %v1570_v0 = vld [vmem:[%s1942_s1 + $0x40] sm:$0xff] (!%p140_p2)   ;;  %v1574_v4 = vld [vmem:[%s1942_s1 + $0x48] sm:$0xff] (!%p140_p2)   ;;  %v1578_v8 = vld [vmem:[%s1942_s1 + $0x50] sm:$0xff] (!%p140_p2)   ;;  %s1258_s21 = sshll.u32 (!%p140_p2), %s1253_s13, 3 }
   0x6   : > { %143 = sbr.rel (%p140_p2) target bundleno = 321 (0x141), region = 32  ;;  %v1571_v1 = vld [vmem:[%s1942_s1 + $0xc0] sm:$0xff] (!%p140_p2)   ;;  %1402 = vmatprep.subr.bf16.mxu0 (!%p140_p2), %v1570_v0  ;;  %v1575_v5 = vld [vmem:[%s1942_s1 + $0xc8] sm:$0xff] (!%p140_p2)   ;;  %v1579_v9 = vld [vmem:[%s1942_s1 + $0xd0] sm:$0xff] (!%p140_p2)   ;;  %p165_p3 = scmp.lt.s32.totalorder (!%p140_p2), %s1258_s21, 15 }
   0x7   : > { %v1572_v2 = vld [vmem:[%s1942_s1] sm:$0xff] (!%p140_p2)   ;;  %1442 = vmatprep.subr.bf16.mxu1 (!%p140_p2), %v1571_v1  ;;  %v1576_v6 = vld [vmem:[%s1942_s1 + $0x8] sm:$0xff] (!%p140_p2)   ;;  %v1580_v10 = vld [vmem:[%s1942_s1 + $0x10] sm:$0xff] (!%p140_p2)  }
   0x8   : > { %v1573_v3 = vld [vmem:[%s1942_s1 + $0x80] sm:$0xff] (!%p140_p2)   ;;  %1403 = vmatpush3.bf16.msra.mxu0 (!%p140_p2), %v1572_v2  ;;  %v1577_v7 = vld [vmem:[%s1942_s1 + $0x88] sm:$0xff] (!%p140_p2)   ;;  %v1581_v11 = vld [vmem:[%s1942_s1 + $0x90] sm:$0xff] (!%p140_p2)  }
   0x9   : > { %1443 = vmatpush3.bf16.msra.mxu1 (!%p140_p2), %v1573_v3  ;;  %1404 = vmatprep.subr.bf16.mxu0 (!%p140_p2), %v1574_v4  ;;  %v1582_v12 = vld [vmem:[%s1942_s1 + $0x58] sm:$0xff] (!%p140_p2)   ;;  %v1586_v16 = vld [vmem:[%s1942_s1 + $0x60] sm:$0xff] (!%p140_p2)   ;;  %v1590_v20 = vld [vmem:[%s1942_s1 + $0x68] sm:$0xff] (!%p140_p2)  }
   0xa   : > { %1444 = vmatprep.subr.bf16.mxu1 (!%p140_p2), %v1575_v5  ;;  %v1583_v13 = vld [vmem:[%s1942_s1 + $0xd8] sm:$0xff] (!%p140_p2)   ;;  %v1587_v17 = vld [vmem:[%s1942_s1 + $0xe0] sm:$0xff] (!%p140_p2)   ;;  %v1591_v21 = vld [vmem:[%s1942_s1 + $0xe8] sm:$0xff] (!%p140_p2)  }
   0xb   : > { %v1584_v14 = vld [vmem:[%s1942_s1 + $0x18] sm:$0xff] (!%p140_p2)   ;;  %v1588_v18 = vld [vmem:[%s1942_s1 + $0x20] sm:$0xff] (!%p140_p2)   ;;  %v1592_v22 = vld [vmem:[%s1942_s1 + $0x28] sm:$0xff] (!%p140_p2)  }
   0xc   : > { %1405 = vmatpush3.bf16.msra.mxu0 (!%p140_p2), %v1576_v6  ;;  %v1585_v15 = vld [vmem:[%s1942_s1 + $0x98] sm:$0xff] (!%p140_p2)   ;;  %v1589_v19 = vld [vmem:[%s1942_s1 + $0xa0] sm:$0xff] (!%p140_p2)   ;;  %v1593_v23 = vld [vmem:[%s1942_s1 + $0xa8] sm:$0xff] (!%p140_p2)  }
   0xd   : > { %1445 = vmatpush3.bf16.msra.mxu1 %v1577_v7  ;;  %1406 = vmatprep.subr.bf16.mxu0 %v1578_v8  ;;  %s1946_s21 = smov (!%p165_p3, %s1258_s21), 15  ;;  %v1594_v24 = vld [vmem:[%s1942_s1 + $0x70] sm:$0xff]   ;;  %v1598_v28 = vld [vmem:[%s1942_s1 + $0x78] sm:$0xff]   ;;  %v1602_v40 = vld [vmem:[%s1942_s1 + $0x140] sm:$0xff]  }
   0xe   : > { %1446 = vmatprep.subr.bf16.mxu1 %v1579_v9  ;;  %v1595_v25 = vld [vmem:[%s1942_s1 + $0xf0] sm:$0xff]   ;;  %s1370_s18 = sshll.u32 %s1946_s21, 5  ;;  %v1599_v29 = vld [vmem:[%s1942_s1 + $0xf8] sm:$0xff]   ;;  %v1603_v41 = vld [vmem:[%s1942_s1 + $0x1c0] sm:$0xff]  }
   0xf   : > { %v1596_v26 = vld [vmem:[%s1942_s1 + $0x30] sm:$0xff]   ;;  %s1768_s28 = scalar_lea.vmem %s1941_s0, %s1370_s18  ;;  %v1600_v30 = vld [vmem:[%s1942_s1 + $0x38] sm:$0xff]   ;;  %v1604_v42 = vld [vmem:[%s1942_s1 + $0x100] sm:$0xff]  }
  0x10   : > { %1407 = vmatpush3.bf16.msra.mxu0 %v1580_v10  ;;  %v1597_v27 = vld [vmem:[%s1942_s1 + $0xb0] sm:$0xff]   ;;  %v1601_v31 = vld [vmem:[%s1942_s1 + $0xb8] sm:$0xff]   ;;  %v178_v32 = vld [vmem:[%s1768_s28] sm:$0xff] }
  0x11   : > { %1447 = vmatpush3.bf16.msra.mxu1 %v1581_v11  ;;  %1408 = vmatprep.subr.bf16.mxu0 %v1582_v12  ;;  %v182_v33 = vld [vmem:[%s1768_s28 + $0x20] sm:$0xff]  ;;  %v179_v34 = vld [vmem:[%s1768_s28 + $0x8] sm:$0xff]  ;;  %v1610_v56 = vld [vmem:[%s1942_s1 + $0x150] sm:$0xff]  }
  0x12   : > { %1448 = vmatprep.subr.bf16.mxu1 %v1583_v13  ;;  %v1264_v35 = vcombine.low %v178_v32, %v182_v33  ;;  %v1265_v36 = vcombine.high %v178_v32, %v182_v33  ;;  %v183_v37 = vld [vmem:[%s1768_s28 + $0x28] sm:$0xff]  ;;  %v1605_v43 = vld [vmem:[%s1942_s1 + $0x180] sm:$0xff]   ;;  %v1611_v57 = vld [vmem:[%s1942_s1 + $0x1d0] sm:$0xff]  }
  0x13   : > { %v1266_v38 = vcombine.low %v179_v34, %v183_v37  ;;  %v1267_v39 = vcombine.high %v179_v34, %v183_v37  ;;  %v1606_v44 = vld [vmem:[%s1942_s1 + $0x148] sm:$0xff]   ;;  %v186_v48 = vld [vmem:[%s1768_s28 + $0x40] sm:$0xff]  ;;  %v1612_v58 = vld [vmem:[%s1942_s1 + $0x110] sm:$0xff]  }
  0x14   : > { %1409 = vmatpush3.bf16.msra.mxu0 %v1584_v14  ;;  %921 = vmatprep.mubr.bf16.mxu0 %v1265_v36  ;;  %v1607_v45 = vld [vmem:[%s1942_s1 + $0x1c8] sm:$0xff]   ;;  %v190_v49 = vld [vmem:[%s1768_s28 + $0x60] sm:$0xff]  ;;  %v1613_v59 = vld [vmem:[%s1942_s1 + $0x190] sm:$0xff]  }
  0x15   : > { %1449 = vmatpush3.bf16.msra.mxu1 %v1585_v15  ;;  %1410 = vmatprep.subr.bf16.mxu0 %v1586_v16  ;;  %v1608_v46 = vld [vmem:[%s1942_s1 + $0x108] sm:$0xff]   ;;  %v1273_v50 = vcombine.high %v186_v48, %v190_v49  ;;  %v1272_v53 = vcombine.low %v186_v48, %v190_v49  ;;  %v1614_v60 = vld [vmem:[%s1942_s1 + $0x158] sm:$0xff]   ;;  %v194_v0 = vld [vmem:[%s1768_s28 + $0x80] sm:$0xff] }
  0x16   : > { %1450 = vmatprep.subr.bf16.mxu1 %v1587_v17  ;;  %986 = vmatprep.mubr.bf16.mxu1 %v1267_v39  ;;  %v1609_v47 = vld [vmem:[%s1942_s1 + $0x188] sm:$0xff]   ;;  %v1615_v61 = vld [vmem:[%s1942_s1 + $0x1d8] sm:$0xff]   ;;  %v198_v1 = vld [vmem:[%s1768_s28 + $0xa0] sm:$0xff] }
  0x17   : > { %v187_v51 = vld [vmem:[%s1768_s28 + $0x48] sm:$0xff]  ;;  %v1616_v62 = vld [vmem:[%s1942_s1 + $0x118] sm:$0xff]   ;;  %v1281_v4 = vcombine.high %v194_v0, %v198_v1  ;;  %v1280_v6 = vcombine.low %v194_v0, %v198_v1  ;;  %v1618_v8 = vld [vmem:[%s1942_s1 + $0x160] sm:$0xff]  }
  0x18   : > { %1411 = vmatpush3.bf16.msra.mxu0 %v1588_v18  ;;  %v191_v52 = vld [vmem:[%s1768_s28 + $0x68] sm:$0xff]  ;;  %v1617_v63 = vld [vmem:[%s1942_s1 + $0x198] sm:$0xff]   ;;  %v1619_v9 = vld [vmem:[%s1942_s1 + $0x1e0] sm:$0xff]  }
  0x19   : > { %1451 = vmatpush3.bf16.msra.mxu1 %v1589_v19  ;;  %1412 = vmatprep.subr.bf16.mxu0 %v1590_v20  ;;  %v1275_v54 = vcombine.high %v187_v51, %v191_v52  ;;  %v1274_v55 = vcombine.low %v187_v51, %v191_v52  ;;  %v195_v2 = vld [vmem:[%s1768_s28 + $0x88] sm:$0xff]  ;;  %v1620_v10 = vld [vmem:[%s1942_s1 + $0x120] sm:$0xff]   ;;  %v180_v32 = vld [vmem:[%s1768_s28 + $0x10] sm:$0xff] }
  0x1a   : > { %1452 = vmatprep.subr.bf16.mxu1 %v1591_v21  ;;  %v199_v3 = vld [vmem:[%s1768_s28 + $0xa8] sm:$0xff]  ;;  %v1621_v11 = vld [vmem:[%s1942_s1 + $0x1a0] sm:$0xff]   ;;  %v184_v33 = vld [vmem:[%s1768_s28 + $0x30] sm:$0xff] }
  0x1b   : > { %v1283_v5 = vcombine.high %v195_v2, %v199_v3  ;;  %v1282_v7 = vcombine.low %v195_v2, %v199_v3  ;;  %v1622_v12 = vld [vmem:[%s1942_s1 + $0x168] sm:$0xff]   ;;  %v202_v16 = vld [vmem:[%s1768_s28 + $0xc0] sm:$0xff]  ;;  %v1268_v34 = vcombine.low %v180_v32, %v184_v33  ;;  %v181_v36 = vld [vmem:[%s1768_s28 + $0x18] sm:$0xff] }
  0x1c   : > { %1413 = vmatpush3.bf16.msra.mxu0 %v1592_v22  ;;  %v1623_v13 = vld [vmem:[%s1942_s1 + $0x1e8] sm:$0xff]   ;;  %v206_v17 = vld [vmem:[%s1768_s28 + $0xe0] sm:$0xff]  ;;  %v185_v37 = vld [vmem:[%s1768_s28 + $0x38] sm:$0xff] }
  0x1d   : > { %1453 = vmatpush3.bf16.msra.mxu1 %v1593_v23  ;;  %1414 = vmatprep.subr.bf16.mxu0 %v1594_v24  ;;  %v1624_v14 = vld [vmem:[%s1942_s1 + $0x128] sm:$0xff]   ;;  %v1289_v19 = vcombine.high %v202_v16, %v206_v17  ;;  %v1288_v21 = vcombine.low %v202_v16, %v206_v17  ;;  %v1626_v24 = vld [vmem:[%s1942_s1 + $0x170] sm:$0xff]   ;;  %v1270_v39 = vcombine.low %v181_v36, %v185_v37  ;;  %v197_v48 = vld [vmem:[%s1768_s28 + $0x98] sm:$0xff] }
  0x1e   : > { %1454 = vmatprep.subr.bf16.mxu1 %v1595_v25  ;;  %v1625_v15 = vld [vmem:[%s1942_s1 + $0x1a8] sm:$0xff]   ;;  %v1627_v25 = vld [vmem:[%s1942_s1 + $0x1f0] sm:$0xff]   ;;  %v201_v49 = vld [vmem:[%s1768_s28 + $0xb8] sm:$0xff] }
  0x1f   : > { %v203_v18 = vld [vmem:[%s1768_s28 + $0xc8] sm:$0xff]  ;;  %v1263_v2 = vld [vmem:[%s1943_s2] ss:$0 sm:$0xff] }
  0x20   : > { %1415 = vmatpush3.bf16.msra.mxu0 %v1596_v26  ;;  %v207_v20 = vld [vmem:[%s1768_s28 + $0xe8] sm:$0xff]  ;;  %v1628_v26 = vld [vmem:[%s1942_s1 + $0x130] sm:$0xff]  }
  0x21   : > { %1455 = vmatpush3.bf16.msra.mxu1 %v1597_v27  ;;  %1416 = vmatprep.subr.bf16.mxu0 %v1598_v28  ;;  %v1291_v22 = vcombine.high %v203_v18, %v207_v20  ;;  %v1290_v23 = vcombine.low %v203_v18, %v207_v20  ;;  %v1629_v27 = vld [vmem:[%s1942_s1 + $0x1b0] sm:$0xff]   ;;  %v1630_v28 = vld [vmem:[%s1942_s1 + $0x178] sm:$0xff]  }
  0x22   : > { %1456 = vmatprep.subr.bf16.mxu1 %v1599_v29  ;;  %v1631_v29 = vld [vmem:[%s1942_s1 + $0x1f8] sm:$0xff]  }
  0x24   : > { %1417 = vmatpush3.bf16.msra.mxu0 %v1600_v30  ;;  %v1632_v30 = vld [vmem:[%s1942_s1 + $0x138] sm:$0xff]  }
  0x25   : > { %1457 = vmatpush3.bf16.msra.mxu1 %v1601_v31  ;;  %1482 = vmatprep.subr.bf16.mxu0 %v1602_v40  ;;  %v1633_v31 = vld [vmem:[%s1942_s1 + $0x1b8] sm:$0xff]   ;;  %v1271_v40 = vcombine.high %v181_v36, %v185_v37 }
  0x26   : > { %1522 = vmatprep.subr.bf16.mxu1 %v1603_v41  ;;  %v192_v41 = vld [vmem:[%s1768_s28 + $0x70] sm:$0xff] }
  0x27   : > { %922 = vmatmul.mubr.bf16.vlgmr.msra.gmra.mrb[0].mxu0 %v1264_v35  ;;  %v1269_v35 = vcombine.high %v180_v32, %v184_v33 }
  0x28   : > { %987 = vmatmul.mubr.bf16.vlgmr.msra.gmra.mrb[0].mxu1 %v1266_v38  ;;  %1483 = vmatpush3.bf16.msra.mxu0 %v1604_v42  ;;  %v188_v38 = vld [vmem:[%s1768_s28 + $0x50] sm:$0xff]  ;;  %v189_v42 = vld [vmem:[%s1768_s28 + $0x58] sm:$0xff] }
  0x29   : > { %1523 = vmatpush3.bf16.msra.mxu1 %v1605_v43  ;;  %1484 = vmatprep.subr.bf16.mxu0 %v1606_v44  ;;  %v193_v43 = vld [vmem:[%s1768_s28 + $0x78] sm:$0xff]  ;;  %v1277_v44 = vcombine.high %v188_v38, %v192_v41 }
  0x2a   : > { %1524 = vmatprep.subr.bf16.mxu1 %v1607_v45  ;;  %929 = vmatprep.mubr.bf16.mxu0 %v1273_v50  ;;  %v1279_v45 = vcombine.high %v189_v42, %v193_v43  ;;  %v1276_v50 = vcombine.low %v188_v38, %v192_v41  ;;  %v1278_v51 = vcombine.low %v189_v42, %v193_v43 }
  0x2b   : > { %994 = vmatprep.mubr.bf16.mxu1 %v1275_v54  ;;  %v204_v54 = vld [vmem:[%s1768_s28 + $0xd0] sm:$0xff] }
  0x2c   : > { %1485 = vmatpush3.bf16.msra.mxu0 %v1608_v46  ;;  %v196_v46 = vld [vmem:[%s1768_s28 + $0x90] sm:$0xff] }
  0x2d   : > { %1525 = vmatpush3.bf16.msra.mxu1 %v1609_v47  ;;  %1486 = vmatprep.subr.bf16.mxu0 %v1610_v56  ;;  %v200_v47 = vld [vmem:[%s1768_s28 + $0xb0] sm:$0xff]  ;;  %v205_v56 = vld [vmem:[%s1768_s28 + $0xd8] sm:$0xff] }
  0x2e   : > { %1526 = vmatprep.subr.bf16.mxu1 %v1611_v57  ;;  %v1285_v52 = vcombine.high %v196_v46, %v200_v47  ;;  %v209_v57 = vld [vmem:[%s1768_s28 + $0xf8] sm:$0xff] }
  0x2f   : > { %930 = vmatmul.mubr.bf16.gmra.mrb[4].mxu0 %v1272_v53  ;;  %v1287_v53 = vcombine.high %v197_v48, %v201_v49 }
  0x30   : > { %995 = vmatmul.mubr.bf16.gmra.mrb[4].mxu1 %v1274_v55  ;;  %1487 = vmatpush3.bf16.msra.mxu0 %v1612_v58  ;;  %v208_v55 = vld [vmem:[%s1768_s28 + $0xf0] sm:$0xff]  ;;  %v1284_v58 = vcombine.low %v196_v46, %v200_v47  ;;  %s1262_s28 = sshll.u32 %s1946_s21, 2 }
  0x31   : > { %1527 = vmatpush3.bf16.msra.mxu1 %v1613_v59  ;;  %1488 = vmatprep.subr.bf16.mxu0 %v1614_v60  ;;  %v1286_v59 = vcombine.low %v197_v48, %v201_v49  ;;  %v1293_v60 = vcombine.high %v204_v54, %v208_v55  ;;  %s1926_s29 = scalar_lea.vmem %s1944_s3, %s1262_s28 }
  0x32   : > { %1528 = vmatprep.subr.bf16.mxu1 %v1615_v61  ;;  %937 = vmatprep.mubr.bf16.mxu0 %v1281_v4  ;;  %v1295_v61 = vcombine.high %v205_v56, %v209_v57 }
  0x33   : > { %1002 = vmatprep.mubr.bf16.mxu1 %v1283_v5 }
  0x34   : > { %1489 = vmatpush3.bf16.msra.mxu0 %v1616_v62  ;;  %v1292_v62 = vcombine.low %v204_v54, %v208_v55 }
  0x35   : > { %1529 = vmatpush3.bf16.msra.mxu1 %v1617_v63  ;;  %1490 = vmatprep.subr.bf16.mxu0 %v1618_v8  ;;  %v1294_v63 = vcombine.low %v205_v56, %v209_v57 }
  0x36   : > { %1530 = vmatprep.subr.bf16.mxu1 %v1619_v9 }
  0x37   : > { %938 = vmatmul.mubr.bf16.gmra.mrb[8].mxu0 %v1280_v6 }
  0x38   : > { %1003 = vmatmul.mubr.bf16.gmra.mrb[8].mxu1 %v1282_v7  ;;  %1491 = vmatpush3.bf16.msra.mxu0 %v1620_v10 }
  0x39   : > { %1531 = vmatpush3.bf16.msra.mxu1 %v1621_v11  ;;  %1492 = vmatprep.subr.bf16.mxu0 %v1622_v12 }
  0x3a   : > { %1532 = vmatprep.subr.bf16.mxu1 %v1623_v13  ;;  %945 = vmatprep.mubr.bf16.mxu0 %v1289_v19 }
  0x3b   : > { %1010 = vmatprep.mubr.bf16.mxu1 %v1291_v22 }
  0x3c   : > { %1493 = vmatpush3.bf16.msra.mxu0 %v1624_v14 }
  0x3d   : > { %1533 = vmatpush3.bf16.msra.mxu1 %v1625_v15  ;;  %1494 = vmatprep.subr.bf16.mxu0 %v1626_v24 }
  0x3e   : > { %1534 = vmatprep.subr.bf16.mxu1 %v1627_v25 }
  0x3f   : > { %946 = vmatmul.mubr.bf16.gmra.mrb[12].mxu0 %v1288_v21 }
  0x40   : > { %1011 = vmatmul.mubr.bf16.gmra.mrb[12].mxu1 %v1290_v23  ;;  %1495 = vmatpush3.bf16.msra.mxu0 %v1628_v26 }
  0x41   : > { %1535 = vmatpush3.bf16.msra.mxu1 %v1629_v27  ;;  %1496 = vmatprep.subr.bf16.mxu0 %v1630_v28 }
  0x42   : > { %1536 = vmatprep.subr.bf16.mxu1 %v1631_v29  ;;  %1051 = vmatprep.mubr.bf16.mxu0 %v1269_v35 }
  0x43   : > { %1116 = vmatprep.mubr.bf16.mxu1 %v1271_v40 }
  0x44   : > { %1497 = vmatpush3.bf16.msra.mxu0 %v1632_v30 }
  0x45   : > { %1537 = vmatpush3.bf16.msra.mxu1 %v1633_v31 }
  0x47   : > { %1052 = vmatmul.mubr.bf16.vlgmr.msra.gmra.mrb[16].mxu0 %v1268_v34 }
  0x48   : > { %1117 = vmatmul.mubr.bf16.vlgmr.msra.gmra.mrb[16].mxu1 %v1270_v39  ;;  %1059 = vmatprep.mubr.bf16.mxu0 %v1277_v44 }
  0x49   : > { %1124 = vmatprep.mubr.bf16.mxu1 %v1279_v45 }
  0x4f   : > { %1060 = vmatmul.mubr.bf16.gmra.mrb[20].mxu0 %v1276_v50 }
  0x50   : > { %1125 = vmatmul.mubr.bf16.gmra.mrb[20].mxu1 %v1278_v51  ;;  %1067 = vmatprep.mubr.bf16.mxu0 %v1285_v52 }
  0x51   : > { %1132 = vmatprep.mubr.bf16.mxu1 %v1287_v53 }
  0x57   : > { %1068 = vmatmul.mubr.bf16.gmra.mrb[24].mxu0 %v1284_v58 }
  0x58   : > { %1133 = vmatmul.mubr.bf16.gmra.mrb[24].mxu1 %v1286_v59  ;;  %1075 = vmatprep.mubr.bf16.mxu0 %v1293_v60 }
  0x59   : > { %1140 = vmatprep.mubr.bf16.mxu1 %v1295_v61 }
  0x5f   : > { %1076 = vmatmul.mubr.bf16.gmra.mrb[28].mxu0 %v1292_v62 }
  0x60   : > { %1141 = vmatmul.mubr.bf16.gmra.mrb[28].mxu1 %v1294_v63 }
  0xfa   : > { %v1418_v0 = vpop.f32.mrb[0].mxu0 }
  0xfb   : > { %v1458_v1 = vpop.f32.mrb[0].mxu1  ;;  %v1419_v3 = vpop.f32.mrb[1].mxu0 }
  0xfc   : > { %v1420_v4 = vadd.f32 %v1419_v3, %v1418_v0  ;;  %v1459_v5 = vpop.f32.mrb[1].mxu1  ;;  %v1421_v6 = vpop.f32.mrb[2].mxu0 }
  0xfd   : > { %v1460_v7 = vadd.f32 %v1459_v5, %v1458_v1  ;;  %v1461_v8 = vpop.f32.mrb[2].mxu1  ;;  %v1422_v9 = vpop.f32.mrb[3].mxu0 }
  0xfe   : > { %v924_v10 = vadd.f32 %v1420_v4, %v1263_v2  ;;  %v1423_v11 = vadd.f32 %v1422_v9, %v1421_v6  ;;  %v1462_v12 = vpop.f32.mrb[3].mxu1 }
  0xff   : > { %v1463_v13 = vadd.f32 %v1462_v12, %v1461_v8 }
 0x100   : > { %v989_v14 = vadd.f32 %v1460_v7, %v924_v10  ;;  %v927_v15 = vadd.f32 %v1423_v11, %v1263_v2 }
 0x102   : > { %v1907_v16 = vadd.f32 %v1463_v13, %v927_v15  ;;  %v1424_v17 = vpop.f32.mrb[4].mxu0 }
 0x103   : > { %v1464_v18 = vpop.f32.mrb[4].mxu1  ;;  %v1425_v19 = vpop.f32.mrb[5].mxu0 }
 0x104   : > { %v1426_v20 = vadd.f32 %v1425_v19, %v1424_v17  ;;  %v1465_v21 = vpop.f32.mrb[5].mxu1  ;;  %v1427_v22 = vpop.f32.mrb[6].mxu0 }
 0x105   : > { %v1466_v23 = vadd.f32 %v1465_v21, %v1464_v18  ;;  %v1467_v24 = vpop.f32.mrb[6].mxu1  ;;  %v1428_v25 = vpop.f32.mrb[7].mxu0 }
 0x106   : > { %v932_v26 = vadd.f32 %v1426_v20, %v1263_v2  ;;  %v1429_v27 = vadd.f32 %v1428_v25, %v1427_v22  ;;  %v1468_v28 = vpop.f32.mrb[7].mxu1 }
 0x107   : > { %v1469_v29 = vadd.f32 %v1468_v28, %v1467_v24 }
 0x108   : > { %v1909_v30 = vadd.f32 %v1466_v23, %v932_v26  ;;  %v935_v31 = vadd.f32 %v1429_v27, %v1263_v2 }
 0x10a   : > { %v1911_v32 = vadd.f32 %v1469_v29, %v935_v31  ;;  %v1430_v33 = vpop.f32.mrb[8].mxu0 }
 0x10b   : > { %v1470_v34 = vpop.f32.mrb[8].mxu1  ;;  %v1431_v35 = vpop.f32.mrb[9].mxu0 }
 0x10c   : > { %v1471_v36 = vpop.f32.mrb[9].mxu1  ;;  %v1432_v37 = vadd.f32 %v1431_v35, %v1430_v33  ;;  %v1433_v39 = vpop.f32.mrb[10].mxu0 }
 0x10d   : > { %v1472_v38 = vadd.f32 %v1471_v36, %v1470_v34  ;;  %v1473_v40 = vpop.f32.mrb[10].mxu1  ;;  %v1434_v41 = vpop.f32.mrb[11].mxu0 }
 0x10e   : > { %v1474_v42 = vpop.f32.mrb[11].mxu1  ;;  %v940_v43 = vadd.f32 %v1432_v37, %v1263_v2  ;;  %v1435_v44 = vadd.f32 %v1434_v41, %v1433_v39 }
 0x10f   : > { %v1475_v45 = vadd.f32 %v1474_v42, %v1473_v40 }
 0x110   : > { %v1913_v46 = vadd.f32 %v1472_v38, %v940_v43  ;;  %v943_v47 = vadd.f32 %v1435_v44, %v1263_v2 }
 0x112   : > { %v1915_v48 = vadd.f32 %v1475_v45, %v943_v47  ;;  %v1436_v49 = vpop.f32.mrb[12].mxu0 }
 0x113   : > { %v1476_v50 = vpop.f32.mrb[12].mxu1  ;;  %v1437_v51 = vpop.f32.mrb[13].mxu0 }
 0x114   : > { %v1438_v52 = vadd.f32 %v1437_v51, %v1436_v49  ;;  %v1477_v53 = vpop.f32.mrb[13].mxu1  ;;  %v1439_v54 = vpop.f32.mrb[14].mxu0 }
 0x115   : > { %v1478_v55 = vadd.f32 %v1477_v53, %v1476_v50  ;;  %v1479_v56 = vpop.f32.mrb[14].mxu1  ;;  %v1440_v57 = vpop.f32.mrb[15].mxu0 }
 0x116   : > { %v948_v58 = vadd.f32 %v1438_v52, %v1263_v2  ;;  %v1441_v59 = vadd.f32 %v1440_v57, %v1439_v54  ;;  %v1480_v60 = vpop.f32.mrb[15].mxu1 }
 0x117   : > { %v1481_v61 = vadd.f32 %v1480_v60, %v1479_v56 }
 0x118   : > { %v1917_v62 = vadd.f32 %v1478_v55, %v948_v58  ;;  %v951_v63 = vadd.f32 %v1441_v59, %v1263_v2 }
 0x11a   : > { %v1919_v0 = vadd.f32 %v1481_v61, %v951_v63  ;;  %v1498_v1 = vpop.f32.mrb[16].mxu0 }
 0x11b   : > { %v1538_v3 = vpop.f32.mrb[16].mxu1  ;;  %v1499_v4 = vpop.f32.mrb[17].mxu0 }
 0x11c   : > { %v1500_v5 = vadd.f32 %v1499_v4, %v1498_v1  ;;  %v1539_v6 = vpop.f32.mrb[17].mxu1  ;;  %v1501_v7 = vpop.f32.mrb[18].mxu0 }
 0x11d   : > { %v1540_v8 = vadd.f32 %v1539_v6, %v1538_v3  ;;  %v1541_v9 = vpop.f32.mrb[18].mxu1  ;;  %v1502_v10 = vpop.f32.mrb[19].mxu0 }
 0x11e   : > { %v1054_v11 = vadd.f32 %v1500_v5, %v989_v14  ;;  %v1503_v12 = vadd.f32 %v1502_v10, %v1501_v7  ;;  %v1542_v13 = vpop.f32.mrb[19].mxu1 }
 0x11f   : > { %v1543_v15 = vadd.f32 %v1542_v13, %v1541_v9 }
 0x120   : > { %v1119_v17 = vadd.f32 %v1540_v8, %v1054_v11  ;;  %v1057_v18 = vadd.f32 %v1503_v12, %v1907_v16 }
 0x122   : > { %v1122_v2 = vadd.f32 %v1543_v15, %v1057_v18  ;;  %v1504_v19 = vpop.f32.mrb[20].mxu0  ;;  %v1149_v22 = vmax.f32 %v1119_v17, 0.0 }
 0x123   : > { %v1544_v20 = vpop.f32.mrb[20].mxu1  ;;  %v1505_v21 = vpop.f32.mrb[21].mxu0 }
 0x124   : > { %v1150_v23 = vmax.f32 %v1122_v2, 0.0  ;;  %v1506_v24 = vadd.f32 %v1505_v21, %v1504_v19  ;;  %v1545_v25 = vpop.f32.mrb[21].mxu1  ;;  %v1507_v26 = vpop.f32.mrb[22].mxu0 }
 0x125   : > { %v1546_v14 = vadd.f32 %v1545_v25, %v1544_v20  ;;  %v1547_v27 = vpop.f32.mrb[22].mxu1  ;;  %v1508_v28 = vpop.f32.mrb[23].mxu0 }
 0x126   : > { %v1382_v16 = vpack.c.bf16 %v1150_v23, %v1149_v22  ;;  %v1062_v29 = vadd.f32 %v1506_v24, %v1909_v30  ;;  %v1509_v31 = vadd.f32 %v1508_v28, %v1507_v26  ;;  %v1548_v33 = vpop.f32.mrb[23].mxu1 }
 0x127   : > { %v1549_v34 = vadd.f32 %v1548_v33, %v1547_v27 }
 0x128   : > { %1383 = vst [vmem:[%s1926_s29] sm:$0xff] %v1382_v16   ;;  %v1127_v35 = vadd.f32 %v1546_v14, %v1062_v29  ;;  %v1065_v36 = vadd.f32 %v1509_v31, %v1911_v32 }
 0x12a   : > { %v1130_v37 = vadd.f32 %v1549_v34, %v1065_v36  ;;  %v1510_v38 = vpop.f32.mrb[24].mxu0  ;;  %v1151_v41 = vmax.f32 %v1127_v35, 0.0 }
 0x12b   : > { %v1550_v39 = vpop.f32.mrb[24].mxu1  ;;  %v1511_v40 = vpop.f32.mrb[25].mxu0 }
 0x12c   : > { %v1152_v42 = vmax.f32 %v1130_v37, 0.0  ;;  %v1512_v43 = vadd.f32 %v1511_v40, %v1510_v38  ;;  %v1551_v44 = vpop.f32.mrb[25].mxu1  ;;  %v1513_v45 = vpop.f32.mrb[26].mxu0 }
 0x12d   : > { %v1552_v47 = vadd.f32 %v1551_v44, %v1550_v39  ;;  %v1553_v49 = vpop.f32.mrb[26].mxu1  ;;  %v1514_v30 = vpop.f32.mrb[27].mxu0 }
 0x12e   : > { %v1387_v50 = vpack.c.bf16 %v1152_v42, %v1151_v41  ;;  %v1070_v51 = vadd.f32 %v1512_v43, %v1913_v46  ;;  %v1515_v52 = vadd.f32 %v1514_v30, %v1513_v45  ;;  %v1554_v53 = vpop.f32.mrb[27].mxu1 }
 0x12f   : > { %v1555_v54 = vadd.f32 %v1554_v53, %v1553_v49 }
 0x130   : > { %1399 = vst [vmem:[%s1926_s29 + $0x8] sm:$0xff] %v1387_v50   ;;  %v1135_v32 = vadd.f32 %v1552_v47, %v1070_v51  ;;  %v1073_v55 = vadd.f32 %v1515_v52, %v1915_v48 }
 0x132   : > { %v1138_v56 = vadd.f32 %v1555_v54, %v1073_v55  ;;  %v1516_v57 = vpop.f32.mrb[28].mxu0  ;;  %v1153_v60 = vmax.f32 %v1135_v32, 0.0 }
 0x133   : > { %v1556_v58 = vpop.f32.mrb[28].mxu1  ;;  %v1517_v59 = vpop.f32.mrb[29].mxu0 }
 0x134   : > { %v1154_v61 = vmax.f32 %v1138_v56, 0.0  ;;  %v1518_v63 = vadd.f32 %v1517_v59, %v1516_v57  ;;  %v1557_v1 = vpop.f32.mrb[29].mxu1  ;;  %v1519_v3 = vpop.f32.mrb[30].mxu0 }
 0x135   : > { %v1558_v4 = vadd.f32 %v1557_v1, %v1556_v58  ;;  %v1559_v46 = vpop.f32.mrb[30].mxu1  ;;  %v1520_v5 = vpop.f32.mrb[31].mxu0 }
 0x136   : > { %v1392_v6 = vpack.c.bf16 %v1154_v61, %v1153_v60  ;;  %v1078_v7 = vadd.f32 %v1518_v63, %v1917_v62  ;;  %v1521_v8 = vadd.f32 %v1520_v5, %v1519_v3  ;;  %v1560_v9 = vpop.f32.mrb[31].mxu1 }
 0x137   : > { %v1561_v48 = vadd.f32 %v1560_v9, %v1559_v46 }
 0x138   : > { %1400 = vst [vmem:[%s1926_s29 + $0x10] sm:$0xff] %v1392_v6   ;;  %v1143_v10 = vadd.f32 %v1558_v4, %v1078_v7  ;;  %v1081_v11 = vadd.f32 %v1521_v8, %v1919_v0 }
 0x13a   : > { %v1146_v12 = vadd.f32 %v1561_v48, %v1081_v11  ;;  %v1155_v13 = vmax.f32 %v1143_v10, 0.0 }
 0x13c   : > { %v1156_v15 = vmax.f32 %v1146_v12, 0.0 }
 0x13e   : > { %v1397_v17 = vpack.c.bf16 %v1156_v15, %v1155_v13 }
 0x140   : > { %1401 = vst [vmem:[%s1926_s29 + $0x18] sm:$0xff] %v1397_v17  }
 0x141 PF: > { %s13_s12 = sadd.s32 1, %s1640_s12  }
 0x142   : > { %p10_p4 = scmp.ge.s32.totalorder %s13_s12, 4  }
 0x144   :  { %12 = sbr.rel (!%p10_p4) target bundleno = 1 (0x1), region = 62 }

// kernel: vae_forward.9
= control target key start
LH: loop header
LB: loop body
LE: loop exit
PB: predicated region body
PF: predicated region fallthrough
CT: control target
= control target key end

     0   :  { %s2986_s12 = smov 0   ;;  %s3846_s0 = inlined_call_operand.vmem [shape: bf16[32,2048], index: 0, kind: input, shape index: {}]   ;;  %s3847_s1 = inlined_call_operand.vmem [shape: bf16[2048,256], index: 1, kind: input, shape index: {}]   ;;  %s3848_s2 = inlined_call_operand.vmem [shape: f32[1,256], index: 2, kind: input, shape index: {}]   ;;  %s3849_s3 = inlined_call_operand.vmem [shape: bf16[32,256], index: 3, kind: output, shape index: {}]  }
   0x1 LB: > { %s2243_s13 = sadd.s32 4294967295, %s2964_s12   ;;  %p2247_p0 = scmp.ge.s32.totalorder %s2964_s12, 1  ;;  %s2964_s12 = sphi %s2986_s12, %s13_s12  }
   0x2   : > { %p139_p1 = scmp.lt.s32.totalorder %s2964_s12, 3 }
   0x4   : > { %p140_p2 = pnand %p2247_p0, %p139_p1 }
   0x5   : > { %v2574_v0 = vld [vmem:[%s3847_s1 + $0x4] ss:$8 sps:$4 sm:$0xff] (!%p140_p2)   ;;  %v2578_v2 = vld [vmem:[%s3847_s1] ss:$8 sps:$4 sm:$0xff] (!%p140_p2)   ;;  %v2580_v4 = vld [vmem:[%s3847_s1 + $0x14] ss:$8 sps:$4 sm:$0xff] (!%p140_p2)  }
   0x6   : > { %143 = sbr.rel (%p140_p2) target bundleno = 486 (0x1e6), region = 32  ;;  %v2576_v1 = vld [vmem:[%s3847_s1 + $0x404] ss:$8 sps:$4 sm:$0xff] (!%p140_p2)   ;;  %1823 = vmatprep.subr.bf16.mxu1 (!%p140_p2), %v2574_v0  ;;  %v2579_v3 = vld [vmem:[%s3847_s1 + $0x400] ss:$8 sps:$4 sm:$0xff] (!%p140_p2)   ;;  %s2248_s24 = sshll.u32 (!%p140_p2), %s2243_s13, 1 }
   0x7   : > { %1995 = vmatprep.subr.bf16.mxu0 (!%p140_p2), %v2576_v1  ;;  %1824 = vmatpush1.bf16.msra.mxu1 (!%p140_p2), %v2578_v2  ;;  %v2582_v5 = vld [vmem:[%s3847_s1 + $0x414] ss:$8 sps:$4 sm:$0xff] (!%p140_p2)   ;;  %v2584_v6 = vld [vmem:[%s3847_s1 + $0x10] ss:$8 sps:$4 sm:$0xff] (!%p140_p2)   ;;  %v2586_v8 = vld [vmem:[%s3847_s1 + $0x24] ss:$8 sps:$4 sm:$0xff] (!%p140_p2)  }
   0x8   : > { %1996 = vmatpush1.bf16.msra.mxu0 (!%p140_p2), %v2579_v3  ;;  %1825 = vmatprep.subr.bf16.mxu1 (!%p140_p2), %v2580_v4  ;;  %v2585_v7 = vld [vmem:[%s3847_s1 + $0x410] ss:$8 sps:$4 sm:$0xff] (!%p140_p2)   ;;  %v2588_v9 = vld [vmem:[%s3847_s1 + $0x424] ss:$8 sps:$4 sm:$0xff] (!%p140_p2)   ;;  %v2590_v10 = vld [vmem:[%s3847_s1 + $0x20] ss:$8 sps:$4 sm:$0xff] (!%p140_p2)  }
   0x9   : > { %1997 = vmatprep.subr.bf16.mxu0 (!%p140_p2), %v2582_v5  ;;  %v2591_v11 = vld [vmem:[%s3847_s1 + $0x420] ss:$8 sps:$4 sm:$0xff] (!%p140_p2)   ;;  %v2592_v12 = vld [vmem:[%s3847_s1 + $0x34] ss:$8 sps:$4 sm:$0xff] (!%p140_p2)   ;;  %v2596_v14 = vld [vmem:[%s3847_s1 + $0x30] ss:$8 sps:$4 sm:$0xff] (!%p140_p2)  }
   0xa   : > { %v2594_v13 = vld [vmem:[%s3847_s1 + $0x434] ss:$8 sps:$4 sm:$0xff] (!%p140_p2)   ;;  %v2597_v15 = vld [vmem:[%s3847_s1 + $0x430] ss:$8 sps:$4 sm:$0xff] (!%p140_p2)   ;;  %v2598_v16 = vld [vmem:[%s3847_s1 + $0x44] ss:$8 sps:$4 sm:$0xff] (!%p140_p2)  }
   0xb   : > { %1826 = vmatpush1.bf16.msra.mxu1 (!%p140_p2), %v2584_v6  ;;  %v2600_v17 = vld [vmem:[%s3847_s1 + $0x444] ss:$8 sps:$4 sm:$0xff] (!%p140_p2)   ;;  %v2602_v18 = vld [vmem:[%s3847_s1 + $0x40] ss:$8 sps:$4 sm:$0xff] (!%p140_p2)   ;;  %v2604_v20 = vld [vmem:[%s3847_s1 + $0x54] ss:$8 sps:$4 sm:$0xff] (!%p140_p2)  }
   0xc   : > { %1998 = vmatpush1.bf16.msra.mxu0 (!%p140_p2), %v2585_v7  ;;  %1827 = vmatprep.subr.bf16.mxu1 (!%p140_p2), %v2586_v8  ;;  %v2603_v19 = vld [vmem:[%s3847_s1 + $0x440] ss:$8 sps:$4 sm:$0xff] (!%p140_p2)   ;;  %v2606_v21 = vld [vmem:[%s3847_s1 + $0x454] ss:$8 sps:$4 sm:$0xff] (!%p140_p2)   ;;  %v2608_v22 = vld [vmem:[%s3847_s1 + $0x50] ss:$8 sps:$4 sm:$0xff] (!%p140_p2)  }
   0xd   : > { %1999 = vmatprep.subr.bf16.mxu0 %v2588_v9  ;;  %v2609_v23 = vld [vmem:[%s3847_s1 + $0x450] ss:$8 sps:$4 sm:$0xff]   ;;  %v2610_v24 = vld [vmem:[%s3847_s1 + $0x64] ss:$8 sps:$4 sm:$0xff]   ;;  %v2614_v26 = vld [vmem:[%s3847_s1 + $0x60] ss:$8 sps:$4 sm:$0xff]  }
   0xe   : > { %v2612_v25 = vld [vmem:[%s3847_s1 + $0x464] ss:$8 sps:$4 sm:$0xff]   ;;  %v2615_v27 = vld [vmem:[%s3847_s1 + $0x460] ss:$8 sps:$4 sm:$0xff]   ;;  %v2616_v28 = vld [vmem:[%s3847_s1 + $0x74] ss:$8 sps:$4 sm:$0xff]  }
   0xf   : > { %1828 = vmatpush1.bf16.msra.mxu1 %v2590_v10  ;;  %v2618_v29 = vld [vmem:[%s3847_s1 + $0x474] ss:$8 sps:$4 sm:$0xff]   ;;  %v2620_v30 = vld [vmem:[%s3847_s1 + $0x70] ss:$8 sps:$4 sm:$0xff]   ;;  %v2622_v32 = vld [vmem:[%s3847_s1 + $0x84] ss:$8 sps:$4 sm:$0xff]  }
  0x10   : > { %2000 = vmatpush1.bf16.msra.mxu0 %v2591_v11  ;;  %1829 = vmatprep.subr.bf16.mxu1 %v2592_v12  ;;  %v2621_v31 = vld [vmem:[%s3847_s1 + $0x470] ss:$8 sps:$4 sm:$0xff]   ;;  %p166_p3 = scmp.lt.s32.totalorder %s2248_s24, 3  ;;  %v2624_v33 = vld [vmem:[%s3847_s1 + $0x484] ss:$8 sps:$4 sm:$0xff]  }
  0x11   : > { %2001 = vmatprep.subr.bf16.mxu0 %v2594_v13  ;;  %v2626_v34 = vld [vmem:[%s3847_s1 + $0x80] ss:$8 sps:$4 sm:$0xff]   ;;  %v2628_v36 = vld [vmem:[%s3847_s1 + $0x94] ss:$8 sps:$4 sm:$0xff]   ;;  %v2632_v38 = vld [vmem:[%s3847_s1 + $0x90] ss:$8 sps:$4 sm:$0xff]  }
  0x12   : > { %v2627_v35 = vld [vmem:[%s3847_s1 + $0x480] ss:$8 sps:$4 sm:$0xff]   ;;  %s3851_s24 = smov (!%p166_p3, %s2248_s24), 3  ;;  %v2630_v37 = vld [vmem:[%s3847_s1 + $0x494] ss:$8 sps:$4 sm:$0xff]  }
  0x13   : > { %1830 = vmatpush1.bf16.msra.mxu1 %v2596_v14  ;;  %v2633_v39 = vld [vmem:[%s3847_s1 + $0x490] ss:$8 sps:$4 sm:$0xff]   ;;  %v2634_v40 = vld [vmem:[%s3847_s1 + $0xa4] ss:$8 sps:$4 sm:$0xff]   ;;  %s2530_s21 = sshll.u32 %s3851_s24, 6  ;;  %s2531_s19 = sshll.u32 %s3851_s24, 3 }
  0x14   : > { %2002 = vmatpush1.bf16.msra.mxu0 %v2597_v15  ;;  %1831 = vmatprep.subr.bf16.mxu1 %v2598_v16  ;;  %v2636_v41 = vld [vmem:[%s3847_s1 + $0x4a4] ss:$8 sps:$4 sm:$0xff]   ;;  %v2638_v42 = vld [vmem:[%s3847_s1 + $0xa0] ss:$8 sps:$4 sm:$0xff]   ;;  %s3134_s4 = scalar_lea.vmem %s3846_s0, %s2530_s21  ;;  %v2640_v44 = vld [vmem:[%s3847_s1 + $0xb4] ss:$8 sps:$4 sm:$0xff]   ;;  %s177_s22 = scalar_lea.vmem %s3849_s3, %s2531_s19 }
  0x15   : > { %2003 = vmatprep.subr.bf16.mxu0 %v2600_v17  ;;  %v2639_v43 = vld [vmem:[%s3847_s1 + $0x4a0] ss:$8 sps:$4 sm:$0xff]   ;;  %v2642_v45 = vld [vmem:[%s3847_s1 + $0x4b4] ss:$8 sps:$4 sm:$0xff]   ;;  %v2644_v46 = vld [vmem:[%s3847_s1 + $0xb0] ss:$8 sps:$4 sm:$0xff]  }
  0x16   : > { %v2645_v47 = vld [vmem:[%s3847_s1 + $0x4b0] ss:$8 sps:$4 sm:$0xff]   ;;  %v179_v48 = vld [vmem:[%s3134_s4] sm:$0xff]  ;;  %v2652_v58 = vld [vmem:[%s3847_s1 + $0xd4] ss:$8 sps:$4 sm:$0xff]  }
  0x17   : > { %1832 = vmatpush1.bf16.msra.mxu1 %v2602_v18  ;;  %v187_v49 = vld [vmem:[%s3134_s4 + $0x40] sm:$0xff]  ;;  %v2654_v59 = vld [vmem:[%s3847_s1 + $0x4d4] ss:$8 sps:$4 sm:$0xff]   ;;  %v2656_v60 = vld [vmem:[%s3847_s1 + $0xd0] ss:$8 sps:$4 sm:$0xff]  }
  0x18   : > { %2004 = vmatpush1.bf16.msra.mxu0 %v2603_v19  ;;  %1833 = vmatprep.subr.bf16.mxu1 %v2604_v20  ;;  %v2646_v50 = vld [vmem:[%s3847_s1 + $0xc4] ss:$8 sps:$4 sm:$0xff]   ;;  %v2255_v52 = vcombine.high %v179_v48, %v187_v49  ;;  %v2650_v56 = vld [vmem:[%s3847_s1 + $0xc0] ss:$8 sps:$4 sm:$0xff]   ;;  %v2657_v61 = vld [vmem:[%s3847_s1 + $0x4d0] ss:$8 sps:$4 sm:$0xff]   ;;  %v2254_v8 = vcombine.low %v179_v48, %v187_v49 }
  0x19   : > { %2005 = vmatprep.subr.bf16.mxu0 %v2606_v21  ;;  %v2648_v51 = vld [vmem:[%s3847_s1 + $0x4c4] ss:$8 sps:$4 sm:$0xff]   ;;  %v2651_v57 = vld [vmem:[%s3847_s1 + $0x4c0] ss:$8 sps:$4 sm:$0xff]   ;;  %v2664_v2 = vld [vmem:[%s3847_s1 + $0xf4] ss:$8 sps:$4 sm:$0xff]  }
  0x1a   : > { %v183_v53 = vld [vmem:[%s3134_s4 + $0x20] sm:$0xff]  ;;  %1855 = vmatprep.mubr.bf16.mxu1 %v2255_v52  ;;  %v2666_v3 = vld [vmem:[%s3847_s1 + $0x4f4] ss:$8 sps:$4 sm:$0xff]   ;;  %v2668_v4 = vld [vmem:[%s3847_s1 + $0xf0] ss:$8 sps:$4 sm:$0xff]  }
  0x1b   : > { %1834 = vmatpush1.bf16.msra.mxu1 %v2608_v22  ;;  %v191_v54 = vld [vmem:[%s3134_s4 + $0x60] sm:$0xff]  ;;  %v2669_v5 = vld [vmem:[%s3847_s1 + $0x4f0] ss:$8 sps:$4 sm:$0xff]   ;;  %v2678_v12 = vld [vmem:[%s3847_s1 + $0x114] ss:$8 sps:$4 sm:$0xff]  }
  0x1c   : > { %2006 = vmatpush1.bf16.msra.mxu0 %v2609_v23  ;;  %1835 = vmatprep.subr.bf16.mxu1 %v2610_v24  ;;  %v2263_v55 = vcombine.high %v183_v53, %v191_v54  ;;  %v2658_v62 = vld [vmem:[%s3847_s1 + $0xe4] ss:$8 sps:$4 sm:$0xff]   ;;  %v2662_v0 = vld [vmem:[%s3847_s1 + $0xe0] ss:$8 sps:$4 sm:$0xff]   ;;  %v2262_v10 = vcombine.low %v183_v53, %v191_v54  ;;  %v2681_v13 = vld [vmem:[%s3847_s1 + $0x514] ss:$8 sps:$4 sm:$0xff]  }
  0x1d   : > { %2007 = vmatprep.subr.bf16.mxu0 %v2612_v25  ;;  %v2660_v63 = vld [vmem:[%s3847_s1 + $0x4e4] ss:$8 sps:$4 sm:$0xff]   ;;  %v2663_v1 = vld [vmem:[%s3847_s1 + $0x4e0] ss:$8 sps:$4 sm:$0xff]   ;;  %v2676_v14 = vld [vmem:[%s3847_s1 + $0x110] ss:$8 sps:$4 sm:$0xff]  }
  0x1e   : > { %2027 = vmatprep.mubr.bf16.mxu0 %v2263_v55  ;;  %v2672_v6 = vld [vmem:[%s3847_s1 + $0x104] ss:$8 sps:$4 sm:$0xff]   ;;  %v2670_v9 = vld [vmem:[%s3847_s1 + $0x100] ss:$8 sps:$4 sm:$0xff]   ;;  %v2679_v15 = vld [vmem:[%s3847_s1 + $0x510] ss:$8 sps:$4 sm:$0xff]  }
  0x1f   : > { %1836 = vmatpush1.bf16.msra.mxu1 %v2614_v26  ;;  %v2675_v7 = vld [vmem:[%s3847_s1 + $0x504] ss:$8 sps:$4 sm:$0xff]   ;;  %v2673_v11 = vld [vmem:[%s3847_s1 + $0x500] ss:$8 sps:$4 sm:$0xff]   ;;  %v2690_v20 = vld [vmem:[%s3847_s1 + $0x134] ss:$8 sps:$4 sm:$0xff]  }
  0x20   : > { %2008 = vmatpush1.bf16.msra.mxu0 %v2615_v27  ;;  %1837 = vmatprep.subr.bf16.mxu1 %v2616_v28  ;;  %v2684_v16 = vld [vmem:[%s3847_s1 + $0x124] ss:$8 sps:$4 sm:$0xff]   ;;  %v2682_v18 = vld [vmem:[%s3847_s1 + $0x120] ss:$8 sps:$4 sm:$0xff]   ;;  %v2693_v21 = vld [vmem:[%s3847_s1 + $0x534] ss:$8 sps:$4 sm:$0xff]  }
  0x21   : > { %2009 = vmatprep.subr.bf16.mxu0 %v2618_v29  ;;  %v2687_v17 = vld [vmem:[%s3847_s1 + $0x524] ss:$8 sps:$4 sm:$0xff]   ;;  %v2685_v19 = vld [vmem:[%s3847_s1 + $0x520] ss:$8 sps:$4 sm:$0xff]   ;;  %v2688_v22 = vld [vmem:[%s3847_s1 + $0x130] ss:$8 sps:$4 sm:$0xff]  }
  0x22   : > { %v2691_v23 = vld [vmem:[%s3847_s1 + $0x530] ss:$8 sps:$4 sm:$0xff]   ;;  %v2696_v24 = vld [vmem:[%s3847_s1 + $0x144] ss:$8 sps:$4 sm:$0xff]   ;;  %v2694_v26 = vld [vmem:[%s3847_s1 + $0x140] ss:$8 sps:$4 sm:$0xff]  }
  0x23   : > { %1838 = vmatpush1.bf16.msra.mxu1 %v2620_v30  ;;  %v2699_v25 = vld [vmem:[%s3847_s1 + $0x544] ss:$8 sps:$4 sm:$0xff]   ;;  %v2697_v27 = vld [vmem:[%s3847_s1 + $0x540] ss:$8 sps:$4 sm:$0xff]   ;;  %v2702_v28 = vld [vmem:[%s3847_s1 + $0x154] ss:$8 sps:$4 sm:$0xff]  }
  0x24   : > { %2010 = vmatpush1.bf16.msra.mxu0 %v2621_v31  ;;  %1839 = vmatprep.subr.bf16.mxu1 %v2622_v32  ;;  %v2705_v29 = vld [vmem:[%s3847_s1 + $0x554] ss:$8 sps:$4 sm:$0xff]   ;;  %v2700_v30 = vld [vmem:[%s3847_s1 + $0x150] ss:$8 sps:$4 sm:$0xff]   ;;  %v2708_v32 = vld [vmem:[%s3847_s1 + $0x164] ss:$8 sps:$4 sm:$0xff]  }
  0x25   : > { %2011 = vmatprep.subr.bf16.mxu0 %v2624_v33  ;;  %v2703_v31 = vld [vmem:[%s3847_s1 + $0x550] ss:$8 sps:$4 sm:$0xff]   ;;  %v2711_v33 = vld [vmem:[%s3847_s1 + $0x564] ss:$8 sps:$4 sm:$0xff]   ;;  %v2718_v48 = vld [vmem:[%s3847_s1 + $0x180] ss:$8 sps:$4 sm:$0xff]  }
  0x26   : > { %v2721_v49 = vld [vmem:[%s3847_s1 + $0x580] ss:$8 sps:$4 sm:$0xff]   ;;  %v2724_v52 = vld [vmem:[%s3847_s1 + $0x190] ss:$8 sps:$4 sm:$0xff]   ;;  %v2732_v54 = vld [vmem:[%s3847_s1 + $0x1a4] ss:$8 sps:$4 sm:$0xff]  }
  0x27   : > { %1840 = vmatpush1.bf16.msra.mxu1 %v2626_v34  ;;  %v2706_v34 = vld [vmem:[%s3847_s1 + $0x160] ss:$8 sps:$4 sm:$0xff]   ;;  %v2727_v53 = vld [vmem:[%s3847_s1 + $0x590] ss:$8 sps:$4 sm:$0xff]   ;;  %v2735_v55 = vld [vmem:[%s3847_s1 + $0x5a4] ss:$8 sps:$4 sm:$0xff]  }
  0x28   : > { %2012 = vmatpush1.bf16.msra.mxu0 %v2627_v35  ;;  %1841 = vmatprep.subr.bf16.mxu1 %v2628_v36  ;;  %v2709_v35 = vld [vmem:[%s3847_s1 + $0x560] ss:$8 sps:$4 sm:$0xff]  }
  0x29   : > { %2013 = vmatprep.subr.bf16.mxu0 %v2630_v37  ;;  %v3285_v36 = vld [vmem:[%s3134_s4 + $0x8] sm:$0xff] }
  0x2a   : > { %v3288_v37 = vld [vmem:[%s3134_s4 + $0x48] sm:$0xff] }
  0x2b   : > { %1842 = vmatpush1.bf16.msra.mxu1 %v2632_v38  ;;  %v2714_v38 = vld [vmem:[%s3847_s1 + $0x174] ss:$8 sps:$4 sm:$0xff]  }
  0x2c   : > { %2014 = vmatpush1.bf16.msra.mxu0 %v2633_v39  ;;  %1843 = vmatprep.subr.bf16.mxu1 %v2634_v40  ;;  %v2717_v39 = vld [vmem:[%s3847_s1 + $0x574] ss:$8 sps:$4 sm:$0xff]   ;;  %v2257_v40 = vcombine.high %v3285_v36, %v3288_v37 }
  0x2d   : > { %2015 = vmatprep.subr.bf16.mxu0 %v2636_v41  ;;  %v3299_v41 = vld [vmem:[%s3134_s4 + $0x28] sm:$0xff] }
  0x2f   : > { %1844 = vmatpush1.bf16.msra.mxu1 %v2638_v42  ;;  %v3302_v42 = vld [vmem:[%s3134_s4 + $0x68] sm:$0xff] }
  0x30   : > { %2016 = vmatpush1.bf16.msra.mxu0 %v2639_v43  ;;  %1845 = vmatprep.subr.bf16.mxu1 %v2640_v44  ;;  %v2265_v43 = vcombine.high %v3299_v41, %v3302_v42  ;;  %v2712_v44 = vld [vmem:[%s3847_s1 + $0x170] ss:$8 sps:$4 sm:$0xff]  }
  0x31   : > { %2017 = vmatprep.subr.bf16.mxu0 %v2642_v45  ;;  %v2715_v45 = vld [vmem:[%s3847_s1 + $0x570] ss:$8 sps:$4 sm:$0xff]  }
  0x33   : > { %1846 = vmatpush1.bf16.msra.mxu1 %v2644_v46  ;;  %v2720_v46 = vld [vmem:[%s3847_s1 + $0x184] ss:$8 sps:$4 sm:$0xff]  }
  0x34   : > { %2018 = vmatpush1.bf16.msra.mxu0 %v2645_v47  ;;  %1847 = vmatprep.subr.bf16.mxu1 %v2646_v50  ;;  %v2723_v47 = vld [vmem:[%s3847_s1 + $0x584] ss:$8 sps:$4 sm:$0xff]   ;;  %v2726_v50 = vld [vmem:[%s3847_s1 + $0x194] ss:$8 sps:$4 sm:$0xff]  }
  0x35   : > { %2019 = vmatprep.subr.bf16.mxu0 %v2648_v51  ;;  %v2729_v51 = vld [vmem:[%s3847_s1 + $0x594] ss:$8 sps:$4 sm:$0xff]  }
  0x37   : > { %1848 = vmatpush1.bf16.msra.mxu1 %v2650_v56  ;;  %v2730_v56 = vld [vmem:[%s3847_s1 + $0x1a0] ss:$8 sps:$4 sm:$0xff]  }
  0x38   : > { %2020 = vmatpush1.bf16.msra.mxu0 %v2651_v57  ;;  %1849 = vmatprep.subr.bf16.mxu1 %v2652_v58  ;;  %v2733_v57 = vld [vmem:[%s3847_s1 + $0x5a0] ss:$8 sps:$4 sm:$0xff]   ;;  %v2738_v58 = vld [vmem:[%s3847_s1 + $0x1b4] ss:$8 sps:$4 sm:$0xff]  }
  0x39   : > { %2021 = vmatprep.subr.bf16.mxu0 %v2654_v59  ;;  %v2741_v59 = vld [vmem:[%s3847_s1 + $0x5b4] ss:$8 sps:$4 sm:$0xff]  }
  0x3b   : > { %1850 = vmatpush1.bf16.msra.mxu1 %v2656_v60  ;;  %v2736_v60 = vld [vmem:[%s3847_s1 + $0x1b0] ss:$8 sps:$4 sm:$0xff]  }
  0x3c   : > { %2022 = vmatpush1.bf16.msra.mxu0 %v2657_v61  ;;  %1851 = vmatprep.subr.bf16.mxu1 %v2658_v62  ;;  %v2739_v61 = vld [vmem:[%s3847_s1 + $0x5b0] ss:$8 sps:$4 sm:$0xff]   ;;  %v2744_v62 = vld [vmem:[%s3847_s1 + $0x1c4] ss:$8 sps:$4 sm:$0xff]  }
  0x3d   : > { %2023 = vmatprep.subr.bf16.mxu0 %v2660_v63  ;;  %v2747_v63 = vld [vmem:[%s3847_s1 + $0x5c4] ss:$8 sps:$4 sm:$0xff]  }
  0x3f   : > { %1852 = vmatpush1.bf16.msra.mxu1 %v2662_v0  ;;  %v2742_v0 = vld [vmem:[%s3847_s1 + $0x1c0] ss:$8 sps:$4 sm:$0xff]  }
  0x40   : > { %2024 = vmatpush1.bf16.msra.mxu0 %v2663_v1  ;;  %1853 = vmatprep.subr.bf16.mxu1 %v2664_v2  ;;  %v2745_v1 = vld [vmem:[%s3847_s1 + $0x5c0] ss:$8 sps:$4 sm:$0xff]   ;;  %v2750_v2 = vld [vmem:[%s3847_s1 + $0x1d4] ss:$8 sps:$4 sm:$0xff]  }
  0x41   : > { %2025 = vmatprep.subr.bf16.mxu0 %v2666_v3  ;;  %v2753_v3 = vld [vmem:[%s3847_s1 + $0x5d4] ss:$8 sps:$4 sm:$0xff]  }
  0x43   : > { %1854 = vmatpush1.bf16.msra.mxu1 %v2668_v4  ;;  %v2748_v4 = vld [vmem:[%s3847_s1 + $0x1d0] ss:$8 sps:$4 sm:$0xff]  }
  0x44   : > { %2026 = vmatpush1.bf16.msra.mxu0 %v2669_v5  ;;  %1866 = vmatprep.subr.bf16.mxu1 %v2672_v6  ;;  %v2751_v5 = vld [vmem:[%s3847_s1 + $0x5d0] ss:$8 sps:$4 sm:$0xff]   ;;  %v2756_v6 = vld [vmem:[%s3847_s1 + $0x1e4] ss:$8 sps:$4 sm:$0xff]  }
  0x45   : > { %2038 = vmatprep.subr.bf16.mxu0 %v2675_v7  ;;  %v2759_v7 = vld [vmem:[%s3847_s1 + $0x5e4] ss:$8 sps:$4 sm:$0xff]  }
  0x46   : > { %1856 = vmatmul.mubr.bf16.vlgmr.msra.gmra.mrb[0].mxu1 %v2254_v8  ;;  %v2754_v8 = vld [vmem:[%s3847_s1 + $0x1e0] ss:$8 sps:$4 sm:$0xff]  }
  0x47   : > { %2028 = vmatmul.mubr.bf16.vlgmr.msra.gmra.mrb[0].mxu0 %v2262_v10  ;;  %1867 = vmatpush1.bf16.msra.mxu1 %v2670_v9  ;;  %v2757_v9 = vld [vmem:[%s3847_s1 + $0x5e0] ss:$8 sps:$4 sm:$0xff]   ;;  %v2762_v10 = vld [vmem:[%s3847_s1 + $0x1f4] ss:$8 sps:$4 sm:$0xff]  }
  0x48   : > { %2039 = vmatpush1.bf16.msra.mxu0 %v2673_v11  ;;  %1868 = vmatprep.subr.bf16.mxu1 %v2678_v12  ;;  %v2765_v11 = vld [vmem:[%s3847_s1 + $0x5f4] ss:$8 sps:$4 sm:$0xff]   ;;  %v2760_v12 = vld [vmem:[%s3847_s1 + $0x1f0] ss:$8 sps:$4 sm:$0xff]  }
  0x49   : > { %2040 = vmatprep.subr.bf16.mxu0 %v2681_v13  ;;  %1898 = vmatprep.mubr.bf16.mxu1 %v2257_v40  ;;  %v2763_v13 = vld [vmem:[%s3847_s1 + $0x5f0] ss:$8 sps:$4 sm:$0xff]   ;;  %v2790_v40 = vld [vmem:[%s3847_s1 + $0x240] ss:$8 sps:$4 sm:$0xff]  }
  0x4a   : > { %2070 = vmatprep.mubr.bf16.mxu0 %v2265_v43  ;;  %v2801_v43 = vld [vmem:[%s3847_s1 + $0x654] ss:$8 sps:$4 sm:$0xff]  }
  0x4b   : > { %1869 = vmatpush1.bf16.msra.mxu1 %v2676_v14  ;;  %v2768_v14 = vld [vmem:[%s3847_s1 + $0x204] ss:$8 sps:$4 sm:$0xff]  }
  0x4c   : > { %2041 = vmatpush1.bf16.msra.mxu0 %v2679_v15  ;;  %1870 = vmatprep.subr.bf16.mxu1 %v2684_v16  ;;  %v2771_v15 = vld [vmem:[%s3847_s1 + $0x604] ss:$8 sps:$4 sm:$0xff]   ;;  %v2256_v16 = vcombine.low %v3285_v36, %v3288_v37  ;;  %v2784_v36 = vld [vmem:[%s3847_s1 + $0x230] ss:$8 sps:$4 sm:$0xff]  }
  0x4d   : > { %2042 = vmatprep.subr.bf16.mxu0 %v2687_v17  ;;  %v2766_v17 = vld [vmem:[%s3847_s1 + $0x200] ss:$8 sps:$4 sm:$0xff]   ;;  %v2787_v37 = vld [vmem:[%s3847_s1 + $0x630] ss:$8 sps:$4 sm:$0xff]  }
  0x4f   : > { %1871 = vmatpush1.bf16.msra.mxu1 %v2682_v18  ;;  %v2264_v18 = vcombine.low %v3299_v41, %v3302_v42  ;;  %v2793_v41 = vld [vmem:[%s3847_s1 + $0x640] ss:$8 sps:$4 sm:$0xff]   ;;  %v2798_v42 = vld [vmem:[%s3847_s1 + $0x254] ss:$8 sps:$4 sm:$0xff]  }
  0x50   : > { %2043 = vmatpush1.bf16.msra.mxu0 %v2685_v19  ;;  %1872 = vmatprep.subr.bf16.mxu1 %v2690_v20  ;;  %v2769_v19 = vld [vmem:[%s3847_s1 + $0x600] ss:$8 sps:$4 sm:$0xff]   ;;  %v2774_v20 = vld [vmem:[%s3847_s1 + $0x214] ss:$8 sps:$4 sm:$0xff]  }
  0x51   : > { %2044 = vmatprep.subr.bf16.mxu0 %v2693_v21  ;;  %v2777_v21 = vld [vmem:[%s3847_s1 + $0x614] ss:$8 sps:$4 sm:$0xff]  }
  0x53   : > { %1873 = vmatpush1.bf16.msra.mxu1 %v2688_v22  ;;  %v2772_v22 = vld [vmem:[%s3847_s1 + $0x210] ss:$8 sps:$4 sm:$0xff]  }
  0x54   : > { %2045 = vmatpush1.bf16.msra.mxu0 %v2691_v23  ;;  %1874 = vmatprep.subr.bf16.mxu1 %v2696_v24  ;;  %v2775_v23 = vld [vmem:[%s3847_s1 + $0x610] ss:$8 sps:$4 sm:$0xff]  }
  0x55   : > { %2046 = vmatprep.subr.bf16.mxu0 %v2699_v25  ;;  %v3437_v24 = vld [vmem:[%s3134_s4 + $0x10] sm:$0xff] }
  0x56   : > { %v3440_v25 = vld [vmem:[%s3134_s4 + $0x50] sm:$0xff] }
  0x57   : > { %1875 = vmatpush1.bf16.msra.mxu1 %v2694_v26  ;;  %v2780_v26 = vld [vmem:[%s3847_s1 + $0x224] ss:$8 sps:$4 sm:$0xff]  }
  0x58   : > { %2047 = vmatpush1.bf16.msra.mxu0 %v2697_v27  ;;  %1876 = vmatprep.subr.bf16.mxu1 %v2702_v28  ;;  %v2783_v27 = vld [vmem:[%s3847_s1 + $0x624] ss:$8 sps:$4 sm:$0xff]   ;;  %v2259_v28 = vcombine.high %v3437_v24, %v3440_v25 }
  0x59   : > { %2048 = vmatprep.subr.bf16.mxu0 %v2705_v29  ;;  %v3451_v29 = vld [vmem:[%s3134_s4 + $0x30] sm:$0xff] }
  0x5b   : > { %1877 = vmatpush1.bf16.msra.mxu1 %v2700_v30  ;;  %v3454_v30 = vld [vmem:[%s3134_s4 + $0x70] sm:$0xff] }
  0x5c   : > { %2049 = vmatpush1.bf16.msra.mxu0 %v2703_v31  ;;  %1878 = vmatprep.subr.bf16.mxu1 %v2708_v32  ;;  %v2267_v31 = vcombine.high %v3451_v29, %v3454_v30  ;;  %v2778_v32 = vld [vmem:[%s3847_s1 + $0x220] ss:$8 sps:$4 sm:$0xff]  }
  0x5d   : > { %2050 = vmatprep.subr.bf16.mxu0 %v2711_v33  ;;  %v2781_v33 = vld [vmem:[%s3847_s1 + $0x620] ss:$8 sps:$4 sm:$0xff]  }
  0x5f   : > { %1879 = vmatpush1.bf16.msra.mxu1 %v2706_v34  ;;  %v2786_v34 = vld [vmem:[%s3847_s1 + $0x234] ss:$8 sps:$4 sm:$0xff]  }
  0x60   : > { %2051 = vmatpush1.bf16.msra.mxu0 %v2709_v35  ;;  %1880 = vmatprep.subr.bf16.mxu1 %v2714_v38  ;;  %v2789_v35 = vld [vmem:[%s3847_s1 + $0x634] ss:$8 sps:$4 sm:$0xff]   ;;  %v2792_v38 = vld [vmem:[%s3847_s1 + $0x244] ss:$8 sps:$4 sm:$0xff]  }
  0x61   : > { %2052 = vmatprep.subr.bf16.mxu0 %v2717_v39  ;;  %v2795_v39 = vld [vmem:[%s3847_s1 + $0x644] ss:$8 sps:$4 sm:$0xff]  }
  0x63   : > { %1881 = vmatpush1.bf16.msra.mxu1 %v2712_v44  ;;  %v2796_v44 = vld [vmem:[%s3847_s1 + $0x250] ss:$8 sps:$4 sm:$0xff]  }
  0x64   : > { %2053 = vmatpush1.bf16.msra.mxu0 %v2715_v45  ;;  %1882 = vmatprep.subr.bf16.mxu1 %v2720_v46  ;;  %v2799_v45 = vld [vmem:[%s3847_s1 + $0x650] ss:$8 sps:$4 sm:$0xff]   ;;  %v2804_v46 = vld [vmem:[%s3847_s1 + $0x264] ss:$8 sps:$4 sm:$0xff]  }
  0x65   : > { %2054 = vmatprep.subr.bf16.mxu0 %v2723_v47  ;;  %v2807_v47 = vld [vmem:[%s3847_s1 + $0x664] ss:$8 sps:$4 sm:$0xff]  }
  0x67   : > { %1883 = vmatpush1.bf16.msra.mxu1 %v2718_v48  ;;  %v2802_v48 = vld [vmem:[%s3847_s1 + $0x260] ss:$8 sps:$4 sm:$0xff]  }
  0x68   : > { %2055 = vmatpush1.bf16.msra.mxu0 %v2721_v49  ;;  %1884 = vmatprep.subr.bf16.mxu1 %v2726_v50  ;;  %v2805_v49 = vld [vmem:[%s3847_s1 + $0x660] ss:$8 sps:$4 sm:$0xff]   ;;  %v2810_v50 = vld [vmem:[%s3847_s1 + $0x274] ss:$8 sps:$4 sm:$0xff]  }
  0x69   : > { %2056 = vmatprep.subr.bf16.mxu0 %v2729_v51  ;;  %v2813_v51 = vld [vmem:[%s3847_s1 + $0x674] ss:$8 sps:$4 sm:$0xff]  }
  0x6b   : > { %1885 = vmatpush1.bf16.msra.mxu1 %v2724_v52  ;;  %v2808_v52 = vld [vmem:[%s3847_s1 + $0x270] ss:$8 sps:$4 sm:$0xff]  }
  0x6c   : > { %2057 = vmatpush1.bf16.msra.mxu0 %v2727_v53  ;;  %1886 = vmatprep.subr.bf16.mxu1 %v2732_v54  ;;  %v2811_v53 = vld [vmem:[%s3847_s1 + $0x670] ss:$8 sps:$4 sm:$0xff]   ;;  %v2816_v54 = vld [vmem:[%s3847_s1 + $0x284] ss:$8 sps:$4 sm:$0xff]  }
  0x6d   : > { %2058 = vmatprep.subr.bf16.mxu0 %v2735_v55  ;;  %v2819_v55 = vld [vmem:[%s3847_s1 + $0x684] ss:$8 sps:$4 sm:$0xff]  }
  0x6f   : > { %1887 = vmatpush1.bf16.msra.mxu1 %v2730_v56  ;;  %v2814_v56 = vld [vmem:[%s3847_s1 + $0x280] ss:$8 sps:$4 sm:$0xff]  }
  0x70   : > { %2059 = vmatpush1.bf16.msra.mxu0 %v2733_v57  ;;  %1888 = vmatprep.subr.bf16.mxu1 %v2738_v58  ;;  %v2817_v57 = vld [vmem:[%s3847_s1 + $0x680] ss:$8 sps:$4 sm:$0xff]   ;;  %v2822_v58 = vld [vmem:[%s3847_s1 + $0x294] ss:$8 sps:$4 sm:$0xff]  }
  0x71   : > { %2060 = vmatprep.subr.bf16.mxu0 %v2741_v59  ;;  %v2825_v59 = vld [vmem:[%s3847_s1 + $0x694] ss:$8 sps:$4 sm:$0xff]  }
  0x73   : > { %1889 = vmatpush1.bf16.msra.mxu1 %v2736_v60  ;;  %v2820_v60 = vld [vmem:[%s3847_s1 + $0x290] ss:$8 sps:$4 sm:$0xff]  }
  0x74   : > { %2061 = vmatpush1.bf16.msra.mxu0 %v2739_v61  ;;  %1890 = vmatprep.subr.bf16.mxu1 %v2744_v62  ;;  %v2823_v61 = vld [vmem:[%s3847_s1 + $0x690] ss:$8 sps:$4 sm:$0xff]   ;;  %v2828_v62 = vld [vmem:[%s3847_s1 + $0x2a4] ss:$8 sps:$4 sm:$0xff]  }
  0x75   : > { %2062 = vmatprep.subr.bf16.mxu0 %v2747_v63  ;;  %v2831_v63 = vld [vmem:[%s3847_s1 + $0x6a4] ss:$8 sps:$4 sm:$0xff]  }
  0x77   : > { %1891 = vmatpush1.bf16.msra.mxu1 %v2742_v0  ;;  %v2826_v0 = vld [vmem:[%s3847_s1 + $0x2a0] ss:$8 sps:$4 sm:$0xff]  }
  0x78   : > { %2063 = vmatpush1.bf16.msra.mxu0 %v2745_v1  ;;  %1892 = vmatprep.subr.bf16.mxu1 %v2750_v2  ;;  %v2829_v1 = vld [vmem:[%s3847_s1 + $0x6a0] ss:$8 sps:$4 sm:$0xff]   ;;  %v2834_v2 = vld [vmem:[%s3847_s1 + $0x2b4] ss:$8 sps:$4 sm:$0xff]  }
  0x79   : > { %2064 = vmatprep.subr.bf16.mxu0 %v2753_v3  ;;  %v2837_v3 = vld [vmem:[%s3847_s1 + $0x6b4] ss:$8 sps:$4 sm:$0xff]  }
  0x7b   : > { %1893 = vmatpush1.bf16.msra.mxu1 %v2748_v4  ;;  %v2832_v4 = vld [vmem:[%s3847_s1 + $0x2b0] ss:$8 sps:$4 sm:$0xff]  }
  0x7c   : > { %2065 = vmatpush1.bf16.msra.mxu0 %v2751_v5  ;;  %1894 = vmatprep.subr.bf16.mxu1 %v2756_v6  ;;  %v2835_v5 = vld [vmem:[%s3847_s1 + $0x6b0] ss:$8 sps:$4 sm:$0xff]   ;;  %v2840_v6 = vld [vmem:[%s3847_s1 + $0x2c4] ss:$8 sps:$4 sm:$0xff]  }
  0x7d   : > { %2066 = vmatprep.subr.bf16.mxu0 %v2759_v7  ;;  %v2843_v7 = vld [vmem:[%s3847_s1 + $0x6c4] ss:$8 sps:$4 sm:$0xff]  }
  0x7f   : > { %1895 = vmatpush1.bf16.msra.mxu1 %v2754_v8  ;;  %v2838_v8 = vld [vmem:[%s3847_s1 + $0x2c0] ss:$8 sps:$4 sm:$0xff]  }
  0x80   : > { %2067 = vmatpush1.bf16.msra.mxu0 %v2757_v9  ;;  %1896 = vmatprep.subr.bf16.mxu1 %v2762_v10  ;;  %v2841_v9 = vld [vmem:[%s3847_s1 + $0x6c0] ss:$8 sps:$4 sm:$0xff]   ;;  %v2846_v10 = vld [vmem:[%s3847_s1 + $0x2d4] ss:$8 sps:$4 sm:$0xff]  }
  0x81   : > { %2068 = vmatprep.subr.bf16.mxu0 %v2765_v11  ;;  %v2849_v11 = vld [vmem:[%s3847_s1 + $0x6d4] ss:$8 sps:$4 sm:$0xff]  }
  0x83   : > { %1897 = vmatpush1.bf16.msra.mxu1 %v2760_v12  ;;  %v2844_v12 = vld [vmem:[%s3847_s1 + $0x2d0] ss:$8 sps:$4 sm:$0xff]  }
  0x84   : > { %2069 = vmatpush1.bf16.msra.mxu0 %v2763_v13  ;;  %1909 = vmatprep.subr.bf16.mxu1 %v2768_v14  ;;  %v2847_v13 = vld [vmem:[%s3847_s1 + $0x6d0] ss:$8 sps:$4 sm:$0xff]   ;;  %v2852_v14 = vld [vmem:[%s3847_s1 + $0x2e4] ss:$8 sps:$4 sm:$0xff]  }
  0x85   : > { %2081 = vmatprep.subr.bf16.mxu0 %v2771_v15  ;;  %v2855_v15 = vld [vmem:[%s3847_s1 + $0x6e4] ss:$8 sps:$4 sm:$0xff]  }
  0x86   : > { %1899 = vmatmul.mubr.bf16.vlgmr.msra.gmra.mrb[0].mxu1 %v2256_v16  ;;  %v2850_v16 = vld [vmem:[%s3847_s1 + $0x2e0] ss:$8 sps:$4 sm:$0xff]  }
  0x87   : > { %2071 = vmatmul.mubr.bf16.vlgmr.msra.gmra.mrb[0].mxu0 %v2264_v18  ;;  %1910 = vmatpush1.bf16.msra.mxu1 %v2766_v17  ;;  %v2853_v17 = vld [vmem:[%s3847_s1 + $0x6e0] ss:$8 sps:$4 sm:$0xff]   ;;  %v2858_v18 = vld [vmem:[%s3847_s1 + $0x2f4] ss:$8 sps:$4 sm:$0xff]  }
  0x88   : > { %2082 = vmatpush1.bf16.msra.mxu0 %v2769_v19  ;;  %1911 = vmatprep.subr.bf16.mxu1 %v2774_v20  ;;  %v2861_v19 = vld [vmem:[%s3847_s1 + $0x6f4] ss:$8 sps:$4 sm:$0xff]   ;;  %v2856_v20 = vld [vmem:[%s3847_s1 + $0x2f0] ss:$8 sps:$4 sm:$0xff]  }
  0x89   : > { %2083 = vmatprep.subr.bf16.mxu0 %v2777_v21  ;;  %1941 = vmatprep.mubr.bf16.mxu1 %v2259_v28  ;;  %v2859_v21 = vld [vmem:[%s3847_s1 + $0x6f0] ss:$8 sps:$4 sm:$0xff]   ;;  %v2266_v28 = vcombine.low %v3451_v29, %v3454_v30 }
  0x8a   : > { %2113 = vmatprep.mubr.bf16.mxu0 %v2267_v31  ;;  %v3634_v31 = vld [vmem:[%s3134_s4 + $0x58] sm:$0xff] }
  0x8b   : > { %1912 = vmatpush1.bf16.msra.mxu1 %v2772_v22  ;;  %v2864_v22 = vld [vmem:[%s3847_s1 + $0x304] ss:$8 sps:$4 sm:$0xff]  }
  0x8c   : > { %2084 = vmatpush1.bf16.msra.mxu0 %v2775_v23  ;;  %1913 = vmatprep.subr.bf16.mxu1 %v2780_v26  ;;  %v2867_v23 = vld [vmem:[%s3847_s1 + $0x704] ss:$8 sps:$4 sm:$0xff]   ;;  %v3627_v26 = vld [vmem:[%s3134_s4 + $0x18] sm:$0xff] }
  0x8d   : > { %2085 = vmatprep.subr.bf16.mxu0 %v2783_v27  ;;  %v2258_v27 = vcombine.low %v3437_v24, %v3440_v25  ;;  %v2870_v24 = vld [vmem:[%s3847_s1 + $0x314] ss:$8 sps:$4 sm:$0xff]   ;;  %v2261_v29 = vcombine.high %v3627_v26, %v3634_v31 }
  0x8e   : > { %v2873_v25 = vld [vmem:[%s3847_s1 + $0x714] ss:$8 sps:$4 sm:$0xff]  }
  0x8f   : > { %1914 = vmatpush1.bf16.msra.mxu1 %v2778_v32  ;;  %v3637_v32 = vld [vmem:[%s3134_s4 + $0x38] sm:$0xff] }
  0x90   : > { %2086 = vmatpush1.bf16.msra.mxu0 %v2781_v33  ;;  %1915 = vmatprep.subr.bf16.mxu1 %v2786_v34  ;;  %v3640_v33 = vld [vmem:[%s3134_s4 + $0x78] sm:$0xff]  ;;  %v2862_v34 = vld [vmem:[%s3847_s1 + $0x300] ss:$8 sps:$4 sm:$0xff]  }
  0x91   : > { %2087 = vmatprep.subr.bf16.mxu0 %v2789_v35  ;;  %v2865_v35 = vld [vmem:[%s3847_s1 + $0x700] ss:$8 sps:$4 sm:$0xff]   ;;  %v2269_v30 = vcombine.high %v3637_v32, %v3640_v33 }
  0x93   : > { %1916 = vmatpush1.bf16.msra.mxu1 %v2784_v36  ;;  %v2868_v36 = vld [vmem:[%s3847_s1 + $0x310] ss:$8 sps:$4 sm:$0xff]  }
  0x94   : > { %2088 = vmatpush1.bf16.msra.mxu0 %v2787_v37  ;;  %1917 = vmatprep.subr.bf16.mxu1 %v2792_v38  ;;  %v2871_v37 = vld [vmem:[%s3847_s1 + $0x710] ss:$8 sps:$4 sm:$0xff]   ;;  %v2876_v38 = vld [vmem:[%s3847_s1 + $0x324] ss:$8 sps:$4 sm:$0xff]  }
  0x95   : > { %2089 = vmatprep.subr.bf16.mxu0 %v2795_v39  ;;  %v2879_v39 = vld [vmem:[%s3847_s1 + $0x724] ss:$8 sps:$4 sm:$0xff]  }
  0x97   : > { %1918 = vmatpush1.bf16.msra.mxu1 %v2790_v40  ;;  %v2874_v40 = vld [vmem:[%s3847_s1 + $0x320] ss:$8 sps:$4 sm:$0xff]  }
  0x98   : > { %2090 = vmatpush1.bf16.msra.mxu0 %v2793_v41  ;;  %1919 = vmatprep.subr.bf16.mxu1 %v2798_v42  ;;  %v2877_v41 = vld [vmem:[%s3847_s1 + $0x720] ss:$8 sps:$4 sm:$0xff]   ;;  %v2882_v42 = vld [vmem:[%s3847_s1 + $0x334] ss:$8 sps:$4 sm:$0xff]  }
  0x99   : > { %2091 = vmatprep.subr.bf16.mxu0 %v2801_v43  ;;  %v2885_v43 = vld [vmem:[%s3847_s1 + $0x734] ss:$8 sps:$4 sm:$0xff]  }
  0x9b   : > { %1920 = vmatpush1.bf16.msra.mxu1 %v2796_v44  ;;  %v2880_v44 = vld [vmem:[%s3847_s1 + $0x330] ss:$8 sps:$4 sm:$0xff]  }
  0x9c   : > { %2092 = vmatpush1.bf16.msra.mxu0 %v2799_v45  ;;  %1921 = vmatprep.subr.bf16.mxu1 %v2804_v46  ;;  %v2883_v45 = vld [vmem:[%s3847_s1 + $0x730] ss:$8 sps:$4 sm:$0xff]   ;;  %v2888_v46 = vld [vmem:[%s3847_s1 + $0x344] ss:$8 sps:$4 sm:$0xff]  }
  0x9d   : > { %2093 = vmatprep.subr.bf16.mxu0 %v2807_v47  ;;  %v2891_v47 = vld [vmem:[%s3847_s1 + $0x744] ss:$8 sps:$4 sm:$0xff]  }
  0x9f   : > { %1922 = vmatpush1.bf16.msra.mxu1 %v2802_v48  ;;  %v2886_v48 = vld [vmem:[%s3847_s1 + $0x340] ss:$8 sps:$4 sm:$0xff]  }
  0xa0   : > { %2094 = vmatpush1.bf16.msra.mxu0 %v2805_v49  ;;  %1923 = vmatprep.subr.bf16.mxu1 %v2810_v50  ;;  %v2889_v49 = vld [vmem:[%s3847_s1 + $0x740] ss:$8 sps:$4 sm:$0xff]   ;;  %v2894_v50 = vld [vmem:[%s3847_s1 + $0x354] ss:$8 sps:$4 sm:$0xff]  }
  0xa1   : > { %2095 = vmatprep.subr.bf16.mxu0 %v2813_v51  ;;  %v2897_v51 = vld [vmem:[%s3847_s1 + $0x754] ss:$8 sps:$4 sm:$0xff]  }
  0xa3   : > { %1924 = vmatpush1.bf16.msra.mxu1 %v2808_v52  ;;  %v2892_v52 = vld [vmem:[%s3847_s1 + $0x350] ss:$8 sps:$4 sm:$0xff]  }
  0xa4   : > { %2096 = vmatpush1.bf16.msra.mxu0 %v2811_v53  ;;  %1925 = vmatprep.subr.bf16.mxu1 %v2816_v54  ;;  %v2895_v53 = vld [vmem:[%s3847_s1 + $0x750] ss:$8 sps:$4 sm:$0xff]   ;;  %v2900_v54 = vld [vmem:[%s3847_s1 + $0x364] ss:$8 sps:$4 sm:$0xff]  }
  0xa5   : > { %2097 = vmatprep.subr.bf16.mxu0 %v2819_v55  ;;  %v2903_v55 = vld [vmem:[%s3847_s1 + $0x764] ss:$8 sps:$4 sm:$0xff]  }
  0xa7   : > { %1926 = vmatpush1.bf16.msra.mxu1 %v2814_v56  ;;  %v2898_v56 = vld [vmem:[%s3847_s1 + $0x360] ss:$8 sps:$4 sm:$0xff]  }
  0xa8   : > { %2098 = vmatpush1.bf16.msra.mxu0 %v2817_v57  ;;  %1927 = vmatprep.subr.bf16.mxu1 %v2822_v58  ;;  %v2901_v57 = vld [vmem:[%s3847_s1 + $0x760] ss:$8 sps:$4 sm:$0xff]   ;;  %v2906_v58 = vld [vmem:[%s3847_s1 + $0x374] ss:$8 sps:$4 sm:$0xff]  }
  0xa9   : > { %2099 = vmatprep.subr.bf16.mxu0 %v2825_v59  ;;  %v2909_v59 = vld [vmem:[%s3847_s1 + $0x774] ss:$8 sps:$4 sm:$0xff]  }
  0xab   : > { %1928 = vmatpush1.bf16.msra.mxu1 %v2820_v60  ;;  %v2904_v60 = vld [vmem:[%s3847_s1 + $0x370] ss:$8 sps:$4 sm:$0xff]  }
  0xac   : > { %2100 = vmatpush1.bf16.msra.mxu0 %v2823_v61  ;;  %1929 = vmatprep.subr.bf16.mxu1 %v2828_v62  ;;  %v2907_v61 = vld [vmem:[%s3847_s1 + $0x770] ss:$8 sps:$4 sm:$0xff]   ;;  %v2912_v62 = vld [vmem:[%s3847_s1 + $0x384] ss:$8 sps:$4 sm:$0xff]  }
  0xad   : > { %2101 = vmatprep.subr.bf16.mxu0 %v2831_v63  ;;  %v2915_v63 = vld [vmem:[%s3847_s1 + $0x784] ss:$8 sps:$4 sm:$0xff]  }
  0xaf   : > { %1930 = vmatpush1.bf16.msra.mxu1 %v2826_v0  ;;  %v2910_v0 = vld [vmem:[%s3847_s1 + $0x380] ss:$8 sps:$4 sm:$0xff]  }
  0xb0   : > { %2102 = vmatpush1.bf16.msra.mxu0 %v2829_v1  ;;  %1931 = vmatprep.subr.bf16.mxu1 %v2834_v2  ;;  %v2913_v1 = vld [vmem:[%s3847_s1 + $0x780] ss:$8 sps:$4 sm:$0xff]   ;;  %v2918_v2 = vld [vmem:[%s3847_s1 + $0x394] ss:$8 sps:$4 sm:$0xff]  }
  0xb1   : > { %2103 = vmatprep.subr.bf16.mxu0 %v2837_v3  ;;  %v2921_v3 = vld [vmem:[%s3847_s1 + $0x794] ss:$8 sps:$4 sm:$0xff]  }
  0xb3   : > { %1932 = vmatpush1.bf16.msra.mxu1 %v2832_v4  ;;  %v2916_v4 = vld [vmem:[%s3847_s1 + $0x390] ss:$8 sps:$4 sm:$0xff]  }
  0xb4   : > { %2104 = vmatpush1.bf16.msra.mxu0 %v2835_v5  ;;  %1933 = vmatprep.subr.bf16.mxu1 %v2840_v6  ;;  %v2919_v5 = vld [vmem:[%s3847_s1 + $0x790] ss:$8 sps:$4 sm:$0xff]   ;;  %v2924_v6 = vld [vmem:[%s3847_s1 + $0x3a4] ss:$8 sps:$4 sm:$0xff]  }
  0xb5   : > { %2105 = vmatprep.subr.bf16.mxu0 %v2843_v7  ;;  %v2927_v7 = vld [vmem:[%s3847_s1 + $0x7a4] ss:$8 sps:$4 sm:$0xff]  }
  0xb7   : > { %1934 = vmatpush1.bf16.msra.mxu1 %v2838_v8  ;;  %v2922_v8 = vld [vmem:[%s3847_s1 + $0x3a0] ss:$8 sps:$4 sm:$0xff]  }
  0xb8   : > { %2106 = vmatpush1.bf16.msra.mxu0 %v2841_v9  ;;  %1935 = vmatprep.subr.bf16.mxu1 %v2846_v10  ;;  %v2925_v9 = vld [vmem:[%s3847_s1 + $0x7a0] ss:$8 sps:$4 sm:$0xff]   ;;  %v2930_v10 = vld [vmem:[%s3847_s1 + $0x3b4] ss:$8 sps:$4 sm:$0xff]  }
  0xb9   : > { %2107 = vmatprep.subr.bf16.mxu0 %v2849_v11  ;;  %v2933_v11 = vld [vmem:[%s3847_s1 + $0x7b4] ss:$8 sps:$4 sm:$0xff]  }
  0xbb   : > { %1936 = vmatpush1.bf16.msra.mxu1 %v2844_v12  ;;  %v2928_v12 = vld [vmem:[%s3847_s1 + $0x3b0] ss:$8 sps:$4 sm:$0xff]  }
  0xbc   : > { %2108 = vmatpush1.bf16.msra.mxu0 %v2847_v13  ;;  %1937 = vmatprep.subr.bf16.mxu1 %v2852_v14  ;;  %v2931_v13 = vld [vmem:[%s3847_s1 + $0x7b0] ss:$8 sps:$4 sm:$0xff]   ;;  %v2936_v14 = vld [vmem:[%s3847_s1 + $0x3c4] ss:$8 sps:$4 sm:$0xff]  }
  0xbd   : > { %2109 = vmatprep.subr.bf16.mxu0 %v2855_v15  ;;  %v2939_v15 = vld [vmem:[%s3847_s1 + $0x7c4] ss:$8 sps:$4 sm:$0xff]  }
  0xbf   : > { %1938 = vmatpush1.bf16.msra.mxu1 %v2850_v16  ;;  %v2934_v16 = vld [vmem:[%s3847_s1 + $0x3c0] ss:$8 sps:$4 sm:$0xff]  }
  0xc0   : > { %2110 = vmatpush1.bf16.msra.mxu0 %v2853_v17  ;;  %1939 = vmatprep.subr.bf16.mxu1 %v2858_v18  ;;  %v2937_v17 = vld [vmem:[%s3847_s1 + $0x7c0] ss:$8 sps:$4 sm:$0xff]   ;;  %v2942_v18 = vld [vmem:[%s3847_s1 + $0x3d4] ss:$8 sps:$4 sm:$0xff]  }
  0xc1   : > { %2111 = vmatprep.subr.bf16.mxu0 %v2861_v19  ;;  %v2945_v19 = vld [vmem:[%s3847_s1 + $0x7d4] ss:$8 sps:$4 sm:$0xff]  }
  0xc3   : > { %1940 = vmatpush1.bf16.msra.mxu1 %v2856_v20  ;;  %v2940_v20 = vld [vmem:[%s3847_s1 + $0x3d0] ss:$8 sps:$4 sm:$0xff]  }
  0xc4   : > { %2112 = vmatpush1.bf16.msra.mxu0 %v2859_v21  ;;  %1952 = vmatprep.subr.bf16.mxu1 %v2864_v22  ;;  %v2943_v21 = vld [vmem:[%s3847_s1 + $0x7d0] ss:$8 sps:$4 sm:$0xff]   ;;  %v2948_v22 = vld [vmem:[%s3847_s1 + $0x3e4] ss:$8 sps:$4 sm:$0xff]  }
  0xc5   : > { %2124 = vmatprep.subr.bf16.mxu0 %v2867_v23  ;;  %v2951_v23 = vld [vmem:[%s3847_s1 + $0x7e4] ss:$8 sps:$4 sm:$0xff]  }
  0xc6   : > { %1942 = vmatmul.mubr.bf16.vlgmr.msra.gmra.mrb[0].mxu1 %v2258_v27  ;;  %v2946_v27 = vld [vmem:[%s3847_s1 + $0x3e0] ss:$8 sps:$4 sm:$0xff]  }
  0xc7   : > { %2114 = vmatmul.mubr.bf16.vlgmr.msra.gmra.mrb[0].mxu0 %v2266_v28  ;;  %1953 = vmatpush1.bf16.msra.mxu1 %v2862_v34  ;;  %v2949_v28 = vld [vmem:[%s3847_s1 + $0x7e0] ss:$8 sps:$4 sm:$0xff]   ;;  %v2954_v34 = vld [vmem:[%s3847_s1 + $0x3f4] ss:$8 sps:$4 sm:$0xff]  }
  0xc8   : > { %2125 = vmatpush1.bf16.msra.mxu0 %v2865_v35  ;;  %1954 = vmatprep.subr.bf16.mxu1 %v2870_v24  ;;  %v2957_v35 = vld [vmem:[%s3847_s1 + $0x7f4] ss:$8 sps:$4 sm:$0xff]   ;;  %v2952_v24 = vld [vmem:[%s3847_s1 + $0x3f0] ss:$8 sps:$4 sm:$0xff]  }
  0xc9   : > { %2126 = vmatprep.subr.bf16.mxu0 %v2873_v25  ;;  %1984 = vmatprep.mubr.bf16.mxu1 %v2261_v29  ;;  %v2955_v25 = vld [vmem:[%s3847_s1 + $0x7f0] ss:$8 sps:$4 sm:$0xff]   ;;  %v2260_v29 = vcombine.low %v3627_v26, %v3634_v31 }
  0xca   : > { %2156 = vmatprep.mubr.bf16.mxu0 %v2269_v30  ;;  %v2268_v30 = vcombine.low %v3637_v32, %v3640_v33 }
  0xcb   : > { %1955 = vmatpush1.bf16.msra.mxu1 %v2868_v36  ;;  %v453_v36 = vlaneseq }
  0xcc   : > { %2127 = vmatpush1.bf16.msra.mxu0 %v2871_v37  ;;  %1956 = vmatprep.subr.bf16.mxu1 %v2876_v38 }
  0xcd   : > { %2128 = vmatprep.subr.bf16.mxu0 %v2879_v39  ;;  %v454_v37 = vshrl.u32 %v453_v36, 7  ;;  %v451_v39 = vld [vmem:[%s3848_s2] sm:$0x3] }
  0xcf   : > { %1957 = vmatpush1.bf16.msra.mxu1 %v2874_v40  ;;  %v455_v38 = vsub.s32 0, %v454_v37  ;;  %v459_v40 = vsub.s32 1, %v454_v37 }
  0xd0   : > { %2129 = vmatpush1.bf16.msra.mxu0 %v2877_v41  ;;  %1958 = vmatprep.subr.bf16.mxu1 %v2882_v42 }
  0xd1   : > { %2130 = vmatprep.subr.bf16.mxu0 %v2885_v43  ;;  %v456_v41 = vrot.slane %v451_v39, %v455_v38  ;;  %v460_v42 = vrot.slane %v451_v39, %v459_v40 }
  0xd3   : > { %1959 = vmatpush1.bf16.msra.mxu1 %v2880_v44 }
  0xd4   : > { %2131 = vmatpush1.bf16.msra.mxu0 %v2883_v45  ;;  %1960 = vmatprep.subr.bf16.mxu1 %v2888_v46 }
  0xd5   : > { %2132 = vmatprep.subr.bf16.mxu0 %v2891_v47 }
  0xd7   : > { %1961 = vmatpush1.bf16.msra.mxu1 %v2886_v48 }
  0xd8   : > { %2133 = vmatpush1.bf16.msra.mxu0 %v2889_v49  ;;  %1962 = vmatprep.subr.bf16.mxu1 %v2894_v50 }
  0xd9   : > { %2134 = vmatprep.subr.bf16.mxu0 %v2897_v51 }
  0xdb   : > { %1963 = vmatpush1.bf16.msra.mxu1 %v2892_v52 }
  0xdc   : > { %2135 = vmatpush1.bf16.msra.mxu0 %v2895_v53  ;;  %1964 = vmatprep.subr.bf16.mxu1 %v2900_v54 }
  0xdd   : > { %2136 = vmatprep.subr.bf16.mxu0 %v2903_v55 }
  0xdf   : > { %1965 = vmatpush1.bf16.msra.mxu1 %v2898_v56 }
  0xe0   : > { %2137 = vmatpush1.bf16.msra.mxu0 %v2901_v57  ;;  %1966 = vmatprep.subr.bf16.mxu1 %v2906_v58 }
  0xe1   : > { %2138 = vmatprep.subr.bf16.mxu0 %v2909_v59 }
  0xe3   : > { %1967 = vmatpush1.bf16.msra.mxu1 %v2904_v60 }
  0xe4   : > { %2139 = vmatpush1.bf16.msra.mxu0 %v2907_v61  ;;  %1968 = vmatprep.subr.bf16.mxu1 %v2912_v62 }
  0xe5   : > { %2140 = vmatprep.subr.bf16.mxu0 %v2915_v63 }
  0xe7   : > { %1969 = vmatpush1.bf16.msra.mxu1 %v2910_v0 }
  0xe8   : > { %2141 = vmatpush1.bf16.msra.mxu0 %v2913_v1  ;;  %1970 = vmatprep.subr.bf16.mxu1 %v2918_v2 }
  0xe9   : > { %2142 = vmatprep.subr.bf16.mxu0 %v2921_v3 }
  0xeb   : > { %1971 = vmatpush1.bf16.msra.mxu1 %v2916_v4 }
  0xec   : > { %2143 = vmatpush1.bf16.msra.mxu0 %v2919_v5  ;;  %1972 = vmatprep.subr.bf16.mxu1 %v2924_v6 }
  0xed   : > { %2144 = vmatprep.subr.bf16.mxu0 %v2927_v7 }
  0xef   : > { %1973 = vmatpush1.bf16.msra.mxu1 %v2922_v8 }
  0xf0   : > { %2145 = vmatpush1.bf16.msra.mxu0 %v2925_v9  ;;  %1974 = vmatprep.subr.bf16.mxu1 %v2930_v10 }
  0xf1   : > { %2146 = vmatprep.subr.bf16.mxu0 %v2933_v11 }
  0xf3   : > { %1975 = vmatpush1.bf16.msra.mxu1 %v2928_v12 }
  0xf4   : > { %2147 = vmatpush1.bf16.msra.mxu0 %v2931_v13  ;;  %1976 = vmatprep.subr.bf16.mxu1 %v2936_v14 }
  0xf5   : > { %2148 = vmatprep.subr.bf16.mxu0 %v2939_v15 }
  0xf7   : > { %1977 = vmatpush1.bf16.msra.mxu1 %v2934_v16 }
  0xf8   : > { %2149 = vmatpush1.bf16.msra.mxu0 %v2937_v17  ;;  %1978 = vmatprep.subr.bf16.mxu1 %v2942_v18 }
  0xf9   : > { %2150 = vmatprep.subr.bf16.mxu0 %v2945_v19 }
  0xfb   : > { %1979 = vmatpush1.bf16.msra.mxu1 %v2940_v20 }
  0xfc   : > { %2151 = vmatpush1.bf16.msra.mxu0 %v2943_v21  ;;  %1980 = vmatprep.subr.bf16.mxu1 %v2948_v22 }
  0xfd   : > { %2152 = vmatprep.subr.bf16.mxu0 %v2951_v23 }
  0xff   : > { %1981 = vmatpush1.bf16.msra.mxu1 %v2946_v27 }
 0x100   : > { %2153 = vmatpush1.bf16.msra.mxu0 %v2949_v28  ;;  %1982 = vmatprep.subr.bf16.mxu1 %v2954_v34 }
 0x101   : > { %2154 = vmatprep.subr.bf16.mxu0 %v2957_v35 }
 0x103   : > { %1983 = vmatpush1.bf16.msra.mxu1 %v2952_v24 }
 0x104   : > { %2155 = vmatpush1.bf16.msra.mxu0 %v2955_v25 }
 0x106   : > { %1985 = vmatmul.mubr.bf16.vlgmr.msra.gmra.mrb[0].mxu1 %v2260_v29 }
 0x107   : > { %2157 = vmatmul.mubr.bf16.vlgmr.msra.gmra.mrb[0].mxu0 %v2268_v30 }
 0x1d9   : > { %v1986_v43 = vpop.f32.mrb[0].mxu1 }
 0x1da   : > { %v2158_v26 = vpop.f32.mrb[0].mxu0  ;;  %v2534_v31 = vadd.f32 %v1986_v43, %v456_v41  ;;  %v1988_v44 = vpop.f32.mrb[1].mxu1 }
 0x1db   : > { %v2160_v32 = vpop.f32.mrb[1].mxu0  ;;  %v2536_v33 = vadd.f32 %v1988_v44, %v460_v42  ;;  %v1990_v45 = vpop.f32.mrb[2].mxu1 }
 0x1dc   : > { %v2162_v46 = vpop.f32.mrb[2].mxu0  ;;  %v2535_v47 = vadd.f32 %v2534_v31, %v2158_v26  ;;  %v2538_v48 = vadd.f32 %v1990_v45, %v456_v41  ;;  %v1992_v49 = vpop.f32.mrb[3].mxu1 }
 0x1dd   : > { %v2164_v50 = vpop.f32.mrb[3].mxu0  ;;  %v2537_v51 = vadd.f32 %v2536_v33, %v2160_v32  ;;  %v2540_v52 = vadd.f32 %v1992_v49, %v460_v42 }
 0x1de   : > { %v2167_v53 = vmax.f32 %v2535_v47, 0.0  ;;  %v2539_v54 = vadd.f32 %v2538_v48, %v2162_v46 }
 0x1df   : > { %v2168_v55 = vmax.f32 %v2537_v51, 0.0  ;;  %v2541_v56 = vadd.f32 %v2540_v52, %v2164_v50 }
 0x1e0   : > { %v2169_v57 = vmax.f32 %v2539_v54, 0.0 }
 0x1e1   : > { %v2532_v58 = vpack.c.bf16 %v2168_v55, %v2167_v53  ;;  %v2170_v59 = vmax.f32 %v2541_v56, 0.0 }
 0x1e3   : > { %2183 = vst [vmem:[%s177_s22] sm:$0xff] %v2532_v58  ;;  %v2533_v60 = vpack.c.bf16 %v2170_v59, %v2169_v57 }
 0x1e5   : > { %2184 = vst [vmem:[%s177_s22 + $0x8] sm:$0xff] %v2533_v60 }
 0x1e6 PF: > { %s13_s12 = sadd.s32 1, %s2964_s12  }
 0x1e7   : > { %p10_p4 = scmp.ge.s32.totalorder %s13_s12, 4  }
 0x1e9   :  { %12 = sbr.rel (!%p10_p4) target bundleno = 1 (0x1), region = 62 }

// kernel: vae_forward.10
= control target key start
LH: loop header
LB: loop body
LE: loop exit
PB: predicated region body
PF: predicated region fallthrough
CT: control target
= control target key end

     0   :  { %s10766_s1 = inlined_call_operand.vmem [shape: bf16[4096,256], index: 1, kind: input, shape index: {}]   ;;  %s10767_s0 = inlined_call_operand.vmem [shape: bf16[8,4096], index: 0, kind: input, shape index: {}]   ;;  %s10768_s4 = inlined_call_operand.vmem [shape: bf16[128,4096], index: 4, kind: input, shape index: {}]   ;;  %s10769_s2 = inlined_call_operand.vmem [shape: f32[1,256], index: 2, kind: input, shape index: {}]   ;;  %s10770_s3 = inlined_call_operand.vmem [shape: f32[8,128], index: 3, kind: input, shape index: {}]   ;;  %s10771_s7 = inlined_call_operand.vmem [shape: f32[8,128], index: 7, kind: output, shape index: {1}]   ;;  %s10772_s8 = inlined_call_operand.vmem [shape: f32[8,128], index: 8, kind: output, shape index: {2}]   ;;  %s10773_s5 = inlined_call_operand.vmem [shape: f32[1,4096], index: 5, kind: input, shape index: {}]   ;;  %s10774_s6 = inlined_call_operand.vmem [shape: bf16[8,4096], index: 6, kind: output, shape index: {0}]  }
   0x1   :  { %v7310_v0 = vld [vmem:[%s10766_s1 + $0x404] ss:$8 sps:$4 sm:$0xff]   ;;  %v7312_v1 = vld [vmem:[%s10766_s1 + $0x400] ss:$8 sps:$4 sm:$0xff]   ;;  %v7313_v2 = vld [vmem:[%s10766_s1 + $0x414] ss:$8 sps:$4 sm:$0xff]  }
   0x2   :  { %3403 = vmatprep.subr.bf16.mxu0 %v7310_v0  ;;  %v7315_v3 = vld [vmem:[%s10766_s1 + $0x410] ss:$8 sps:$4 sm:$0xff]   ;;  %v7316_v4 = vld [vmem:[%s10766_s1 + $0x424] ss:$8 sps:$4 sm:$0xff]   ;;  %v7318_v5 = vld [vmem:[%s10766_s1 + $0x420] ss:$8 sps:$4 sm:$0xff]  }
   0x3   :  { %3404 = vmatpush1.bf16.msra.mxu0 %v7312_v1  ;;  %v7319_v6 = vld [vmem:[%s10766_s1 + $0x434] ss:$8 sps:$4 sm:$0xff]   ;;  %v7321_v7 = vld [vmem:[%s10766_s1 + $0x430] ss:$8 sps:$4 sm:$0xff]   ;;  %v7322_v8 = vld [vmem:[%s10766_s1 + $0x444] ss:$8 sps:$4 sm:$0xff]  }
   0x4   :  { %3405 = vmatprep.subr.bf16.mxu0 %v7313_v2  ;;  %v7324_v9 = vld [vmem:[%s10766_s1 + $0x440] ss:$8 sps:$4 sm:$0xff]   ;;  %v7325_v10 = vld [vmem:[%s10766_s1 + $0x454] ss:$8 sps:$4 sm:$0xff]   ;;  %v7327_v11 = vld [vmem:[%s10766_s1 + $0x450] ss:$8 sps:$4 sm:$0xff]  }
   0x5   :  { %v7328_v12 = vld [vmem:[%s10766_s1 + $0x464] ss:$8 sps:$4 sm:$0xff]   ;;  %v7330_v15 = vld [vmem:[%s10766_s1 + $0x460] ss:$8 sps:$4 sm:$0xff]   ;;  %v7331_v16 = vld [vmem:[%s10766_s1 + $0x474] ss:$8 sps:$4 sm:$0xff]  }
   0x6   :  { %v31_v13 = vld [vmem:[%s10767_s0 + $0x20] sm:$0xff]  ;;  %v7333_v17 = vld [vmem:[%s10766_s1 + $0x470] ss:$8 sps:$4 sm:$0xff]   ;;  %v7337_v20 = vld [vmem:[%s10766_s1 + $0x494] ss:$8 sps:$4 sm:$0xff]  }
   0x7   :  { %3406 = vmatpush1.bf16.msra.mxu0 %v7315_v3  ;;  %v6426_v14 = vcombine.high %v31_v13, %v31_v13  ;;  %v7334_v18 = vld [vmem:[%s10766_s1 + $0x484] ss:$8 sps:$4 sm:$0xff]   ;;  %v7336_v19 = vld [vmem:[%s10766_s1 + $0x480] ss:$8 sps:$4 sm:$0xff]   ;;  %v7339_v21 = vld [vmem:[%s10766_s1 + $0x490] ss:$8 sps:$4 sm:$0xff]   ;;  %v6425_v36 = vcombine.low %v31_v13, %v31_v13 }
   0x8   :  { %3407 = vmatprep.subr.bf16.mxu0 %v7316_v4  ;;  %v7340_v22 = vld [vmem:[%s10766_s1 + $0x4a4] ss:$8 sps:$4 sm:$0xff]   ;;  %v7342_v23 = vld [vmem:[%s10766_s1 + $0x4a0] ss:$8 sps:$4 sm:$0xff]   ;;  %v7343_v24 = vld [vmem:[%s10766_s1 + $0x4b4] ss:$8 sps:$4 sm:$0xff]  }
   0x9   :  { %3435 = vmatprep.mubr.bf16.mxu0 %v6426_v14  ;;  %v7345_v25 = vld [vmem:[%s10766_s1 + $0x4b0] ss:$8 sps:$4 sm:$0xff]   ;;  %v7346_v26 = vld [vmem:[%s10766_s1 + $0x4c4] ss:$8 sps:$4 sm:$0xff]   ;;  %v7348_v27 = vld [vmem:[%s10766_s1 + $0x4c0] ss:$8 sps:$4 sm:$0xff]  }
   0xa   :  { %v7349_v28 = vld [vmem:[%s10766_s1 + $0x4d4] ss:$8 sps:$4 sm:$0xff]   ;;  %v7351_v29 = vld [vmem:[%s10766_s1 + $0x4d0] ss:$8 sps:$4 sm:$0xff]   ;;  %v7352_v30 = vld [vmem:[%s10766_s1 + $0x4e4] ss:$8 sps:$4 sm:$0xff]  }
   0xb   :  { %3408 = vmatpush1.bf16.msra.mxu0 %v7318_v5  ;;  %v7354_v31 = vld [vmem:[%s10766_s1 + $0x4e0] ss:$8 sps:$4 sm:$0xff]   ;;  %v7355_v32 = vld [vmem:[%s10766_s1 + $0x4f4] ss:$8 sps:$4 sm:$0xff]   ;;  %v7357_v33 = vld [vmem:[%s10766_s1 + $0x4f0] ss:$8 sps:$4 sm:$0xff]  }
   0xc   :  { %3409 = vmatprep.subr.bf16.mxu0 %v7319_v6  ;;  %v7362_v34 = vld [vmem:[%s10766_s1 + $0x504] ss:$8 sps:$4 sm:$0xff]   ;;  %v7360_v37 = vld [vmem:[%s10766_s1 + $0x500] ss:$8 sps:$4 sm:$0xff]   ;;  %v7365_v39 = vld [vmem:[%s10766_s1 + $0x514] ss:$8 sps:$4 sm:$0xff]  }
   0xd   :  { %v8261_v35 = vld [vmem:[%s10767_s0 + $0x28] sm:$0xff]  ;;  %v7363_v40 = vld [vmem:[%s10766_s1 + $0x510] ss:$8 sps:$4 sm:$0xff]   ;;  %v7371_v43 = vld [vmem:[%s10766_s1 + $0x534] ss:$8 sps:$4 sm:$0xff]  }
   0xe   :  { %v6428_v38 = vcombine.high %v8261_v35, %v8261_v35  ;;  %v7368_v41 = vld [vmem:[%s10766_s1 + $0x524] ss:$8 sps:$4 sm:$0xff]   ;;  %v7366_v42 = vld [vmem:[%s10766_s1 + $0x520] ss:$8 sps:$4 sm:$0xff]   ;;  %v7369_v44 = vld [vmem:[%s10766_s1 + $0x530] ss:$8 sps:$4 sm:$0xff]  }
   0xf   :  { %3410 = vmatpush1.bf16.msra.mxu0 %v7321_v7  ;;  %v7374_v45 = vld [vmem:[%s10766_s1 + $0x544] ss:$8 sps:$4 sm:$0xff]   ;;  %v7372_v46 = vld [vmem:[%s10766_s1 + $0x540] ss:$8 sps:$4 sm:$0xff]   ;;  %v7377_v47 = vld [vmem:[%s10766_s1 + $0x554] ss:$8 sps:$4 sm:$0xff]   ;;  %v6427_v7 = vcombine.low %v8261_v35, %v8261_v35 }
  0x10   :  { %3411 = vmatprep.subr.bf16.mxu0 %v7322_v8  ;;  %v7375_v48 = vld [vmem:[%s10766_s1 + $0x550] ss:$8 sps:$4 sm:$0xff]   ;;  %v7380_v49 = vld [vmem:[%s10766_s1 + $0x564] ss:$8 sps:$4 sm:$0xff]   ;;  %v7378_v50 = vld [vmem:[%s10766_s1 + $0x560] ss:$8 sps:$4 sm:$0xff]  }
  0x11   :  { %v7383_v51 = vld [vmem:[%s10766_s1 + $0x574] ss:$8 sps:$4 sm:$0xff]   ;;  %v7381_v52 = vld [vmem:[%s10766_s1 + $0x570] ss:$8 sps:$4 sm:$0xff]   ;;  %v7386_v53 = vld [vmem:[%s10766_s1 + $0x584] ss:$8 sps:$4 sm:$0xff]  }
  0x12   :  { %v7384_v54 = vld [vmem:[%s10766_s1 + $0x580] ss:$8 sps:$4 sm:$0xff]   ;;  %v7389_v55 = vld [vmem:[%s10766_s1 + $0x594] ss:$8 sps:$4 sm:$0xff]   ;;  %v7387_v56 = vld [vmem:[%s10766_s1 + $0x590] ss:$8 sps:$4 sm:$0xff]  }
  0x13   :  { %3412 = vmatpush1.bf16.msra.mxu0 %v7324_v9  ;;  %v7392_v57 = vld [vmem:[%s10766_s1 + $0x5a4] ss:$8 sps:$4 sm:$0xff]   ;;  %v7390_v58 = vld [vmem:[%s10766_s1 + $0x5a0] ss:$8 sps:$4 sm:$0xff]   ;;  %v7395_v59 = vld [vmem:[%s10766_s1 + $0x5b4] ss:$8 sps:$4 sm:$0xff]  }
  0x14   :  { %3413 = vmatprep.subr.bf16.mxu0 %v7325_v10  ;;  %v7393_v60 = vld [vmem:[%s10766_s1 + $0x5b0] ss:$8 sps:$4 sm:$0xff]   ;;  %v7398_v61 = vld [vmem:[%s10766_s1 + $0x5c4] ss:$8 sps:$4 sm:$0xff]   ;;  %v7396_v62 = vld [vmem:[%s10766_s1 + $0x5c0] ss:$8 sps:$4 sm:$0xff]  }
  0x15   :  { %v7401_v63 = vld [vmem:[%s10766_s1 + $0x5d4] ss:$8 sps:$4 sm:$0xff]   ;;  %v7399_v0 = vld [vmem:[%s10766_s1 + $0x5d0] ss:$8 sps:$4 sm:$0xff]   ;;  %v7404_v1 = vld [vmem:[%s10766_s1 + $0x5e4] ss:$8 sps:$4 sm:$0xff]  }
  0x16   :  { %v7402_v2 = vld [vmem:[%s10766_s1 + $0x5e0] ss:$8 sps:$4 sm:$0xff]   ;;  %v7407_v3 = vld [vmem:[%s10766_s1 + $0x5f4] ss:$8 sps:$4 sm:$0xff]   ;;  %v7405_v4 = vld [vmem:[%s10766_s1 + $0x5f0] ss:$8 sps:$4 sm:$0xff]  }
  0x17   :  { %3414 = vmatpush1.bf16.msra.mxu0 %v7327_v11  ;;  %v7412_v5 = vld [vmem:[%s10766_s1 + $0x604] ss:$8 sps:$4 sm:$0xff]   ;;  %v8364_v6 = vld [vmem:[%s10767_s0 + $0x30] sm:$0xff]  ;;  %v7410_v8 = vld [vmem:[%s10766_s1 + $0x600] ss:$8 sps:$4 sm:$0xff]  }
  0x18   :  { %3415 = vmatprep.subr.bf16.mxu0 %v7328_v12  ;;  %v7415_v9 = vld [vmem:[%s10766_s1 + $0x614] ss:$8 sps:$4 sm:$0xff]   ;;  %v6430_v10 = vcombine.high %v8364_v6, %v8364_v6  ;;  %v7413_v11 = vld [vmem:[%s10766_s1 + $0x610] ss:$8 sps:$4 sm:$0xff]   ;;  %v7418_v12 = vld [vmem:[%s10766_s1 + $0x624] ss:$8 sps:$4 sm:$0xff]  }
  0x19   :  { %v7416_v13 = vld [vmem:[%s10766_s1 + $0x620] ss:$8 sps:$4 sm:$0xff]   ;;  %v7421_v14 = vld [vmem:[%s10766_s1 + $0x634] ss:$8 sps:$4 sm:$0xff]   ;;  %v7449_v35 = vld [vmem:[%s10766_s1 + $0x6d0] ss:$8 sps:$4 sm:$0xff]  }
  0x1b   :  { %3416 = vmatpush1.bf16.msra.mxu0 %v7330_v15  ;;  %v7419_v15 = vld [vmem:[%s10766_s1 + $0x630] ss:$8 sps:$4 sm:$0xff]  }
  0x1c   :  { %3417 = vmatprep.subr.bf16.mxu0 %v7331_v16  ;;  %v7424_v16 = vld [vmem:[%s10766_s1 + $0x644] ss:$8 sps:$4 sm:$0xff]  }
  0x1f   :  { %3418 = vmatpush1.bf16.msra.mxu0 %v7333_v17  ;;  %v7422_v17 = vld [vmem:[%s10766_s1 + $0x640] ss:$8 sps:$4 sm:$0xff]  }
  0x20   :  { %3419 = vmatprep.subr.bf16.mxu0 %v7334_v18  ;;  %v7427_v18 = vld [vmem:[%s10766_s1 + $0x654] ss:$8 sps:$4 sm:$0xff]  }
  0x23   :  { %3420 = vmatpush1.bf16.msra.mxu0 %v7336_v19  ;;  %v7425_v19 = vld [vmem:[%s10766_s1 + $0x650] ss:$8 sps:$4 sm:$0xff]  }
  0x24   :  { %3421 = vmatprep.subr.bf16.mxu0 %v7337_v20  ;;  %v7430_v20 = vld [vmem:[%s10766_s1 + $0x664] ss:$8 sps:$4 sm:$0xff]  }
  0x27   :  { %3422 = vmatpush1.bf16.msra.mxu0 %v7339_v21  ;;  %v7428_v21 = vld [vmem:[%s10766_s1 + $0x660] ss:$8 sps:$4 sm:$0xff]  }
  0x28   :  { %3423 = vmatprep.subr.bf16.mxu0 %v7340_v22  ;;  %v7433_v22 = vld [vmem:[%s10766_s1 + $0x674] ss:$8 sps:$4 sm:$0xff]  }
  0x2b   :  { %3424 = vmatpush1.bf16.msra.mxu0 %v7342_v23  ;;  %v7431_v23 = vld [vmem:[%s10766_s1 + $0x670] ss:$8 sps:$4 sm:$0xff]  }
  0x2c   :  { %3425 = vmatprep.subr.bf16.mxu0 %v7343_v24  ;;  %v7436_v24 = vld [vmem:[%s10766_s1 + $0x684] ss:$8 sps:$4 sm:$0xff]  }
  0x2f   :  { %3426 = vmatpush1.bf16.msra.mxu0 %v7345_v25  ;;  %v7434_v25 = vld [vmem:[%s10766_s1 + $0x680] ss:$8 sps:$4 sm:$0xff]  }
  0x30   :  { %3427 = vmatprep.subr.bf16.mxu0 %v7346_v26  ;;  %v7439_v26 = vld [vmem:[%s10766_s1 + $0x694] ss:$8 sps:$4 sm:$0xff]  }
  0x33   :  { %3428 = vmatpush1.bf16.msra.mxu0 %v7348_v27  ;;  %v7437_v27 = vld [vmem:[%s10766_s1 + $0x690] ss:$8 sps:$4 sm:$0xff]  }
  0x34   :  { %3429 = vmatprep.subr.bf16.mxu0 %v7349_v28  ;;  %v7442_v28 = vld [vmem:[%s10766_s1 + $0x6a4] ss:$8 sps:$4 sm:$0xff]  }
  0x37   :  { %3430 = vmatpush1.bf16.msra.mxu0 %v7351_v29  ;;  %v7440_v29 = vld [vmem:[%s10766_s1 + $0x6a0] ss:$8 sps:$4 sm:$0xff]  }
  0x38   :  { %3431 = vmatprep.subr.bf16.mxu0 %v7352_v30  ;;  %v7445_v30 = vld [vmem:[%s10766_s1 + $0x6b4] ss:$8 sps:$4 sm:$0xff]  }
  0x3b   :  { %3432 = vmatpush1.bf16.msra.mxu0 %v7354_v31  ;;  %v7443_v31 = vld [vmem:[%s10766_s1 + $0x6b0] ss:$8 sps:$4 sm:$0xff]  }
  0x3c   :  { %3433 = vmatprep.subr.bf16.mxu0 %v7355_v32  ;;  %v7448_v32 = vld [vmem:[%s10766_s1 + $0x6c4] ss:$8 sps:$4 sm:$0xff]  }
  0x3f   :  { %3434 = vmatpush1.bf16.msra.mxu0 %v7357_v33  ;;  %v7446_v33 = vld [vmem:[%s10766_s1 + $0x6c0] ss:$8 sps:$4 sm:$0xff]  }
  0x40   :  { %3444 = vmatprep.subr.bf16.mxu0 %v7362_v34  ;;  %v7451_v34 = vld [vmem:[%s10766_s1 + $0x6d4] ss:$8 sps:$4 sm:$0xff]  }
  0x42   :  { %3436 = vmatmul.mubr.bf16.vlgmr.msra.gmra.mrb[0].mxu0 %v6425_v36  ;;  %v7454_v36 = vld [vmem:[%s10766_s1 + $0x6e4] ss:$8 sps:$4 sm:$0xff]  }
  0x43   :  { %3445 = vmatpush1.bf16.msra.mxu0 %v7360_v37  ;;  %3476 = vmatprep.mubr.bf16.mxu0 %v6428_v38  ;;  %v7452_v37 = vld [vmem:[%s10766_s1 + $0x6e0] ss:$8 sps:$4 sm:$0xff]   ;;  %v7457_v38 = vld [vmem:[%s10766_s1 + $0x6f4] ss:$8 sps:$4 sm:$0xff]  }
  0x44   :  { %3446 = vmatprep.subr.bf16.mxu0 %v7365_v39  ;;  %v7455_v39 = vld [vmem:[%s10766_s1 + $0x6f0] ss:$8 sps:$4 sm:$0xff]  }
  0x47   :  { %3447 = vmatpush1.bf16.msra.mxu0 %v7363_v40  ;;  %v7462_v40 = vld [vmem:[%s10766_s1 + $0x704] ss:$8 sps:$4 sm:$0xff]  }
  0x48   :  { %3448 = vmatprep.subr.bf16.mxu0 %v7368_v41  ;;  %v8469_v41 = vld [vmem:[%s10767_s0 + $0x38] sm:$0xff] }
  0x4b   :  { %3449 = vmatpush1.bf16.msra.mxu0 %v7366_v42  ;;  %v7555_v42 = vld [vmem:[%s10766_s1 + $0x4] ss:$8 sps:$4 sm:$0xff]  }
  0x4c   :  { %3450 = vmatprep.subr.bf16.mxu0 %v7371_v43  ;;  %v7560_v43 = vld [vmem:[%s10766_s1] ss:$8 sps:$4 sm:$0xff]   ;;  %3239 = vmatprep.subr.bf16.mxu1 %v7555_v42  ;;  %v7652_v42 = vld [vmem:[%s10766_s1 + $0xf0] ss:$8 sps:$4 sm:$0xff]  }
  0x4d   :  { %3240 = vmatpush1.bf16.msra.mxu1 %v7560_v43  ;;  %v7505_v43 = vld [vmem:[%s10766_s1 + $0x7f0] ss:$8 sps:$4 sm:$0xff]  }
  0x4f   :  { %3451 = vmatpush1.bf16.msra.mxu0 %v7369_v44  ;;  %v6429_v44 = vcombine.low %v8364_v6, %v8364_v6  ;;  %v7478_v6 = vld [vmem:[%s10766_s1 + $0x760] ss:$8 sps:$4 sm:$0xff]  }
  0x50   :  { %3452 = vmatprep.subr.bf16.mxu0 %v7374_v45  ;;  %v7460_v45 = vld [vmem:[%s10766_s1 + $0x700] ss:$8 sps:$4 sm:$0xff]  }
  0x53   :  { %3453 = vmatpush1.bf16.msra.mxu0 %v7372_v46  ;;  %v6432_v46 = vcombine.high %v8469_v41, %v8469_v41 }
  0x54   :  { %3454 = vmatprep.subr.bf16.mxu0 %v7377_v47  ;;  %v7561_v47 = vld [vmem:[%s10766_s1 + $0x14] ss:$8 sps:$4 sm:$0xff]  }
  0x55   :  { %3241 = vmatprep.subr.bf16.mxu1 %v7561_v47  ;;  %v8676_v47 = vld [vmem:[%s10767_s0 + $0x40] sm:$0xff] }
  0x57   :  { %3455 = vmatpush1.bf16.msra.mxu0 %v7375_v48  ;;  %v7465_v48 = vld [vmem:[%s10766_s1 + $0x714] ss:$8 sps:$4 sm:$0xff]  }
  0x58   :  { %3456 = vmatprep.subr.bf16.mxu0 %v7380_v49  ;;  %v7568_v49 = vld [vmem:[%s10766_s1 + $0x10] ss:$8 sps:$4 sm:$0xff]  }
  0x59   :  { %3242 = vmatpush1.bf16.msra.mxu1 %v7568_v49 }
  0x5b   :  { %3457 = vmatpush1.bf16.msra.mxu0 %v7378_v50  ;;  %v7463_v50 = vld [vmem:[%s10766_s1 + $0x710] ss:$8 sps:$4 sm:$0xff]  }
  0x5c   :  { %3458 = vmatprep.subr.bf16.mxu0 %v7383_v51  ;;  %v7468_v51 = vld [vmem:[%s10766_s1 + $0x724] ss:$8 sps:$4 sm:$0xff]  }
  0x5f   :  { %3459 = vmatpush1.bf16.msra.mxu0 %v7381_v52  ;;  %v7569_v52 = vld [vmem:[%s10766_s1 + $0x24] ss:$8 sps:$4 sm:$0xff]  }
  0x60   :  { %3460 = vmatprep.subr.bf16.mxu0 %v7386_v53  ;;  %v7574_v53 = vld [vmem:[%s10766_s1 + $0x20] ss:$8 sps:$4 sm:$0xff]   ;;  %3243 = vmatprep.subr.bf16.mxu1 %v7569_v52 }
  0x61   :  { %3244 = vmatpush1.bf16.msra.mxu1 %v7574_v53  ;;  %v7510_v52 = vld [vmem:[%s10766_s1 + $0x800] ss:$8 sps:$4 sm:$0xff]   ;;  %v6434_v53 = vcombine.high %v8676_v47, %v8676_v47 }
  0x63   :  { %3461 = vmatpush1.bf16.msra.mxu0 %v7384_v54  ;;  %v7466_v54 = vld [vmem:[%s10766_s1 + $0x720] ss:$8 sps:$4 sm:$0xff]  }
  0x64   :  { %3462 = vmatprep.subr.bf16.mxu0 %v7389_v55  ;;  %v7471_v55 = vld [vmem:[%s10766_s1 + $0x734] ss:$8 sps:$4 sm:$0xff]  }
  0x67   :  { %3463 = vmatpush1.bf16.msra.mxu0 %v7387_v56  ;;  %v7575_v56 = vld [vmem:[%s10766_s1 + $0x34] ss:$8 sps:$4 sm:$0xff]  }
  0x68   :  { %3464 = vmatprep.subr.bf16.mxu0 %v7392_v57  ;;  %v7580_v57 = vld [vmem:[%s10766_s1 + $0x30] ss:$8 sps:$4 sm:$0xff]   ;;  %3245 = vmatprep.subr.bf16.mxu1 %v7575_v56 }
  0x69   :  { %3246 = vmatpush1.bf16.msra.mxu1 %v7580_v57  ;;  %v7513_v56 = vld [vmem:[%s10766_s1 + $0x810] ss:$8 sps:$4 sm:$0xff]   ;;  %v7671_v57 = vld [vmem:[%s10766_s1 + $0x124] ss:$8 sps:$4 sm:$0xff]  }
  0x6b   :  { %3465 = vmatpush1.bf16.msra.mxu0 %v7390_v58  ;;  %v7469_v58 = vld [vmem:[%s10766_s1 + $0x730] ss:$8 sps:$4 sm:$0xff]  }
  0x6c   :  { %3466 = vmatprep.subr.bf16.mxu0 %v7395_v59  ;;  %v7474_v59 = vld [vmem:[%s10766_s1 + $0x744] ss:$8 sps:$4 sm:$0xff]  }
  0x6f   :  { %3467 = vmatpush1.bf16.msra.mxu0 %v7393_v60  ;;  %v7581_v60 = vld [vmem:[%s10766_s1 + $0x44] ss:$8 sps:$4 sm:$0xff]  }
  0x70   :  { %3468 = vmatprep.subr.bf16.mxu0 %v7398_v61  ;;  %v7586_v61 = vld [vmem:[%s10766_s1 + $0x40] ss:$8 sps:$4 sm:$0xff]   ;;  %3247 = vmatprep.subr.bf16.mxu1 %v7581_v60 }
  0x71   :  { %3248 = vmatpush1.bf16.msra.mxu1 %v7586_v61  ;;  %v7516_v60 = vld [vmem:[%s10766_s1 + $0x820] ss:$8 sps:$4 sm:$0xff]   ;;  %v7677_v61 = vld [vmem:[%s10766_s1 + $0x134] ss:$8 sps:$4 sm:$0xff]  }
  0x73   :  { %3469 = vmatpush1.bf16.msra.mxu0 %v7396_v62  ;;  %v7472_v62 = vld [vmem:[%s10766_s1 + $0x740] ss:$8 sps:$4 sm:$0xff]  }
  0x74   :  { %3470 = vmatprep.subr.bf16.mxu0 %v7401_v63  ;;  %v7477_v63 = vld [vmem:[%s10766_s1 + $0x754] ss:$8 sps:$4 sm:$0xff]  }
  0x77   :  { %3471 = vmatpush1.bf16.msra.mxu0 %v7399_v0  ;;  %v7587_v0 = vld [vmem:[%s10766_s1 + $0x54] ss:$8 sps:$4 sm:$0xff]  }
  0x78   :  { %3472 = vmatprep.subr.bf16.mxu0 %v7404_v1  ;;  %v7592_v1 = vld [vmem:[%s10766_s1 + $0x50] ss:$8 sps:$4 sm:$0xff]   ;;  %3249 = vmatprep.subr.bf16.mxu1 %v7587_v0 }
  0x79   :  { %3250 = vmatpush1.bf16.msra.mxu1 %v7592_v1  ;;  %v7519_v0 = vld [vmem:[%s10766_s1 + $0x830] ss:$8 sps:$4 sm:$0xff]   ;;  %v7683_v1 = vld [vmem:[%s10766_s1 + $0x144] ss:$8 sps:$4 sm:$0xff]  }
  0x7b   :  { %3473 = vmatpush1.bf16.msra.mxu0 %v7402_v2  ;;  %v7475_v2 = vld [vmem:[%s10766_s1 + $0x750] ss:$8 sps:$4 sm:$0xff]  }
  0x7c   :  { %3474 = vmatprep.subr.bf16.mxu0 %v7407_v3  ;;  %v7480_v3 = vld [vmem:[%s10766_s1 + $0x764] ss:$8 sps:$4 sm:$0xff]  }
  0x7f   :  { %3475 = vmatpush1.bf16.msra.mxu0 %v7405_v4  ;;  %v7593_v4 = vld [vmem:[%s10766_s1 + $0x64] ss:$8 sps:$4 sm:$0xff]  }
  0x80   :  { %3485 = vmatprep.subr.bf16.mxu0 %v7412_v5  ;;  %v7598_v5 = vld [vmem:[%s10766_s1 + $0x60] ss:$8 sps:$4 sm:$0xff]   ;;  %3251 = vmatprep.subr.bf16.mxu1 %v7593_v4 }
  0x81   :  { %3252 = vmatpush1.bf16.msra.mxu1 %v7598_v5  ;;  %v7522_v4 = vld [vmem:[%s10766_s1 + $0x840] ss:$8 sps:$4 sm:$0xff]   ;;  %v7689_v5 = vld [vmem:[%s10766_s1 + $0x154] ss:$8 sps:$4 sm:$0xff]  }
  0x82   :  { %3477 = vmatmul.mubr.bf16.vlgmr.msra.gmra.mrb[0].mxu0 %v6427_v7  ;;  %v7483_v7 = vld [vmem:[%s10766_s1 + $0x774] ss:$8 sps:$4 sm:$0xff]  }
  0x83   :  { %3486 = vmatpush1.bf16.msra.mxu0 %v7410_v8  ;;  %3517 = vmatprep.mubr.bf16.mxu0 %v6430_v10  ;;  %v7599_v8 = vld [vmem:[%s10766_s1 + $0x74] ss:$8 sps:$4 sm:$0xff]   ;;  %v7481_v10 = vld [vmem:[%s10766_s1 + $0x770] ss:$8 sps:$4 sm:$0xff]  }
  0x84   :  { %3487 = vmatprep.subr.bf16.mxu0 %v7415_v9  ;;  %v7604_v9 = vld [vmem:[%s10766_s1 + $0x70] ss:$8 sps:$4 sm:$0xff]   ;;  %3253 = vmatprep.subr.bf16.mxu1 %v7599_v8 }
  0x85   :  { %3254 = vmatpush1.bf16.msra.mxu1 %v7604_v9  ;;  %v7525_v8 = vld [vmem:[%s10766_s1 + $0x850] ss:$8 sps:$4 sm:$0xff]   ;;  %v7695_v9 = vld [vmem:[%s10766_s1 + $0x164] ss:$8 sps:$4 sm:$0xff]  }
  0x87   :  { %3488 = vmatpush1.bf16.msra.mxu0 %v7413_v11  ;;  %v7486_v11 = vld [vmem:[%s10766_s1 + $0x784] ss:$8 sps:$4 sm:$0xff]  }
  0x88   :  { %3489 = vmatprep.subr.bf16.mxu0 %v7418_v12  ;;  %v7605_v12 = vld [vmem:[%s10766_s1 + $0x84] ss:$8 sps:$4 sm:$0xff]  }
  0x89   :  { %3255 = vmatprep.subr.bf16.mxu1 %v7605_v12  ;;  %v7528_v12 = vld [vmem:[%s10766_s1 + $0x860] ss:$8 sps:$4 sm:$0xff]  }
  0x8b   :  { %3490 = vmatpush1.bf16.msra.mxu0 %v7416_v13  ;;  %v7610_v13 = vld [vmem:[%s10766_s1 + $0x80] ss:$8 sps:$4 sm:$0xff]  }
  0x8c   :  { %3491 = vmatprep.subr.bf16.mxu0 %v7421_v14  ;;  %3256 = vmatpush1.bf16.msra.mxu1 %v7610_v13  ;;  %v7484_v14 = vld [vmem:[%s10766_s1 + $0x780] ss:$8 sps:$4 sm:$0xff]   ;;  %v7701_v13 = vld [vmem:[%s10766_s1 + $0x174] ss:$8 sps:$4 sm:$0xff]  }
  0x8f   :  { %3492 = vmatpush1.bf16.msra.mxu0 %v7419_v15  ;;  %v7489_v15 = vld [vmem:[%s10766_s1 + $0x794] ss:$8 sps:$4 sm:$0xff]  }
  0x90   :  { %3493 = vmatprep.subr.bf16.mxu0 %v7424_v16  ;;  %v7611_v16 = vld [vmem:[%s10766_s1 + $0x94] ss:$8 sps:$4 sm:$0xff]  }
  0x91   :  { %3257 = vmatprep.subr.bf16.mxu1 %v7611_v16  ;;  %v7531_v16 = vld [vmem:[%s10766_s1 + $0x870] ss:$8 sps:$4 sm:$0xff]  }
  0x93   :  { %3494 = vmatpush1.bf16.msra.mxu0 %v7422_v17  ;;  %v7616_v17 = vld [vmem:[%s10766_s1 + $0x90] ss:$8 sps:$4 sm:$0xff]  }
  0x94   :  { %3495 = vmatprep.subr.bf16.mxu0 %v7427_v18  ;;  %3258 = vmatpush1.bf16.msra.mxu1 %v7616_v17  ;;  %v7487_v18 = vld [vmem:[%s10766_s1 + $0x790] ss:$8 sps:$4 sm:$0xff]   ;;  %v7707_v17 = vld [vmem:[%s10766_s1 + $0x184] ss:$8 sps:$4 sm:$0xff]  }
  0x97   :  { %3496 = vmatpush1.bf16.msra.mxu0 %v7425_v19  ;;  %v7492_v19 = vld [vmem:[%s10766_s1 + $0x7a4] ss:$8 sps:$4 sm:$0xff]  }
  0x98   :  { %3497 = vmatprep.subr.bf16.mxu0 %v7430_v20  ;;  %v7617_v20 = vld [vmem:[%s10766_s1 + $0xa4] ss:$8 sps:$4 sm:$0xff]  }
  0x99   :  { %3259 = vmatprep.subr.bf16.mxu1 %v7617_v20  ;;  %v7534_v20 = vld [vmem:[%s10766_s1 + $0x880] ss:$8 sps:$4 sm:$0xff]  }
  0x9b   :  { %3498 = vmatpush1.bf16.msra.mxu0 %v7428_v21  ;;  %v7622_v21 = vld [vmem:[%s10766_s1 + $0xa0] ss:$8 sps:$4 sm:$0xff]  }
  0x9c   :  { %3499 = vmatprep.subr.bf16.mxu0 %v7433_v22  ;;  %3260 = vmatpush1.bf16.msra.mxu1 %v7622_v21  ;;  %v7490_v22 = vld [vmem:[%s10766_s1 + $0x7a0] ss:$8 sps:$4 sm:$0xff]   ;;  %v7713_v21 = vld [vmem:[%s10766_s1 + $0x194] ss:$8 sps:$4 sm:$0xff]  }
  0x9f   :  { %3500 = vmatpush1.bf16.msra.mxu0 %v7431_v23  ;;  %v7495_v23 = vld [vmem:[%s10766_s1 + $0x7b4] ss:$8 sps:$4 sm:$0xff]  }
  0xa0   :  { %3501 = vmatprep.subr.bf16.mxu0 %v7436_v24  ;;  %v7623_v24 = vld [vmem:[%s10766_s1 + $0xb4] ss:$8 sps:$4 sm:$0xff]  }
  0xa1   :  { %3261 = vmatprep.subr.bf16.mxu1 %v7623_v24  ;;  %v7537_v24 = vld [vmem:[%s10766_s1 + $0x890] ss:$8 sps:$4 sm:$0xff]  }
  0xa3   :  { %3502 = vmatpush1.bf16.msra.mxu0 %v7434_v25  ;;  %v7628_v25 = vld [vmem:[%s10766_s1 + $0xb0] ss:$8 sps:$4 sm:$0xff]  }
  0xa4   :  { %3503 = vmatprep.subr.bf16.mxu0 %v7439_v26  ;;  %3262 = vmatpush1.bf16.msra.mxu1 %v7628_v25  ;;  %v7493_v26 = vld [vmem:[%s10766_s1 + $0x7b0] ss:$8 sps:$4 sm:$0xff]   ;;  %v7719_v25 = vld [vmem:[%s10766_s1 + $0x1a4] ss:$8 sps:$4 sm:$0xff]  }
  0xa7   :  { %3504 = vmatpush1.bf16.msra.mxu0 %v7437_v27  ;;  %v7498_v27 = vld [vmem:[%s10766_s1 + $0x7c4] ss:$8 sps:$4 sm:$0xff]  }
  0xa8   :  { %3505 = vmatprep.subr.bf16.mxu0 %v7442_v28  ;;  %v7629_v28 = vld [vmem:[%s10766_s1 + $0xc4] ss:$8 sps:$4 sm:$0xff]  }
  0xa9   :  { %3263 = vmatprep.subr.bf16.mxu1 %v7629_v28  ;;  %v7540_v28 = vld [vmem:[%s10766_s1 + $0x8a0] ss:$8 sps:$4 sm:$0xff]  }
  0xab   :  { %3506 = vmatpush1.bf16.msra.mxu0 %v7440_v29  ;;  %v7634_v29 = vld [vmem:[%s10766_s1 + $0xc0] ss:$8 sps:$4 sm:$0xff]  }
  0xac   :  { %3507 = vmatprep.subr.bf16.mxu0 %v7445_v30  ;;  %3264 = vmatpush1.bf16.msra.mxu1 %v7634_v29  ;;  %v7496_v30 = vld [vmem:[%s10766_s1 + $0x7c0] ss:$8 sps:$4 sm:$0xff]   ;;  %v7725_v29 = vld [vmem:[%s10766_s1 + $0x1b4] ss:$8 sps:$4 sm:$0xff]  }
  0xaf   :  { %3508 = vmatpush1.bf16.msra.mxu0 %v7443_v31  ;;  %v7501_v31 = vld [vmem:[%s10766_s1 + $0x7d4] ss:$8 sps:$4 sm:$0xff]  }
  0xb0   :  { %3509 = vmatprep.subr.bf16.mxu0 %v7448_v32  ;;  %v7635_v32 = vld [vmem:[%s10766_s1 + $0xd4] ss:$8 sps:$4 sm:$0xff]  }
  0xb1   :  { %3265 = vmatprep.subr.bf16.mxu1 %v7635_v32  ;;  %v7543_v32 = vld [vmem:[%s10766_s1 + $0x8b0] ss:$8 sps:$4 sm:$0xff]  }
  0xb3   :  { %3510 = vmatpush1.bf16.msra.mxu0 %v7446_v33  ;;  %v7640_v33 = vld [vmem:[%s10766_s1 + $0xd0] ss:$8 sps:$4 sm:$0xff]  }
  0xb4   :  { %3511 = vmatprep.subr.bf16.mxu0 %v7451_v34  ;;  %3266 = vmatpush1.bf16.msra.mxu1 %v7640_v33  ;;  %v7499_v34 = vld [vmem:[%s10766_s1 + $0x7d0] ss:$8 sps:$4 sm:$0xff]   ;;  %v7731_v33 = vld [vmem:[%s10766_s1 + $0x1c4] ss:$8 sps:$4 sm:$0xff]  }
  0xb7   :  { %3512 = vmatpush1.bf16.msra.mxu0 %v7449_v35  ;;  %v7504_v35 = vld [vmem:[%s10766_s1 + $0x7e4] ss:$8 sps:$4 sm:$0xff]  }
  0xb8   :  { %3513 = vmatprep.subr.bf16.mxu0 %v7454_v36  ;;  %v7641_v36 = vld [vmem:[%s10766_s1 + $0xe4] ss:$8 sps:$4 sm:$0xff]  }
  0xb9   :  { %3267 = vmatprep.subr.bf16.mxu1 %v7641_v36  ;;  %v7546_v36 = vld [vmem:[%s10766_s1 + $0x8c0] ss:$8 sps:$4 sm:$0xff]  }
  0xbb   :  { %3514 = vmatpush1.bf16.msra.mxu0 %v7452_v37  ;;  %v7646_v37 = vld [vmem:[%s10766_s1 + $0xe0] ss:$8 sps:$4 sm:$0xff]  }
  0xbc   :  { %3515 = vmatprep.subr.bf16.mxu0 %v7457_v38  ;;  %3268 = vmatpush1.bf16.msra.mxu1 %v7646_v37  ;;  %v7502_v38 = vld [vmem:[%s10766_s1 + $0x7e0] ss:$8 sps:$4 sm:$0xff]   ;;  %v7737_v37 = vld [vmem:[%s10766_s1 + $0x1d4] ss:$8 sps:$4 sm:$0xff]  }
  0xbf   :  { %3516 = vmatpush1.bf16.msra.mxu0 %v7455_v39  ;;  %v7647_v39 = vld [vmem:[%s10766_s1 + $0xf4] ss:$8 sps:$4 sm:$0xff]  }
  0xc0   :  { %3526 = vmatprep.subr.bf16.mxu0 %v7462_v40  ;;  %v7507_v40 = vld [vmem:[%s10766_s1 + $0x7f4] ss:$8 sps:$4 sm:$0xff]   ;;  %3269 = vmatprep.subr.bf16.mxu1 %v7647_v39  ;;  %v7735_v39 = vld [vmem:[%s10766_s1 + $0x1d0] ss:$8 sps:$4 sm:$0xff]  }
  0xc1   :  { %3270 = vmatpush1.bf16.msra.mxu1 %v7652_v42  ;;  %v7743_v42 = vld [vmem:[%s10766_s1 + $0x1e4] ss:$8 sps:$4 sm:$0xff]  }
  0xc2   :  { %3518 = vmatmul.mubr.bf16.vlgmr.msra.gmra.mrb[0].mxu0 %v6429_v44  ;;  %v27_v44 = vld [vmem:[%s10767_s0] sm:$0xff] }
  0xc3   :  { %3527 = vmatpush1.bf16.msra.mxu0 %v7460_v45  ;;  %3558 = vmatprep.mubr.bf16.mxu0 %v6432_v46  ;;  %v7657_v45 = vld [vmem:[%s10766_s1 + $0x104] ss:$8 sps:$4 sm:$0xff]   ;;  %v6418_v49 = vcombine.high %v27_v44, %v27_v44 }
  0xc4   :  { %3528 = vmatprep.subr.bf16.mxu0 %v7465_v48  ;;  %v7512_v46 = vld [vmem:[%s10766_s1 + $0x804] ss:$8 sps:$4 sm:$0xff]   ;;  %v6417_v48 = vcombine.low %v27_v44, %v27_v44  ;;  %3280 = vmatprep.subr.bf16.mxu1 %v7657_v45  ;;  %v7741_v44 = vld [vmem:[%s10766_s1 + $0x1e0] ss:$8 sps:$4 sm:$0xff]  }
  0xc5   :  { %3271 = vmatprep.mubr.bf16.mxu1 %v6418_v49  ;;  %v7552_v45 = vld [vmem:[%s10766_s1 + $0x8e0] ss:$8 sps:$4 sm:$0xff]   ;;  %v7747_v49 = vld [vmem:[%s10766_s1 + $0x1f0] ss:$8 sps:$4 sm:$0xff]  }
  0xc6   :  { %3272 = vmatmul.mubr.bf16.vlgmr.msra.gmra.mrb[0].mxu1 %v6417_v48  ;;  %v7559_v48 = vld [vmem:[%s10766_s1 + $0x8f4] ss:$8 sps:$4 sm:$0xff]  }
  0xc7   :  { %3529 = vmatpush1.bf16.msra.mxu0 %v7463_v50  ;;  %v7655_v50 = vld [vmem:[%s10766_s1 + $0x100] ss:$8 sps:$4 sm:$0xff]  }
  0xc8   :  { %3530 = vmatprep.subr.bf16.mxu0 %v7468_v51  ;;  %v6431_v51 = vcombine.low %v8469_v41, %v8469_v41  ;;  %3281 = vmatpush1.bf16.msra.mxu1 %v7655_v50  ;;  %v7661_v41 = vld [vmem:[%s10766_s1 + $0x110] ss:$8 sps:$4 sm:$0xff]  }
  0xc9   :  { %v7557_v50 = vld [vmem:[%s10766_s1 + $0x8f0] ss:$8 sps:$4 sm:$0xff]  }
  0xcb   :  { %3531 = vmatpush1.bf16.msra.mxu0 %v7466_v54  ;;  %v7663_v54 = vld [vmem:[%s10766_s1 + $0x114] ss:$8 sps:$4 sm:$0xff]  }
  0xcc   :  { %3532 = vmatprep.subr.bf16.mxu0 %v7471_v55  ;;  %v7515_v55 = vld [vmem:[%s10766_s1 + $0x814] ss:$8 sps:$4 sm:$0xff]   ;;  %3282 = vmatprep.subr.bf16.mxu1 %v7663_v54  ;;  %v8880_v54 = vld [vmem:[%s10767_s0 + $0x48] sm:$0xff] }
  0xcd   :  { %3283 = vmatpush1.bf16.msra.mxu1 %v7661_v41 }
  0xce   :  { %3284 = vmatprep.subr.bf16.mxu1 %v7671_v57  ;;  %v6433_v57 = vcombine.low %v8676_v47, %v8676_v47  ;;  %v7761_v47 = vld [vmem:[%s10766_s1 + $0x210] ss:$8 sps:$4 sm:$0xff]  }
  0xcf   :  { %3533 = vmatpush1.bf16.msra.mxu0 %v7469_v58  ;;  %v7518_v58 = vld [vmem:[%s10766_s1 + $0x824] ss:$8 sps:$4 sm:$0xff]  }
  0xd0   :  { %3534 = vmatprep.subr.bf16.mxu0 %v7474_v59  ;;  %v7669_v59 = vld [vmem:[%s10766_s1 + $0x120] ss:$8 sps:$4 sm:$0xff]  }
  0xd1   :  { %3285 = vmatpush1.bf16.msra.mxu1 %v7669_v59  ;;  %v6436_v59 = vcombine.high %v8880_v54, %v8880_v54 }
  0xd2   :  { %3286 = vmatprep.subr.bf16.mxu1 %v7677_v61  ;;  %v7573_v61 = vld [vmem:[%s10766_s1 + $0x914] ss:$8 sps:$4 sm:$0xff]  }
  0xd3   :  { %3535 = vmatpush1.bf16.msra.mxu0 %v7472_v62  ;;  %v7521_v62 = vld [vmem:[%s10766_s1 + $0x834] ss:$8 sps:$4 sm:$0xff]  }
  0xd4   :  { %3536 = vmatprep.subr.bf16.mxu0 %v7477_v63  ;;  %v7675_v63 = vld [vmem:[%s10766_s1 + $0x130] ss:$8 sps:$4 sm:$0xff]  }
  0xd5   :  { %3287 = vmatpush1.bf16.msra.mxu1 %v7675_v63  ;;  %v7771_v63 = vld [vmem:[%s10766_s1 + $0x224] ss:$8 sps:$4 sm:$0xff]  }
  0xd6   :  { %3288 = vmatprep.subr.bf16.mxu1 %v7683_v1  ;;  %v7769_v1 = vld [vmem:[%s10766_s1 + $0x220] ss:$8 sps:$4 sm:$0xff]  }
  0xd7   :  { %3537 = vmatpush1.bf16.msra.mxu0 %v7475_v2  ;;  %v7524_v2 = vld [vmem:[%s10766_s1 + $0x844] ss:$8 sps:$4 sm:$0xff]  }
  0xd8   :  { %3538 = vmatprep.subr.bf16.mxu0 %v7480_v3  ;;  %v7681_v3 = vld [vmem:[%s10766_s1 + $0x140] ss:$8 sps:$4 sm:$0xff]  }
  0xd9   :  { %3289 = vmatpush1.bf16.msra.mxu1 %v7681_v3  ;;  %v7777_v3 = vld [vmem:[%s10766_s1 + $0x234] ss:$8 sps:$4 sm:$0xff]  }
  0xda   :  { %3290 = vmatprep.subr.bf16.mxu1 %v7689_v5  ;;  %v7775_v5 = vld [vmem:[%s10766_s1 + $0x230] ss:$8 sps:$4 sm:$0xff]  }
  0xdb   :  { %3539 = vmatpush1.bf16.msra.mxu0 %v7478_v6  ;;  %v7527_v6 = vld [vmem:[%s10766_s1 + $0x854] ss:$8 sps:$4 sm:$0xff]  }
  0xdc   :  { %3540 = vmatprep.subr.bf16.mxu0 %v7483_v7  ;;  %v7687_v7 = vld [vmem:[%s10766_s1 + $0x150] ss:$8 sps:$4 sm:$0xff]  }
  0xdd   :  { %3291 = vmatpush1.bf16.msra.mxu1 %v7687_v7  ;;  %v7783_v7 = vld [vmem:[%s10766_s1 + $0x244] ss:$8 sps:$4 sm:$0xff]  }
  0xde   :  { %3292 = vmatprep.subr.bf16.mxu1 %v7695_v9  ;;  %v7781_v9 = vld [vmem:[%s10766_s1 + $0x240] ss:$8 sps:$4 sm:$0xff]  }
  0xdf   :  { %3541 = vmatpush1.bf16.msra.mxu0 %v7481_v10  ;;  %v7530_v10 = vld [vmem:[%s10766_s1 + $0x864] ss:$8 sps:$4 sm:$0xff]  }
  0xe0   :  { %3542 = vmatprep.subr.bf16.mxu0 %v7486_v11  ;;  %v7693_v11 = vld [vmem:[%s10766_s1 + $0x160] ss:$8 sps:$4 sm:$0xff]  }
  0xe1   :  { %3293 = vmatpush1.bf16.msra.mxu1 %v7693_v11  ;;  %v7789_v11 = vld [vmem:[%s10766_s1 + $0x254] ss:$8 sps:$4 sm:$0xff]  }
  0xe2   :  { %3294 = vmatprep.subr.bf16.mxu1 %v7701_v13  ;;  %v7787_v13 = vld [vmem:[%s10766_s1 + $0x250] ss:$8 sps:$4 sm:$0xff]  }
  0xe3   :  { %3543 = vmatpush1.bf16.msra.mxu0 %v7484_v14  ;;  %v7533_v14 = vld [vmem:[%s10766_s1 + $0x874] ss:$8 sps:$4 sm:$0xff]  }
  0xe4   :  { %3544 = vmatprep.subr.bf16.mxu0 %v7489_v15  ;;  %v7699_v15 = vld [vmem:[%s10766_s1 + $0x170] ss:$8 sps:$4 sm:$0xff]  }
  0xe5   :  { %3295 = vmatpush1.bf16.msra.mxu1 %v7699_v15  ;;  %v7795_v15 = vld [vmem:[%s10766_s1 + $0x264] ss:$8 sps:$4 sm:$0xff]  }
  0xe6   :  { %3296 = vmatprep.subr.bf16.mxu1 %v7707_v17  ;;  %v7793_v17 = vld [vmem:[%s10766_s1 + $0x260] ss:$8 sps:$4 sm:$0xff]  }
  0xe7   :  { %3545 = vmatpush1.bf16.msra.mxu0 %v7487_v18  ;;  %v7536_v18 = vld [vmem:[%s10766_s1 + $0x884] ss:$8 sps:$4 sm:$0xff]  }
  0xe8   :  { %3546 = vmatprep.subr.bf16.mxu0 %v7492_v19  ;;  %v7705_v19 = vld [vmem:[%s10766_s1 + $0x180] ss:$8 sps:$4 sm:$0xff]  }
  0xe9   :  { %3297 = vmatpush1.bf16.msra.mxu1 %v7705_v19  ;;  %v7801_v19 = vld [vmem:[%s10766_s1 + $0x274] ss:$8 sps:$4 sm:$0xff]  }
  0xea   :  { %3298 = vmatprep.subr.bf16.mxu1 %v7713_v21  ;;  %v7799_v21 = vld [vmem:[%s10766_s1 + $0x270] ss:$8 sps:$4 sm:$0xff]  }
  0xeb   :  { %3547 = vmatpush1.bf16.msra.mxu0 %v7490_v22  ;;  %v7539_v22 = vld [vmem:[%s10766_s1 + $0x894] ss:$8 sps:$4 sm:$0xff]  }
  0xec   :  { %3548 = vmatprep.subr.bf16.mxu0 %v7495_v23  ;;  %v7711_v23 = vld [vmem:[%s10766_s1 + $0x190] ss:$8 sps:$4 sm:$0xff]  }
  0xed   :  { %3299 = vmatpush1.bf16.msra.mxu1 %v7711_v23  ;;  %v7807_v23 = vld [vmem:[%s10766_s1 + $0x284] ss:$8 sps:$4 sm:$0xff]  }
  0xee   :  { %3300 = vmatprep.subr.bf16.mxu1 %v7719_v25  ;;  %v7805_v25 = vld [vmem:[%s10766_s1 + $0x280] ss:$8 sps:$4 sm:$0xff]  }
  0xef   :  { %3549 = vmatpush1.bf16.msra.mxu0 %v7493_v26  ;;  %v7542_v26 = vld [vmem:[%s10766_s1 + $0x8a4] ss:$8 sps:$4 sm:$0xff]  }
  0xf0   :  { %3550 = vmatprep.subr.bf16.mxu0 %v7498_v27  ;;  %v7717_v27 = vld [vmem:[%s10766_s1 + $0x1a0] ss:$8 sps:$4 sm:$0xff]  }
  0xf1   :  { %3301 = vmatpush1.bf16.msra.mxu1 %v7717_v27  ;;  %v7813_v27 = vld [vmem:[%s10766_s1 + $0x294] ss:$8 sps:$4 sm:$0xff]  }
  0xf2   :  { %3302 = vmatprep.subr.bf16.mxu1 %v7725_v29  ;;  %v7811_v29 = vld [vmem:[%s10766_s1 + $0x290] ss:$8 sps:$4 sm:$0xff]  }
  0xf3   :  { %3551 = vmatpush1.bf16.msra.mxu0 %v7496_v30  ;;  %v7545_v30 = vld [vmem:[%s10766_s1 + $0x8b4] ss:$8 sps:$4 sm:$0xff]  }
  0xf4   :  { %3552 = vmatprep.subr.bf16.mxu0 %v7501_v31  ;;  %v7723_v31 = vld [vmem:[%s10766_s1 + $0x1b0] ss:$8 sps:$4 sm:$0xff]  }
  0xf5   :  { %3303 = vmatpush1.bf16.msra.mxu1 %v7723_v31  ;;  %v7819_v31 = vld [vmem:[%s10766_s1 + $0x2a4] ss:$8 sps:$4 sm:$0xff]  }
  0xf6   :  { %3304 = vmatprep.subr.bf16.mxu1 %v7731_v33  ;;  %v7817_v33 = vld [vmem:[%s10766_s1 + $0x2a0] ss:$8 sps:$4 sm:$0xff]  }
  0xf7   :  { %3553 = vmatpush1.bf16.msra.mxu0 %v7499_v34  ;;  %v7548_v34 = vld [vmem:[%s10766_s1 + $0x8c4] ss:$8 sps:$4 sm:$0xff]  }
  0xf8   :  { %3554 = vmatprep.subr.bf16.mxu0 %v7504_v35  ;;  %v7729_v35 = vld [vmem:[%s10766_s1 + $0x1c0] ss:$8 sps:$4 sm:$0xff]  }
  0xf9   :  { %3305 = vmatpush1.bf16.msra.mxu1 %v7729_v35  ;;  %v7825_v35 = vld [vmem:[%s10766_s1 + $0x2b4] ss:$8 sps:$4 sm:$0xff]  }
  0xfa   :  { %3306 = vmatprep.subr.bf16.mxu1 %v7737_v37  ;;  %v7823_v37 = vld [vmem:[%s10766_s1 + $0x2b0] ss:$8 sps:$4 sm:$0xff]  }
  0xfb   :  { %3555 = vmatpush1.bf16.msra.mxu0 %v7502_v38  ;;  %v7551_v38 = vld [vmem:[%s10766_s1 + $0x8d4] ss:$8 sps:$4 sm:$0xff]  }
  0xfc   :  { %3556 = vmatprep.subr.bf16.mxu0 %v7507_v40  ;;  %v7549_v40 = vld [vmem:[%s10766_s1 + $0x8d0] ss:$8 sps:$4 sm:$0xff]  }
  0xfd   :  { %3307 = vmatpush1.bf16.msra.mxu1 %v7735_v39  ;;  %v7831_v39 = vld [vmem:[%s10766_s1 + $0x2c4] ss:$8 sps:$4 sm:$0xff]  }
  0xfe   :  { %3308 = vmatprep.subr.bf16.mxu1 %v7743_v42  ;;  %v7829_v42 = vld [vmem:[%s10766_s1 + $0x2c0] ss:$8 sps:$4 sm:$0xff]  }
  0xff   :  { %3557 = vmatpush1.bf16.msra.mxu0 %v7505_v43  ;;  %v7554_v43 = vld [vmem:[%s10766_s1 + $0x8e4] ss:$8 sps:$4 sm:$0xff]  }
 0x100   :  { %3567 = vmatprep.subr.bf16.mxu0 %v7512_v46  ;;  %v7749_v46 = vld [vmem:[%s10766_s1 + $0x1f4] ss:$8 sps:$4 sm:$0xff]  }
 0x101   :  { %3309 = vmatpush1.bf16.msra.mxu1 %v7741_v44  ;;  %v7837_v44 = vld [vmem:[%s10766_s1 + $0x2d4] ss:$8 sps:$4 sm:$0xff]  }
 0x102   :  { %3559 = vmatmul.mubr.bf16.vlgmr.msra.gmra.mrb[0].mxu0 %v6431_v51  ;;  %3310 = vmatprep.subr.bf16.mxu1 %v7749_v46  ;;  %v28_v51 = vld [vmem:[%s10767_s0 + $0x8] sm:$0xff]  ;;  %v7835_v46 = vld [vmem:[%s10766_s1 + $0x2d0] ss:$8 sps:$4 sm:$0xff]  }
 0x103   :  { %3568 = vmatpush1.bf16.msra.mxu0 %v7510_v52  ;;  %3599 = vmatprep.mubr.bf16.mxu0 %v6434_v53  ;;  %v7757_v52 = vld [vmem:[%s10766_s1 + $0x204] ss:$8 sps:$4 sm:$0xff]   ;;  %v6420_v41 = vcombine.high %v28_v51, %v28_v51 }
 0x104   :  { %3569 = vmatprep.subr.bf16.mxu0 %v7515_v55  ;;  %v7567_v53 = vld [vmem:[%s10766_s1 + $0x904] ss:$8 sps:$4 sm:$0xff]   ;;  %v6419_v55 = vcombine.low %v28_v51, %v28_v51  ;;  %v7841_v51 = vld [vmem:[%s10766_s1 + $0x2e0] ss:$8 sps:$4 sm:$0xff]  }
 0x105   :  { %3311 = vmatpush1.bf16.msra.mxu1 %v7747_v49  ;;  %3312 = vmatprep.mubr.bf16.mxu1 %v6420_v41  ;;  %v7843_v49 = vld [vmem:[%s10766_s1 + $0x2e4] ss:$8 sps:$4 sm:$0xff]   ;;  %v7847_v41 = vld [vmem:[%s10766_s1 + $0x2f0] ss:$8 sps:$4 sm:$0xff]  }
 0x106   :  { %3321 = vmatprep.subr.bf16.mxu1 %v7757_v52  ;;  %v7649_v52 = vld [vmem:[%s10766_s1 + $0x9e0] ss:$8 sps:$4 sm:$0xff]  }
 0x107   :  { %3570 = vmatpush1.bf16.msra.mxu0 %v7513_v56  ;;  %v7755_v56 = vld [vmem:[%s10766_s1 + $0x200] ss:$8 sps:$4 sm:$0xff]  }
 0x108   :  { %3571 = vmatprep.subr.bf16.mxu0 %v7518_v58  ;;  %v7565_v58 = vld [vmem:[%s10766_s1 + $0x900] ss:$8 sps:$4 sm:$0xff]   ;;  %3313 = vmatmul.mubr.bf16.vlgmr.msra.gmra.mrb[0].mxu1 %v6419_v55  ;;  %v7660_v55 = vld [vmem:[%s10766_s1 + $0x9f4] ss:$8 sps:$4 sm:$0xff]  }
 0x109   :  { %3322 = vmatpush1.bf16.msra.mxu1 %v7755_v56  ;;  %v7658_v56 = vld [vmem:[%s10766_s1 + $0x9f0] ss:$8 sps:$4 sm:$0xff]  }
 0x10b   :  { %3572 = vmatpush1.bf16.msra.mxu0 %v7516_v60  ;;  %v7763_v60 = vld [vmem:[%s10766_s1 + $0x214] ss:$8 sps:$4 sm:$0xff]  }
 0x10c   :  { %3573 = vmatprep.subr.bf16.mxu0 %v7521_v62  ;;  %3323 = vmatprep.subr.bf16.mxu1 %v7763_v60  ;;  %v7571_v62 = vld [vmem:[%s10766_s1 + $0x910] ss:$8 sps:$4 sm:$0xff]  }
 0x10d   :  { %3324 = vmatpush1.bf16.msra.mxu1 %v7761_v47  ;;  %v9084_v60 = vld [vmem:[%s10767_s0 + $0x50] sm:$0xff] }
 0x10e   :  { %3325 = vmatprep.subr.bf16.mxu1 %v7771_v63  ;;  %v6435_v63 = vcombine.low %v8880_v54, %v8880_v54  ;;  %v7861_v54 = vld [vmem:[%s10766_s1 + $0x310] ss:$8 sps:$4 sm:$0xff]  }
 0x10f   :  { %3574 = vmatpush1.bf16.msra.mxu0 %v7519_v0  ;;  %v7579_v0 = vld [vmem:[%s10766_s1 + $0x924] ss:$8 sps:$4 sm:$0xff]  }
 0x110   :  { %3575 = vmatprep.subr.bf16.mxu0 %v7524_v2  ;;  %v7577_v2 = vld [vmem:[%s10766_s1 + $0x920] ss:$8 sps:$4 sm:$0xff]  }
 0x111   :  { %3326 = vmatpush1.bf16.msra.mxu1 %v7769_v1  ;;  %v6438_v1 = vcombine.high %v9084_v60, %v9084_v60 }
 0x112   :  { %3327 = vmatprep.subr.bf16.mxu1 %v7777_v3  ;;  %v7674_v3 = vld [vmem:[%s10766_s1 + $0xa14] ss:$8 sps:$4 sm:$0xff]  }
 0x113   :  { %3576 = vmatpush1.bf16.msra.mxu0 %v7522_v4  ;;  %v7585_v4 = vld [vmem:[%s10766_s1 + $0x934] ss:$8 sps:$4 sm:$0xff]  }
 0x114   :  { %3577 = vmatprep.subr.bf16.mxu0 %v7527_v6  ;;  %v7583_v6 = vld [vmem:[%s10766_s1 + $0x930] ss:$8 sps:$4 sm:$0xff]  }
 0x115   :  { %3328 = vmatpush1.bf16.msra.mxu1 %v7775_v5  ;;  %v7871_v5 = vld [vmem:[%s10766_s1 + $0x324] ss:$8 sps:$4 sm:$0xff]  }
 0x116   :  { %3329 = vmatprep.subr.bf16.mxu1 %v7783_v7  ;;  %v7869_v7 = vld [vmem:[%s10766_s1 + $0x320] ss:$8 sps:$4 sm:$0xff]  }
 0x117   :  { %3578 = vmatpush1.bf16.msra.mxu0 %v7525_v8  ;;  %v7591_v8 = vld [vmem:[%s10766_s1 + $0x944] ss:$8 sps:$4 sm:$0xff]  }
 0x118   :  { %3579 = vmatprep.subr.bf16.mxu0 %v7530_v10  ;;  %v7589_v10 = vld [vmem:[%s10766_s1 + $0x940] ss:$8 sps:$4 sm:$0xff]  }
 0x119   :  { %3330 = vmatpush1.bf16.msra.mxu1 %v7781_v9  ;;  %v7877_v9 = vld [vmem:[%s10766_s1 + $0x334] ss:$8 sps:$4 sm:$0xff]  }
 0x11a   :  { %3331 = vmatprep.subr.bf16.mxu1 %v7789_v11  ;;  %v7875_v11 = vld [vmem:[%s10766_s1 + $0x330] ss:$8 sps:$4 sm:$0xff]  }
 0x11b   :  { %3580 = vmatpush1.bf16.msra.mxu0 %v7528_v12  ;;  %v7597_v12 = vld [vmem:[%s10766_s1 + $0x954] ss:$8 sps:$4 sm:$0xff]  }
 0x11c   :  { %3581 = vmatprep.subr.bf16.mxu0 %v7533_v14  ;;  %v7595_v14 = vld [vmem:[%s10766_s1 + $0x950] ss:$8 sps:$4 sm:$0xff]  }
 0x11d   :  { %3332 = vmatpush1.bf16.msra.mxu1 %v7787_v13  ;;  %v7883_v13 = vld [vmem:[%s10766_s1 + $0x344] ss:$8 sps:$4 sm:$0xff]  }
 0x11e   :  { %3333 = vmatprep.subr.bf16.mxu1 %v7795_v15  ;;  %v7881_v15 = vld [vmem:[%s10766_s1 + $0x340] ss:$8 sps:$4 sm:$0xff]  }
 0x11f   :  { %3582 = vmatpush1.bf16.msra.mxu0 %v7531_v16  ;;  %v7603_v16 = vld [vmem:[%s10766_s1 + $0x964] ss:$8 sps:$4 sm:$0xff]  }
 0x120   :  { %3583 = vmatprep.subr.bf16.mxu0 %v7536_v18  ;;  %v7601_v18 = vld [vmem:[%s10766_s1 + $0x960] ss:$8 sps:$4 sm:$0xff]  }
 0x121   :  { %3334 = vmatpush1.bf16.msra.mxu1 %v7793_v17  ;;  %v7889_v17 = vld [vmem:[%s10766_s1 + $0x354] ss:$8 sps:$4 sm:$0xff]  }
 0x122   :  { %3335 = vmatprep.subr.bf16.mxu1 %v7801_v19  ;;  %v7887_v19 = vld [vmem:[%s10766_s1 + $0x350] ss:$8 sps:$4 sm:$0xff]  }
 0x123   :  { %3584 = vmatpush1.bf16.msra.mxu0 %v7534_v20  ;;  %v7609_v20 = vld [vmem:[%s10766_s1 + $0x974] ss:$8 sps:$4 sm:$0xff]  }
 0x124   :  { %3585 = vmatprep.subr.bf16.mxu0 %v7539_v22  ;;  %v7607_v22 = vld [vmem:[%s10766_s1 + $0x970] ss:$8 sps:$4 sm:$0xff]  }
 0x125   :  { %3336 = vmatpush1.bf16.msra.mxu1 %v7799_v21  ;;  %v7895_v21 = vld [vmem:[%s10766_s1 + $0x364] ss:$8 sps:$4 sm:$0xff]  }
 0x126   :  { %3337 = vmatprep.subr.bf16.mxu1 %v7807_v23  ;;  %v7893_v23 = vld [vmem:[%s10766_s1 + $0x360] ss:$8 sps:$4 sm:$0xff]  }
 0x127   :  { %3586 = vmatpush1.bf16.msra.mxu0 %v7537_v24  ;;  %v7615_v24 = vld [vmem:[%s10766_s1 + $0x984] ss:$8 sps:$4 sm:$0xff]  }
 0x128   :  { %3587 = vmatprep.subr.bf16.mxu0 %v7542_v26  ;;  %v7613_v26 = vld [vmem:[%s10766_s1 + $0x980] ss:$8 sps:$4 sm:$0xff]  }
 0x129   :  { %3338 = vmatpush1.bf16.msra.mxu1 %v7805_v25  ;;  %v7901_v25 = vld [vmem:[%s10766_s1 + $0x374] ss:$8 sps:$4 sm:$0xff]  }
 0x12a   :  { %3339 = vmatprep.subr.bf16.mxu1 %v7813_v27  ;;  %v7899_v27 = vld [vmem:[%s10766_s1 + $0x370] ss:$8 sps:$4 sm:$0xff]  }
 0x12b   :  { %3588 = vmatpush1.bf16.msra.mxu0 %v7540_v28  ;;  %v7621_v28 = vld [vmem:[%s10766_s1 + $0x994] ss:$8 sps:$4 sm:$0xff]  }
 0x12c   :  { %3589 = vmatprep.subr.bf16.mxu0 %v7545_v30  ;;  %v7619_v30 = vld [vmem:[%s10766_s1 + $0x990] ss:$8 sps:$4 sm:$0xff]  }
 0x12d   :  { %3340 = vmatpush1.bf16.msra.mxu1 %v7811_v29  ;;  %v7907_v29 = vld [vmem:[%s10766_s1 + $0x384] ss:$8 sps:$4 sm:$0xff]  }
 0x12e   :  { %3341 = vmatprep.subr.bf16.mxu1 %v7819_v31  ;;  %v7905_v31 = vld [vmem:[%s10766_s1 + $0x380] ss:$8 sps:$4 sm:$0xff]  }
 0x12f   :  { %3590 = vmatpush1.bf16.msra.mxu0 %v7543_v32  ;;  %v7627_v32 = vld [vmem:[%s10766_s1 + $0x9a4] ss:$8 sps:$4 sm:$0xff]  }
 0x130   :  { %3591 = vmatprep.subr.bf16.mxu0 %v7548_v34  ;;  %v7625_v34 = vld [vmem:[%s10766_s1 + $0x9a0] ss:$8 sps:$4 sm:$0xff]  }
 0x131   :  { %3342 = vmatpush1.bf16.msra.mxu1 %v7817_v33  ;;  %v7913_v33 = vld [vmem:[%s10766_s1 + $0x394] ss:$8 sps:$4 sm:$0xff]  }
 0x132   :  { %3343 = vmatprep.subr.bf16.mxu1 %v7825_v35  ;;  %v7911_v35 = vld [vmem:[%s10766_s1 + $0x390] ss:$8 sps:$4 sm:$0xff]  }
 0x133   :  { %3592 = vmatpush1.bf16.msra.mxu0 %v7546_v36  ;;  %v7633_v36 = vld [vmem:[%s10766_s1 + $0x9b4] ss:$8 sps:$4 sm:$0xff]  }
 0x134   :  { %3593 = vmatprep.subr.bf16.mxu0 %v7551_v38  ;;  %v7631_v38 = vld [vmem:[%s10766_s1 + $0x9b0] ss:$8 sps:$4 sm:$0xff]  }
 0x135   :  { %3344 = vmatpush1.bf16.msra.mxu1 %v7823_v37  ;;  %v7919_v37 = vld [vmem:[%s10766_s1 + $0x3a4] ss:$8 sps:$4 sm:$0xff]  }
 0x136   :  { %3345 = vmatprep.subr.bf16.mxu1 %v7831_v39  ;;  %v7917_v39 = vld [vmem:[%s10766_s1 + $0x3a0] ss:$8 sps:$4 sm:$0xff]  }
 0x137   :  { %3594 = vmatpush1.bf16.msra.mxu0 %v7549_v40  ;;  %v7639_v40 = vld [vmem:[%s10766_s1 + $0x9c4] ss:$8 sps:$4 sm:$0xff]  }
 0x138   :  { %3595 = vmatprep.subr.bf16.mxu0 %v7554_v43  ;;  %v7637_v43 = vld [vmem:[%s10766_s1 + $0x9c0] ss:$8 sps:$4 sm:$0xff]  }
 0x139   :  { %3346 = vmatpush1.bf16.msra.mxu1 %v7829_v42  ;;  %v7925_v42 = vld [vmem:[%s10766_s1 + $0x3b4] ss:$8 sps:$4 sm:$0xff]  }
 0x13a   :  { %3347 = vmatprep.subr.bf16.mxu1 %v7837_v44  ;;  %v7923_v44 = vld [vmem:[%s10766_s1 + $0x3b0] ss:$8 sps:$4 sm:$0xff]  }
 0x13b   :  { %3596 = vmatpush1.bf16.msra.mxu0 %v7552_v45  ;;  %v7645_v45 = vld [vmem:[%s10766_s1 + $0x9d4] ss:$8 sps:$4 sm:$0xff]  }
 0x13c   :  { %3597 = vmatprep.subr.bf16.mxu0 %v7559_v48  ;;  %v7643_v48 = vld [vmem:[%s10766_s1 + $0x9d0] ss:$8 sps:$4 sm:$0xff]  }
 0x13d   :  { %3348 = vmatpush1.bf16.msra.mxu1 %v7835_v46  ;;  %v7931_v46 = vld [vmem:[%s10766_s1 + $0x3c4] ss:$8 sps:$4 sm:$0xff]  }
 0x13e   :  { %3349 = vmatprep.subr.bf16.mxu1 %v7843_v49  ;;  %v7929_v49 = vld [vmem:[%s10766_s1 + $0x3c0] ss:$8 sps:$4 sm:$0xff]  }
 0x13f   :  { %3598 = vmatpush1.bf16.msra.mxu0 %v7557_v50  ;;  %v7651_v50 = vld [vmem:[%s10766_s1 + $0x9e4] ss:$8 sps:$4 sm:$0xff]  }
 0x140   :  { %3608 = vmatprep.subr.bf16.mxu0 %v7567_v53  ;;  %v7849_v53 = vld [vmem:[%s10766_s1 + $0x2f4] ss:$8 sps:$4 sm:$0xff]  }
 0x141   :  { %3350 = vmatpush1.bf16.msra.mxu1 %v7841_v51  ;;  %v7937_v51 = vld [vmem:[%s10766_s1 + $0x3d4] ss:$8 sps:$4 sm:$0xff]  }
 0x142   :  { %3600 = vmatmul.mubr.bf16.vlgmr.msra.gmra.mrb[0].mxu0 %v6433_v57  ;;  %3351 = vmatprep.subr.bf16.mxu1 %v7849_v53  ;;  %v29_v57 = vld [vmem:[%s10767_s0 + $0x10] sm:$0xff] }
 0x143   :  { %3609 = vmatpush1.bf16.msra.mxu0 %v7565_v58  ;;  %3640 = vmatprep.mubr.bf16.mxu0 %v6436_v59  ;;  %v7857_v58 = vld [vmem:[%s10766_s1 + $0x304] ss:$8 sps:$4 sm:$0xff]   ;;  %v6422_v47 = vcombine.high %v29_v57, %v29_v57  ;;  %v7935_v53 = vld [vmem:[%s10766_s1 + $0x3d0] ss:$8 sps:$4 sm:$0xff]  }
 0x144   :  { %3610 = vmatprep.subr.bf16.mxu0 %v7573_v61  ;;  %v7668_v59 = vld [vmem:[%s10766_s1 + $0xa04] ss:$8 sps:$4 sm:$0xff]   ;;  %v6421_v61 = vcombine.low %v29_v57, %v29_v57  ;;  %v7941_v57 = vld [vmem:[%s10766_s1 + $0x3e0] ss:$8 sps:$4 sm:$0xff]  }
 0x145   :  { %3352 = vmatpush1.bf16.msra.mxu1 %v7847_v41  ;;  %3353 = vmatprep.mubr.bf16.mxu1 %v6422_v47  ;;  %v7943_v41 = vld [vmem:[%s10766_s1 + $0x3e4] ss:$8 sps:$4 sm:$0xff]   ;;  %v7947_v47 = vld [vmem:[%s10766_s1 + $0x3f0] ss:$8 sps:$4 sm:$0xff]  }
 0x146   :  { %3362 = vmatprep.subr.bf16.mxu1 %v7857_v58  ;;  %v7750_v58 = vld [vmem:[%s10766_s1 + $0xae0] ss:$8 sps:$4 sm:$0xff]  }
 0x147   :  { %3611 = vmatpush1.bf16.msra.mxu0 %v7571_v62  ;;  %v7855_v62 = vld [vmem:[%s10766_s1 + $0x300] ss:$8 sps:$4 sm:$0xff]  }
 0x148   :  { %3612 = vmatprep.subr.bf16.mxu0 %v7579_v0  ;;  %v7666_v0 = vld [vmem:[%s10766_s1 + $0xa00] ss:$8 sps:$4 sm:$0xff]   ;;  %3354 = vmatmul.mubr.bf16.vlgmr.msra.gmra.mrb[0].mxu1 %v6421_v61  ;;  %v7760_v61 = vld [vmem:[%s10766_s1 + $0xaf4] ss:$8 sps:$4 sm:$0xff]  }
 0x149   :  { %3363 = vmatpush1.bf16.msra.mxu1 %v7855_v62  ;;  %v30_v62 = vld [vmem:[%s10767_s0 + $0x18] sm:$0xff] }
 0x14b   :  { %3613 = vmatpush1.bf16.msra.mxu0 %v7577_v2  ;;  %v7863_v2 = vld [vmem:[%s10766_s1 + $0x314] ss:$8 sps:$4 sm:$0xff]  }
 0x14c   :  { %3614 = vmatprep.subr.bf16.mxu0 %v7585_v4  ;;  %3364 = vmatprep.subr.bf16.mxu1 %v7863_v2  ;;  %v7672_v4 = vld [vmem:[%s10766_s1 + $0xa10] ss:$8 sps:$4 sm:$0xff]   ;;  %v7768_v2 = vld [vmem:[%s10766_s1 + $0xb04] ss:$8 sps:$4 sm:$0xff]  }
 0x14d   :  { %3365 = vmatpush1.bf16.msra.mxu1 %v7861_v54  ;;  %v6437_v54 = vcombine.low %v9084_v60, %v9084_v60  ;;  %v7772_v60 = vld [vmem:[%s10766_s1 + $0xb10] ss:$8 sps:$4 sm:$0xff]  }
 0x14e   :  { %3366 = vmatprep.subr.bf16.mxu1 %v7871_v5 }
 0x14f   :  { %3615 = vmatpush1.bf16.msra.mxu0 %v7583_v6  ;;  %v7680_v6 = vld [vmem:[%s10766_s1 + $0xa24] ss:$8 sps:$4 sm:$0xff]  }
 0x150   :  { %3616 = vmatprep.subr.bf16.mxu0 %v7591_v8  ;;  %v7678_v8 = vld [vmem:[%s10766_s1 + $0xa20] ss:$8 sps:$4 sm:$0xff]  }
 0x151   :  { %3367 = vmatpush1.bf16.msra.mxu1 %v7869_v7  ;;  %v7780_v7 = vld [vmem:[%s10766_s1 + $0xb24] ss:$8 sps:$4 sm:$0xff]  }
 0x152   :  { %3368 = vmatprep.subr.bf16.mxu1 %v7877_v9  ;;  %v7786_v9 = vld [vmem:[%s10766_s1 + $0xb34] ss:$8 sps:$4 sm:$0xff]  }
 0x153   :  { %3617 = vmatpush1.bf16.msra.mxu0 %v7589_v10  ;;  %v7686_v10 = vld [vmem:[%s10766_s1 + $0xa34] ss:$8 sps:$4 sm:$0xff]  }
 0x154   :  { %3618 = vmatprep.subr.bf16.mxu0 %v7597_v12  ;;  %v7684_v12 = vld [vmem:[%s10766_s1 + $0xa30] ss:$8 sps:$4 sm:$0xff]  }
 0x155   :  { %3369 = vmatpush1.bf16.msra.mxu1 %v7875_v11  ;;  %v7792_v11 = vld [vmem:[%s10766_s1 + $0xb44] ss:$8 sps:$4 sm:$0xff]  }
 0x156   :  { %3370 = vmatprep.subr.bf16.mxu1 %v7883_v13  ;;  %v7798_v13 = vld [vmem:[%s10766_s1 + $0xb54] ss:$8 sps:$4 sm:$0xff]  }
 0x157   :  { %3619 = vmatpush1.bf16.msra.mxu0 %v7595_v14  ;;  %v7692_v14 = vld [vmem:[%s10766_s1 + $0xa44] ss:$8 sps:$4 sm:$0xff]  }
 0x158   :  { %3620 = vmatprep.subr.bf16.mxu0 %v7603_v16  ;;  %v7690_v16 = vld [vmem:[%s10766_s1 + $0xa40] ss:$8 sps:$4 sm:$0xff]  }
 0x159   :  { %3371 = vmatpush1.bf16.msra.mxu1 %v7881_v15  ;;  %v7804_v15 = vld [vmem:[%s10766_s1 + $0xb64] ss:$8 sps:$4 sm:$0xff]  }
 0x15a   :  { %3372 = vmatprep.subr.bf16.mxu1 %v7889_v17  ;;  %v7810_v17 = vld [vmem:[%s10766_s1 + $0xb74] ss:$8 sps:$4 sm:$0xff]  }
 0x15b   :  { %3621 = vmatpush1.bf16.msra.mxu0 %v7601_v18  ;;  %v7698_v18 = vld [vmem:[%s10766_s1 + $0xa54] ss:$8 sps:$4 sm:$0xff]  }
 0x15c   :  { %3622 = vmatprep.subr.bf16.mxu0 %v7609_v20  ;;  %v7696_v20 = vld [vmem:[%s10766_s1 + $0xa50] ss:$8 sps:$4 sm:$0xff]  }
 0x15d   :  { %3373 = vmatpush1.bf16.msra.mxu1 %v7887_v19  ;;  %v7816_v19 = vld [vmem:[%s10766_s1 + $0xb84] ss:$8 sps:$4 sm:$0xff]  }
 0x15e   :  { %3374 = vmatprep.subr.bf16.mxu1 %v7895_v21  ;;  %v7822_v21 = vld [vmem:[%s10766_s1 + $0xb94] ss:$8 sps:$4 sm:$0xff]  }
 0x15f   :  { %3623 = vmatpush1.bf16.msra.mxu0 %v7607_v22  ;;  %v7704_v22 = vld [vmem:[%s10766_s1 + $0xa64] ss:$8 sps:$4 sm:$0xff]  }
 0x160   :  { %3624 = vmatprep.subr.bf16.mxu0 %v7615_v24  ;;  %v7702_v24 = vld [vmem:[%s10766_s1 + $0xa60] ss:$8 sps:$4 sm:$0xff]  }
 0x161   :  { %3375 = vmatpush1.bf16.msra.mxu1 %v7893_v23  ;;  %v7828_v23 = vld [vmem:[%s10766_s1 + $0xba4] ss:$8 sps:$4 sm:$0xff]  }
 0x162   :  { %3376 = vmatprep.subr.bf16.mxu1 %v7901_v25  ;;  %v7834_v25 = vld [vmem:[%s10766_s1 + $0xbb4] ss:$8 sps:$4 sm:$0xff]  }
 0x163   :  { %3625 = vmatpush1.bf16.msra.mxu0 %v7613_v26  ;;  %v7710_v26 = vld [vmem:[%s10766_s1 + $0xa74] ss:$8 sps:$4 sm:$0xff]  }
 0x164   :  { %3626 = vmatprep.subr.bf16.mxu0 %v7621_v28  ;;  %v7708_v28 = vld [vmem:[%s10766_s1 + $0xa70] ss:$8 sps:$4 sm:$0xff]  }
 0x165   :  { %3377 = vmatpush1.bf16.msra.mxu1 %v7899_v27  ;;  %v7840_v27 = vld [vmem:[%s10766_s1 + $0xbc4] ss:$8 sps:$4 sm:$0xff]  }
 0x166   :  { %3378 = vmatprep.subr.bf16.mxu1 %v7907_v29  ;;  %v7846_v29 = vld [vmem:[%s10766_s1 + $0xbd4] ss:$8 sps:$4 sm:$0xff]  }
 0x167   :  { %3627 = vmatpush1.bf16.msra.mxu0 %v7619_v30  ;;  %v7716_v30 = vld [vmem:[%s10766_s1 + $0xa84] ss:$8 sps:$4 sm:$0xff]  }
 0x168   :  { %3628 = vmatprep.subr.bf16.mxu0 %v7627_v32  ;;  %v7714_v32 = vld [vmem:[%s10766_s1 + $0xa80] ss:$8 sps:$4 sm:$0xff]  }
 0x169   :  { %3379 = vmatpush1.bf16.msra.mxu1 %v7905_v31  ;;  %v7852_v31 = vld [vmem:[%s10766_s1 + $0xbe4] ss:$8 sps:$4 sm:$0xff]  }
 0x16a   :  { %3380 = vmatprep.subr.bf16.mxu1 %v7913_v33  ;;  %v7860_v33 = vld [vmem:[%s10766_s1 + $0xbf4] ss:$8 sps:$4 sm:$0xff]  }
 0x16b   :  { %3629 = vmatpush1.bf16.msra.mxu0 %v7625_v34  ;;  %v7722_v34 = vld [vmem:[%s10766_s1 + $0xa94] ss:$8 sps:$4 sm:$0xff]  }
 0x16c   :  { %3630 = vmatprep.subr.bf16.mxu0 %v7633_v36  ;;  %v7720_v36 = vld [vmem:[%s10766_s1 + $0xa90] ss:$8 sps:$4 sm:$0xff]  }
 0x16d   :  { %3381 = vmatpush1.bf16.msra.mxu1 %v7911_v35  ;;  %v7868_v35 = vld [vmem:[%s10766_s1 + $0xc04] ss:$8 sps:$4 sm:$0xff]  }
 0x16e   :  { %3382 = vmatprep.subr.bf16.mxu1 %v7919_v37 }
 0x16f   :  { %3631 = vmatpush1.bf16.msra.mxu0 %v7631_v38  ;;  %v7728_v38 = vld [vmem:[%s10766_s1 + $0xaa4] ss:$8 sps:$4 sm:$0xff]  }
 0x170   :  { %3632 = vmatprep.subr.bf16.mxu0 %v7639_v40  ;;  %v7726_v40 = vld [vmem:[%s10766_s1 + $0xaa0] ss:$8 sps:$4 sm:$0xff]  }
 0x171   :  { %3383 = vmatpush1.bf16.msra.mxu1 %v7917_v39 }
 0x172   :  { %3384 = vmatprep.subr.bf16.mxu1 %v7925_v42  ;;  %v7872_v42 = vld [vmem:[%s10766_s1 + $0xc10] ss:$8 sps:$4 sm:$0xff]  }
 0x173   :  { %3633 = vmatpush1.bf16.msra.mxu0 %v7637_v43  ;;  %v7734_v43 = vld [vmem:[%s10766_s1 + $0xab4] ss:$8 sps:$4 sm:$0xff]  }
 0x174   :  { %3634 = vmatprep.subr.bf16.mxu0 %v7645_v45  ;;  %v7732_v45 = vld [vmem:[%s10766_s1 + $0xab0] ss:$8 sps:$4 sm:$0xff]  }
 0x175   :  { %3385 = vmatpush1.bf16.msra.mxu1 %v7923_v44  ;;  %v7878_v44 = vld [vmem:[%s10766_s1 + $0xc20] ss:$8 sps:$4 sm:$0xff]  }
 0x176   :  { %3386 = vmatprep.subr.bf16.mxu1 %v7931_v46  ;;  %v7884_v46 = vld [vmem:[%s10766_s1 + $0xc30] ss:$8 sps:$4 sm:$0xff]  }
 0x177   :  { %3635 = vmatpush1.bf16.msra.mxu0 %v7643_v48  ;;  %v7740_v48 = vld [vmem:[%s10766_s1 + $0xac4] ss:$8 sps:$4 sm:$0xff]  }
 0x178   :  { %3636 = vmatprep.subr.bf16.mxu0 %v7651_v50  ;;  %v7738_v50 = vld [vmem:[%s10766_s1 + $0xac0] ss:$8 sps:$4 sm:$0xff]  }
 0x179   :  { %3387 = vmatpush1.bf16.msra.mxu1 %v7929_v49  ;;  %v7890_v49 = vld [vmem:[%s10766_s1 + $0xc40] ss:$8 sps:$4 sm:$0xff]  }
 0x17a   :  { %3388 = vmatprep.subr.bf16.mxu1 %v7937_v51  ;;  %v7896_v51 = vld [vmem:[%s10766_s1 + $0xc50] ss:$8 sps:$4 sm:$0xff]  }
 0x17b   :  { %3637 = vmatpush1.bf16.msra.mxu0 %v7649_v52  ;;  %v7746_v52 = vld [vmem:[%s10766_s1 + $0xad4] ss:$8 sps:$4 sm:$0xff]  }
 0x17c   :  { %3638 = vmatprep.subr.bf16.mxu0 %v7660_v55  ;;  %v7744_v55 = vld [vmem:[%s10766_s1 + $0xad0] ss:$8 sps:$4 sm:$0xff]  }
 0x17d   :  { %3389 = vmatpush1.bf16.msra.mxu1 %v7935_v53  ;;  %v7902_v53 = vld [vmem:[%s10766_s1 + $0xc60] ss:$8 sps:$4 sm:$0xff]  }
 0x17e   :  { %3390 = vmatprep.subr.bf16.mxu1 %v7943_v41  ;;  %v7908_v41 = vld [vmem:[%s10766_s1 + $0xc70] ss:$8 sps:$4 sm:$0xff]  }
 0x17f   :  { %3639 = vmatpush1.bf16.msra.mxu0 %v7658_v56  ;;  %v7752_v56 = vld [vmem:[%s10766_s1 + $0xae4] ss:$8 sps:$4 sm:$0xff]  }
 0x180   :  { %3649 = vmatprep.subr.bf16.mxu0 %v7668_v59  ;;  %v7949_v59 = vld [vmem:[%s10766_s1 + $0x3f4] ss:$8 sps:$4 sm:$0xff]  }
 0x181   :  { %3391 = vmatpush1.bf16.msra.mxu1 %v7941_v57  ;;  %v7914_v57 = vld [vmem:[%s10766_s1 + $0xc80] ss:$8 sps:$4 sm:$0xff]  }
 0x182   :  { %3641 = vmatmul.mubr.bf16.vlgmr.msra.gmra.mrb[0].mxu0 %v6435_v63  ;;  %3392 = vmatprep.subr.bf16.mxu1 %v7949_v59  ;;  %v7758_v63 = vld [vmem:[%s10766_s1 + $0xaf0] ss:$8 sps:$4 sm:$0xff]  }
 0x183   :  { %3650 = vmatpush1.bf16.msra.mxu0 %v7666_v0  ;;  %3681 = vmatprep.mubr.bf16.mxu0 %v6438_v1  ;;  %v6423_v0 = vcombine.low %v30_v62, %v30_v62  ;;  %v6424_v1 = vcombine.high %v30_v62, %v30_v62  ;;  %v7920_v59 = vld [vmem:[%s10766_s1 + $0xc90] ss:$8 sps:$4 sm:$0xff]   ;;  %v7934_v62 = vld [vmem:[%s10766_s1 + $0xcb4] ss:$8 sps:$4 sm:$0xff]  }
 0x184   :  { %3651 = vmatprep.subr.bf16.mxu0 %v7674_v3  ;;  %v9285_v3 = vld [vmem:[%s10767_s0 + $0x58] sm:$0xff] }
 0x185   :  { %3393 = vmatpush1.bf16.msra.mxu1 %v7947_v47  ;;  %3394 = vmatprep.mubr.bf16.mxu1 %v6424_v1  ;;  %v6440_v5 = vcombine.high %v9285_v3, %v9285_v3  ;;  %v6439_v37 = vcombine.low %v9285_v3, %v9285_v3  ;;  %v7926_v47 = vld [vmem:[%s10766_s1 + $0xca0] ss:$8 sps:$4 sm:$0xff]   ;;  %v7944_v3 = vld [vmem:[%s10766_s1 + $0xcd0] ss:$8 sps:$4 sm:$0xff]  }
 0x186   :  { %v7938_v1 = vld [vmem:[%s10766_s1 + $0xcc0] ss:$8 sps:$4 sm:$0xff]  }
 0x187   :  { %3652 = vmatpush1.bf16.msra.mxu0 %v7672_v4  ;;  %v7766_v4 = vld [vmem:[%s10766_s1 + $0xb00] ss:$8 sps:$4 sm:$0xff]  }
 0x188   :  { %3653 = vmatprep.subr.bf16.mxu0 %v7680_v6  ;;  %3395 = vmatmul.mubr.bf16.vlgmr.msra.gmra.mrb[0].mxu1 %v6423_v0  ;;  %v7774_v6 = vld [vmem:[%s10766_s1 + $0xb14] ss:$8 sps:$4 sm:$0xff]   ;;  %v7940_v0 = vld [vmem:[%s10766_s1 + $0xcc4] ss:$8 sps:$4 sm:$0xff]  }
 0x18b   :  { %3654 = vmatpush1.bf16.msra.mxu0 %v7678_v8  ;;  %v7778_v8 = vld [vmem:[%s10766_s1 + $0xb20] ss:$8 sps:$4 sm:$0xff]  }
 0x18c   :  { %3655 = vmatprep.subr.bf16.mxu0 %v7686_v10  ;;  %v7784_v10 = vld [vmem:[%s10766_s1 + $0xb30] ss:$8 sps:$4 sm:$0xff]  }
 0x18f   :  { %3656 = vmatpush1.bf16.msra.mxu0 %v7684_v12  ;;  %v7790_v12 = vld [vmem:[%s10766_s1 + $0xb40] ss:$8 sps:$4 sm:$0xff]  }
 0x190   :  { %3657 = vmatprep.subr.bf16.mxu0 %v7692_v14  ;;  %v7796_v14 = vld [vmem:[%s10766_s1 + $0xb50] ss:$8 sps:$4 sm:$0xff]  }
 0x193   :  { %3658 = vmatpush1.bf16.msra.mxu0 %v7690_v16  ;;  %v7802_v16 = vld [vmem:[%s10766_s1 + $0xb60] ss:$8 sps:$4 sm:$0xff]  }
 0x194   :  { %3659 = vmatprep.subr.bf16.mxu0 %v7698_v18  ;;  %v7808_v18 = vld [vmem:[%s10766_s1 + $0xb70] ss:$8 sps:$4 sm:$0xff]  }
 0x197   :  { %3660 = vmatpush1.bf16.msra.mxu0 %v7696_v20  ;;  %v7814_v20 = vld [vmem:[%s10766_s1 + $0xb80] ss:$8 sps:$4 sm:$0xff]  }
 0x198   :  { %3661 = vmatprep.subr.bf16.mxu0 %v7704_v22  ;;  %v7820_v22 = vld [vmem:[%s10766_s1 + $0xb90] ss:$8 sps:$4 sm:$0xff]  }
 0x19b   :  { %3662 = vmatpush1.bf16.msra.mxu0 %v7702_v24  ;;  %v7826_v24 = vld [vmem:[%s10766_s1 + $0xba0] ss:$8 sps:$4 sm:$0xff]  }
 0x19c   :  { %3663 = vmatprep.subr.bf16.mxu0 %v7710_v26  ;;  %v7832_v26 = vld [vmem:[%s10766_s1 + $0xbb0] ss:$8 sps:$4 sm:$0xff]  }
 0x19f   :  { %3664 = vmatpush1.bf16.msra.mxu0 %v7708_v28  ;;  %v7838_v28 = vld [vmem:[%s10766_s1 + $0xbc0] ss:$8 sps:$4 sm:$0xff]  }
 0x1a0   :  { %3665 = vmatprep.subr.bf16.mxu0 %v7716_v30  ;;  %v7844_v30 = vld [vmem:[%s10766_s1 + $0xbd0] ss:$8 sps:$4 sm:$0xff]  }
 0x1a3   :  { %3666 = vmatpush1.bf16.msra.mxu0 %v7714_v32  ;;  %v7850_v32 = vld [vmem:[%s10766_s1 + $0xbe0] ss:$8 sps:$4 sm:$0xff]  }
 0x1a4   :  { %3667 = vmatprep.subr.bf16.mxu0 %v7722_v34  ;;  %v7858_v34 = vld [vmem:[%s10766_s1 + $0xbf0] ss:$8 sps:$4 sm:$0xff]  }
 0x1a7   :  { %3668 = vmatpush1.bf16.msra.mxu0 %v7720_v36  ;;  %v9390_v36 = vld [vmem:[%s10767_s0 + $0x60] sm:$0xff] }
 0x1a8   :  { %3669 = vmatprep.subr.bf16.mxu0 %v7728_v38  ;;  %v7866_v38 = vld [vmem:[%s10766_s1 + $0xc00] ss:$8 sps:$4 sm:$0xff]   ;;  %v6442_v39 = vcombine.high %v9390_v36, %v9390_v36 }
 0x1ab   :  { %3670 = vmatpush1.bf16.msra.mxu0 %v7726_v40  ;;  %v7874_v40 = vld [vmem:[%s10766_s1 + $0xc14] ss:$8 sps:$4 sm:$0xff]  }
 0x1ac   :  { %3671 = vmatprep.subr.bf16.mxu0 %v7734_v43  ;;  %v7880_v43 = vld [vmem:[%s10766_s1 + $0xc24] ss:$8 sps:$4 sm:$0xff]  }
 0x1af   :  { %3672 = vmatpush1.bf16.msra.mxu0 %v7732_v45  ;;  %v7886_v45 = vld [vmem:[%s10766_s1 + $0xc34] ss:$8 sps:$4 sm:$0xff]  }
 0x1b0   :  { %3673 = vmatprep.subr.bf16.mxu0 %v7740_v48  ;;  %v7892_v48 = vld [vmem:[%s10766_s1 + $0xc44] ss:$8 sps:$4 sm:$0xff]  }
 0x1b3   :  { %3674 = vmatpush1.bf16.msra.mxu0 %v7738_v50  ;;  %v7898_v50 = vld [vmem:[%s10766_s1 + $0xc54] ss:$8 sps:$4 sm:$0xff]  }
 0x1b4   :  { %3675 = vmatprep.subr.bf16.mxu0 %v7746_v52  ;;  %v7904_v52 = vld [vmem:[%s10766_s1 + $0xc64] ss:$8 sps:$4 sm:$0xff]  }
 0x1b7   :  { %3676 = vmatpush1.bf16.msra.mxu0 %v7744_v55  ;;  %v7910_v55 = vld [vmem:[%s10766_s1 + $0xc74] ss:$8 sps:$4 sm:$0xff]  }
 0x1b8   :  { %3677 = vmatprep.subr.bf16.mxu0 %v7752_v56  ;;  %v7916_v56 = vld [vmem:[%s10766_s1 + $0xc84] ss:$8 sps:$4 sm:$0xff]  }
 0x1bb   :  { %3678 = vmatpush1.bf16.msra.mxu0 %v7750_v58  ;;  %v7922_v58 = vld [vmem:[%s10766_s1 + $0xc94] ss:$8 sps:$4 sm:$0xff]  }
 0x1bc   :  { %3679 = vmatprep.subr.bf16.mxu0 %v7760_v61  ;;  %v7928_v61 = vld [vmem:[%s10766_s1 + $0xca4] ss:$8 sps:$4 sm:$0xff]  }
 0x1bf   :  { %3680 = vmatpush1.bf16.msra.mxu0 %v7758_v63  ;;  %v7932_v63 = vld [vmem:[%s10766_s1 + $0xcb0] ss:$8 sps:$4 sm:$0xff]  }
 0x1c0   :  { %3690 = vmatprep.subr.bf16.mxu0 %v7768_v2  ;;  %v7946_v2 = vld [vmem:[%s10766_s1 + $0xcd4] ss:$8 sps:$4 sm:$0xff]  }
 0x1c2   :  { %3682 = vmatmul.mubr.bf16.vlgmr.msra.gmra.mrb[0].mxu0 %v6437_v54  ;;  %v7952_v54 = vld [vmem:[%s10766_s1 + $0xce4] ss:$8 sps:$4 sm:$0xff]  }
 0x1c3   :  { %3691 = vmatpush1.bf16.msra.mxu0 %v7766_v4  ;;  %3722 = vmatprep.mubr.bf16.mxu0 %v6440_v5  ;;  %v7950_v4 = vld [vmem:[%s10766_s1 + $0xce0] ss:$8 sps:$4 sm:$0xff]   ;;  %v7957_v5 = vld [vmem:[%s10766_s1 + $0xcf4] ss:$8 sps:$4 sm:$0xff]  }
 0x1c4   :  { %3692 = vmatprep.subr.bf16.mxu0 %v7774_v6  ;;  %v7955_v6 = vld [vmem:[%s10766_s1 + $0xcf0] ss:$8 sps:$4 sm:$0xff]  }
 0x1c7   :  { %3693 = vmatpush1.bf16.msra.mxu0 %v7772_v60  ;;  %v7962_v60 = vld [vmem:[%s10766_s1 + $0xd04] ss:$8 sps:$4 sm:$0xff]  }
 0x1c8   :  { %3694 = vmatprep.subr.bf16.mxu0 %v7780_v7  ;;  %v9495_v7 = vld [vmem:[%s10767_s0 + $0x68] sm:$0xff] }
 0x1cb   :  { %3695 = vmatpush1.bf16.msra.mxu0 %v7778_v8  ;;  %v6441_v8 = vcombine.low %v9390_v36, %v9390_v36  ;;  %v7999_v36 = vld [vmem:[%s10766_s1 + $0xdd0] ss:$8 sps:$4 sm:$0xff]  }
 0x1cc   :  { %3696 = vmatprep.subr.bf16.mxu0 %v7786_v9  ;;  %v7960_v9 = vld [vmem:[%s10766_s1 + $0xd00] ss:$8 sps:$4 sm:$0xff]  }
 0x1cf   :  { %3697 = vmatpush1.bf16.msra.mxu0 %v7784_v10  ;;  %v6444_v10 = vcombine.high %v9495_v7, %v9495_v7 }
 0x1d0   :  { %3698 = vmatprep.subr.bf16.mxu0 %v7792_v11  ;;  %v7965_v11 = vld [vmem:[%s10766_s1 + $0xd14] ss:$8 sps:$4 sm:$0xff]  }
 0x1d3   :  { %3699 = vmatpush1.bf16.msra.mxu0 %v7790_v12  ;;  %v7963_v12 = vld [vmem:[%s10766_s1 + $0xd10] ss:$8 sps:$4 sm:$0xff]  }
 0x1d4   :  { %3700 = vmatprep.subr.bf16.mxu0 %v7798_v13  ;;  %v7968_v13 = vld [vmem:[%s10766_s1 + $0xd24] ss:$8 sps:$4 sm:$0xff]  }
 0x1d7   :  { %3701 = vmatpush1.bf16.msra.mxu0 %v7796_v14  ;;  %v7966_v14 = vld [vmem:[%s10766_s1 + $0xd20] ss:$8 sps:$4 sm:$0xff]  }
 0x1d8   :  { %3702 = vmatprep.subr.bf16.mxu0 %v7804_v15  ;;  %v7971_v15 = vld [vmem:[%s10766_s1 + $0xd34] ss:$8 sps:$4 sm:$0xff]  }
 0x1db   :  { %3703 = vmatpush1.bf16.msra.mxu0 %v7802_v16  ;;  %v7969_v16 = vld [vmem:[%s10766_s1 + $0xd30] ss:$8 sps:$4 sm:$0xff]  }
 0x1dc   :  { %3704 = vmatprep.subr.bf16.mxu0 %v7810_v17  ;;  %v7974_v17 = vld [vmem:[%s10766_s1 + $0xd44] ss:$8 sps:$4 sm:$0xff]  }
 0x1df   :  { %3705 = vmatpush1.bf16.msra.mxu0 %v7808_v18  ;;  %v7972_v18 = vld [vmem:[%s10766_s1 + $0xd40] ss:$8 sps:$4 sm:$0xff]  }
 0x1e0   :  { %3706 = vmatprep.subr.bf16.mxu0 %v7816_v19  ;;  %v7977_v19 = vld [vmem:[%s10766_s1 + $0xd54] ss:$8 sps:$4 sm:$0xff]  }
 0x1e3   :  { %3707 = vmatpush1.bf16.msra.mxu0 %v7814_v20  ;;  %v7975_v20 = vld [vmem:[%s10766_s1 + $0xd50] ss:$8 sps:$4 sm:$0xff]  }
 0x1e4   :  { %3708 = vmatprep.subr.bf16.mxu0 %v7822_v21  ;;  %v7980_v21 = vld [vmem:[%s10766_s1 + $0xd64] ss:$8 sps:$4 sm:$0xff]  }
 0x1e7   :  { %3709 = vmatpush1.bf16.msra.mxu0 %v7820_v22  ;;  %v7978_v22 = vld [vmem:[%s10766_s1 + $0xd60] ss:$8 sps:$4 sm:$0xff]  }
 0x1e8   :  { %3710 = vmatprep.subr.bf16.mxu0 %v7828_v23  ;;  %v7983_v23 = vld [vmem:[%s10766_s1 + $0xd74] ss:$8 sps:$4 sm:$0xff]  }
 0x1eb   :  { %3711 = vmatpush1.bf16.msra.mxu0 %v7826_v24  ;;  %v7981_v24 = vld [vmem:[%s10766_s1 + $0xd70] ss:$8 sps:$4 sm:$0xff]  }
 0x1ec   :  { %3712 = vmatprep.subr.bf16.mxu0 %v7834_v25  ;;  %v7986_v25 = vld [vmem:[%s10766_s1 + $0xd84] ss:$8 sps:$4 sm:$0xff]  }
 0x1ef   :  { %3713 = vmatpush1.bf16.msra.mxu0 %v7832_v26  ;;  %v7984_v26 = vld [vmem:[%s10766_s1 + $0xd80] ss:$8 sps:$4 sm:$0xff]  }
 0x1f0   :  { %3714 = vmatprep.subr.bf16.mxu0 %v7840_v27  ;;  %v7989_v27 = vld [vmem:[%s10766_s1 + $0xd94] ss:$8 sps:$4 sm:$0xff]  }
 0x1f3   :  { %3715 = vmatpush1.bf16.msra.mxu0 %v7838_v28  ;;  %v7987_v28 = vld [vmem:[%s10766_s1 + $0xd90] ss:$8 sps:$4 sm:$0xff]  }
 0x1f4   :  { %3716 = vmatprep.subr.bf16.mxu0 %v7846_v29  ;;  %v7992_v29 = vld [vmem:[%s10766_s1 + $0xda4] ss:$8 sps:$4 sm:$0xff]  }
 0x1f7   :  { %3717 = vmatpush1.bf16.msra.mxu0 %v7844_v30  ;;  %v7990_v30 = vld [vmem:[%s10766_s1 + $0xda0] ss:$8 sps:$4 sm:$0xff]  }
 0x1f8   :  { %3718 = vmatprep.subr.bf16.mxu0 %v7852_v31  ;;  %v7995_v31 = vld [vmem:[%s10766_s1 + $0xdb4] ss:$8 sps:$4 sm:$0xff]  }
 0x1fb   :  { %3719 = vmatpush1.bf16.msra.mxu0 %v7850_v32  ;;  %v7993_v32 = vld [vmem:[%s10766_s1 + $0xdb0] ss:$8 sps:$4 sm:$0xff]  }
 0x1fc   :  { %3720 = vmatprep.subr.bf16.mxu0 %v7860_v33  ;;  %v7998_v33 = vld [vmem:[%s10766_s1 + $0xdc4] ss:$8 sps:$4 sm:$0xff]  }
 0x1ff   :  { %3721 = vmatpush1.bf16.msra.mxu0 %v7858_v34  ;;  %v7996_v34 = vld [vmem:[%s10766_s1 + $0xdc0] ss:$8 sps:$4 sm:$0xff]  }
 0x200   :  { %3731 = vmatprep.subr.bf16.mxu0 %v7868_v35  ;;  %v8001_v35 = vld [vmem:[%s10766_s1 + $0xdd4] ss:$8 sps:$4 sm:$0xff]  }
 0x202   :  { %3723 = vmatmul.mubr.bf16.vlgmr.msra.gmra.mrb[0].mxu0 %v6439_v37  ;;  %v8004_v37 = vld [vmem:[%s10766_s1 + $0xde4] ss:$8 sps:$4 sm:$0xff]  }
 0x203   :  { %3732 = vmatpush1.bf16.msra.mxu0 %v7866_v38  ;;  %3763 = vmatprep.mubr.bf16.mxu0 %v6442_v39  ;;  %v8002_v38 = vld [vmem:[%s10766_s1 + $0xde0] ss:$8 sps:$4 sm:$0xff]   ;;  %v8007_v39 = vld [vmem:[%s10766_s1 + $0xdf4] ss:$8 sps:$4 sm:$0xff]  }
 0x204   :  { %3733 = vmatprep.subr.bf16.mxu0 %v7874_v40  ;;  %v8005_v40 = vld [vmem:[%s10766_s1 + $0xdf0] ss:$8 sps:$4 sm:$0xff]  }
 0x207   :  { %3734 = vmatpush1.bf16.msra.mxu0 %v7872_v42  ;;  %v8012_v42 = vld [vmem:[%s10766_s1 + $0xe04] ss:$8 sps:$4 sm:$0xff]  }
 0x208   :  { %3735 = vmatprep.subr.bf16.mxu0 %v7880_v43  ;;  %v9600_v43 = vld [vmem:[%s10767_s0 + $0x70] sm:$0xff] }
 0x20b   :  { %3736 = vmatpush1.bf16.msra.mxu0 %v7878_v44  ;;  %v6443_v44 = vcombine.low %v9495_v7, %v9495_v7 }
 0x20c   :  { %3737 = vmatprep.subr.bf16.mxu0 %v7886_v45  ;;  %v8010_v45 = vld [vmem:[%s10766_s1 + $0xe00] ss:$8 sps:$4 sm:$0xff]  }
 0x20f   :  { %3738 = vmatpush1.bf16.msra.mxu0 %v7884_v46  ;;  %v6446_v46 = vcombine.high %v9600_v43, %v9600_v43 }
 0x210   :  { %3739 = vmatprep.subr.bf16.mxu0 %v7892_v48  ;;  %v8015_v48 = vld [vmem:[%s10766_s1 + $0xe14] ss:$8 sps:$4 sm:$0xff]  }
 0x213   :  { %3740 = vmatpush1.bf16.msra.mxu0 %v7890_v49  ;;  %v8013_v49 = vld [vmem:[%s10766_s1 + $0xe10] ss:$8 sps:$4 sm:$0xff]  }
 0x214   :  { %3741 = vmatprep.subr.bf16.mxu0 %v7898_v50  ;;  %v3901_v50 = vld [vmem:[%s10768_s4] sm:$0xff] }
 0x217   :  { %3742 = vmatpush1.bf16.msra.mxu0 %v7896_v51  ;;  %v3917_v51 = vld [vmem:[%s10768_s4 + $0x80] sm:$0xff] }
 0x218   :  { %3743 = vmatprep.subr.bf16.mxu0 %v7904_v52  ;;  %v8018_v52 = vld [vmem:[%s10766_s1 + $0xe24] ss:$8 sps:$4 sm:$0xff]  }
 0x21b   :  { %3744 = vmatpush1.bf16.msra.mxu0 %v7902_v53  ;;  %v6961_v53 = vcombine.low %v3901_v50, %v3917_v51 }
 0x21c   :  { %3745 = vmatprep.subr.bf16.mxu0 %v7910_v55  ;;  %v6962_v55 = vcombine.high %v3901_v50, %v3917_v51  ;;  %v8066_v50 = vld [vmem:[%s10766_s1 + $0xf20] ss:$8 sps:$4 sm:$0xff]   ;;  %v8071_v51 = vld [vmem:[%s10766_s1 + $0xf34] ss:$8 sps:$4 sm:$0xff]  }
 0x21e   :  { %5605 = vmatprep.subr.bf16.mxu1 %v6962_v55  ;;  %v8072_v55 = vld [vmem:[%s10766_s1 + $0xf40] ss:$8 sps:$4 sm:$0xff]  }
 0x21f   :  { %3746 = vmatpush1.bf16.msra.mxu0 %v7908_v41  ;;  %v3933_v41 = vld [vmem:[%s10768_s4 + $0x100] sm:$0xff]  ;;  %5606 = vmatpush1.bf16.msra.mxu1 %v6961_v53 }
 0x220   :  { %3747 = vmatprep.subr.bf16.mxu0 %v7916_v56  ;;  %v3949_v56 = vld [vmem:[%s10768_s4 + $0x180] sm:$0xff] }
 0x221   :  { %v8074_v53 = vld [vmem:[%s10766_s1 + $0xf44] ss:$8 sps:$4 sm:$0xff]  }
 0x223   :  { %3748 = vmatpush1.bf16.msra.mxu0 %v7914_v57  ;;  %v6994_v57 = vcombine.high %v3933_v41, %v3949_v56 }
 0x224   :  { %3749 = vmatprep.subr.bf16.mxu0 %v7922_v58  ;;  %v3965_v58 = vld [vmem:[%s10768_s4 + $0x200] sm:$0xff] }
 0x225   :  { %5607 = vmatprep.subr.bf16.mxu1 %v6994_v57  ;;  %v8080_v57 = vld [vmem:[%s10766_s1 + $0xf64] ss:$8 sps:$4 sm:$0xff]  }
 0x227   :  { %3750 = vmatpush1.bf16.msra.mxu0 %v7920_v59  ;;  %v3981_v59 = vld [vmem:[%s10768_s4 + $0x280] sm:$0xff] }
 0x228   :  { %3751 = vmatprep.subr.bf16.mxu0 %v7928_v61  ;;  %v8016_v61 = vld [vmem:[%s10766_s1 + $0xe20] ss:$8 sps:$4 sm:$0xff]  }
 0x22b   :  { %3752 = vmatpush1.bf16.msra.mxu0 %v7926_v47  ;;  %v6993_v47 = vcombine.low %v3933_v41, %v3949_v56  ;;  %v8077_v41 = vld [vmem:[%s10766_s1 + $0xf54] ss:$8 sps:$4 sm:$0xff]   ;;  %v8075_v56 = vld [vmem:[%s10766_s1 + $0xf50] ss:$8 sps:$4 sm:$0xff]  }
 0x22c   :  { %3753 = vmatprep.subr.bf16.mxu0 %v7934_v62  ;;  %v8021_v62 = vld [vmem:[%s10766_s1 + $0xe34] ss:$8 sps:$4 sm:$0xff]  }
 0x22d   :  { %5608 = vmatpush1.bf16.msra.mxu1 %v6993_v47  ;;  %v8086_v47 = vld [vmem:[%s10766_s1 + $0xf84] ss:$8 sps:$4 sm:$0xff]  }
 0x22f   :  { %3754 = vmatpush1.bf16.msra.mxu0 %v7932_v63  ;;  %v7026_v63 = vcombine.high %v3965_v58, %v3981_v59 }
 0x230   :  { %3755 = vmatprep.subr.bf16.mxu0 %v7940_v0  ;;  %v3997_v0 = vld [vmem:[%s10768_s4 + $0x300] sm:$0xff] }
 0x231   :  { %5609 = vmatprep.subr.bf16.mxu1 %v7026_v63  ;;  %v8089_v63 = vld [vmem:[%s10766_s1 + $0xf94] ss:$8 sps:$4 sm:$0xff]  }
 0x233   :  { %3756 = vmatpush1.bf16.msra.mxu0 %v7938_v1  ;;  %v4013_v1 = vld [vmem:[%s10768_s4 + $0x380] sm:$0xff] }
 0x234   :  { %3757 = vmatprep.subr.bf16.mxu0 %v7946_v2  ;;  %v8019_v2 = vld [vmem:[%s10766_s1 + $0xe30] ss:$8 sps:$4 sm:$0xff]   ;;  %v7057_v7 = vcombine.low %v3997_v0, %v4013_v1 }
 0x237   :  { %3758 = vmatpush1.bf16.msra.mxu0 %v7944_v3  ;;  %v7025_v3 = vcombine.low %v3965_v58, %v3981_v59  ;;  %v8078_v58 = vld [vmem:[%s10766_s1 + $0xf60] ss:$8 sps:$4 sm:$0xff]   ;;  %v8083_v59 = vld [vmem:[%s10766_s1 + $0xf74] ss:$8 sps:$4 sm:$0xff]  }
 0x238   :  { %3759 = vmatprep.subr.bf16.mxu0 %v7952_v54  ;;  %v8024_v54 = vld [vmem:[%s10766_s1 + $0xe44] ss:$8 sps:$4 sm:$0xff]  }
 0x239   :  { %5610 = vmatpush1.bf16.msra.mxu1 %v7025_v3  ;;  %v8095_v3 = vld [vmem:[%s10766_s1 + $0xfb4] ss:$8 sps:$4 sm:$0xff]  }
 0x23b   :  { %3760 = vmatpush1.bf16.msra.mxu0 %v7950_v4  ;;  %v7058_v4 = vcombine.high %v3997_v0, %v4013_v1  ;;  %v8087_v0 = vld [vmem:[%s10766_s1 + $0xf90] ss:$8 sps:$4 sm:$0xff]   ;;  %v8092_v1 = vld [vmem:[%s10766_s1 + $0xfa4] ss:$8 sps:$4 sm:$0xff]  }
 0x23c   :  { %3761 = vmatprep.subr.bf16.mxu0 %v7957_v5  ;;  %v4029_v5 = vld [vmem:[%s10768_s4 + $0x400] sm:$0xff] }
 0x23d   :  { %5611 = vmatprep.subr.bf16.mxu1 %v7058_v4  ;;  %v8098_v4 = vld [vmem:[%s10766_s1 + $0xfc4] ss:$8 sps:$4 sm:$0xff]  }
 0x23e   :  { %5612 = vmatpush1.bf16.msra.mxu1 %v7057_v7  ;;  %v8104_v7 = vld [vmem:[%s10766_s1 + $0xfe4] ss:$8 sps:$4 sm:$0xff]  }
 0x23f   :  { %3762 = vmatpush1.bf16.msra.mxu0 %v7955_v6  ;;  %v4045_v6 = vld [vmem:[%s10768_s4 + $0x480] sm:$0xff] }
 0x240   :  { %3772 = vmatprep.subr.bf16.mxu0 %v7962_v60  ;;  %v8022_v60 = vld [vmem:[%s10766_s1 + $0xe40] ss:$8 sps:$4 sm:$0xff]  }
 0x242   :  { %3764 = vmatmul.mubr.bf16.vlgmr.msra.gmra.mrb[0].mxu0 %v6441_v8  ;;  %v8027_v8 = vld [vmem:[%s10766_s1 + $0xe54] ss:$8 sps:$4 sm:$0xff]  }
 0x243   :  { %3773 = vmatpush1.bf16.msra.mxu0 %v7960_v9  ;;  %3804 = vmatprep.mubr.bf16.mxu0 %v6444_v10  ;;  %v7090_v9 = vcombine.high %v4029_v5, %v4045_v6  ;;  %v4061_v10 = vld [vmem:[%s10768_s4 + $0x500] sm:$0xff] }
 0x244   :  { %3774 = vmatprep.subr.bf16.mxu0 %v7965_v11  ;;  %v4077_v11 = vld [vmem:[%s10768_s4 + $0x580] sm:$0xff] }
 0x245   :  { %5613 = vmatprep.subr.bf16.mxu1 %v7090_v9  ;;  %v8107_v9 = vld [vmem:[%s10766_s1 + $0xff4] ss:$8 sps:$4 sm:$0xff]  }
 0x247   :  { %3775 = vmatpush1.bf16.msra.mxu0 %v7963_v12 }
 0x248   :  { %3776 = vmatprep.subr.bf16.mxu0 %v7968_v13  ;;  %v8025_v13 = vld [vmem:[%s10766_s1 + $0xe50] ss:$8 sps:$4 sm:$0xff]  }
 0x24b   :  { %3777 = vmatpush1.bf16.msra.mxu0 %v7966_v14 }
 0x24c   :  { %3778 = vmatprep.subr.bf16.mxu0 %v7971_v15  ;;  %v7089_v15 = vcombine.low %v4029_v5, %v4045_v6  ;;  %v8096_v5 = vld [vmem:[%s10766_s1 + $0xfc0] ss:$8 sps:$4 sm:$0xff]   ;;  %v8101_v6 = vld [vmem:[%s10766_s1 + $0xfd4] ss:$8 sps:$4 sm:$0xff]  }
 0x24e   :  { %5614 = vmatpush1.bf16.msra.mxu1 %v7089_v15  ;;  %v4109_v15 = vld [vmem:[%s10768_s4 + $0x680] sm:$0xff] }
 0x24f   :  { %3779 = vmatpush1.bf16.msra.mxu0 %v7969_v16  ;;  %v8030_v16 = vld [vmem:[%s10766_s1 + $0xe64] ss:$8 sps:$4 sm:$0xff]  }
 0x250   :  { %3780 = vmatprep.subr.bf16.mxu0 %v7974_v17 }
 0x253   :  { %3781 = vmatpush1.bf16.msra.mxu0 %v7972_v18  ;;  %v7122_v18 = vcombine.high %v4061_v10, %v4077_v11 }
 0x254   :  { %3782 = vmatprep.subr.bf16.mxu0 %v7977_v19 }
 0x255   :  { %5615 = vmatprep.subr.bf16.mxu1 %v7122_v18  ;;  %v4125_v18 = vld [vmem:[%s10768_s4 + $0x700] sm:$0xff] }
 0x257   :  { %3783 = vmatpush1.bf16.msra.mxu0 %v7975_v20  ;;  %v8028_v20 = vld [vmem:[%s10766_s1 + $0xe60] ss:$8 sps:$4 sm:$0xff]  }
 0x258   :  { %3784 = vmatprep.subr.bf16.mxu0 %v7980_v21  ;;  %v7121_v21 = vcombine.low %v4061_v10, %v4077_v11  ;;  %v8105_v10 = vld [vmem:[%s10766_s1 + $0xff0] ss:$8 sps:$4 sm:$0xff]  }
 0x25a   :  { %5616 = vmatpush1.bf16.msra.mxu1 %v7121_v21 }
 0x25b   :  { %3785 = vmatpush1.bf16.msra.mxu0 %v7978_v22  ;;  %v9672_v12 = vpop.f32.mrb[0].mxu1  ;;  %v8033_v22 = vld [vmem:[%s10766_s1 + $0xe74] ss:$8 sps:$4 sm:$0xff]  }
 0x25c   :  { %3786 = vmatprep.subr.bf16.mxu0 %v7983_v23  ;;  %v9677_v14 = vpop.f32.mrb[1].mxu1  ;;  %v8031_v23 = vld [vmem:[%s10766_s1 + $0xe70] ss:$8 sps:$4 sm:$0xff]  }
 0x25d   :  { %v3400_v17 = vpop.f32.mrb[2].mxu1 }
 0x25e   :  { %v3401_v19 = vpop.f32.mrb[3].mxu1 }
 0x25f   :  { %3787 = vmatpush1.bf16.msra.mxu0 %v7981_v24  ;;  %v8036_v24 = vld [vmem:[%s10766_s1 + $0xe84] ss:$8 sps:$4 sm:$0xff]  }
 0x260   :  { %3788 = vmatprep.subr.bf16.mxu0 %v7986_v25  ;;  %v8034_v25 = vld [vmem:[%s10766_s1 + $0xe80] ss:$8 sps:$4 sm:$0xff]  }
 0x261   :  { %v4141_v19 = vld [vmem:[%s10768_s4 + $0x780] sm:$0xff] }
 0x262   :  { %v7185_v21 = vcombine.low %v4125_v18, %v4141_v19 }
 0x263   :  { %3789 = vmatpush1.bf16.msra.mxu0 %v7984_v26  ;;  %v8039_v26 = vld [vmem:[%s10766_s1 + $0xe94] ss:$8 sps:$4 sm:$0xff]  }
 0x264   :  { %3790 = vmatprep.subr.bf16.mxu0 %v7989_v27  ;;  %v8037_v27 = vld [vmem:[%s10766_s1 + $0xe90] ss:$8 sps:$4 sm:$0xff]  }
 0x267   :  { %3791 = vmatpush1.bf16.msra.mxu0 %v7987_v28  ;;  %v8042_v28 = vld [vmem:[%s10766_s1 + $0xea4] ss:$8 sps:$4 sm:$0xff]  }
 0x268   :  { %3792 = vmatprep.subr.bf16.mxu0 %v7992_v29  ;;  %v8040_v29 = vld [vmem:[%s10766_s1 + $0xea0] ss:$8 sps:$4 sm:$0xff]  }
 0x26b   :  { %3793 = vmatpush1.bf16.msra.mxu0 %v7990_v30  ;;  %v8045_v30 = vld [vmem:[%s10766_s1 + $0xeb4] ss:$8 sps:$4 sm:$0xff]  }
 0x26c   :  { %3794 = vmatprep.subr.bf16.mxu0 %v7995_v31  ;;  %v8043_v31 = vld [vmem:[%s10766_s1 + $0xeb0] ss:$8 sps:$4 sm:$0xff]  }
 0x26f   :  { %3795 = vmatpush1.bf16.msra.mxu0 %v7993_v32  ;;  %v8048_v32 = vld [vmem:[%s10766_s1 + $0xec4] ss:$8 sps:$4 sm:$0xff]  }
 0x270   :  { %3796 = vmatprep.subr.bf16.mxu0 %v7998_v33  ;;  %v8046_v33 = vld [vmem:[%s10766_s1 + $0xec0] ss:$8 sps:$4 sm:$0xff]  }
 0x273   :  { %3797 = vmatpush1.bf16.msra.mxu0 %v7996_v34  ;;  %v8051_v34 = vld [vmem:[%s10766_s1 + $0xed4] ss:$8 sps:$4 sm:$0xff]  }
 0x274   :  { %3798 = vmatprep.subr.bf16.mxu0 %v8001_v35  ;;  %v8049_v35 = vld [vmem:[%s10766_s1 + $0xed0] ss:$8 sps:$4 sm:$0xff]  }
 0x277   :  { %3799 = vmatpush1.bf16.msra.mxu0 %v7999_v36  ;;  %v8054_v36 = vld [vmem:[%s10766_s1 + $0xee4] ss:$8 sps:$4 sm:$0xff]  }
 0x278   :  { %3800 = vmatprep.subr.bf16.mxu0 %v8004_v37  ;;  %v8052_v37 = vld [vmem:[%s10766_s1 + $0xee0] ss:$8 sps:$4 sm:$0xff]  }
 0x27b   :  { %3801 = vmatpush1.bf16.msra.mxu0 %v8002_v38  ;;  %v8057_v38 = vld [vmem:[%s10766_s1 + $0xef4] ss:$8 sps:$4 sm:$0xff]  }
 0x27c   :  { %3802 = vmatprep.subr.bf16.mxu0 %v8007_v39  ;;  %v8055_v39 = vld [vmem:[%s10766_s1 + $0xef0] ss:$8 sps:$4 sm:$0xff]  }
 0x27f   :  { %3803 = vmatpush1.bf16.msra.mxu0 %v8005_v40  ;;  %v8062_v40 = vld [vmem:[%s10766_s1 + $0xf04] ss:$8 sps:$4 sm:$0xff]  }
 0x280   :  { %3813 = vmatprep.subr.bf16.mxu0 %v8012_v42  ;;  %v9745_v42 = vld [vmem:[%s10767_s0 + $0x78] sm:$0xff] }
 0x281   :  { %v6447_v11 = vcombine.low %v9745_v42, %v9745_v42 }
 0x282   :  { %3805 = vmatmul.mubr.bf16.vlgmr.msra.gmra.mrb[0].mxu0 %v6443_v44  ;;  %v6445_v44 = vcombine.low %v9600_v43, %v9600_v43  ;;  %v8068_v43 = vld [vmem:[%s10766_s1 + $0xf24] ss:$8 sps:$4 sm:$0xff]  }
 0x283   :  { %3814 = vmatpush1.bf16.msra.mxu0 %v8010_v45  ;;  %3845 = vmatprep.mubr.bf16.mxu0 %v6446_v46  ;;  %v8060_v45 = vld [vmem:[%s10766_s1 + $0xf00] ss:$8 sps:$4 sm:$0xff]   ;;  %v6448_v46 = vcombine.high %v9745_v42, %v9745_v42 }
 0x284   :  { %3815 = vmatprep.subr.bf16.mxu0 %v8015_v48  ;;  %v8065_v48 = vld [vmem:[%s10766_s1 + $0xf14] ss:$8 sps:$4 sm:$0xff]  }
 0x287   :  { %3816 = vmatpush1.bf16.msra.mxu0 %v8013_v49  ;;  %v8063_v49 = vld [vmem:[%s10766_s1 + $0xf10] ss:$8 sps:$4 sm:$0xff]  }
 0x288   :  { %3817 = vmatprep.subr.bf16.mxu0 %v8018_v52  ;;  %v8069_v52 = vld [vmem:[%s10766_s1 + $0xf30] ss:$8 sps:$4 sm:$0xff]  }
 0x28b   :  { %3818 = vmatpush1.bf16.msra.mxu0 %v8016_v61  ;;  %v8081_v61 = vld [vmem:[%s10766_s1 + $0xf70] ss:$8 sps:$4 sm:$0xff]  }
 0x28c   :  { %3819 = vmatprep.subr.bf16.mxu0 %v8021_v62  ;;  %v8084_v62 = vld [vmem:[%s10766_s1 + $0xf80] ss:$8 sps:$4 sm:$0xff]  }
 0x28f   :  { %3820 = vmatpush1.bf16.msra.mxu0 %v8019_v2  ;;  %v8090_v2 = vld [vmem:[%s10766_s1 + $0xfa0] ss:$8 sps:$4 sm:$0xff]  }
 0x290   :  { %3821 = vmatprep.subr.bf16.mxu0 %v8024_v54  ;;  %v8093_v54 = vld [vmem:[%s10766_s1 + $0xfb0] ss:$8 sps:$4 sm:$0xff]  }
 0x293   :  { %3822 = vmatpush1.bf16.msra.mxu0 %v8022_v60  ;;  %v8099_v60 = vld [vmem:[%s10766_s1 + $0xfd0] ss:$8 sps:$4 sm:$0xff]  }
 0x294   :  { %3823 = vmatprep.subr.bf16.mxu0 %v8027_v8  ;;  %v8102_v8 = vld [vmem:[%s10766_s1 + $0xfe0] ss:$8 sps:$4 sm:$0xff]  }
 0x297   :  { %3824 = vmatpush1.bf16.msra.mxu0 %v8025_v13  ;;  %v4093_v13 = vld [vmem:[%s10768_s4 + $0x600] sm:$0xff] }
 0x298   :  { %3825 = vmatprep.subr.bf16.mxu0 %v8030_v16  ;;  %v7154_v16 = vcombine.high %v4093_v13, %v4109_v15  ;;  %v7153_v17 = vcombine.low %v4093_v13, %v4109_v15  ;;  %v3951_v13 = vld [vmem:[%s10768_s4 + $0x190] sm:$0xff] }
 0x29a   :  { %5617 = vmatprep.subr.bf16.mxu1 %v7154_v16 }
 0x29b   :  { %3826 = vmatpush1.bf16.msra.mxu0 %v8028_v20  ;;  %5618 = vmatpush1.bf16.msra.mxu1 %v7153_v17  ;;  %v7186_v20 = vcombine.high %v4125_v18, %v4141_v19  ;;  %v3967_v17 = vld [vmem:[%s10768_s4 + $0x210] sm:$0xff] }
 0x29c   :  { %3827 = vmatprep.subr.bf16.mxu0 %v8033_v22  ;;  %v3902_v22 = vld [vmem:[%s10768_s4 + $0x8] sm:$0xff]  ;;  %v3983_v18 = vld [vmem:[%s10768_s4 + $0x290] sm:$0xff] }
 0x29d   :  { %5619 = vmatprep.subr.bf16.mxu1 %v7186_v20  ;;  %v7030_v20 = vcombine.high %v3967_v17, %v3983_v18 }
 0x29f   :  { %3828 = vmatpush1.bf16.msra.mxu0 %v8031_v23  ;;  %5620 = vmatpush1.bf16.msra.mxu1 %v7185_v21  ;;  %v3918_v23 = vld [vmem:[%s10768_s4 + $0x88] sm:$0xff]  ;;  %v3999_v21 = vld [vmem:[%s10768_s4 + $0x310] sm:$0xff] }
 0x2a0   :  { %3829 = vmatprep.subr.bf16.mxu0 %v8036_v24  ;;  %v6964_v24 = vcombine.high %v3902_v22, %v3918_v23 }
 0x2a2   :  { %5646 = vmatprep.subr.bf16.mxu1 %v6964_v24 }
 0x2a3   :  { %3830 = vmatpush1.bf16.msra.mxu0 %v8034_v25  ;;  %v6963_v25 = vcombine.low %v3902_v22, %v3918_v23  ;;  %v4015_v22 = vld [vmem:[%s10768_s4 + $0x390] sm:$0xff]  ;;  %v7029_v23 = vcombine.low %v3967_v17, %v3983_v18  ;;  %v3937_v18 = vld [vmem:[%s10768_s4 + $0x120] sm:$0xff] }
 0x2a4   :  { %3831 = vmatprep.subr.bf16.mxu0 %v8039_v26  ;;  %v8110_v26 = vmov 0   ;;  %v7062_v24 = vcombine.high %v3999_v21, %v4015_v22 }
 0x2a5   :  { %5637 = vmatprep.mubr.bf16.mxu1 %v8110_v26 }
 0x2a7   :  { %3832 = vmatpush1.bf16.msra.mxu0 %v8037_v27  ;;  %v557_v27 = vlaneseq }
 0x2a8   :  { %3833 = vmatprep.subr.bf16.mxu0 %v8042_v28 }
 0x2a9   :  { %v9865_v28 = vshrl.u32 %v557_v27, 7  ;;  %v4047_v27 = vld [vmem:[%s10768_s4 + $0x490] sm:$0xff] }
 0x2ab   :  { %3834 = vmatpush1.bf16.msra.mxu0 %v8040_v29  ;;  %v9868_v29 = vsub.s32 0, %v9865_v28 }
 0x2ac   :  { %3835 = vmatprep.subr.bf16.mxu0 %v8045_v30  ;;  %v555_v30 = vld [vmem:[%s10769_s2] sm:$0x3] }
 0x2af   :  { %3836 = vmatpush1.bf16.msra.mxu0 %v8043_v31  ;;  %v9874_v31 = vsub.s32 1, %v9865_v28 }
 0x2b0   :  { %3837 = vmatprep.subr.bf16.mxu0 %v8048_v32  ;;  %v560_v32 = vrot.slane %v555_v30, %v9868_v29 }
 0x2b3   :  { %3838 = vmatpush1.bf16.msra.mxu0 %v8046_v33  ;;  %v564_v33 = vrot.slane %v555_v30, %v9874_v31  ;;  %v7061_v30 = vcombine.low %v3999_v21, %v4015_v22  ;;  %v3969_v22 = vld [vmem:[%s10768_s4 + $0x220] sm:$0xff] }
 0x2b4   :  { %3839 = vmatprep.subr.bf16.mxu0 %v8051_v34  ;;  %v7249_v34 = vadd.f32 %v9672_v12, %v560_v32 }
 0x2b7   :  { %3840 = vmatpush1.bf16.msra.mxu0 %v8049_v35  ;;  %v7251_v35 = vadd.f32 %v9677_v14, %v564_v33  ;;  %v3934_v14 = vld [vmem:[%s10768_s4 + $0x108] sm:$0xff]  ;;  %v4063_v33 = vld [vmem:[%s10768_s4 + $0x510] sm:$0xff] }
 0x2b8   :  { %3841 = vmatprep.subr.bf16.mxu0 %v8054_v36 }
 0x2bb   :  { %3842 = vmatpush1.bf16.msra.mxu0 %v8052_v37 }
 0x2bc   :  { %3843 = vmatprep.subr.bf16.mxu0 %v8057_v38 }
 0x2bf   :  { %3844 = vmatpush1.bf16.msra.mxu0 %v8055_v39  ;;  %v3897_v39 = vld [vmem:[%s10770_s3] sm:$0xff] }
 0x2c0   :  { %3854 = vmatprep.subr.bf16.mxu0 %v8062_v40 }
 0x2c2   :  { %3846 = vmatmul.mubr.bf16.vlgmr.msra.gmra.mrb[0].mxu0 %v6445_v44 }
 0x2c3   :  { %3855 = vmatpush1.bf16.msra.mxu0 %v8060_v45  ;;  %3886 = vmatprep.mubr.bf16.mxu0 %v6448_v46  ;;  %v3950_v45 = vld [vmem:[%s10768_s4 + $0x188] sm:$0xff] }
 0x2c4   :  { %3856 = vmatprep.subr.bf16.mxu0 %v8065_v48 }
 0x2c7   :  { %3857 = vmatpush1.bf16.msra.mxu0 %v8063_v49  ;;  %v6996_v49 = vcombine.high %v3934_v14, %v3950_v45 }
 0x2c8   :  { %3858 = vmatprep.subr.bf16.mxu0 %v8068_v43  ;;  %v3966_v43 = vld [vmem:[%s10768_s4 + $0x208] sm:$0xff] }
 0x2cb   :  { %3859 = vmatpush1.bf16.msra.mxu0 %v8066_v50  ;;  %v3982_v50 = vld [vmem:[%s10768_s4 + $0x288] sm:$0xff] }
 0x2cc   :  { %3860 = vmatprep.subr.bf16.mxu0 %v8071_v51  ;;  %v6995_v51 = vcombine.low %v3934_v14, %v3950_v45  ;;  %v3904_v45 = vld [vmem:[%s10768_s4 + $0x18] sm:$0xff] }
 0x2cf   :  { %3861 = vmatpush1.bf16.msra.mxu0 %v8069_v52  ;;  %v7028_v52 = vcombine.high %v3966_v43, %v3982_v50 }
 0x2d0   :  { %3862 = vmatprep.subr.bf16.mxu0 %v8074_v53  ;;  %v3998_v53 = vld [vmem:[%s10768_s4 + $0x308] sm:$0xff] }
 0x2d3   :  { %3863 = vmatpush1.bf16.msra.mxu0 %v8072_v55  ;;  %v4014_v55 = vld [vmem:[%s10768_s4 + $0x388] sm:$0xff] }
 0x2d4   :  { %3864 = vmatprep.subr.bf16.mxu0 %v8077_v41  ;;  %v7027_v41 = vcombine.low %v3966_v43, %v3982_v50  ;;  %v3936_v50 = vld [vmem:[%s10768_s4 + $0x118] sm:$0xff] }
 0x2d7   :  { %3865 = vmatpush1.bf16.msra.mxu0 %v8075_v56  ;;  %v7060_v56 = vcombine.high %v3998_v53, %v4014_v55 }
 0x2d8   :  { %3866 = vmatprep.subr.bf16.mxu0 %v8080_v57  ;;  %v4030_v57 = vld [vmem:[%s10768_s4 + $0x408] sm:$0xff] }
 0x2db   :  { %3867 = vmatpush1.bf16.msra.mxu0 %v8078_v58  ;;  %v4046_v58 = vld [vmem:[%s10768_s4 + $0x488] sm:$0xff] }
 0x2dc   :  { %3868 = vmatprep.subr.bf16.mxu0 %v8083_v59  ;;  %v7059_v59 = vcombine.low %v3998_v53, %v4014_v55  ;;  %v3968_v55 = vld [vmem:[%s10768_s4 + $0x218] sm:$0xff] }
 0x2df   :  { %3869 = vmatpush1.bf16.msra.mxu0 %v8081_v61  ;;  %v7092_v61 = vcombine.high %v4030_v57, %v4046_v58 }
 0x2e0   :  { %3870 = vmatprep.subr.bf16.mxu0 %v8086_v47  ;;  %v4062_v47 = vld [vmem:[%s10768_s4 + $0x508] sm:$0xff] }
 0x2e3   :  { %3871 = vmatpush1.bf16.msra.mxu0 %v8084_v62  ;;  %v4078_v62 = vld [vmem:[%s10768_s4 + $0x588] sm:$0xff] }
 0x2e4   :  { %3872 = vmatprep.subr.bf16.mxu0 %v8089_v63  ;;  %v7091_v63 = vcombine.low %v4030_v57, %v4046_v58  ;;  %v4000_v58 = vld [vmem:[%s10768_s4 + $0x318] sm:$0xff] }
 0x2e7   :  { %3873 = vmatpush1.bf16.msra.mxu0 %v8087_v0  ;;  %v7124_v0 = vcombine.high %v4062_v47, %v4078_v62 }
 0x2e8   :  { %3874 = vmatprep.subr.bf16.mxu0 %v8092_v1  ;;  %v4094_v1 = vld [vmem:[%s10768_s4 + $0x608] sm:$0xff] }
 0x2eb   :  { %3875 = vmatpush1.bf16.msra.mxu0 %v8090_v2  ;;  %v4110_v2 = vld [vmem:[%s10768_s4 + $0x688] sm:$0xff] }
 0x2ec   :  { %3876 = vmatprep.subr.bf16.mxu0 %v8095_v3  ;;  %v7123_v3 = vcombine.low %v4062_v47, %v4078_v62  ;;  %v4032_v62 = vld [vmem:[%s10768_s4 + $0x418] sm:$0xff] }
 0x2ef   :  { %3877 = vmatpush1.bf16.msra.mxu0 %v8093_v54  ;;  %v7156_v54 = vcombine.high %v4094_v1, %v4110_v2 }
 0x2f0   :  { %3878 = vmatprep.subr.bf16.mxu0 %v8098_v4  ;;  %v4126_v4 = vld [vmem:[%s10768_s4 + $0x708] sm:$0xff] }
 0x2f3   :  { %3879 = vmatpush1.bf16.msra.mxu0 %v8096_v5  ;;  %v4142_v5 = vld [vmem:[%s10768_s4 + $0x788] sm:$0xff] }
 0x2f4   :  { %3880 = vmatprep.subr.bf16.mxu0 %v8101_v6  ;;  %v7155_v6 = vcombine.low %v4094_v1, %v4110_v2  ;;  %v4064_v2 = vld [vmem:[%s10768_s4 + $0x518] sm:$0xff] }
 0x2f7   :  { %3881 = vmatpush1.bf16.msra.mxu0 %v8099_v60  ;;  %v7188_v60 = vcombine.high %v4126_v4, %v4142_v5 }
 0x2f8   :  { %3882 = vmatprep.subr.bf16.mxu0 %v8104_v7  ;;  %v3903_v7 = vld [vmem:[%s10768_s4 + $0x10] sm:$0xff] }
 0x2fb   :  { %3883 = vmatpush1.bf16.msra.mxu0 %v8102_v8  ;;  %v3919_v8 = vld [vmem:[%s10768_s4 + $0x90] sm:$0xff] }
 0x2fc   :  { %3884 = vmatprep.subr.bf16.mxu0 %v8107_v9  ;;  %v7187_v9 = vcombine.low %v4126_v4, %v4142_v5  ;;  %v6965_v15 = vcombine.low %v3903_v7, %v3919_v8  ;;  %v4096_v5 = vld [vmem:[%s10768_s4 + $0x618] sm:$0xff] }
 0x2ff   :  { %3885 = vmatpush1.bf16.msra.mxu0 %v8105_v10  ;;  %v6966_v10 = vcombine.high %v3903_v7, %v3919_v8  ;;  %v4128_v8 = vld [vmem:[%s10768_s4 + $0x718] sm:$0xff] }
 0x302   :  { %3887 = vmatmul.mubr.bf16.vlgmr.msra.gmra.mrb[0].mxu0 %v6447_v11  ;;  %v3935_v11 = vld [vmem:[%s10768_s4 + $0x110] sm:$0xff] }
 0x303   :  { %v6998_v16 = vcombine.high %v3935_v11, %v3951_v13  ;;  %v6997_v19 = vcombine.low %v3935_v11, %v3951_v13  ;;  %v3905_v13 = vld [vmem:[%s10768_s4 + $0x20] sm:$0xff] }
 0x3d5   :  { %v3888_v36 = vpop.f32.mrb[0].mxu0 }
 0x3d6   :  { %v7250_v37 = vadd.f32 %v7249_v34, %v3888_v36  ;;  %v3890_v38 = vpop.f32.mrb[1].mxu0  ;;  %v4079_v34 = vld [vmem:[%s10768_s4 + $0x590] sm:$0xff] }
 0x3d7   :  { %v7252_v40 = vadd.f32 %v7251_v35, %v3890_v38  ;;  %v3892_v42 = vpop.f32.mrb[2].mxu0  ;;  %v7126_v36 = vcombine.high %v4063_v33, %v4079_v34  ;;  %v4111_v38 = vld [vmem:[%s10768_s4 + $0x690] sm:$0xff] }
 0x3d8   :  { %3895 = vst [vmem:[%s10771_s7] sm:$0xff] %v7250_v37  ;;  %v3893_v44 = vpop.f32.mrb[3].mxu0  ;;  %v4127_v42 = vld [vmem:[%s10768_s4 + $0x710] sm:$0xff] }
 0x3d9   :  { %3896 = vst [vmem:[%s10772_s8] sm:$0xff] %v7252_v40  ;;  %v3898_v12 = vmul.f32 %v7252_v40, %v3897_v39  ;;  %v7125_v39 = vcombine.low %v4063_v33, %v4079_v34  ;;  %v4143_v44 = vld [vmem:[%s10768_s4 + $0x790] sm:$0xff]  ;;  %v4033_v34 = vld [vmem:[%s10768_s4 + $0x420] sm:$0xff] }
 0x3da   :  { %v7190_v14 = vcombine.high %v4127_v42, %v4143_v44 }
 0x3db   :  { %v3899_v46 = vadd.f32 %v7250_v37, %v3898_v12  ;;  %v4095_v37 = vld [vmem:[%s10768_s4 + $0x610] sm:$0xff] }
 0x3dc   :  { %v7158_v40 = vcombine.high %v4095_v37, %v4111_v38  ;;  %v7157_v12 = vcombine.low %v4095_v37, %v4111_v38  ;;  %v4065_v38 = vld [vmem:[%s10768_s4 + $0x520] sm:$0xff] }
 0x3dd   :  { %v9895_v48 = vpack.c.bf16 %v3899_v46, %v3899_v46  ;;  %v3920_v46 = vld [vmem:[%s10768_s4 + $0x98] sm:$0xff] }
 0x3de   :  { %v6968_v43 = vcombine.high %v3904_v45, %v3920_v46 }
 0x3df   :  { %5638 = vmatmul.mubr.bf16.vlgmr.msra.gmra.mrb[4].mxu1 %v9895_v48 }
 0x3e0   :  { %5647 = vmatpush1.bf16.msra.mxu1 %v6963_v25  ;;  %5678 = vmatprep.mubr.bf16.mxu1 %v8110_v26  ;;  %v4031_v25 = vld [vmem:[%s10768_s4 + $0x410] sm:$0xff] }
 0x3e1   :  { %5648 = vmatprep.subr.bf16.mxu1 %v6996_v49  ;;  %v7094_v32 = vcombine.high %v4031_v25, %v4047_v27  ;;  %v7093_v35 = vcombine.low %v4031_v25, %v4047_v27  ;;  %v7189_v49 = vcombine.low %v4127_v42, %v4143_v44  ;;  %v4001_v27 = vld [vmem:[%s10768_s4 + $0x320] sm:$0xff] }
 0x3e2   :  { %v4097_v44 = vld [vmem:[%s10768_s4 + $0x620] sm:$0xff] }
 0x3e4   :  { %5649 = vmatpush1.bf16.msra.mxu1 %v6995_v51  ;;  %v3952_v51 = vld [vmem:[%s10768_s4 + $0x198] sm:$0xff] }
 0x3e5   :  { %5650 = vmatprep.subr.bf16.mxu1 %v7028_v52  ;;  %v6967_v52 = vcombine.low %v3904_v45, %v3920_v46  ;;  %v7000_v53 = vcombine.high %v3936_v50, %v3952_v51  ;;  %v4129_v46 = vld [vmem:[%s10768_s4 + $0x720] sm:$0xff] }
 0x3e8   :  { %5651 = vmatpush1.bf16.msra.mxu1 %v7027_v41  ;;  %v3984_v41 = vld [vmem:[%s10768_s4 + $0x298] sm:$0xff] }
 0x3e9   :  { %5652 = vmatprep.subr.bf16.mxu1 %v7060_v56  ;;  %v6999_v56 = vcombine.low %v3936_v50, %v3952_v51  ;;  %v7032_v57 = vcombine.high %v3968_v55, %v3984_v41  ;;  %v3906_v51 = vld [vmem:[%s10768_s4 + $0x28] sm:$0xff] }
 0x3ec   :  { %5653 = vmatpush1.bf16.msra.mxu1 %v7059_v59  ;;  %v4016_v59 = vld [vmem:[%s10768_s4 + $0x398] sm:$0xff] }
 0x3ed   :  { %5654 = vmatprep.subr.bf16.mxu1 %v7092_v61  ;;  %v7031_v61 = vcombine.low %v3968_v55, %v3984_v41  ;;  %v7064_v47 = vcombine.high %v4000_v58, %v4016_v59  ;;  %v3938_v41 = vld [vmem:[%s10768_s4 + $0x128] sm:$0xff] }
 0x3f0   :  { %5655 = vmatpush1.bf16.msra.mxu1 %v7091_v63  ;;  %v4048_v63 = vld [vmem:[%s10768_s4 + $0x498] sm:$0xff] }
 0x3f1   :  { %5656 = vmatprep.subr.bf16.mxu1 %v7124_v0  ;;  %v7063_v0 = vcombine.low %v4000_v58, %v4016_v59  ;;  %v7096_v1 = vcombine.high %v4032_v62, %v4048_v63  ;;  %v3970_v59 = vld [vmem:[%s10768_s4 + $0x228] sm:$0xff] }
 0x3f4   :  { %5657 = vmatpush1.bf16.msra.mxu1 %v7123_v3  ;;  %v4080_v3 = vld [vmem:[%s10768_s4 + $0x598] sm:$0xff] }
 0x3f5   :  { %5658 = vmatprep.subr.bf16.mxu1 %v7156_v54  ;;  %v7095_v54 = vcombine.low %v4032_v62, %v4048_v63  ;;  %v7128_v4 = vcombine.high %v4064_v2, %v4080_v3  ;;  %v4002_v63 = vld [vmem:[%s10768_s4 + $0x328] sm:$0xff] }
 0x3f8   :  { %5659 = vmatpush1.bf16.msra.mxu1 %v7155_v6  ;;  %v4112_v6 = vld [vmem:[%s10768_s4 + $0x698] sm:$0xff] }
 0x3f9   :  { %5660 = vmatprep.subr.bf16.mxu1 %v7188_v60  ;;  %v7127_v60 = vcombine.low %v4064_v2, %v4080_v3  ;;  %v7160_v7 = vcombine.high %v4096_v5, %v4112_v6  ;;  %v4034_v3 = vld [vmem:[%s10768_s4 + $0x428] sm:$0xff] }
 0x3fc   :  { %5661 = vmatpush1.bf16.msra.mxu1 %v7187_v9  ;;  %v4144_v9 = vld [vmem:[%s10768_s4 + $0x798] sm:$0xff] }
 0x3fd   :  { %5687 = vmatprep.subr.bf16.mxu1 %v6966_v10  ;;  %v7159_v10 = vcombine.low %v4096_v5, %v4112_v6  ;;  %v7192_v11 = vcombine.high %v4128_v8, %v4144_v9  ;;  %v4066_v6 = vld [vmem:[%s10768_s4 + $0x528] sm:$0xff] }
 0x3ff   :  { %5679 = vmatmul.mubr.bf16.vlgmr.msra.gmra.mrb[8].mxu1 %v9895_v48 }
 0x400   :  { %5688 = vmatpush1.bf16.msra.mxu1 %v6965_v15  ;;  %5719 = vmatprep.mubr.bf16.mxu1 %v8110_v26  ;;  %v3921_v15 = vld [vmem:[%s10768_s4 + $0xa0] sm:$0xff] }
 0x401   :  { %5689 = vmatprep.subr.bf16.mxu1 %v6998_v16  ;;  %v7191_v16 = vcombine.low %v4128_v8, %v4144_v9  ;;  %v6970_v17 = vcombine.high %v3905_v13, %v3921_v15  ;;  %v4098_v9 = vld [vmem:[%s10768_s4 + $0x628] sm:$0xff] }
 0x404   :  { %5690 = vmatpush1.bf16.msra.mxu1 %v6997_v19  ;;  %v3953_v19 = vld [vmem:[%s10768_s4 + $0x1a0] sm:$0xff] }
 0x405   :  { %5691 = vmatprep.subr.bf16.mxu1 %v7030_v20  ;;  %v6969_v20 = vcombine.low %v3905_v13, %v3921_v15  ;;  %v7002_v21 = vcombine.high %v3937_v18, %v3953_v19  ;;  %v4130_v15 = vld [vmem:[%s10768_s4 + $0x728] sm:$0xff] }
 0x408   :  { %5692 = vmatpush1.bf16.msra.mxu1 %v7029_v23  ;;  %v3985_v23 = vld [vmem:[%s10768_s4 + $0x2a0] sm:$0xff] }
 0x409   :  { %5693 = vmatprep.subr.bf16.mxu1 %v7062_v24  ;;  %v7001_v24 = vcombine.low %v3937_v18, %v3953_v19  ;;  %v7034_v25 = vcombine.high %v3969_v22, %v3985_v23  ;;  %v3907_v19 = vld [vmem:[%s10768_s4 + $0x30] sm:$0xff] }
 0x40c   :  { %5694 = vmatpush1.bf16.msra.mxu1 %v7061_v30  ;;  %v4017_v30 = vld [vmem:[%s10768_s4 + $0x3a0] sm:$0xff] }
 0x40d   :  { %5695 = vmatprep.subr.bf16.mxu1 %v7094_v32  ;;  %v7033_v32 = vcombine.low %v3969_v22, %v3985_v23  ;;  %v7066_v33 = vcombine.high %v4001_v27, %v4017_v30  ;;  %v3939_v23 = vld [vmem:[%s10768_s4 + $0x130] sm:$0xff] }
 0x410   :  { %5696 = vmatpush1.bf16.msra.mxu1 %v7093_v35  ;;  %v4049_v35 = vld [vmem:[%s10768_s4 + $0x4a0] sm:$0xff] }
 0x411   :  { %5697 = vmatprep.subr.bf16.mxu1 %v7126_v36  ;;  %v7065_v36 = vcombine.low %v4001_v27, %v4017_v30  ;;  %v7098_v37 = vcombine.high %v4033_v34, %v4049_v35  ;;  %v3971_v30 = vld [vmem:[%s10768_s4 + $0x230] sm:$0xff] }
 0x414   :  { %5698 = vmatpush1.bf16.msra.mxu1 %v7125_v39  ;;  %v4081_v39 = vld [vmem:[%s10768_s4 + $0x5a0] sm:$0xff] }
 0x415   :  { %5699 = vmatprep.subr.bf16.mxu1 %v7158_v40  ;;  %v7097_v40 = vcombine.low %v4033_v34, %v4049_v35  ;;  %v7130_v42 = vcombine.high %v4065_v38, %v4081_v39  ;;  %v4003_v35 = vld [vmem:[%s10768_s4 + $0x330] sm:$0xff] }
 0x418   :  { %5700 = vmatpush1.bf16.msra.mxu1 %v7157_v12  ;;  %v4113_v12 = vld [vmem:[%s10768_s4 + $0x6a0] sm:$0xff] }
 0x419   :  { %5701 = vmatprep.subr.bf16.mxu1 %v7190_v14  ;;  %v7129_v14 = vcombine.low %v4065_v38, %v4081_v39  ;;  %v7162_v45 = vcombine.high %v4097_v44, %v4113_v12  ;;  %v4035_v39 = vld [vmem:[%s10768_s4 + $0x430] sm:$0xff] }
 0x41c   :  { %5702 = vmatpush1.bf16.msra.mxu1 %v7189_v49  ;;  %v4145_v49 = vld [vmem:[%s10768_s4 + $0x7a0] sm:$0xff] }
 0x41d   :  { %5728 = vmatprep.subr.bf16.mxu1 %v6968_v43  ;;  %v7161_v43 = vcombine.low %v4097_v44, %v4113_v12  ;;  %v7194_v50 = vcombine.high %v4129_v46, %v4145_v49  ;;  %v4067_v12 = vld [vmem:[%s10768_s4 + $0x530] sm:$0xff] }
 0x41f   :  { %5720 = vmatmul.mubr.bf16.vlgmr.msra.gmra.mrb[12].mxu1 %v9895_v48 }
 0x420   :  { %5729 = vmatpush1.bf16.msra.mxu1 %v6967_v52  ;;  %5760 = vmatprep.mubr.bf16.mxu1 %v8110_v26  ;;  %v3922_v52 = vld [vmem:[%s10768_s4 + $0xa8] sm:$0xff] }
 0x421   :  { %5730 = vmatprep.subr.bf16.mxu1 %v7000_v53  ;;  %v7193_v53 = vcombine.low %v4129_v46, %v4145_v49  ;;  %v6972_v55 = vcombine.high %v3906_v51, %v3922_v52  ;;  %v4099_v49 = vld [vmem:[%s10768_s4 + $0x630] sm:$0xff] }
 0x424   :  { %5731 = vmatpush1.bf16.msra.mxu1 %v6999_v56  ;;  %v3954_v56 = vld [vmem:[%s10768_s4 + $0x1a8] sm:$0xff] }
 0x425   :  { %5732 = vmatprep.subr.bf16.mxu1 %v7032_v57  ;;  %v6971_v57 = vcombine.low %v3906_v51, %v3922_v52  ;;  %v7004_v58 = vcombine.high %v3938_v41, %v3954_v56  ;;  %v4131_v52 = vld [vmem:[%s10768_s4 + $0x730] sm:$0xff] }
 0x428   :  { %5733 = vmatpush1.bf16.msra.mxu1 %v7031_v61  ;;  %v3986_v61 = vld [vmem:[%s10768_s4 + $0x2a8] sm:$0xff] }
 0x429   :  { %5734 = vmatprep.subr.bf16.mxu1 %v7064_v47  ;;  %v7003_v47 = vcombine.low %v3938_v41, %v3954_v56  ;;  %v7036_v62 = vcombine.high %v3970_v59, %v3986_v61  ;;  %v3908_v56 = vld [vmem:[%s10768_s4 + $0x38] sm:$0xff] }
 0x42c   :  { %5735 = vmatpush1.bf16.msra.mxu1 %v7063_v0  ;;  %v4018_v0 = vld [vmem:[%s10768_s4 + $0x3a8] sm:$0xff] }
 0x42d   :  { %5736 = vmatprep.subr.bf16.mxu1 %v7096_v1  ;;  %v7035_v1 = vcombine.low %v3970_v59, %v3986_v61  ;;  %v7068_v2 = vcombine.high %v4002_v63, %v4018_v0  ;;  %v3940_v61 = vld [vmem:[%s10768_s4 + $0x138] sm:$0xff] }
 0x430   :  { %5737 = vmatpush1.bf16.msra.mxu1 %v7095_v54  ;;  %v4050_v54 = vld [vmem:[%s10768_s4 + $0x4a8] sm:$0xff] }
 0x431   :  { %5738 = vmatprep.subr.bf16.mxu1 %v7128_v4  ;;  %v7067_v4 = vcombine.low %v4002_v63, %v4018_v0  ;;  %v7100_v5 = vcombine.high %v4034_v3, %v4050_v54  ;;  %v3972_v0 = vld [vmem:[%s10768_s4 + $0x238] sm:$0xff] }
 0x434   :  { %5739 = vmatpush1.bf16.msra.mxu1 %v7127_v60  ;;  %v4082_v60 = vld [vmem:[%s10768_s4 + $0x5a8] sm:$0xff] }
 0x435   :  { %5740 = vmatprep.subr.bf16.mxu1 %v7160_v7  ;;  %v7099_v7 = vcombine.low %v4034_v3, %v4050_v54  ;;  %v7132_v8 = vcombine.high %v4066_v6, %v4082_v60  ;;  %v4004_v54 = vld [vmem:[%s10768_s4 + $0x338] sm:$0xff] }
 0x438   :  { %5741 = vmatpush1.bf16.msra.mxu1 %v7159_v10  ;;  %v4114_v10 = vld [vmem:[%s10768_s4 + $0x6a8] sm:$0xff] }
 0x439   :  { %5742 = vmatprep.subr.bf16.mxu1 %v7192_v11  ;;  %v7131_v11 = vcombine.low %v4066_v6, %v4082_v60  ;;  %v7164_v13 = vcombine.high %v4098_v9, %v4114_v10  ;;  %v4036_v60 = vld [vmem:[%s10768_s4 + $0x438] sm:$0xff] }
 0x43c   :  { %5743 = vmatpush1.bf16.msra.mxu1 %v7191_v16  ;;  %v4146_v16 = vld [vmem:[%s10768_s4 + $0x7a8] sm:$0xff] }
 0x43d   :  { %5769 = vmatprep.subr.bf16.mxu1 %v6970_v17  ;;  %v7163_v17 = vcombine.low %v4098_v9, %v4114_v10  ;;  %v7196_v18 = vcombine.high %v4130_v15, %v4146_v16  ;;  %v4068_v10 = vld [vmem:[%s10768_s4 + $0x538] sm:$0xff] }
 0x43f   :  { %5761 = vmatmul.mubr.bf16.vlgmr.msra.gmra.mrb[16].mxu1 %v9895_v48 }
 0x440   :  { %5770 = vmatpush1.bf16.msra.mxu1 %v6969_v20  ;;  %5801 = vmatprep.mubr.bf16.mxu1 %v8110_v26  ;;  %v3923_v20 = vld [vmem:[%s10768_s4 + $0xb0] sm:$0xff] }
 0x441   :  { %5771 = vmatprep.subr.bf16.mxu1 %v7002_v21  ;;  %v7195_v21 = vcombine.low %v4130_v15, %v4146_v16  ;;  %v6974_v22 = vcombine.high %v3907_v19, %v3923_v20  ;;  %v10226_v15 = vld [vmem:[%s10773_s5] sm:$0xff] }
 0x444   :  { %5772 = vmatpush1.bf16.msra.mxu1 %v7001_v24  ;;  %v3955_v24 = vld [vmem:[%s10768_s4 + $0x1b0] sm:$0xff] }
 0x445   :  { %5773 = vmatprep.subr.bf16.mxu1 %v7034_v25  ;;  %v6973_v25 = vcombine.low %v3907_v19, %v3923_v20  ;;  %v7006_v27 = vcombine.high %v3939_v23, %v3955_v24  ;;  %v4168_v19 = vrot.slane %v10226_v15, %v9868_v29 }
 0x448   :  { %5774 = vmatpush1.bf16.msra.mxu1 %v7033_v32  ;;  %v3987_v32 = vld [vmem:[%s10768_s4 + $0x2b0] sm:$0xff] }
 0x449   :  { %5775 = vmatprep.subr.bf16.mxu1 %v7066_v33  ;;  %v7005_v33 = vcombine.low %v3939_v23, %v3955_v24  ;;  %v7038_v34 = vcombine.high %v3971_v30, %v3987_v32  ;;  %v4132_v24 = vld [vmem:[%s10768_s4 + $0x738] sm:$0xff] }
 0x44c   :  { %5776 = vmatpush1.bf16.msra.mxu1 %v7065_v36  ;;  %v4019_v36 = vld [vmem:[%s10768_s4 + $0x3b0] sm:$0xff] }
 0x44d   :  { %5777 = vmatprep.subr.bf16.mxu1 %v7098_v37  ;;  %v7037_v37 = vcombine.low %v3971_v30, %v3987_v32  ;;  %v7070_v38 = vcombine.high %v4003_v35, %v4019_v36 }
 0x450   :  { %5778 = vmatpush1.bf16.msra.mxu1 %v7097_v40  ;;  %v4051_v40 = vld [vmem:[%s10768_s4 + $0x4b0] sm:$0xff] }
 0x451   :  { %5779 = vmatprep.subr.bf16.mxu1 %v7130_v42  ;;  %v7069_v42 = vcombine.low %v4003_v35, %v4019_v36  ;;  %v7102_v44 = vcombine.high %v4035_v39, %v4051_v40 }
 0x454   :  { %5780 = vmatpush1.bf16.msra.mxu1 %v7129_v14  ;;  %v4083_v14 = vld [vmem:[%s10768_s4 + $0x5b0] sm:$0xff] }
 0x455   :  { %5781 = vmatprep.subr.bf16.mxu1 %v7162_v45  ;;  %v7101_v45 = vcombine.low %v4035_v39, %v4051_v40  ;;  %v7134_v46 = vcombine.high %v4067_v12, %v4083_v14  ;;  %v3925_v39 = vld [vmem:[%s10768_s4 + $0xc0] sm:$0xff] }
 0x458   :  { %5782 = vmatpush1.bf16.msra.mxu1 %v7161_v43  ;;  %v4115_v43 = vld [vmem:[%s10768_s4 + $0x6b0] sm:$0xff] }
 0x459   :  { %5783 = vmatprep.subr.bf16.mxu1 %v7194_v50  ;;  %v7133_v50 = vcombine.low %v4067_v12, %v4083_v14  ;;  %v7166_v51 = vcombine.high %v4099_v49, %v4115_v43  ;;  %v3957_v12 = vld [vmem:[%s10768_s4 + $0x1c0] sm:$0xff] }
 0x45c   :  { %5784 = vmatpush1.bf16.msra.mxu1 %v7193_v53  ;;  %v4147_v53 = vld [vmem:[%s10768_s4 + $0x7b0] sm:$0xff] }
 0x45d   :  { %5810 = vmatprep.subr.bf16.mxu1 %v6972_v55  ;;  %v7165_v55 = vcombine.low %v4099_v49, %v4115_v43  ;;  %v7198_v41 = vcombine.high %v4131_v52, %v4147_v53  ;;  %v3989_v49 = vld [vmem:[%s10768_s4 + $0x2c0] sm:$0xff] }
 0x45f   :  { %5802 = vmatmul.mubr.bf16.vlgmr.msra.gmra.mrb[20].mxu1 %v9895_v48 }
 0x460   :  { %5811 = vmatpush1.bf16.msra.mxu1 %v6971_v57  ;;  %5842 = vmatprep.mubr.bf16.mxu1 %v8110_v26  ;;  %v3924_v57 = vld [vmem:[%s10768_s4 + $0xb8] sm:$0xff] }
 0x461   :  { %5812 = vmatprep.subr.bf16.mxu1 %v7004_v58  ;;  %v7197_v58 = vcombine.low %v4131_v52, %v4147_v53  ;;  %v6976_v59 = vcombine.high %v3908_v56, %v3924_v57  ;;  %v4021_v52 = vld [vmem:[%s10768_s4 + $0x3c0] sm:$0xff] }
 0x464   :  { %5813 = vmatpush1.bf16.msra.mxu1 %v7003_v47  ;;  %v3956_v47 = vld [vmem:[%s10768_s4 + $0x1b8] sm:$0xff] }
 0x465   :  { %5814 = vmatprep.subr.bf16.mxu1 %v7036_v62  ;;  %v6975_v62 = vcombine.low %v3908_v56, %v3924_v57  ;;  %v7008_v63 = vcombine.high %v3940_v61, %v3956_v47  ;;  %v4053_v56 = vld [vmem:[%s10768_s4 + $0x4c0] sm:$0xff] }
 0x468   :  { %5815 = vmatpush1.bf16.msra.mxu1 %v7035_v1  ;;  %v3988_v1 = vld [vmem:[%s10768_s4 + $0x2b8] sm:$0xff] }
 0x469   :  { %5816 = vmatprep.subr.bf16.mxu1 %v7068_v2  ;;  %v7007_v2 = vcombine.low %v3940_v61, %v3956_v47  ;;  %v7040_v3 = vcombine.high %v3972_v0, %v3988_v1  ;;  %v4085_v61 = vld [vmem:[%s10768_s4 + $0x5c0] sm:$0xff]  ;;  %v10286_v47 = vsub.s32 2, %v9865_v28 }
 0x46c   :  { %5817 = vmatpush1.bf16.msra.mxu1 %v7067_v4  ;;  %v4020_v4 = vld [vmem:[%s10768_s4 + $0x3b8] sm:$0xff] }
 0x46d   :  { %5818 = vmatprep.subr.bf16.mxu1 %v7100_v5  ;;  %v7039_v5 = vcombine.low %v3972_v0, %v3988_v1  ;;  %v7072_v6 = vcombine.high %v4004_v54, %v4020_v4  ;;  %v4101_v1 = vld [vmem:[%s10768_s4 + $0x640] sm:$0xff] }
 0x470   :  { %5819 = vmatpush1.bf16.msra.mxu1 %v7099_v7  ;;  %v4052_v7 = vld [vmem:[%s10768_s4 + $0x4b8] sm:$0xff] }
 0x471   :  { %5820 = vmatprep.subr.bf16.mxu1 %v7132_v8  ;;  %v7071_v8 = vcombine.low %v4004_v54, %v4020_v4  ;;  %v7104_v9 = vcombine.high %v4036_v60, %v4052_v7 }
 0x474   :  { %5821 = vmatpush1.bf16.msra.mxu1 %v7131_v11  ;;  %v4084_v11 = vld [vmem:[%s10768_s4 + $0x5b8] sm:$0xff] }
 0x475   :  { %5822 = vmatprep.subr.bf16.mxu1 %v7164_v13  ;;  %v7103_v13 = vcombine.low %v4036_v60, %v4052_v7  ;;  %v7136_v16 = vcombine.high %v4068_v10, %v4084_v11  ;;  %v7135_v20 = vcombine.low %v4068_v10, %v4084_v11  ;;  %v4133_v60 = vld [vmem:[%s10768_s4 + $0x740] sm:$0xff] }
 0x476   :  { %v4149_v7 = vld [vmem:[%s10768_s4 + $0x7c0] sm:$0xff] }
 0x478   :  { %5823 = vmatpush1.bf16.msra.mxu1 %v7163_v17  ;;  %v4100_v17 = vld [vmem:[%s10768_s4 + $0x638] sm:$0xff] }
 0x479   :  { %5824 = vmatprep.subr.bf16.mxu1 %v7196_v18  ;;  %v4116_v18 = vld [vmem:[%s10768_s4 + $0x6b8] sm:$0xff] }
 0x47c   :  { %5825 = vmatpush1.bf16.msra.mxu1 %v7195_v21  ;;  %v4172_v21 = vrot.slane %v10226_v15, %v9874_v31 }
 0x47d   :  { %5851 = vmatprep.subr.bf16.mxu1 %v6974_v22  ;;  %v7168_v22 = vcombine.high %v4100_v17, %v4116_v18 }
 0x47f   :  { %5843 = vmatmul.mubr.bf16.vlgmr.msra.gmra.mrb[24].mxu1 %v9895_v48 }
 0x480   :  { %5852 = vmatpush1.bf16.msra.mxu1 %v6973_v25  ;;  %5883 = vmatprep.mubr.bf16.mxu1 %v8110_v26  ;;  %v4148_v25 = vld [vmem:[%s10768_s4 + $0x7b8] sm:$0xff] }
 0x481   :  { %5853 = vmatprep.subr.bf16.mxu1 %v7006_v27  ;;  %v7200_v36 = vcombine.high %v4132_v24, %v4148_v25  ;;  %v7199_v40 = vcombine.low %v4132_v24, %v4148_v25  ;;  %v3958_v24 = vld [vmem:[%s10768_s4 + $0x1c8] sm:$0xff] }
 0x484   :  { %5854 = vmatpush1.bf16.msra.mxu1 %v7005_v33 }
 0x485   :  { %5855 = vmatprep.subr.bf16.mxu1 %v7038_v34  ;;  %v7167_v34 = vcombine.low %v4100_v17, %v4116_v18  ;;  %v7202_v17 = vcombine.high %v4133_v60, %v4149_v7 }
 0x488   :  { %5856 = vmatpush1.bf16.msra.mxu1 %v7037_v37 }
 0x489   :  { %5857 = vmatprep.subr.bf16.mxu1 %v7070_v38  ;;  %v3909_v38 = vld [vmem:[%s10768_s4 + $0x40] sm:$0xff] }
 0x48a   :  { %v6977_v14 = vcombine.low %v3909_v38, %v3925_v39 }
 0x48c   :  { %5858 = vmatpush1.bf16.msra.mxu1 %v7069_v42  ;;  %v6978_v42 = vcombine.high %v3909_v38, %v3925_v39  ;;  %v4038_v39 = vld [vmem:[%s10768_s4 + $0x448] sm:$0xff] }
 0x48d   :  { %5859 = vmatprep.subr.bf16.mxu1 %v7102_v44  ;;  %v3941_v44 = vld [vmem:[%s10768_s4 + $0x140] sm:$0xff] }
 0x48e   :  { %v7009_v43 = vcombine.low %v3941_v44, %v3957_v12 }
 0x490   :  { %5860 = vmatpush1.bf16.msra.mxu1 %v7101_v45  ;;  %v7010_v45 = vcombine.high %v3941_v44, %v3957_v12  ;;  %v4070_v12 = vld [vmem:[%s10768_s4 + $0x548] sm:$0xff] }
 0x491   :  { %5861 = vmatprep.subr.bf16.mxu1 %v7134_v46  ;;  %v3973_v46 = vld [vmem:[%s10768_s4 + $0x240] sm:$0xff] }
 0x492   :  { %v7041_v53 = vcombine.low %v3973_v46, %v3989_v49 }
 0x494   :  { %5862 = vmatpush1.bf16.msra.mxu1 %v7133_v50  ;;  %v7042_v50 = vcombine.high %v3973_v46, %v3989_v49  ;;  %v10352_v49 = vsub.s32 5, %v9865_v28 }
 0x495   :  { %5863 = vmatprep.subr.bf16.mxu1 %v7166_v51  ;;  %v4005_v51 = vld [vmem:[%s10768_s4 + $0x340] sm:$0xff] }
 0x496   :  { %v7073_v57 = vcombine.low %v4005_v51, %v4021_v52 }
 0x498   :  { %5864 = vmatpush1.bf16.msra.mxu1 %v7165_v55  ;;  %v7074_v55 = vcombine.high %v4005_v51, %v4021_v52  ;;  %v4118_v51 = vld [vmem:[%s10768_s4 + $0x6c8] sm:$0xff] }
 0x499   :  { %5865 = vmatprep.subr.bf16.mxu1 %v7198_v41  ;;  %v4037_v41 = vld [vmem:[%s10768_s4 + $0x440] sm:$0xff] }
 0x49c   :  { %5866 = vmatpush1.bf16.msra.mxu1 %v7197_v58  ;;  %v7106_v58 = vcombine.high %v4037_v41, %v4053_v56 }
 0x49d   :  { %5892 = vmatprep.subr.bf16.mxu1 %v6976_v59  ;;  %v4069_v59 = vld [vmem:[%s10768_s4 + $0x540] sm:$0xff] }
 0x49e   :  { %v7138_v0 = vcombine.high %v4069_v59, %v4085_v61  ;;  %v7137_v4 = vcombine.low %v4069_v59, %v4085_v61 }
 0x49f   :  { %5884 = vmatmul.mubr.bf16.vlgmr.msra.gmra.mrb[28].mxu1 %v9895_v48 }
 0x4a0   :  { %5893 = vmatpush1.bf16.msra.mxu1 %v6975_v62  ;;  %5924 = vmatprep.mubr.bf16.mxu1 %v8110_v26  ;;  %v7105_v62 = vcombine.low %v4037_v41, %v4053_v56 }
 0x4a1   :  { %5894 = vmatprep.subr.bf16.mxu1 %v7008_v63  ;;  %v10289_v63 = vsub.s32 3, %v9865_v28 }
 0x4a3   :  { %v4180_v54 = vrot.slane %v10226_v15, %v10289_v63 }
 0x4a4   :  { %5895 = vmatpush1.bf16.msra.mxu1 %v7007_v2  ;;  %v4117_v2 = vld [vmem:[%s10768_s4 + $0x6c0] sm:$0xff] }
 0x4a5   :  { %5896 = vmatprep.subr.bf16.mxu1 %v7040_v3  ;;  %v4176_v3 = vrot.slane %v10226_v15, %v10286_v47 }
 0x4a8   :  { %5897 = vmatpush1.bf16.msra.mxu1 %v7039_v5  ;;  %v7170_v5 = vcombine.high %v4101_v1, %v4117_v2 }
 0x4a9   :  { %5898 = vmatprep.subr.bf16.mxu1 %v7072_v6 }
 0x4ac   :  { %5899 = vmatpush1.bf16.msra.mxu1 %v7071_v8 }
 0x4ad   :  { %5900 = vmatprep.subr.bf16.mxu1 %v7104_v9 }
 0x4b0   :  { %5901 = vmatpush1.bf16.msra.mxu1 %v7103_v13  ;;  %v7169_v13 = vcombine.low %v4101_v1, %v4117_v2 }
 0x4b1   :  { %5902 = vmatprep.subr.bf16.mxu1 %v7136_v16 }
 0x4b2   :  { %v5639_v23 = vpop.f32.mrb[4].mxu1 }
 0x4b3   :  { %v5640_v27 = vadd.f32 %v5639_v23, %v4168_v19  ;;  %v5641_v30 = vpop.f32.mrb[5].mxu1  ;;  %v3910_v19 = vld [vmem:[%s10768_s4 + $0x48] sm:$0xff] }
 0x4b4   :  { %v5642_v32 = vadd.f32 %v5641_v30, %v4172_v21  ;;  %5903 = vmatpush1.bf16.msra.mxu1 %v7135_v20  ;;  %v5643_v33 = vpop.f32.mrb[6].mxu1  ;;  %v3926_v20 = vld [vmem:[%s10768_s4 + $0xc8] sm:$0xff]  ;;  %v7201_v21 = vcombine.low %v4133_v60, %v4149_v7  ;;  %v3943_v7 = vld [vmem:[%s10768_s4 + $0x150] sm:$0xff] }
 0x4b5   :  { %v5644_v35 = vpop.f32.mrb[7].mxu1  ;;  %5904 = vmatprep.subr.bf16.mxu1 %v7168_v22  ;;  %v6980_v22 = vcombine.high %v3910_v19, %v3926_v20  ;;  %v3942_v23 = vld [vmem:[%s10768_s4 + $0x148] sm:$0xff]  ;;  %v6979_v25 = vcombine.low %v3910_v19, %v3926_v20  ;;  %v4023_v19 = vld [vmem:[%s10768_s4 + $0x3d0] sm:$0xff] }
 0x4b6   :  { %v7233_v37 = vpack.c.bf16 %v5642_v32, %v5640_v27  ;;  %v7012_v27 = vcombine.high %v3942_v23, %v3958_v24  ;;  %v3974_v30 = vld [vmem:[%s10768_s4 + $0x248] sm:$0xff]  ;;  %v7011_v33 = vcombine.low %v3942_v23, %v3958_v24  ;;  %v4055_v23 = vld [vmem:[%s10768_s4 + $0x4d0] sm:$0xff] }
 0x4b7   :  { %v3990_v32 = vld [vmem:[%s10768_s4 + $0x2c8] sm:$0xff] }
 0x4b8   :  { %6389 = vst [vmem:[%s10774_s6] sm:$0xff] %v7233_v37  ;;  %5905 = vmatpush1.bf16.msra.mxu1 %v7167_v34  ;;  %v7044_v34 = vcombine.high %v3974_v30, %v3990_v32  ;;  %v4006_v35 = vld [vmem:[%s10768_s4 + $0x348] sm:$0xff]  ;;  %v7043_v37 = vcombine.low %v3974_v30, %v3990_v32  ;;  %v4087_v30 = vld [vmem:[%s10768_s4 + $0x5d0] sm:$0xff]  ;;  %v10412_v32 = vsub.s32 6, %v9865_v28 }
 0x4b9   :  { %5906 = vmatprep.subr.bf16.mxu1 %v7200_v36  ;;  %v4022_v36 = vld [vmem:[%s10768_s4 + $0x3c8] sm:$0xff] }
 0x4ba   :  { %v7076_v38 = vcombine.high %v4006_v35, %v4022_v36 }
 0x4bc   :  { %5907 = vmatpush1.bf16.msra.mxu1 %v7199_v40  ;;  %v4054_v40 = vld [vmem:[%s10768_s4 + $0x4c8] sm:$0xff] }
 0x4bd   :  { %5933 = vmatprep.subr.bf16.mxu1 %v6978_v42  ;;  %v7075_v42 = vcombine.low %v4006_v35, %v4022_v36  ;;  %v7108_v44 = vcombine.high %v4038_v39, %v4054_v40  ;;  %v7107_v46 = vcombine.low %v4038_v39, %v4054_v40  ;;  %v4103_v36 = vld [vmem:[%s10768_s4 + $0x650] sm:$0xff] }
 0x4bf   :  { %5925 = vmatmul.mubr.bf16.vlgmr.msra.gmra.mrb[32].mxu1 %v9895_v48 }
 0x4c0   :  { %5934 = vmatpush1.bf16.msra.mxu1 %v6977_v14  ;;  %5965 = vmatprep.mubr.bf16.mxu1 %v8110_v26  ;;  %v4086_v14 = vld [vmem:[%s10768_s4 + $0x5c8] sm:$0xff] }
 0x4c1   :  { %5935 = vmatprep.subr.bf16.mxu1 %v7010_v45  ;;  %v10349_v45 = vsub.s32 4, %v9865_v28 }
 0x4c3   :  { %v4184_v52 = vrot.slane %v10226_v15, %v10349_v45 }
 0x4c4   :  { %5936 = vmatpush1.bf16.msra.mxu1 %v7009_v43  ;;  %v7140_v43 = vcombine.high %v4070_v12, %v4086_v14 }
 0x4c5   :  { %5937 = vmatprep.subr.bf16.mxu1 %v7042_v50  ;;  %v4102_v50 = vld [vmem:[%s10768_s4 + $0x648] sm:$0xff] }
 0x4c6   :  { %v7172_v41 = vcombine.high %v4102_v50, %v4118_v51  ;;  %v7171_v1 = vcombine.low %v4102_v50, %v4118_v51 }
 0x4c8   :  { %5938 = vmatpush1.bf16.msra.mxu1 %v7041_v53  ;;  %v4188_v53 = vrot.slane %v10226_v15, %v10352_v49 }
 0x4c9   :  { %5939 = vmatprep.subr.bf16.mxu1 %v7074_v55  ;;  %v7139_v55 = vcombine.low %v4070_v12, %v4086_v14  ;;  %v4151_v12 = vld [vmem:[%s10768_s4 + $0x7d0] sm:$0xff] }
 0x4cc   :  { %5940 = vmatpush1.bf16.msra.mxu1 %v7073_v57  ;;  %v4134_v57 = vld [vmem:[%s10768_s4 + $0x748] sm:$0xff] }
 0x4cd   :  { %5941 = vmatprep.subr.bf16.mxu1 %v7106_v58  ;;  %v4150_v58 = vld [vmem:[%s10768_s4 + $0x7c8] sm:$0xff] }
 0x4d0   :  { %5942 = vmatpush1.bf16.msra.mxu1 %v7105_v62 }
 0x4d1   :  { %5943 = vmatprep.subr.bf16.mxu1 %v7138_v0 }
 0x4d2   :  { %v5680_v6 = vpop.f32.mrb[8].mxu1 }
 0x4d3   :  { %v5681_v8 = vadd.f32 %v5680_v6, %v4176_v3  ;;  %v5682_v9 = vpop.f32.mrb[9].mxu1  ;;  %v7204_v3 = vcombine.high %v4134_v57, %v4150_v58  ;;  %v7203_v6 = vcombine.low %v4134_v57, %v4150_v58  ;;  %v3944_v58 = vld [vmem:[%s10768_s4 + $0x158] sm:$0xff] }
 0x4d4   :  { %v5683_v10 = vadd.f32 %v5682_v9, %v4180_v54  ;;  %v5684_v11 = vpop.f32.mrb[10].mxu1  ;;  %5944 = vmatpush1.bf16.msra.mxu1 %v7137_v4  ;;  %v3911_v4 = vld [vmem:[%s10768_s4 + $0x50] sm:$0xff] }
 0x4d5   :  { %v5685_v16 = vpop.f32.mrb[11].mxu1  ;;  %5945 = vmatprep.subr.bf16.mxu1 %v7170_v5  ;;  %v3927_v5 = vld [vmem:[%s10768_s4 + $0xd0] sm:$0xff] }
 0x4d6   :  { %v7234_v18 = vpack.c.bf16 %v5683_v10, %v5681_v8  ;;  %v6982_v60 = vcombine.high %v3911_v4, %v3927_v5  ;;  %v3959_v8 = vld [vmem:[%s10768_s4 + $0x1d0] sm:$0xff]  ;;  %v6981_v9 = vcombine.low %v3911_v4, %v3927_v5  ;;  %v4024_v4 = vld [vmem:[%s10768_s4 + $0x3d8] sm:$0xff] }
 0x4d7   :  { %v7014_v10 = vcombine.high %v3943_v7, %v3959_v8  ;;  %v3975_v11 = vld [vmem:[%s10768_s4 + $0x250] sm:$0xff]  ;;  %v7013_v16 = vcombine.low %v3943_v7, %v3959_v8  ;;  %v4056_v7 = vld [vmem:[%s10768_s4 + $0x4d8] sm:$0xff] }
 0x4d8   :  { %6390 = vst [vmem:[%s10774_s6 + $0x8] sm:$0xff] %v7234_v18  ;;  %5946 = vmatpush1.bf16.msra.mxu1 %v7169_v13  ;;  %v3991_v13 = vld [vmem:[%s10768_s4 + $0x2d0] sm:$0xff] }
 0x4d9   :  { %5947 = vmatprep.subr.bf16.mxu1 %v7202_v17  ;;  %v7046_v17 = vcombine.high %v3975_v11, %v3991_v13  ;;  %v4007_v18 = vld [vmem:[%s10768_s4 + $0x350] sm:$0xff]  ;;  %v7045_v20 = vcombine.low %v3975_v11, %v3991_v13  ;;  %v4088_v11 = vld [vmem:[%s10768_s4 + $0x5d8] sm:$0xff] }
 0x4da   :  { %v7077_v24 = vcombine.low %v4007_v18, %v4023_v19 }
 0x4dc   :  { %5948 = vmatpush1.bf16.msra.mxu1 %v7201_v21  ;;  %v7078_v21 = vcombine.high %v4007_v18, %v4023_v19  ;;  %v4104_v18 = vld [vmem:[%s10768_s4 + $0x658] sm:$0xff] }
 0x4dd   :  { %5974 = vmatprep.subr.bf16.mxu1 %v6980_v22  ;;  %v4039_v22 = vld [vmem:[%s10768_s4 + $0x450] sm:$0xff]  ;;  %v4120_v19 = vld [vmem:[%s10768_s4 + $0x6d8] sm:$0xff] }
 0x4df   :  { %5966 = vmatmul.mubr.bf16.vlgmr.msra.gmra.mrb[36].mxu1 %v9895_v48 }
 0x4e0   :  { %5975 = vmatpush1.bf16.msra.mxu1 %v6979_v25  ;;  %6006 = vmatprep.mubr.bf16.mxu1 %v8110_v26  ;;  %v7110_v25 = vcombine.high %v4039_v22, %v4055_v23 }
 0x4e1   :  { %5976 = vmatprep.subr.bf16.mxu1 %v7012_v27  ;;  %v4071_v27 = vld [vmem:[%s10768_s4 + $0x550] sm:$0xff] }
 0x4e2   :  { %v7142_v35 = vcombine.high %v4071_v27, %v4087_v30  ;;  %v7141_v40 = vcombine.low %v4071_v27, %v4087_v30  ;;  %v4152_v27 = vld [vmem:[%s10768_s4 + $0x7d8] sm:$0xff] }
 0x4e4   :  { %5977 = vmatpush1.bf16.msra.mxu1 %v7011_v33  ;;  %v7109_v33 = vcombine.low %v4039_v22, %v4055_v23  ;;  %v7176_v23 = vcombine.high %v4104_v18, %v4120_v19 }
 0x4e5   :  { %5978 = vmatprep.subr.bf16.mxu1 %v7044_v34  ;;  %v10415_v34 = vsub.s32 7, %v9865_v28 }
 0x4e7   :  { %v4196_v39 = vrot.slane %v10226_v15, %v10415_v34 }
 0x4e8   :  { %5979 = vmatpush1.bf16.msra.mxu1 %v7043_v37  ;;  %v4119_v37 = vld [vmem:[%s10768_s4 + $0x6d0] sm:$0xff] }
 0x4e9   :  { %5980 = vmatprep.subr.bf16.mxu1 %v7076_v38  ;;  %v4192_v38 = vrot.slane %v10226_v15, %v10412_v32  ;;  %v7174_v28 = vcombine.high %v4103_v36, %v4119_v37  ;;  %v7173_v51 = vcombine.low %v4103_v36, %v4119_v37  ;;  %v7175_v37 = vcombine.low %v4104_v18, %v4120_v19 }
 0x4ec   :  { %5981 = vmatpush1.bf16.msra.mxu1 %v7075_v42 }
 0x4ed   :  { %5982 = vmatprep.subr.bf16.mxu1 %v7108_v44  ;;  %v4135_v44 = vld [vmem:[%s10768_s4 + $0x750] sm:$0xff] }
 0x4ee   :  { %v7206_v15 = vcombine.high %v4135_v44, %v4151_v12 }
 0x4f0   :  { %5983 = vmatpush1.bf16.msra.mxu1 %v7107_v46 }
 0x4f1   :  { %5984 = vmatprep.subr.bf16.mxu1 %v7140_v43 }
 0x4f2   :  { %v5721_v56 = vpop.f32.mrb[12].mxu1 }
 0x4f3   :  { %v5722_v59 = vadd.f32 %v5721_v56, %v4184_v52  ;;  %v5723_v61 = vpop.f32.mrb[13].mxu1  ;;  %v7205_v56 = vcombine.low %v4135_v44, %v4151_v12 }
 0x4f4   :  { %v5724_v62 = vadd.f32 %v5723_v61, %v4188_v53  ;;  %v5725_v0 = vpop.f32.mrb[14].mxu1  ;;  %5985 = vmatpush1.bf16.msra.mxu1 %v7139_v55  ;;  %v3912_v55 = vld [vmem:[%s10768_s4 + $0x58] sm:$0xff] }
 0x4f5   :  { %v5726_v2 = vpop.f32.mrb[15].mxu1  ;;  %5986 = vmatprep.subr.bf16.mxu1 %v7172_v41  ;;  %v3928_v41 = vld [vmem:[%s10768_s4 + $0xd8] sm:$0xff] }
 0x4f6   :  { %v7235_v54 = vpack.c.bf16 %v5724_v62, %v5722_v59  ;;  %v6984_v57 = vcombine.high %v3912_v55, %v3928_v41  ;;  %v3960_v59 = vld [vmem:[%s10768_s4 + $0x1d8] sm:$0xff]  ;;  %v6983_v61 = vcombine.low %v3912_v55, %v3928_v41  ;;  %v4009_v55 = vld [vmem:[%s10768_s4 + $0x360] sm:$0xff] }
 0x4f7   :  { %v7016_v62 = vcombine.high %v3944_v58, %v3960_v59  ;;  %v3976_v0 = vld [vmem:[%s10768_s4 + $0x258] sm:$0xff]  ;;  %v7015_v2 = vcombine.low %v3944_v58, %v3960_v59  ;;  %v4025_v41 = vld [vmem:[%s10768_s4 + $0x3e0] sm:$0xff] }
 0x4f8   :  { %6391 = vst [vmem:[%s10774_s6 + $0x10] sm:$0xff] %v7235_v54  ;;  %5987 = vmatpush1.bf16.msra.mxu1 %v7171_v1  ;;  %v3992_v1 = vld [vmem:[%s10768_s4 + $0x2d8] sm:$0xff]  ;;  %v4041_v58 = vld [vmem:[%s10768_s4 + $0x460] sm:$0xff] }
 0x4f9   :  { %5988 = vmatprep.subr.bf16.mxu1 %v7204_v3  ;;  %v7048_v3 = vcombine.high %v3976_v0, %v3992_v1  ;;  %v4008_v54 = vld [vmem:[%s10768_s4 + $0x358] sm:$0xff]  ;;  %v7047_v5 = vcombine.low %v3976_v0, %v3992_v1  ;;  %v4057_v59 = vld [vmem:[%s10768_s4 + $0x4e0] sm:$0xff] }
 0x4fa   :  { %v7079_v8 = vcombine.low %v4008_v54, %v4024_v4  ;;  %v4073_v0 = vld [vmem:[%s10768_s4 + $0x560] sm:$0xff] }
 0x4fb   :  { %v4089_v1 = vld [vmem:[%s10768_s4 + $0x5e0] sm:$0xff] }
 0x4fc   :  { %5989 = vmatpush1.bf16.msra.mxu1 %v7203_v6  ;;  %v7080_v6 = vcombine.high %v4008_v54, %v4024_v4  ;;  %v4105_v54 = vld [vmem:[%s10768_s4 + $0x660] sm:$0xff] }
 0x4fd   :  { %6015 = vmatprep.subr.bf16.mxu1 %v6982_v60  ;;  %v4040_v60 = vld [vmem:[%s10768_s4 + $0x458] sm:$0xff]  ;;  %v4121_v4 = vld [vmem:[%s10768_s4 + $0x6e0] sm:$0xff] }
 0x4fe   :  { %v7111_v13 = vcombine.low %v4040_v60, %v4056_v7  ;;  %v7177_v19 = vcombine.low %v4105_v54, %v4121_v4 }
 0x4ff   :  { %6007 = vmatmul.mubr.bf16.vlgmr.msra.gmra.mrb[40].mxu1 %v9895_v48 }
 0x500   :  { %6016 = vmatpush1.bf16.msra.mxu1 %v6981_v9  ;;  %6047 = vmatprep.mubr.bf16.mxu1 %v8110_v26  ;;  %v7112_v9 = vcombine.high %v4040_v60, %v4056_v7  ;;  %v7145_v60 = vcombine.low %v4073_v0, %v4089_v1  ;;  %v7178_v7 = vcombine.high %v4105_v54, %v4121_v4 }
 0x501   :  { %6017 = vmatprep.subr.bf16.mxu1 %v7014_v10  ;;  %v4072_v10 = vld [vmem:[%s10768_s4 + $0x558] sm:$0xff] }
 0x502   :  { %v7143_v22 = vcombine.low %v4072_v10, %v4088_v11 }
 0x504   :  { %6018 = vmatpush1.bf16.msra.mxu1 %v7013_v16  ;;  %v10477_v16 = vld [vmem:[%s10773_s5 + $0x8] sm:$0xff] }
 0x505   :  { %6019 = vmatprep.subr.bf16.mxu1 %v7046_v17  ;;  %v7144_v17 = vcombine.high %v4072_v10, %v4088_v11  ;;  %v4153_v10 = vld [vmem:[%s10768_s4 + $0x7e0] sm:$0xff] }
 0x508   :  { %6020 = vmatpush1.bf16.msra.mxu1 %v7045_v20  ;;  %v4200_v20 = vrot.slane %v10477_v16, %v9868_v29 }
 0x509   :  { %6021 = vmatprep.subr.bf16.mxu1 %v7078_v21  ;;  %v4204_v21 = vrot.slane %v10477_v16, %v9874_v31 }
 0x50c   :  { %6022 = vmatpush1.bf16.msra.mxu1 %v7077_v24 }
 0x50d   :  { %6023 = vmatprep.subr.bf16.mxu1 %v7110_v25  ;;  %v4136_v25 = vld [vmem:[%s10768_s4 + $0x758] sm:$0xff] }
 0x50e   :  { %v7207_v44 = vcombine.low %v4136_v25, %v4152_v27 }
 0x510   :  { %6024 = vmatpush1.bf16.msra.mxu1 %v7109_v33 }
 0x511   :  { %6025 = vmatprep.subr.bf16.mxu1 %v7142_v35 }
 0x512   :  { %v5762_v42 = vpop.f32.mrb[16].mxu1 }
 0x513   :  { %v5763_v14 = vadd.f32 %v5762_v42, %v4192_v38  ;;  %v5764_v46 = vpop.f32.mrb[17].mxu1  ;;  %v3929_v42 = vld [vmem:[%s10768_s4 + $0xe0] sm:$0xff] }
 0x514   :  { %v5765_v43 = vadd.f32 %v5764_v46, %v4196_v39  ;;  %v5766_v50 = vpop.f32.mrb[18].mxu1  ;;  %6026 = vmatpush1.bf16.msra.mxu1 %v7141_v40  ;;  %v7208_v39 = vcombine.high %v4136_v25, %v4152_v27  ;;  %v3961_v46 = vld [vmem:[%s10768_s4 + $0x1e0] sm:$0xff] }
 0x515   :  { %v5767_v52 = vpop.f32.mrb[19].mxu1  ;;  %6027 = vmatprep.subr.bf16.mxu1 %v7174_v28  ;;  %v3913_v28 = vld [vmem:[%s10768_s4 + $0x60] sm:$0xff] }
 0x516   :  { %v7236_v53 = vpack.c.bf16 %v5765_v43, %v5763_v14  ;;  %v6986_v12 = vcombine.high %v3913_v28, %v3929_v42  ;;  %v3945_v14 = vld [vmem:[%s10768_s4 + $0x160] sm:$0xff]  ;;  %v6985_v43 = vcombine.low %v3913_v28, %v3929_v42  ;;  %v4010_v28 = vld [vmem:[%s10768_s4 + $0x368] sm:$0xff] }
 0x517   :  { %v7018_v50 = vcombine.high %v3945_v14, %v3961_v46  ;;  %v3993_v52 = vld [vmem:[%s10768_s4 + $0x2e0] sm:$0xff]  ;;  %v4026_v42 = vld [vmem:[%s10768_s4 + $0x3e8] sm:$0xff] }
 0x518   :  { %6392 = vst [vmem:[%s10774_s6 + $0x18] sm:$0xff] %v7236_v53  ;;  %6028 = vmatpush1.bf16.msra.mxu1 %v7173_v51  ;;  %v3977_v51 = vld [vmem:[%s10768_s4 + $0x260] sm:$0xff] }
 0x519   :  { %6029 = vmatprep.subr.bf16.mxu1 %v7206_v15  ;;  %v7017_v15 = vcombine.low %v3945_v14, %v3961_v46  ;;  %v7050_v53 = vcombine.high %v3977_v51, %v3993_v52  ;;  %v4042_v14 = vld [vmem:[%s10768_s4 + $0x468] sm:$0xff] }
 0x51a   :  { %v4058_v46 = vld [vmem:[%s10768_s4 + $0x4e8] sm:$0xff] }
 0x51c   :  { %6030 = vmatpush1.bf16.msra.mxu1 %v7205_v56  ;;  %v7049_v56 = vcombine.low %v3977_v51, %v3993_v52  ;;  %v4074_v51 = vld [vmem:[%s10768_s4 + $0x568] sm:$0xff] }
 0x51d   :  { %6056 = vmatprep.subr.bf16.mxu1 %v6984_v57  ;;  %v7082_v57 = vcombine.high %v4009_v55, %v4025_v41  ;;  %v4090_v52 = vld [vmem:[%s10768_s4 + $0x5e8] sm:$0xff] }
 0x51f   :  { %6048 = vmatmul.mubr.bf16.vlgmr.msra.gmra.mrb[44].mxu1 %v9895_v48 }
 0x520   :  { %6057 = vmatpush1.bf16.msra.mxu1 %v6983_v61  ;;  %6088 = vmatprep.mubr.bf16.mxu1 %v8110_v26  ;;  %v7081_v61 = vcombine.low %v4009_v55, %v4025_v41  ;;  %v4106_v55 = vld [vmem:[%s10768_s4 + $0x668] sm:$0xff] }
 0x521   :  { %6058 = vmatprep.subr.bf16.mxu1 %v7016_v62  ;;  %v7114_v62 = vcombine.high %v4041_v58, %v4057_v59  ;;  %v4122_v41 = vld [vmem:[%s10768_s4 + $0x6e8] sm:$0xff] }
 0x522   :  { %v7179_v4 = vcombine.low %v4106_v55, %v4122_v41 }
 0x524   :  { %6059 = vmatpush1.bf16.msra.mxu1 %v7015_v2  ;;  %v7113_v2 = vcombine.low %v4041_v58, %v4057_v59  ;;  %v7147_v58 = vcombine.low %v4074_v51, %v4090_v52  ;;  %v7180_v59 = vcombine.high %v4106_v55, %v4122_v41 }
 0x525   :  { %6060 = vmatprep.subr.bf16.mxu1 %v7048_v3  ;;  %v7146_v3 = vcombine.high %v4073_v0, %v4089_v1  ;;  %v4154_v0 = vld [vmem:[%s10768_s4 + $0x7e8] sm:$0xff] }
 0x528   :  { %6061 = vmatpush1.bf16.msra.mxu1 %v7047_v5  ;;  %v4208_v5 = vrot.slane %v10477_v16, %v10286_v47 }
 0x529   :  { %6062 = vmatprep.subr.bf16.mxu1 %v7080_v6  ;;  %v4212_v6 = vrot.slane %v10477_v16, %v10289_v63 }
 0x52c   :  { %6063 = vmatpush1.bf16.msra.mxu1 %v7079_v8 }
 0x52d   :  { %6064 = vmatprep.subr.bf16.mxu1 %v7112_v9  ;;  %v4137_v9 = vld [vmem:[%s10768_s4 + $0x760] sm:$0xff] }
 0x52e   :  { %v7209_v25 = vcombine.low %v4137_v9, %v4153_v10 }
 0x530   :  { %6065 = vmatpush1.bf16.msra.mxu1 %v7111_v13 }
 0x531   :  { %6066 = vmatprep.subr.bf16.mxu1 %v7144_v17 }
 0x532   :  { %v5803_v24 = vpop.f32.mrb[20].mxu1 }
 0x533   :  { %v5804_v30 = vadd.f32 %v5803_v24, %v4200_v20  ;;  %v5805_v33 = vpop.f32.mrb[21].mxu1  ;;  %v3930_v24 = vld [vmem:[%s10768_s4 + $0xe8] sm:$0xff] }
 0x534   :  { %v5806_v35 = vadd.f32 %v5805_v33, %v4204_v21  ;;  %v5807_v36 = vpop.f32.mrb[22].mxu1  ;;  %6067 = vmatpush1.bf16.msra.mxu1 %v7143_v22  ;;  %v7210_v21 = vcombine.high %v4137_v9, %v4153_v10  ;;  %v3962_v33 = vld [vmem:[%s10768_s4 + $0x1e8] sm:$0xff] }
 0x535   :  { %v5808_v38 = vpop.f32.mrb[23].mxu1  ;;  %6068 = vmatprep.subr.bf16.mxu1 %v7176_v23  ;;  %v3914_v23 = vld [vmem:[%s10768_s4 + $0x68] sm:$0xff] }
 0x536   :  { %v7237_v40 = vpack.c.bf16 %v5806_v35, %v5804_v30  ;;  %v6988_v27 = vcombine.high %v3914_v23, %v3930_v24  ;;  %v3946_v30 = vld [vmem:[%s10768_s4 + $0x168] sm:$0xff]  ;;  %v6987_v35 = vcombine.low %v3914_v23, %v3930_v24  ;;  %v4011_v23 = vld [vmem:[%s10768_s4 + $0x370] sm:$0xff] }
 0x537   :  { %v7020_v36 = vcombine.high %v3946_v30, %v3962_v33  ;;  %v3994_v38 = vld [vmem:[%s10768_s4 + $0x2e8] sm:$0xff]  ;;  %v4027_v24 = vld [vmem:[%s10768_s4 + $0x3f0] sm:$0xff] }
 0x538   :  { %6393 = vst [vmem:[%s10774_s6 + $0x20] sm:$0xff] %v7237_v40  ;;  %6069 = vmatpush1.bf16.msra.mxu1 %v7175_v37  ;;  %v3978_v37 = vld [vmem:[%s10768_s4 + $0x268] sm:$0xff] }
 0x539   :  { %6070 = vmatprep.subr.bf16.mxu1 %v7208_v39  ;;  %v7019_v39 = vcombine.low %v3946_v30, %v3962_v33  ;;  %v7052_v40 = vcombine.high %v3978_v37, %v3994_v38  ;;  %v4043_v30 = vld [vmem:[%s10768_s4 + $0x470] sm:$0xff] }
 0x53a   :  { %v4059_v33 = vld [vmem:[%s10768_s4 + $0x4f0] sm:$0xff] }
 0x53c   :  { %6071 = vmatpush1.bf16.msra.mxu1 %v7207_v44  ;;  %v7051_v44 = vcombine.low %v3978_v37, %v3994_v38  ;;  %v4075_v37 = vld [vmem:[%s10768_s4 + $0x570] sm:$0xff] }
 0x53d   :  { %6097 = vmatprep.subr.bf16.mxu1 %v6986_v12  ;;  %v7084_v12 = vcombine.high %v4010_v28, %v4026_v42  ;;  %v4091_v38 = vld [vmem:[%s10768_s4 + $0x5f0] sm:$0xff] }
 0x53f   :  { %6089 = vmatmul.mubr.bf16.vlgmr.msra.gmra.mrb[48].mxu1 %v9895_v48 }
 0x540   :  { %6098 = vmatpush1.bf16.msra.mxu1 %v6985_v43  ;;  %6129 = vmatprep.mubr.bf16.mxu1 %v8110_v26  ;;  %v7083_v43 = vcombine.low %v4010_v28, %v4026_v42  ;;  %v4107_v28 = vld [vmem:[%s10768_s4 + $0x670] sm:$0xff] }
 0x541   :  { %6099 = vmatprep.subr.bf16.mxu1 %v7018_v50  ;;  %v7116_v50 = vcombine.high %v4042_v14, %v4058_v46  ;;  %v4123_v42 = vld [vmem:[%s10768_s4 + $0x6f0] sm:$0xff] }
 0x542   :  { %v7181_v41 = vcombine.low %v4107_v28, %v4123_v42 }
 0x544   :  { %6100 = vmatpush1.bf16.msra.mxu1 %v7017_v15  ;;  %v7115_v15 = vcombine.low %v4042_v14, %v4058_v46  ;;  %v7149_v14 = vcombine.low %v4075_v37, %v4091_v38  ;;  %v7182_v46 = vcombine.high %v4107_v28, %v4123_v42 }
 0x545   :  { %6101 = vmatprep.subr.bf16.mxu1 %v7050_v53  ;;  %v7148_v53 = vcombine.high %v4074_v51, %v4090_v52  ;;  %v4155_v51 = vld [vmem:[%s10768_s4 + $0x7f0] sm:$0xff] }
 0x548   :  { %6102 = vmatpush1.bf16.msra.mxu1 %v7049_v56  ;;  %v4216_v56 = vrot.slane %v10477_v16, %v10349_v45 }
 0x549   :  { %6103 = vmatprep.subr.bf16.mxu1 %v7082_v57  ;;  %v4220_v57 = vrot.slane %v10477_v16, %v10352_v49 }
 0x54c   :  { %6104 = vmatpush1.bf16.msra.mxu1 %v7081_v61 }
 0x54d   :  { %6105 = vmatprep.subr.bf16.mxu1 %v7114_v62  ;;  %v4138_v62 = vld [vmem:[%s10768_s4 + $0x768] sm:$0xff] }
 0x54e   :  { %v7211_v9 = vcombine.low %v4138_v62, %v4154_v0 }
 0x550   :  { %6106 = vmatpush1.bf16.msra.mxu1 %v7113_v2 }
 0x551   :  { %6107 = vmatprep.subr.bf16.mxu1 %v7146_v3 }
 0x552   :  { %v5844_v8 = vpop.f32.mrb[24].mxu1 }
 0x553   :  { %v5845_v11 = vadd.f32 %v5844_v8, %v4208_v5  ;;  %v5846_v13 = vpop.f32.mrb[25].mxu1  ;;  %v3931_v8 = vld [vmem:[%s10768_s4 + $0xf0] sm:$0xff] }
 0x554   :  { %v5847_v17 = vadd.f32 %v5846_v13, %v4212_v6  ;;  %v5848_v18 = vpop.f32.mrb[26].mxu1  ;;  %6108 = vmatpush1.bf16.msra.mxu1 %v7145_v60  ;;  %v7212_v6 = vcombine.high %v4138_v62, %v4154_v0  ;;  %v3963_v13 = vld [vmem:[%s10768_s4 + $0x1f0] sm:$0xff]  ;;  %v3948_v0 = vld [vmem:[%s10768_s4 + $0x178] sm:$0xff] }
 0x555   :  { %v5849_v20 = vpop.f32.mrb[27].mxu1  ;;  %6109 = vmatprep.subr.bf16.mxu1 %v7178_v7  ;;  %v3915_v7 = vld [vmem:[%s10768_s4 + $0x70] sm:$0xff] }
 0x556   :  { %v7238_v22 = vpack.c.bf16 %v5847_v17, %v5845_v11  ;;  %v6990_v10 = vcombine.high %v3915_v7, %v3931_v8  ;;  %v3947_v11 = vld [vmem:[%s10768_s4 + $0x170] sm:$0xff]  ;;  %v6989_v17 = vcombine.low %v3915_v7, %v3931_v8  ;;  %v4028_v7 = vld [vmem:[%s10768_s4 + $0x3f8] sm:$0xff] }
 0x557   :  { %v7022_v18 = vcombine.high %v3947_v11, %v3963_v13  ;;  %v3995_v20 = vld [vmem:[%s10768_s4 + $0x2f0] sm:$0xff] }
 0x558   :  { %6394 = vst [vmem:[%s10774_s6 + $0x28] sm:$0xff] %v7238_v22  ;;  %6110 = vmatpush1.bf16.msra.mxu1 %v7177_v19  ;;  %v3979_v19 = vld [vmem:[%s10768_s4 + $0x270] sm:$0xff] }
 0x559   :  { %6111 = vmatprep.subr.bf16.mxu1 %v7210_v21  ;;  %v7021_v21 = vcombine.low %v3947_v11, %v3963_v13  ;;  %v7054_v22 = vcombine.high %v3979_v19, %v3995_v20 }
 0x55c   :  { %6112 = vmatpush1.bf16.msra.mxu1 %v7209_v25  ;;  %v7053_v25 = vcombine.low %v3979_v19, %v3995_v20  ;;  %v4159_v20 = vld [vmem:[%s10773_s5 + $0x10] sm:$0xff] }
 0x55d   :  { %6138 = vmatprep.subr.bf16.mxu1 %v6988_v27  ;;  %v7086_v27 = vcombine.high %v4011_v23, %v4027_v24 }
 0x55f   :  { %6130 = vmatmul.mubr.bf16.vlgmr.msra.gmra.mrb[52].mxu1 %v9895_v48 }
 0x560   :  { %6139 = vmatpush1.bf16.msra.mxu1 %v6987_v35  ;;  %6170 = vmatprep.mubr.bf16.mxu1 %v8110_v26  ;;  %v7085_v35 = vcombine.low %v4011_v23, %v4027_v24  ;;  %v4124_v23 = vld [vmem:[%s10768_s4 + $0x6f8] sm:$0xff]  ;;  %v4232_v24 = vrot.slane %v4159_v20, %v9868_v29 }
 0x561   :  { %6140 = vmatprep.subr.bf16.mxu1 %v7020_v36  ;;  %v7118_v36 = vcombine.high %v4043_v30, %v4059_v33 }
 0x564   :  { %6141 = vmatpush1.bf16.msra.mxu1 %v7019_v39  ;;  %v7117_v39 = vcombine.low %v4043_v30, %v4059_v33 }
 0x565   :  { %6142 = vmatprep.subr.bf16.mxu1 %v7052_v40  ;;  %v7150_v40 = vcombine.high %v4075_v37, %v4091_v38 }
 0x568   :  { %6143 = vmatpush1.bf16.msra.mxu1 %v7051_v44  ;;  %v4224_v44 = vrot.slane %v10477_v16, %v10412_v32 }
 0x569   :  { %6144 = vmatprep.subr.bf16.mxu1 %v7084_v12  ;;  %v4228_v12 = vrot.slane %v10477_v16, %v10415_v34 }
 0x56c   :  { %6145 = vmatpush1.bf16.msra.mxu1 %v7083_v43 }
 0x56d   :  { %6146 = vmatprep.subr.bf16.mxu1 %v7116_v50  ;;  %v4139_v50 = vld [vmem:[%s10768_s4 + $0x770] sm:$0xff] }
 0x56e   :  { %v7214_v16 = vcombine.high %v4139_v50, %v4155_v51 }
 0x570   :  { %6147 = vmatpush1.bf16.msra.mxu1 %v7115_v15 }
 0x571   :  { %6148 = vmatprep.subr.bf16.mxu1 %v7148_v53 }
 0x572   :  { %v5885_v61 = vpop.f32.mrb[28].mxu1 }
 0x573   :  { %v5886_v1 = vadd.f32 %v5885_v61, %v4216_v56  ;;  %v5887_v2 = vpop.f32.mrb[29].mxu1  ;;  %v7213_v61 = vcombine.low %v4139_v50, %v4155_v51 }
 0x574   :  { %v5888_v3 = vadd.f32 %v5887_v2, %v4220_v57  ;;  %v5889_v54 = vpop.f32.mrb[30].mxu1  ;;  %6149 = vmatpush1.bf16.msra.mxu1 %v7147_v58  ;;  %v3916_v58 = vld [vmem:[%s10768_s4 + $0x78] sm:$0xff] }
 0x575   :  { %v5890_v5 = vpop.f32.mrb[31].mxu1  ;;  %6150 = vmatprep.subr.bf16.mxu1 %v7180_v59  ;;  %v3932_v59 = vld [vmem:[%s10768_s4 + $0xf8] sm:$0xff] }
 0x576   :  { %v7239_v60 = vpack.c.bf16 %v5888_v3, %v5886_v1  ;;  %v6992_v62 = vcombine.high %v3916_v58, %v3932_v59  ;;  %v3964_v1 = vld [vmem:[%s10768_s4 + $0x1f8] sm:$0xff]  ;;  %v6991_v2 = vcombine.low %v3916_v58, %v3932_v59 }
 0x577   :  { %v7024_v3 = vcombine.high %v3948_v0, %v3964_v1  ;;  %v3980_v54 = vld [vmem:[%s10768_s4 + $0x278] sm:$0xff]  ;;  %v7023_v5 = vcombine.low %v3948_v0, %v3964_v1  ;;  %v4256_v1 = vrot.slane %v4159_v20, %v10412_v32 }
 0x578   :  { %6395 = vst [vmem:[%s10774_s6 + $0x30] sm:$0xff] %v7239_v60  ;;  %6151 = vmatpush1.bf16.msra.mxu1 %v7179_v4  ;;  %v3996_v4 = vld [vmem:[%s10768_s4 + $0x2f8] sm:$0xff] }
 0x579   :  { %6152 = vmatprep.subr.bf16.mxu1 %v7212_v6  ;;  %v7056_v6 = vcombine.high %v3980_v54, %v3996_v4  ;;  %v4012_v60 = vld [vmem:[%s10768_s4 + $0x378] sm:$0xff]  ;;  %v7055_v8 = vcombine.low %v3980_v54, %v3996_v4 }
 0x57a   :  { %v7087_v11 = vcombine.low %v4012_v60, %v4028_v7 }
 0x57c   :  { %6153 = vmatpush1.bf16.msra.mxu1 %v7211_v9  ;;  %v7088_v9 = vcombine.high %v4012_v60, %v4028_v7 }
 0x57d   :  { %6179 = vmatprep.subr.bf16.mxu1 %v6990_v10  ;;  %v4044_v10 = vld [vmem:[%s10768_s4 + $0x478] sm:$0xff] }
 0x57f   :  { %6171 = vmatmul.mubr.bf16.vlgmr.msra.gmra.mrb[56].mxu1 %v9895_v48 }
 0x580   :  { %6180 = vmatpush1.bf16.msra.mxu1 %v6989_v17  ;;  %6211 = vmatprep.mubr.bf16.mxu1 %v8110_v26  ;;  %v4076_v17 = vld [vmem:[%s10768_s4 + $0x578] sm:$0xff] }
 0x581   :  { %6181 = vmatprep.subr.bf16.mxu1 %v7022_v18  ;;  %v4092_v18 = vld [vmem:[%s10768_s4 + $0x5f8] sm:$0xff] }
 0x584   :  { %6182 = vmatpush1.bf16.msra.mxu1 %v7021_v21  ;;  %v7152_v21 = vcombine.high %v4076_v17, %v4092_v18 }
 0x585   :  { %6183 = vmatprep.subr.bf16.mxu1 %v7054_v22  ;;  %v4108_v22 = vld [vmem:[%s10768_s4 + $0x678] sm:$0xff] }
 0x586   :  { %v7184_v30 = vcombine.high %v4108_v22, %v4124_v23  ;;  %v7183_v28 = vcombine.low %v4108_v22, %v4124_v23 }
 0x588   :  { %6184 = vmatpush1.bf16.msra.mxu1 %v7053_v25  ;;  %v4236_v25 = vrot.slane %v4159_v20, %v9874_v31 }
 0x589   :  { %6185 = vmatprep.subr.bf16.mxu1 %v7086_v27  ;;  %v7151_v27 = vcombine.low %v4076_v17, %v4092_v18 }
 0x58c   :  { %6186 = vmatpush1.bf16.msra.mxu1 %v7085_v35  ;;  %v4140_v35 = vld [vmem:[%s10768_s4 + $0x778] sm:$0xff] }
 0x58d   :  { %6187 = vmatprep.subr.bf16.mxu1 %v7118_v36  ;;  %v4156_v36 = vld [vmem:[%s10768_s4 + $0x7f8] sm:$0xff] }
 0x590   :  { %6188 = vmatpush1.bf16.msra.mxu1 %v7117_v39 }
 0x591   :  { %6189 = vmatprep.subr.bf16.mxu1 %v7150_v40 }
 0x592   :  { %v5926_v43 = vpop.f32.mrb[32].mxu1 }
 0x593   :  { %v5927_v52 = vadd.f32 %v5926_v43, %v4224_v44  ;;  %v5928_v15 = vpop.f32.mrb[33].mxu1  ;;  %v7216_v44 = vcombine.high %v4140_v35, %v4156_v36  ;;  %v4244_v43 = vrot.slane %v4159_v20, %v10289_v63 }
 0x594   :  { %v5929_v53 = vadd.f32 %v5928_v15, %v4228_v12  ;;  %v5930_v55 = vpop.f32.mrb[34].mxu1  ;;  %6190 = vmatpush1.bf16.msra.mxu1 %v7149_v14  ;;  %v7215_v14 = vcombine.low %v4140_v35, %v4156_v36 }
 0x595   :  { %v5931_v56 = vpop.f32.mrb[35].mxu1  ;;  %6191 = vmatprep.subr.bf16.mxu1 %v7182_v46  ;;  %v4240_v46 = vrot.slane %v4159_v20, %v10286_v47 }
 0x596   :  { %v7240_v57 = vpack.c.bf16 %v5929_v53, %v5927_v52  ;;  %v4248_v56 = vrot.slane %v4159_v20, %v10349_v45 }
 0x598   :  { %6396 = vst [vmem:[%s10774_s6 + $0x38] sm:$0xff] %v7240_v57  ;;  %6192 = vmatpush1.bf16.msra.mxu1 %v7181_v41 }
 0x599   :  { %6193 = vmatprep.subr.bf16.mxu1 %v7214_v16  ;;  %v4252_v16 = vrot.slane %v4159_v20, %v10352_v49 }
 0x59c   :  { %6194 = vmatpush1.bf16.msra.mxu1 %v7213_v61 }
 0x59d   :  { %6220 = vmatprep.subr.bf16.mxu1 %v6992_v62 }
 0x59f   :  { %6212 = vmatmul.mubr.bf16.vlgmr.msra.gmra.mrb[60].mxu1 %v9895_v48 }
 0x5a0   :  { %6221 = vmatpush1.bf16.msra.mxu1 %v6991_v2  ;;  %6252 = vmatprep.mubr.bf16.mxu1 %v8110_v26  ;;  %v4060_v26 = vld [vmem:[%s10768_s4 + $0x4f8] sm:$0xff]  ;;  %v4260_v2 = vrot.slane %v4159_v20, %v10415_v34 }
 0x5a1   :  { %6222 = vmatprep.subr.bf16.mxu1 %v7024_v3  ;;  %v7120_v13 = vcombine.high %v4044_v10, %v4060_v26  ;;  %v7119_v19 = vcombine.low %v4044_v10, %v4060_v26 }
 0x5a4   :  { %6223 = vmatpush1.bf16.msra.mxu1 %v7023_v5 }
 0x5a5   :  { %6224 = vmatprep.subr.bf16.mxu1 %v7056_v6 }
 0x5a8   :  { %6225 = vmatpush1.bf16.msra.mxu1 %v7055_v8  ;;  %v4160_v8 = vld [vmem:[%s10773_s5 + $0x18] sm:$0xff] }
 0x5a9   :  { %6226 = vmatprep.subr.bf16.mxu1 %v7088_v9  ;;  %v4264_v9 = vrot.slane %v4160_v8, %v9868_v29  ;;  %v4268_v10 = vrot.slane %v4160_v8, %v9874_v31  ;;  %v4276_v22 = vrot.slane %v4160_v8, %v10289_v63  ;;  %v4284_v35 = vrot.slane %v4160_v8, %v10352_v49 }
 0x5ac   :  { %6227 = vmatpush1.bf16.msra.mxu1 %v7087_v11 }
 0x5ad   :  { %6228 = vmatprep.subr.bf16.mxu1 %v7120_v13 }
 0x5b0   :  { %6229 = vmatpush1.bf16.msra.mxu1 %v7119_v19 }
 0x5b1   :  { %6230 = vmatprep.subr.bf16.mxu1 %v7152_v21  ;;  %v4272_v21 = vrot.slane %v4160_v8, %v10286_v47 }
 0x5b2   :  { %v5967_v33 = vpop.f32.mrb[36].mxu1 }
 0x5b3   :  { %v5968_v37 = vadd.f32 %v5967_v33, %v4232_v24  ;;  %v5969_v38 = vpop.f32.mrb[37].mxu1  ;;  %v4280_v33 = vrot.slane %v4160_v8, %v10349_v45 }
 0x5b4   :  { %v5970_v39 = vadd.f32 %v5969_v38, %v4236_v25  ;;  %v5971_v40 = vpop.f32.mrb[38].mxu1  ;;  %6231 = vmatpush1.bf16.msra.mxu1 %v7151_v27 }
 0x5b5   :  { %v5972_v42 = vpop.f32.mrb[39].mxu1  ;;  %6232 = vmatprep.subr.bf16.mxu1 %v7184_v30 }
 0x5b6   :  { %v7241_v12 = vpack.c.bf16 %v5970_v39, %v5968_v37  ;;  %v4292_v42 = vrot.slane %v4160_v8, %v10415_v34 }
 0x5b8   :  { %6397 = vst [vmem:[%s10774_s6 + $0x40] sm:$0xff] %v7241_v12  ;;  %6233 = vmatpush1.bf16.msra.mxu1 %v7183_v28  ;;  %v4288_v28 = vrot.slane %v4160_v8, %v10412_v32 }
 0x5b9   :  { %6234 = vmatprep.subr.bf16.mxu1 %v7216_v44 }
 0x5bc   :  { %6235 = vmatpush1.bf16.msra.mxu1 %v7215_v14 }
 0x5bf   :  { %6253 = vmatmul.mubr.bf16.vlgmr.msra.gmra.mrb[64].mxu1 %v9895_v48 }
 0x5d2   :  { %v6008_v50 = vpop.f32.mrb[40].mxu1 }
 0x5d3   :  { %v6009_v51 = vadd.f32 %v6008_v50, %v4240_v46  ;;  %v6010_v52 = vpop.f32.mrb[41].mxu1 }
 0x5d4   :  { %v6011_v15 = vadd.f32 %v6010_v52, %v4244_v43  ;;  %v6012_v53 = vpop.f32.mrb[42].mxu1 }
 0x5d5   :  { %v6013_v55 = vpop.f32.mrb[43].mxu1 }
 0x5d6   :  { %v7242_v41 = vpack.c.bf16 %v6011_v15, %v6009_v51 }
 0x5d8   :  { %6398 = vst [vmem:[%s10774_s6 + $0x48] sm:$0xff] %v7242_v41 }
 0x5f2   :  { %v6049_v48 = vpop.f32.mrb[44].mxu1 }
 0x5f3   :  { %v6050_v57 = vadd.f32 %v6049_v48, %v4248_v56  ;;  %v6051_v58 = vpop.f32.mrb[45].mxu1 }
 0x5f4   :  { %v6052_v59 = vadd.f32 %v6051_v58, %v4252_v16  ;;  %v6053_v61 = vpop.f32.mrb[46].mxu1 }
 0x5f5   :  { %v6054_v62 = vpop.f32.mrb[47].mxu1 }
 0x5f6   :  { %v7243_v0 = vpack.c.bf16 %v6052_v59, %v6050_v57 }
 0x5f8   :  { %6399 = vst [vmem:[%s10774_s6 + $0x50] sm:$0xff] %v7243_v0 }
 0x612   :  { %v6090_v3 = vpop.f32.mrb[48].mxu1 }
 0x613   :  { %v6091_v54 = vadd.f32 %v6090_v3, %v4256_v1  ;;  %v6092_v4 = vpop.f32.mrb[49].mxu1 }
 0x614   :  { %v6093_v5 = vadd.f32 %v6092_v4, %v4260_v2  ;;  %v6094_v6 = vpop.f32.mrb[50].mxu1 }
 0x615   :  { %v6095_v60 = vpop.f32.mrb[51].mxu1 }
 0x616   :  { %v7244_v7 = vpack.c.bf16 %v6093_v5, %v6091_v54 }
 0x618   :  { %6400 = vst [vmem:[%s10774_s6 + $0x58] sm:$0xff] %v7244_v7 }
 0x632   :  { %v6131_v26 = vpop.f32.mrb[52].mxu1 }
 0x633   :  { %v6132_v11 = vadd.f32 %v6131_v26, %v4264_v9  ;;  %v6133_v13 = vpop.f32.mrb[53].mxu1 }
 0x634   :  { %v6134_v17 = vadd.f32 %v6133_v13, %v4268_v10  ;;  %v6135_v18 = vpop.f32.mrb[54].mxu1 }
 0x635   :  { %v6136_v19 = vpop.f32.mrb[55].mxu1 }
 0x636   :  { %v7245_v20 = vpack.c.bf16 %v6134_v17, %v6132_v11 }
 0x638   :  { %6401 = vst [vmem:[%s10774_s6 + $0x60] sm:$0xff] %v7245_v20 }
 0x652   :  { %v6172_v23 = vpop.f32.mrb[56].mxu1 }
 0x653   :  { %v6173_v24 = vadd.f32 %v6172_v23, %v4272_v21  ;;  %v6174_v29 = vpop.f32.mrb[57].mxu1 }
 0x654   :  { %v6175_v25 = vadd.f32 %v6174_v29, %v4276_v22  ;;  %v6176_v31 = vpop.f32.mrb[58].mxu1 }
 0x655   :  { %v6177_v27 = vpop.f32.mrb[59].mxu1 }
 0x656   :  { %v7246_v30 = vpack.c.bf16 %v6175_v25, %v6173_v24 }
 0x658   :  { %6402 = vst [vmem:[%s10774_s6 + $0x68] sm:$0xff] %v7246_v30 }
 0x672   :  { %v6213_v36 = vpop.f32.mrb[60].mxu1 }
 0x673   :  { %v6214_v37 = vadd.f32 %v6213_v36, %v4280_v33  ;;  %v6215_v47 = vpop.f32.mrb[61].mxu1 }
 0x674   :  { %v6216_v38 = vadd.f32 %v6215_v47, %v4284_v35  ;;  %v6217_v63 = vpop.f32.mrb[62].mxu1 }
 0x675   :  { %v6218_v39 = vpop.f32.mrb[63].mxu1 }
 0x676   :  { %v7247_v40 = vpack.c.bf16 %v6216_v38, %v6214_v37 }
 0x678   :  { %6403 = vst [vmem:[%s10774_s6 + $0x70] sm:$0xff] %v7247_v40 }
 0x692   :  { %v6254_v44 = vpop.f32.mrb[64].mxu1 }
 0x693   :  { %v6255_v12 = vadd.f32 %v6254_v44, %v4288_v28  ;;  %v6256_v45 = vpop.f32.mrb[65].mxu1 }
 0x694   :  { %v6257_v14 = vadd.f32 %v6256_v45, %v4292_v42  ;;  %v6258_v49 = vpop.f32.mrb[66].mxu1 }
 0x695   :  { %v6259_v46 = vpop.f32.mrb[67].mxu1 }
 0x696   :  { %v7248_v43 = vpack.c.bf16 %v6257_v14, %v6255_v12 }
 0x698   :  { %6404 = vst [vmem:[%s10774_s6 + $0x78] sm:$0xff] %v7248_v43 }

// kernel: vae_forward.11
= control target key start
LH: loop header
LB: loop body
LE: loop exit
PB: predicated region body
PF: predicated region fallthrough
CT: control target
= control target key end

     0   :  { %s6248_s12 = smov 0   ;;  %s8022_s0 = inlined_call_operand.vmem [shape: bf16[32,2304], index: 0, kind: input, shape index: {}]   ;;  %s8023_s1 = inlined_call_operand.vmem [shape: bf16[2304,512], index: 1, kind: input, shape index: {}]   ;;  %s8024_s2 = inlined_call_operand.vmem [shape: f32[1,512], index: 2, kind: input, shape index: {}]   ;;  %s8025_s3 = inlined_call_operand.vmem [shape: bf16[32,512], index: 3, kind: output, shape index: {}]  }
   0x1 LB: > { %s4633_s13 = sadd.s32 4294967295, %s6226_s12   ;;  %p4637_p0 = scmp.ge.s32.totalorder %s6226_s12, 1  ;;  %s6226_s12 = sphi %s6248_s12, %s13_s12  }
   0x2   : > { %p139_p1 = scmp.lt.s32.totalorder %s6226_s12, 3 }
   0x4   : > { %p140_p2 = pnand %p4637_p0, %p139_p1 }
   0x5   : > { %v5329_v0 = vld [vmem:[%s8023_s1 + $0x4] ss:$16 sps:$4 sm:$0xff] (!%p140_p2)   ;;  %v5331_v1 = vld [vmem:[%s8023_s1 + $0xc] ss:$16 sps:$4 sm:$0xff] (!%p140_p2)   ;;  %v5333_v2 = vld [vmem:[%s8023_s1] ss:$16 sps:$4 sm:$0xff] (!%p140_p2)  }
   0x6   : > { %143 = sbr.rel (%p140_p2) target bundleno = 804 (0x324), region = 32  ;;  %3765 = vmatprep.subr.bf16.mxu0 (!%p140_p2), %v5329_v0  ;;  %v5334_v3 = vld [vmem:[%s8023_s1 + $0x8] ss:$16 sps:$4 sm:$0xff] (!%p140_p2)   ;;  %4152 = vmatprep.subr.bf16.mxu1 (!%p140_p2), %v5331_v1  ;;  %v5335_v4 = vld [vmem:[%s8023_s1 + $0x24] ss:$16 sps:$4 sm:$0xff] (!%p140_p2)   ;;  %s4638_s24 = sshll.u32 (!%p140_p2), %s4633_s13, 1 }
   0x7   : > { %3766 = vmatpush1.bf16.msra.mxu0 (!%p140_p2), %v5333_v2  ;;  %4153 = vmatpush1.bf16.msra.mxu1 (!%p140_p2), %v5334_v3  ;;  %v5337_v5 = vld [vmem:[%s8023_s1 + $0x2c] ss:$16 sps:$4 sm:$0xff] (!%p140_p2)   ;;  %v5339_v6 = vld [vmem:[%s8023_s1 + $0x20] ss:$16 sps:$4 sm:$0xff] (!%p140_p2)   ;;  %v5340_v7 = vld [vmem:[%s8023_s1 + $0x28] ss:$16 sps:$4 sm:$0xff] (!%p140_p2)  }
   0x8   : > { %3767 = vmatprep.subr.bf16.mxu0 (!%p140_p2), %v5335_v4  ;;  %4154 = vmatprep.subr.bf16.mxu1 (!%p140_p2), %v5337_v5  ;;  %v5341_v8 = vld [vmem:[%s8023_s1 + $0x44] ss:$16 sps:$4 sm:$0xff] (!%p140_p2)   ;;  %v5343_v9 = vld [vmem:[%s8023_s1 + $0x4c] ss:$16 sps:$4 sm:$0xff] (!%p140_p2)   ;;  %v5345_v10 = vld [vmem:[%s8023_s1 + $0x40] ss:$16 sps:$4 sm:$0xff] (!%p140_p2)  }
   0x9   : > { %v5346_v11 = vld [vmem:[%s8023_s1 + $0x48] ss:$16 sps:$4 sm:$0xff] (!%p140_p2)   ;;  %v5347_v12 = vld [vmem:[%s8023_s1 + $0x64] ss:$16 sps:$4 sm:$0xff] (!%p140_p2)   ;;  %v5349_v13 = vld [vmem:[%s8023_s1 + $0x6c] ss:$16 sps:$4 sm:$0xff] (!%p140_p2)  }
   0xa   : > { %v5351_v14 = vld [vmem:[%s8023_s1 + $0x60] ss:$16 sps:$4 sm:$0xff] (!%p140_p2)   ;;  %v5352_v15 = vld [vmem:[%s8023_s1 + $0x68] ss:$16 sps:$4 sm:$0xff] (!%p140_p2)   ;;  %v5353_v16 = vld [vmem:[%s8023_s1 + $0x84] ss:$16 sps:$4 sm:$0xff] (!%p140_p2)  }
   0xb   : > { %3768 = vmatpush1.bf16.msra.mxu0 (!%p140_p2), %v5339_v6  ;;  %4155 = vmatpush1.bf16.msra.mxu1 (!%p140_p2), %v5340_v7  ;;  %v5355_v17 = vld [vmem:[%s8023_s1 + $0x8c] ss:$16 sps:$4 sm:$0xff] (!%p140_p2)   ;;  %v5357_v18 = vld [vmem:[%s8023_s1 + $0x80] ss:$16 sps:$4 sm:$0xff] (!%p140_p2)   ;;  %v5358_v19 = vld [vmem:[%s8023_s1 + $0x88] ss:$16 sps:$4 sm:$0xff] (!%p140_p2)  }
   0xc   : > { %3769 = vmatprep.subr.bf16.mxu0 (!%p140_p2), %v5341_v8  ;;  %4156 = vmatprep.subr.bf16.mxu1 (!%p140_p2), %v5343_v9  ;;  %v5359_v20 = vld [vmem:[%s8023_s1 + $0xa4] ss:$16 sps:$4 sm:$0xff] (!%p140_p2)   ;;  %v5361_v21 = vld [vmem:[%s8023_s1 + $0xac] ss:$16 sps:$4 sm:$0xff] (!%p140_p2)   ;;  %v5363_v22 = vld [vmem:[%s8023_s1 + $0xa0] ss:$16 sps:$4 sm:$0xff] (!%p140_p2)  }
   0xd   : > { %v5364_v23 = vld [vmem:[%s8023_s1 + $0xa8] ss:$16 sps:$4 sm:$0xff]   ;;  %v5365_v24 = vld [vmem:[%s8023_s1 + $0xc4] ss:$16 sps:$4 sm:$0xff]   ;;  %v5367_v25 = vld [vmem:[%s8023_s1 + $0xcc] ss:$16 sps:$4 sm:$0xff]  }
   0xe   : > { %v5369_v26 = vld [vmem:[%s8023_s1 + $0xc0] ss:$16 sps:$4 sm:$0xff]   ;;  %v5370_v27 = vld [vmem:[%s8023_s1 + $0xc8] ss:$16 sps:$4 sm:$0xff]   ;;  %v5371_v28 = vld [vmem:[%s8023_s1 + $0xe4] ss:$16 sps:$4 sm:$0xff]  }
   0xf   : > { %3770 = vmatpush1.bf16.msra.mxu0 %v5345_v10  ;;  %4157 = vmatpush1.bf16.msra.mxu1 %v5346_v11  ;;  %v5373_v29 = vld [vmem:[%s8023_s1 + $0xec] ss:$16 sps:$4 sm:$0xff]   ;;  %v5375_v30 = vld [vmem:[%s8023_s1 + $0xe0] ss:$16 sps:$4 sm:$0xff]   ;;  %v5376_v31 = vld [vmem:[%s8023_s1 + $0xe8] ss:$16 sps:$4 sm:$0xff]  }
  0x10   : > { %3771 = vmatprep.subr.bf16.mxu0 %v5347_v12  ;;  %4158 = vmatprep.subr.bf16.mxu1 %v5349_v13  ;;  %v5377_v32 = vld [vmem:[%s8023_s1 + $0x104] ss:$16 sps:$4 sm:$0xff]   ;;  %p166_p3 = scmp.lt.s32.totalorder %s4638_s24, 3  ;;  %v5379_v33 = vld [vmem:[%s8023_s1 + $0x10c] ss:$16 sps:$4 sm:$0xff]  }
  0x11   : > { %v5381_v34 = vld [vmem:[%s8023_s1 + $0x100] ss:$16 sps:$4 sm:$0xff]   ;;  %v5382_v35 = vld [vmem:[%s8023_s1 + $0x108] ss:$16 sps:$4 sm:$0xff]   ;;  %v5383_v36 = vld [vmem:[%s8023_s1 + $0x124] ss:$16 sps:$4 sm:$0xff]  }
  0x12   : > { %s8027_s24 = smov (!%p166_p3, %s4638_s24), 3  ;;  %v5385_v37 = vld [vmem:[%s8023_s1 + $0x12c] ss:$16 sps:$4 sm:$0xff]   ;;  %v5387_v38 = vld [vmem:[%s8023_s1 + $0x120] ss:$16 sps:$4 sm:$0xff]  }
  0x13   : > { %3772 = vmatpush1.bf16.msra.mxu0 %v5351_v14  ;;  %4159 = vmatpush1.bf16.msra.mxu1 %v5352_v15  ;;  %v5388_v39 = vld [vmem:[%s8023_s1 + $0x128] ss:$16 sps:$4 sm:$0xff]   ;;  %v5389_v40 = vld [vmem:[%s8023_s1 + $0x144] ss:$16 sps:$4 sm:$0xff]   ;;  %s5320_s21 = smul.u32 72, %s8027_s24 }
  0x14   : > { %3773 = vmatprep.subr.bf16.mxu0 %v5353_v16  ;;  %4160 = vmatprep.subr.bf16.mxu1 %v5355_v17  ;;  %v5391_v41 = vld [vmem:[%s8023_s1 + $0x14c] ss:$16 sps:$4 sm:$0xff]   ;;  %v5393_v42 = vld [vmem:[%s8023_s1 + $0x140] ss:$16 sps:$4 sm:$0xff]   ;;  %v5394_v43 = vld [vmem:[%s8023_s1 + $0x148] ss:$16 sps:$4 sm:$0xff]  }
  0x15   : > { %v5395_v44 = vld [vmem:[%s8023_s1 + $0x164] ss:$16 sps:$4 sm:$0xff]   ;;  %s6399_s13 = scalar_lea.vmem %s8022_s0, %s5320_s21  ;;  %v5397_v45 = vld [vmem:[%s8023_s1 + $0x16c] ss:$16 sps:$4 sm:$0xff]   ;;  %v5399_v46 = vld [vmem:[%s8023_s1 + $0x160] ss:$16 sps:$4 sm:$0xff]  }
  0x16   : > { %v5400_v47 = vld [vmem:[%s8023_s1 + $0x168] ss:$16 sps:$4 sm:$0xff]   ;;  %v5427_v48 = vld [vmem:[%s6399_s13 + $0x4] ss:$72 sps:$4 sm:$0xff]   ;;  %v5405_v51 = vld [vmem:[%s8023_s1 + $0x180] ss:$16 sps:$4 sm:$0xff]  }
  0x17   : > { %3774 = vmatpush1.bf16.msra.mxu0 %v5357_v18  ;;  %4161 = vmatpush1.bf16.msra.mxu1 %v5358_v19  ;;  %v5401_v49 = vld [vmem:[%s8023_s1 + $0x184] ss:$16 sps:$4 sm:$0xff]   ;;  %v5403_v50 = vld [vmem:[%s8023_s1 + $0x18c] ss:$16 sps:$4 sm:$0xff]   ;;  %v5406_v52 = vld [vmem:[%s8023_s1 + $0x188] ss:$16 sps:$4 sm:$0xff]  }
  0x18   : > { %3775 = vmatprep.subr.bf16.mxu0 %v5359_v20  ;;  %4162 = vmatprep.subr.bf16.mxu1 %v5361_v21  ;;  %v5407_v53 = vld [vmem:[%s8023_s1 + $0x1a4] ss:$16 sps:$4 sm:$0xff]   ;;  %v5409_v54 = vld [vmem:[%s8023_s1 + $0x1ac] ss:$16 sps:$4 sm:$0xff]   ;;  %v5411_v55 = vld [vmem:[%s8023_s1 + $0x1a0] ss:$16 sps:$4 sm:$0xff]  }
  0x19   : > { %3797 = vmatprep.mubr.bf16.mxu0 %v5427_v48  ;;  %4184 = vmatprep.mubr.bf16.mxu1 %v5427_v48  ;;  %v5412_v56 = vld [vmem:[%s8023_s1 + $0x1a8] ss:$16 sps:$4 sm:$0xff]   ;;  %v5413_v57 = vld [vmem:[%s8023_s1 + $0x1c4] ss:$16 sps:$4 sm:$0xff]   ;;  %v5415_v58 = vld [vmem:[%s8023_s1 + $0x1cc] ss:$16 sps:$4 sm:$0xff]  }
  0x1a   : > { %v5417_v59 = vld [vmem:[%s8023_s1 + $0x1c0] ss:$16 sps:$4 sm:$0xff]   ;;  %v5418_v60 = vld [vmem:[%s8023_s1 + $0x1c8] ss:$16 sps:$4 sm:$0xff]   ;;  %v5419_v61 = vld [vmem:[%s8023_s1 + $0x1e4] ss:$16 sps:$4 sm:$0xff]  }
  0x1b   : > { %3776 = vmatpush1.bf16.msra.mxu0 %v5363_v22  ;;  %4163 = vmatpush1.bf16.msra.mxu1 %v5364_v23  ;;  %v5421_v62 = vld [vmem:[%s8023_s1 + $0x1ec] ss:$16 sps:$4 sm:$0xff]   ;;  %v5423_v63 = vld [vmem:[%s8023_s1 + $0x1e0] ss:$16 sps:$4 sm:$0xff]   ;;  %v5424_v0 = vld [vmem:[%s8023_s1 + $0x1e8] ss:$16 sps:$4 sm:$0xff]  }
  0x1c   : > { %3777 = vmatprep.subr.bf16.mxu0 %v5365_v24  ;;  %4164 = vmatprep.subr.bf16.mxu1 %v5367_v25  ;;  %v5430_v1 = vld [vmem:[%s8023_s1 + $0x204] ss:$16 sps:$4 sm:$0xff]   ;;  %v5433_v2 = vld [vmem:[%s8023_s1 + $0x20c] ss:$16 sps:$4 sm:$0xff]   ;;  %v5425_v3 = vld [vmem:[%s6399_s13] ss:$72 sps:$4 sm:$0xff]  }
  0x1d   : > { %v5428_v4 = vld [vmem:[%s8023_s1 + $0x200] ss:$16 sps:$4 sm:$0xff]   ;;  %v5431_v5 = vld [vmem:[%s8023_s1 + $0x208] ss:$16 sps:$4 sm:$0xff]   ;;  %v5436_v6 = vld [vmem:[%s8023_s1 + $0x224] ss:$16 sps:$4 sm:$0xff]  }
  0x1e   : > { %v5439_v7 = vld [vmem:[%s8023_s1 + $0x22c] ss:$16 sps:$4 sm:$0xff]   ;;  %v5434_v8 = vld [vmem:[%s8023_s1 + $0x220] ss:$16 sps:$4 sm:$0xff]   ;;  %v5437_v9 = vld [vmem:[%s8023_s1 + $0x228] ss:$16 sps:$4 sm:$0xff]  }
  0x1f   : > { %3778 = vmatpush1.bf16.msra.mxu0 %v5369_v26  ;;  %4165 = vmatpush1.bf16.msra.mxu1 %v5370_v27  ;;  %v5442_v10 = vld [vmem:[%s8023_s1 + $0x244] ss:$16 sps:$4 sm:$0xff]   ;;  %v5445_v11 = vld [vmem:[%s8023_s1 + $0x24c] ss:$16 sps:$4 sm:$0xff]   ;;  %v5440_v12 = vld [vmem:[%s8023_s1 + $0x240] ss:$16 sps:$4 sm:$0xff]  }
  0x20   : > { %3779 = vmatprep.subr.bf16.mxu0 %v5371_v28  ;;  %4166 = vmatprep.subr.bf16.mxu1 %v5373_v29  ;;  %v5443_v13 = vld [vmem:[%s8023_s1 + $0x248] ss:$16 sps:$4 sm:$0xff]   ;;  %v5448_v14 = vld [vmem:[%s8023_s1 + $0x264] ss:$16 sps:$4 sm:$0xff]   ;;  %v5451_v15 = vld [vmem:[%s8023_s1 + $0x26c] ss:$16 sps:$4 sm:$0xff]  }
  0x21   : > { %v5446_v16 = vld [vmem:[%s8023_s1 + $0x260] ss:$16 sps:$4 sm:$0xff]   ;;  %v5449_v17 = vld [vmem:[%s8023_s1 + $0x268] ss:$16 sps:$4 sm:$0xff]   ;;  %v5454_v18 = vld [vmem:[%s8023_s1 + $0x284] ss:$16 sps:$4 sm:$0xff]  }
  0x22   : > { %v5457_v19 = vld [vmem:[%s8023_s1 + $0x28c] ss:$16 sps:$4 sm:$0xff]   ;;  %v5452_v20 = vld [vmem:[%s8023_s1 + $0x280] ss:$16 sps:$4 sm:$0xff]   ;;  %v5455_v21 = vld [vmem:[%s8023_s1 + $0x288] ss:$16 sps:$4 sm:$0xff]  }
  0x23   : > { %3780 = vmatpush1.bf16.msra.mxu0 %v5375_v30  ;;  %4167 = vmatpush1.bf16.msra.mxu1 %v5376_v31  ;;  %v5460_v22 = vld [vmem:[%s8023_s1 + $0x2a4] ss:$16 sps:$4 sm:$0xff]   ;;  %v5463_v23 = vld [vmem:[%s8023_s1 + $0x2ac] ss:$16 sps:$4 sm:$0xff]   ;;  %v5458_v24 = vld [vmem:[%s8023_s1 + $0x2a0] ss:$16 sps:$4 sm:$0xff]  }
  0x24   : > { %3781 = vmatprep.subr.bf16.mxu0 %v5377_v32  ;;  %4168 = vmatprep.subr.bf16.mxu1 %v5379_v33  ;;  %v5461_v25 = vld [vmem:[%s8023_s1 + $0x2a8] ss:$16 sps:$4 sm:$0xff]   ;;  %v5466_v26 = vld [vmem:[%s8023_s1 + $0x2c4] ss:$16 sps:$4 sm:$0xff]   ;;  %v5469_v27 = vld [vmem:[%s8023_s1 + $0x2cc] ss:$16 sps:$4 sm:$0xff]  }
  0x25   : > { %v5464_v28 = vld [vmem:[%s8023_s1 + $0x2c0] ss:$16 sps:$4 sm:$0xff]   ;;  %v5467_v29 = vld [vmem:[%s8023_s1 + $0x2c8] ss:$16 sps:$4 sm:$0xff]   ;;  %v5526_v30 = vld [vmem:[%s6399_s13 + $0xc] ss:$72 sps:$4 sm:$0xff]  }
  0x26   : > { %v5472_v31 = vld [vmem:[%s8023_s1 + $0x2e4] ss:$16 sps:$4 sm:$0xff]   ;;  %v5475_v32 = vld [vmem:[%s8023_s1 + $0x2ec] ss:$16 sps:$4 sm:$0xff]   ;;  %v5470_v33 = vld [vmem:[%s8023_s1 + $0x2e0] ss:$16 sps:$4 sm:$0xff]  }
  0x27   : > { %3782 = vmatpush1.bf16.msra.mxu0 %v5381_v34  ;;  %4169 = vmatpush1.bf16.msra.mxu1 %v5382_v35  ;;  %v5473_v34 = vld [vmem:[%s8023_s1 + $0x2e8] ss:$16 sps:$4 sm:$0xff]   ;;  %v5478_v35 = vld [vmem:[%s8023_s1 + $0x304] ss:$16 sps:$4 sm:$0xff]   ;;  %v5499_v48 = vld [vmem:[%s8023_s1 + $0x36c] ss:$16 sps:$4 sm:$0xff]  }
  0x28   : > { %3783 = vmatprep.subr.bf16.mxu0 %v5383_v36  ;;  %4170 = vmatprep.subr.bf16.mxu1 %v5385_v37  ;;  %v5481_v36 = vld [vmem:[%s8023_s1 + $0x30c] ss:$16 sps:$4 sm:$0xff]   ;;  %v5476_v37 = vld [vmem:[%s8023_s1 + $0x300] ss:$16 sps:$4 sm:$0xff]  }
  0x2b   : > { %3784 = vmatpush1.bf16.msra.mxu0 %v5387_v38  ;;  %4171 = vmatpush1.bf16.msra.mxu1 %v5388_v39  ;;  %v5479_v38 = vld [vmem:[%s8023_s1 + $0x308] ss:$16 sps:$4 sm:$0xff]   ;;  %v5484_v39 = vld [vmem:[%s8023_s1 + $0x324] ss:$16 sps:$4 sm:$0xff]  }
  0x2c   : > { %3785 = vmatprep.subr.bf16.mxu0 %v5389_v40  ;;  %4172 = vmatprep.subr.bf16.mxu1 %v5391_v41  ;;  %v5487_v40 = vld [vmem:[%s8023_s1 + $0x32c] ss:$16 sps:$4 sm:$0xff]   ;;  %v5482_v41 = vld [vmem:[%s8023_s1 + $0x320] ss:$16 sps:$4 sm:$0xff]  }
  0x2f   : > { %3786 = vmatpush1.bf16.msra.mxu0 %v5393_v42  ;;  %4173 = vmatpush1.bf16.msra.mxu1 %v5394_v43  ;;  %v5485_v42 = vld [vmem:[%s8023_s1 + $0x328] ss:$16 sps:$4 sm:$0xff]   ;;  %v5490_v43 = vld [vmem:[%s8023_s1 + $0x344] ss:$16 sps:$4 sm:$0xff]  }
  0x30   : > { %3787 = vmatprep.subr.bf16.mxu0 %v5395_v44  ;;  %4174 = vmatprep.subr.bf16.mxu1 %v5397_v45  ;;  %v5493_v44 = vld [vmem:[%s8023_s1 + $0x34c] ss:$16 sps:$4 sm:$0xff]   ;;  %v5488_v45 = vld [vmem:[%s8023_s1 + $0x340] ss:$16 sps:$4 sm:$0xff]  }
  0x33   : > { %3788 = vmatpush1.bf16.msra.mxu0 %v5399_v46  ;;  %4175 = vmatpush1.bf16.msra.mxu1 %v5400_v47  ;;  %v5491_v46 = vld [vmem:[%s8023_s1 + $0x348] ss:$16 sps:$4 sm:$0xff]   ;;  %v5496_v47 = vld [vmem:[%s8023_s1 + $0x364] ss:$16 sps:$4 sm:$0xff]  }
  0x34   : > { %3789 = vmatprep.subr.bf16.mxu0 %v5401_v49  ;;  %4176 = vmatprep.subr.bf16.mxu1 %v5403_v50  ;;  %v5494_v49 = vld [vmem:[%s8023_s1 + $0x360] ss:$16 sps:$4 sm:$0xff]   ;;  %v5497_v50 = vld [vmem:[%s8023_s1 + $0x368] ss:$16 sps:$4 sm:$0xff]  }
  0x37   : > { %3790 = vmatpush1.bf16.msra.mxu0 %v5405_v51  ;;  %4177 = vmatpush1.bf16.msra.mxu1 %v5406_v52  ;;  %v5502_v51 = vld [vmem:[%s8023_s1 + $0x384] ss:$16 sps:$4 sm:$0xff]   ;;  %v5505_v52 = vld [vmem:[%s8023_s1 + $0x38c] ss:$16 sps:$4 sm:$0xff]  }
  0x38   : > { %3791 = vmatprep.subr.bf16.mxu0 %v5407_v53  ;;  %4178 = vmatprep.subr.bf16.mxu1 %v5409_v54  ;;  %v5500_v53 = vld [vmem:[%s8023_s1 + $0x380] ss:$16 sps:$4 sm:$0xff]   ;;  %v5503_v54 = vld [vmem:[%s8023_s1 + $0x388] ss:$16 sps:$4 sm:$0xff]  }
  0x3b   : > { %3792 = vmatpush1.bf16.msra.mxu0 %v5411_v55  ;;  %4179 = vmatpush1.bf16.msra.mxu1 %v5412_v56  ;;  %v5508_v55 = vld [vmem:[%s8023_s1 + $0x3a4] ss:$16 sps:$4 sm:$0xff]   ;;  %v5511_v56 = vld [vmem:[%s8023_s1 + $0x3ac] ss:$16 sps:$4 sm:$0xff]  }
  0x3c   : > { %3793 = vmatprep.subr.bf16.mxu0 %v5413_v57  ;;  %4180 = vmatprep.subr.bf16.mxu1 %v5415_v58  ;;  %v5506_v57 = vld [vmem:[%s8023_s1 + $0x3a0] ss:$16 sps:$4 sm:$0xff]   ;;  %v5509_v58 = vld [vmem:[%s8023_s1 + $0x3a8] ss:$16 sps:$4 sm:$0xff]  }
  0x3f   : > { %3794 = vmatpush1.bf16.msra.mxu0 %v5417_v59  ;;  %4181 = vmatpush1.bf16.msra.mxu1 %v5418_v60  ;;  %v5514_v59 = vld [vmem:[%s8023_s1 + $0x3c4] ss:$16 sps:$4 sm:$0xff]   ;;  %v5517_v60 = vld [vmem:[%s8023_s1 + $0x3cc] ss:$16 sps:$4 sm:$0xff]  }
  0x40   : > { %3795 = vmatprep.subr.bf16.mxu0 %v5419_v61  ;;  %4182 = vmatprep.subr.bf16.mxu1 %v5421_v62  ;;  %v5512_v61 = vld [vmem:[%s8023_s1 + $0x3c0] ss:$16 sps:$4 sm:$0xff]   ;;  %v5515_v62 = vld [vmem:[%s8023_s1 + $0x3c8] ss:$16 sps:$4 sm:$0xff]  }
  0x43   : > { %3796 = vmatpush1.bf16.msra.mxu0 %v5423_v63  ;;  %4183 = vmatpush1.bf16.msra.mxu1 %v5424_v0  ;;  %v5520_v63 = vld [vmem:[%s8023_s1 + $0x3e4] ss:$16 sps:$4 sm:$0xff]   ;;  %v5523_v0 = vld [vmem:[%s8023_s1 + $0x3ec] ss:$16 sps:$4 sm:$0xff]  }
  0x44   : > { %3808 = vmatprep.subr.bf16.mxu0 %v5430_v1  ;;  %4195 = vmatprep.subr.bf16.mxu1 %v5433_v2  ;;  %v5518_v1 = vld [vmem:[%s8023_s1 + $0x3e0] ss:$16 sps:$4 sm:$0xff]   ;;  %v5521_v2 = vld [vmem:[%s8023_s1 + $0x3e8] ss:$16 sps:$4 sm:$0xff]  }
  0x46   : > { %3798 = vmatmul.mubr.bf16.vlgmr.msra.gmra.mrb[0].mxu0 %v5425_v3  ;;  %4185 = vmatmul.mubr.bf16.vlgmr.msra.gmra.mrb[0].mxu1 %v5425_v3  ;;  %v5529_v3 = vld [vmem:[%s8023_s1 + $0x404] ss:$16 sps:$4 sm:$0xff]  }
  0x47   : > { %3809 = vmatpush1.bf16.msra.mxu0 %v5428_v4  ;;  %4196 = vmatpush1.bf16.msra.mxu1 %v5431_v5  ;;  %v5532_v4 = vld [vmem:[%s8023_s1 + $0x40c] ss:$16 sps:$4 sm:$0xff]   ;;  %v5524_v5 = vld [vmem:[%s6399_s13 + $0x8] ss:$72 sps:$4 sm:$0xff]  }
  0x48   : > { %3810 = vmatprep.subr.bf16.mxu0 %v5436_v6  ;;  %4197 = vmatprep.subr.bf16.mxu1 %v5439_v7  ;;  %v5527_v6 = vld [vmem:[%s8023_s1 + $0x400] ss:$16 sps:$4 sm:$0xff]   ;;  %v5530_v7 = vld [vmem:[%s8023_s1 + $0x408] ss:$16 sps:$4 sm:$0xff]  }
  0x49   : > { %3840 = vmatprep.mubr.bf16.mxu0 %v5526_v30  ;;  %4227 = vmatprep.mubr.bf16.mxu1 %v5526_v30  ;;  %v5568_v30 = vld [vmem:[%s8023_s1 + $0x4cc] ss:$16 sps:$4 sm:$0xff]  }
  0x4b   : > { %3811 = vmatpush1.bf16.msra.mxu0 %v5434_v8  ;;  %4198 = vmatpush1.bf16.msra.mxu1 %v5437_v9  ;;  %v5535_v8 = vld [vmem:[%s8023_s1 + $0x424] ss:$16 sps:$4 sm:$0xff]   ;;  %v5538_v9 = vld [vmem:[%s8023_s1 + $0x42c] ss:$16 sps:$4 sm:$0xff]  }
  0x4c   : > { %3812 = vmatprep.subr.bf16.mxu0 %v5442_v10  ;;  %4199 = vmatprep.subr.bf16.mxu1 %v5445_v11  ;;  %v5533_v10 = vld [vmem:[%s8023_s1 + $0x420] ss:$16 sps:$4 sm:$0xff]   ;;  %v5536_v11 = vld [vmem:[%s8023_s1 + $0x428] ss:$16 sps:$4 sm:$0xff]  }
  0x4f   : > { %3813 = vmatpush1.bf16.msra.mxu0 %v5440_v12  ;;  %4200 = vmatpush1.bf16.msra.mxu1 %v5443_v13  ;;  %v5625_v12 = vld [vmem:[%s6399_s13 + $0x14] ss:$72 sps:$4 sm:$0xff]  }
  0x50   : > { %3814 = vmatprep.subr.bf16.mxu0 %v5448_v14  ;;  %4201 = vmatprep.subr.bf16.mxu1 %v5451_v15  ;;  %v5541_v13 = vld [vmem:[%s8023_s1 + $0x444] ss:$16 sps:$4 sm:$0xff]   ;;  %v5544_v14 = vld [vmem:[%s8023_s1 + $0x44c] ss:$16 sps:$4 sm:$0xff]   ;;  %v5539_v15 = vld [vmem:[%s8023_s1 + $0x440] ss:$16 sps:$4 sm:$0xff]  }
  0x53   : > { %3815 = vmatpush1.bf16.msra.mxu0 %v5446_v16  ;;  %4202 = vmatpush1.bf16.msra.mxu1 %v5449_v17  ;;  %v5542_v16 = vld [vmem:[%s8023_s1 + $0x448] ss:$16 sps:$4 sm:$0xff]   ;;  %v5547_v17 = vld [vmem:[%s8023_s1 + $0x464] ss:$16 sps:$4 sm:$0xff]  }
  0x54   : > { %3816 = vmatprep.subr.bf16.mxu0 %v5454_v18  ;;  %4203 = vmatprep.subr.bf16.mxu1 %v5457_v19  ;;  %v5550_v18 = vld [vmem:[%s8023_s1 + $0x46c] ss:$16 sps:$4 sm:$0xff]   ;;  %v5545_v19 = vld [vmem:[%s8023_s1 + $0x460] ss:$16 sps:$4 sm:$0xff]  }
  0x57   : > { %3817 = vmatpush1.bf16.msra.mxu0 %v5452_v20  ;;  %4204 = vmatpush1.bf16.msra.mxu1 %v5455_v21  ;;  %v5548_v20 = vld [vmem:[%s8023_s1 + $0x468] ss:$16 sps:$4 sm:$0xff]   ;;  %v5553_v21 = vld [vmem:[%s8023_s1 + $0x484] ss:$16 sps:$4 sm:$0xff]  }
  0x58   : > { %3818 = vmatprep.subr.bf16.mxu0 %v5460_v22  ;;  %4205 = vmatprep.subr.bf16.mxu1 %v5463_v23  ;;  %v5556_v22 = vld [vmem:[%s8023_s1 + $0x48c] ss:$16 sps:$4 sm:$0xff]   ;;  %v5551_v23 = vld [vmem:[%s8023_s1 + $0x480] ss:$16 sps:$4 sm:$0xff]  }
  0x5b   : > { %3819 = vmatpush1.bf16.msra.mxu0 %v5458_v24  ;;  %4206 = vmatpush1.bf16.msra.mxu1 %v5461_v25  ;;  %v5554_v24 = vld [vmem:[%s8023_s1 + $0x488] ss:$16 sps:$4 sm:$0xff]   ;;  %v5559_v25 = vld [vmem:[%s8023_s1 + $0x4a4] ss:$16 sps:$4 sm:$0xff]  }
  0x5c   : > { %3820 = vmatprep.subr.bf16.mxu0 %v5466_v26  ;;  %4207 = vmatprep.subr.bf16.mxu1 %v5469_v27  ;;  %v5562_v26 = vld [vmem:[%s8023_s1 + $0x4ac] ss:$16 sps:$4 sm:$0xff]   ;;  %v5557_v27 = vld [vmem:[%s8023_s1 + $0x4a0] ss:$16 sps:$4 sm:$0xff]  }
  0x5f   : > { %3821 = vmatpush1.bf16.msra.mxu0 %v5464_v28  ;;  %4208 = vmatpush1.bf16.msra.mxu1 %v5467_v29  ;;  %v5560_v28 = vld [vmem:[%s8023_s1 + $0x4a8] ss:$16 sps:$4 sm:$0xff]   ;;  %v5565_v29 = vld [vmem:[%s8023_s1 + $0x4c4] ss:$16 sps:$4 sm:$0xff]  }
  0x60   : > { %3822 = vmatprep.subr.bf16.mxu0 %v5472_v31  ;;  %4209 = vmatprep.subr.bf16.mxu1 %v5475_v32  ;;  %v5563_v31 = vld [vmem:[%s8023_s1 + $0x4c0] ss:$16 sps:$4 sm:$0xff]   ;;  %v5566_v32 = vld [vmem:[%s8023_s1 + $0x4c8] ss:$16 sps:$4 sm:$0xff]  }
  0x63   : > { %3823 = vmatpush1.bf16.msra.mxu0 %v5470_v33  ;;  %4210 = vmatpush1.bf16.msra.mxu1 %v5473_v34  ;;  %v5571_v33 = vld [vmem:[%s8023_s1 + $0x4e4] ss:$16 sps:$4 sm:$0xff]   ;;  %v5574_v34 = vld [vmem:[%s8023_s1 + $0x4ec] ss:$16 sps:$4 sm:$0xff]  }
  0x64   : > { %3824 = vmatprep.subr.bf16.mxu0 %v5478_v35  ;;  %4211 = vmatprep.subr.bf16.mxu1 %v5481_v36  ;;  %v5569_v35 = vld [vmem:[%s8023_s1 + $0x4e0] ss:$16 sps:$4 sm:$0xff]   ;;  %v5572_v36 = vld [vmem:[%s8023_s1 + $0x4e8] ss:$16 sps:$4 sm:$0xff]  }
  0x67   : > { %3825 = vmatpush1.bf16.msra.mxu0 %v5476_v37  ;;  %4212 = vmatpush1.bf16.msra.mxu1 %v5479_v38  ;;  %v5577_v37 = vld [vmem:[%s8023_s1 + $0x504] ss:$16 sps:$4 sm:$0xff]   ;;  %v5580_v38 = vld [vmem:[%s8023_s1 + $0x50c] ss:$16 sps:$4 sm:$0xff]  }
  0x68   : > { %3826 = vmatprep.subr.bf16.mxu0 %v5484_v39  ;;  %4213 = vmatprep.subr.bf16.mxu1 %v5487_v40  ;;  %v5575_v39 = vld [vmem:[%s8023_s1 + $0x500] ss:$16 sps:$4 sm:$0xff]   ;;  %v5578_v40 = vld [vmem:[%s8023_s1 + $0x508] ss:$16 sps:$4 sm:$0xff]  }
  0x6b   : > { %3827 = vmatpush1.bf16.msra.mxu0 %v5482_v41  ;;  %4214 = vmatpush1.bf16.msra.mxu1 %v5485_v42  ;;  %v5583_v41 = vld [vmem:[%s8023_s1 + $0x524] ss:$16 sps:$4 sm:$0xff]   ;;  %v5586_v42 = vld [vmem:[%s8023_s1 + $0x52c] ss:$16 sps:$4 sm:$0xff]  }
  0x6c   : > { %3828 = vmatprep.subr.bf16.mxu0 %v5490_v43  ;;  %4215 = vmatprep.subr.bf16.mxu1 %v5493_v44  ;;  %v5581_v43 = vld [vmem:[%s8023_s1 + $0x520] ss:$16 sps:$4 sm:$0xff]   ;;  %v5584_v44 = vld [vmem:[%s8023_s1 + $0x528] ss:$16 sps:$4 sm:$0xff]  }
  0x6f   : > { %3829 = vmatpush1.bf16.msra.mxu0 %v5488_v45  ;;  %4216 = vmatpush1.bf16.msra.mxu1 %v5491_v46  ;;  %v5589_v45 = vld [vmem:[%s8023_s1 + $0x544] ss:$16 sps:$4 sm:$0xff]   ;;  %v5592_v46 = vld [vmem:[%s8023_s1 + $0x54c] ss:$16 sps:$4 sm:$0xff]  }
  0x70   : > { %3830 = vmatprep.subr.bf16.mxu0 %v5496_v47  ;;  %4217 = vmatprep.subr.bf16.mxu1 %v5499_v48  ;;  %v5587_v47 = vld [vmem:[%s8023_s1 + $0x540] ss:$16 sps:$4 sm:$0xff]   ;;  %v5590_v48 = vld [vmem:[%s8023_s1 + $0x548] ss:$16 sps:$4 sm:$0xff]  }
  0x73   : > { %3831 = vmatpush1.bf16.msra.mxu0 %v5494_v49  ;;  %4218 = vmatpush1.bf16.msra.mxu1 %v5497_v50  ;;  %v5595_v49 = vld [vmem:[%s8023_s1 + $0x564] ss:$16 sps:$4 sm:$0xff]   ;;  %v5598_v50 = vld [vmem:[%s8023_s1 + $0x56c] ss:$16 sps:$4 sm:$0xff]  }
  0x74   : > { %3832 = vmatprep.subr.bf16.mxu0 %v5502_v51  ;;  %4219 = vmatprep.subr.bf16.mxu1 %v5505_v52  ;;  %v5593_v51 = vld [vmem:[%s8023_s1 + $0x560] ss:$16 sps:$4 sm:$0xff]   ;;  %v5596_v52 = vld [vmem:[%s8023_s1 + $0x568] ss:$16 sps:$4 sm:$0xff]  }
  0x77   : > { %3833 = vmatpush1.bf16.msra.mxu0 %v5500_v53  ;;  %4220 = vmatpush1.bf16.msra.mxu1 %v5503_v54  ;;  %v5601_v53 = vld [vmem:[%s8023_s1 + $0x584] ss:$16 sps:$4 sm:$0xff]   ;;  %v5604_v54 = vld [vmem:[%s8023_s1 + $0x58c] ss:$16 sps:$4 sm:$0xff]  }
  0x78   : > { %3834 = vmatprep.subr.bf16.mxu0 %v5508_v55  ;;  %4221 = vmatprep.subr.bf16.mxu1 %v5511_v56  ;;  %v5599_v55 = vld [vmem:[%s8023_s1 + $0x580] ss:$16 sps:$4 sm:$0xff]   ;;  %v5602_v56 = vld [vmem:[%s8023_s1 + $0x588] ss:$16 sps:$4 sm:$0xff]  }
  0x7b   : > { %3835 = vmatpush1.bf16.msra.mxu0 %v5506_v57  ;;  %4222 = vmatpush1.bf16.msra.mxu1 %v5509_v58  ;;  %v5607_v57 = vld [vmem:[%s8023_s1 + $0x5a4] ss:$16 sps:$4 sm:$0xff]   ;;  %v5610_v58 = vld [vmem:[%s8023_s1 + $0x5ac] ss:$16 sps:$4 sm:$0xff]  }
  0x7c   : > { %3836 = vmatprep.subr.bf16.mxu0 %v5514_v59  ;;  %4223 = vmatprep.subr.bf16.mxu1 %v5517_v60  ;;  %v5605_v59 = vld [vmem:[%s8023_s1 + $0x5a0] ss:$16 sps:$4 sm:$0xff]   ;;  %v5608_v60 = vld [vmem:[%s8023_s1 + $0x5a8] ss:$16 sps:$4 sm:$0xff]  }
  0x7f   : > { %3837 = vmatpush1.bf16.msra.mxu0 %v5512_v61  ;;  %4224 = vmatpush1.bf16.msra.mxu1 %v5515_v62  ;;  %v5613_v61 = vld [vmem:[%s8023_s1 + $0x5c4] ss:$16 sps:$4 sm:$0xff]   ;;  %v5616_v62 = vld [vmem:[%s8023_s1 + $0x5cc] ss:$16 sps:$4 sm:$0xff]  }
  0x80   : > { %3838 = vmatprep.subr.bf16.mxu0 %v5520_v63  ;;  %4225 = vmatprep.subr.bf16.mxu1 %v5523_v0  ;;  %v5611_v63 = vld [vmem:[%s8023_s1 + $0x5c0] ss:$16 sps:$4 sm:$0xff]   ;;  %v5614_v0 = vld [vmem:[%s8023_s1 + $0x5c8] ss:$16 sps:$4 sm:$0xff]  }
  0x83   : > { %3839 = vmatpush1.bf16.msra.mxu0 %v5518_v1  ;;  %4226 = vmatpush1.bf16.msra.mxu1 %v5521_v2  ;;  %v5619_v1 = vld [vmem:[%s8023_s1 + $0x5e4] ss:$16 sps:$4 sm:$0xff]   ;;  %v5622_v2 = vld [vmem:[%s8023_s1 + $0x5ec] ss:$16 sps:$4 sm:$0xff]  }
  0x84   : > { %3851 = vmatprep.subr.bf16.mxu0 %v5529_v3  ;;  %4238 = vmatprep.subr.bf16.mxu1 %v5532_v4  ;;  %v5617_v3 = vld [vmem:[%s8023_s1 + $0x5e0] ss:$16 sps:$4 sm:$0xff]   ;;  %v5620_v4 = vld [vmem:[%s8023_s1 + $0x5e8] ss:$16 sps:$4 sm:$0xff]  }
  0x86   : > { %3841 = vmatmul.mubr.bf16.vlgmr.msra.gmra.mrb[0].mxu0 %v5524_v5  ;;  %4228 = vmatmul.mubr.bf16.vlgmr.msra.gmra.mrb[0].mxu1 %v5524_v5  ;;  %v5628_v5 = vld [vmem:[%s8023_s1 + $0x604] ss:$16 sps:$4 sm:$0xff]  }
  0x87   : > { %3852 = vmatpush1.bf16.msra.mxu0 %v5527_v6  ;;  %4239 = vmatpush1.bf16.msra.mxu1 %v5530_v7  ;;  %v5631_v6 = vld [vmem:[%s8023_s1 + $0x60c] ss:$16 sps:$4 sm:$0xff]   ;;  %v5623_v7 = vld [vmem:[%s6399_s13 + $0x10] ss:$72 sps:$4 sm:$0xff]  }
  0x88   : > { %3853 = vmatprep.subr.bf16.mxu0 %v5535_v8  ;;  %4240 = vmatprep.subr.bf16.mxu1 %v5538_v9  ;;  %v5626_v8 = vld [vmem:[%s8023_s1 + $0x600] ss:$16 sps:$4 sm:$0xff]   ;;  %v5629_v9 = vld [vmem:[%s8023_s1 + $0x608] ss:$16 sps:$4 sm:$0xff]  }
  0x89   : > { %3883 = vmatprep.mubr.bf16.mxu0 %v5625_v12  ;;  %4270 = vmatprep.mubr.bf16.mxu1 %v5625_v12  ;;  %v5724_v12 = vld [vmem:[%s6399_s13 + $0x1c] ss:$72 sps:$4 sm:$0xff]  }
  0x8b   : > { %3854 = vmatpush1.bf16.msra.mxu0 %v5533_v10  ;;  %4241 = vmatpush1.bf16.msra.mxu1 %v5536_v11  ;;  %v5634_v10 = vld [vmem:[%s8023_s1 + $0x624] ss:$16 sps:$4 sm:$0xff]   ;;  %v5637_v11 = vld [vmem:[%s8023_s1 + $0x62c] ss:$16 sps:$4 sm:$0xff]  }
  0x8c   : > { %3855 = vmatprep.subr.bf16.mxu0 %v5541_v13  ;;  %4242 = vmatprep.subr.bf16.mxu1 %v5544_v14  ;;  %v5632_v13 = vld [vmem:[%s8023_s1 + $0x620] ss:$16 sps:$4 sm:$0xff]   ;;  %v5635_v14 = vld [vmem:[%s8023_s1 + $0x628] ss:$16 sps:$4 sm:$0xff]  }
  0x8f   : > { %3856 = vmatpush1.bf16.msra.mxu0 %v5539_v15  ;;  %4243 = vmatpush1.bf16.msra.mxu1 %v5542_v16  ;;  %v5640_v15 = vld [vmem:[%s8023_s1 + $0x644] ss:$16 sps:$4 sm:$0xff]   ;;  %v5643_v16 = vld [vmem:[%s8023_s1 + $0x64c] ss:$16 sps:$4 sm:$0xff]  }
  0x90   : > { %3857 = vmatprep.subr.bf16.mxu0 %v5547_v17  ;;  %4244 = vmatprep.subr.bf16.mxu1 %v5550_v18  ;;  %v5638_v17 = vld [vmem:[%s8023_s1 + $0x640] ss:$16 sps:$4 sm:$0xff]   ;;  %v5641_v18 = vld [vmem:[%s8023_s1 + $0x648] ss:$16 sps:$4 sm:$0xff]  }
  0x93   : > { %3858 = vmatpush1.bf16.msra.mxu0 %v5545_v19  ;;  %4245 = vmatpush1.bf16.msra.mxu1 %v5548_v20  ;;  %v5646_v19 = vld [vmem:[%s8023_s1 + $0x664] ss:$16 sps:$4 sm:$0xff]   ;;  %v5649_v20 = vld [vmem:[%s8023_s1 + $0x66c] ss:$16 sps:$4 sm:$0xff]  }
  0x94   : > { %3859 = vmatprep.subr.bf16.mxu0 %v5553_v21  ;;  %4246 = vmatprep.subr.bf16.mxu1 %v5556_v22  ;;  %v5644_v21 = vld [vmem:[%s8023_s1 + $0x660] ss:$16 sps:$4 sm:$0xff]   ;;  %v5647_v22 = vld [vmem:[%s8023_s1 + $0x668] ss:$16 sps:$4 sm:$0xff]  }
  0x97   : > { %3860 = vmatpush1.bf16.msra.mxu0 %v5551_v23  ;;  %4247 = vmatpush1.bf16.msra.mxu1 %v5554_v24  ;;  %v5652_v23 = vld [vmem:[%s8023_s1 + $0x684] ss:$16 sps:$4 sm:$0xff]   ;;  %v5655_v24 = vld [vmem:[%s8023_s1 + $0x68c] ss:$16 sps:$4 sm:$0xff]  }
  0x98   : > { %3861 = vmatprep.subr.bf16.mxu0 %v5559_v25  ;;  %4248 = vmatprep.subr.bf16.mxu1 %v5562_v26  ;;  %v5650_v25 = vld [vmem:[%s8023_s1 + $0x680] ss:$16 sps:$4 sm:$0xff]   ;;  %v5653_v26 = vld [vmem:[%s8023_s1 + $0x688] ss:$16 sps:$4 sm:$0xff]  }
  0x9b   : > { %3862 = vmatpush1.bf16.msra.mxu0 %v5557_v27  ;;  %4249 = vmatpush1.bf16.msra.mxu1 %v5560_v28  ;;  %v5658_v27 = vld [vmem:[%s8023_s1 + $0x6a4] ss:$16 sps:$4 sm:$0xff]   ;;  %v5661_v28 = vld [vmem:[%s8023_s1 + $0x6ac] ss:$16 sps:$4 sm:$0xff]  }
  0x9c   : > { %3863 = vmatprep.subr.bf16.mxu0 %v5565_v29  ;;  %4250 = vmatprep.subr.bf16.mxu1 %v5568_v30  ;;  %v5656_v29 = vld [vmem:[%s8023_s1 + $0x6a0] ss:$16 sps:$4 sm:$0xff]   ;;  %v5659_v30 = vld [vmem:[%s8023_s1 + $0x6a8] ss:$16 sps:$4 sm:$0xff]  }
  0x9f   : > { %3864 = vmatpush1.bf16.msra.mxu0 %v5563_v31  ;;  %4251 = vmatpush1.bf16.msra.mxu1 %v5566_v32  ;;  %v5664_v31 = vld [vmem:[%s8023_s1 + $0x6c4] ss:$16 sps:$4 sm:$0xff]   ;;  %v5667_v32 = vld [vmem:[%s8023_s1 + $0x6cc] ss:$16 sps:$4 sm:$0xff]  }
  0xa0   : > { %3865 = vmatprep.subr.bf16.mxu0 %v5571_v33  ;;  %4252 = vmatprep.subr.bf16.mxu1 %v5574_v34  ;;  %v5662_v33 = vld [vmem:[%s8023_s1 + $0x6c0] ss:$16 sps:$4 sm:$0xff]   ;;  %v5665_v34 = vld [vmem:[%s8023_s1 + $0x6c8] ss:$16 sps:$4 sm:$0xff]  }
  0xa3   : > { %3866 = vmatpush1.bf16.msra.mxu0 %v5569_v35  ;;  %4253 = vmatpush1.bf16.msra.mxu1 %v5572_v36  ;;  %v5670_v35 = vld [vmem:[%s8023_s1 + $0x6e4] ss:$16 sps:$4 sm:$0xff]   ;;  %v5673_v36 = vld [vmem:[%s8023_s1 + $0x6ec] ss:$16 sps:$4 sm:$0xff]  }
  0xa4   : > { %3867 = vmatprep.subr.bf16.mxu0 %v5577_v37  ;;  %4254 = vmatprep.subr.bf16.mxu1 %v5580_v38  ;;  %v5668_v37 = vld [vmem:[%s8023_s1 + $0x6e0] ss:$16 sps:$4 sm:$0xff]   ;;  %v5671_v38 = vld [vmem:[%s8023_s1 + $0x6e8] ss:$16 sps:$4 sm:$0xff]  }
  0xa7   : > { %3868 = vmatpush1.bf16.msra.mxu0 %v5575_v39  ;;  %4255 = vmatpush1.bf16.msra.mxu1 %v5578_v40  ;;  %v5676_v39 = vld [vmem:[%s8023_s1 + $0x704] ss:$16 sps:$4 sm:$0xff]   ;;  %v5679_v40 = vld [vmem:[%s8023_s1 + $0x70c] ss:$16 sps:$4 sm:$0xff]  }
  0xa8   : > { %3869 = vmatprep.subr.bf16.mxu0 %v5583_v41  ;;  %4256 = vmatprep.subr.bf16.mxu1 %v5586_v42  ;;  %v5674_v41 = vld [vmem:[%s8023_s1 + $0x700] ss:$16 sps:$4 sm:$0xff]   ;;  %v5677_v42 = vld [vmem:[%s8023_s1 + $0x708] ss:$16 sps:$4 sm:$0xff]  }
  0xab   : > { %3870 = vmatpush1.bf16.msra.mxu0 %v5581_v43  ;;  %4257 = vmatpush1.bf16.msra.mxu1 %v5584_v44  ;;  %v5682_v43 = vld [vmem:[%s8023_s1 + $0x724] ss:$16 sps:$4 sm:$0xff]   ;;  %v5685_v44 = vld [vmem:[%s8023_s1 + $0x72c] ss:$16 sps:$4 sm:$0xff]  }
  0xac   : > { %3871 = vmatprep.subr.bf16.mxu0 %v5589_v45  ;;  %4258 = vmatprep.subr.bf16.mxu1 %v5592_v46  ;;  %v5680_v45 = vld [vmem:[%s8023_s1 + $0x720] ss:$16 sps:$4 sm:$0xff]   ;;  %v5683_v46 = vld [vmem:[%s8023_s1 + $0x728] ss:$16 sps:$4 sm:$0xff]  }
  0xaf   : > { %3872 = vmatpush1.bf16.msra.mxu0 %v5587_v47  ;;  %4259 = vmatpush1.bf16.msra.mxu1 %v5590_v48  ;;  %v5688_v47 = vld [vmem:[%s8023_s1 + $0x744] ss:$16 sps:$4 sm:$0xff]   ;;  %v5691_v48 = vld [vmem:[%s8023_s1 + $0x74c] ss:$16 sps:$4 sm:$0xff]  }
  0xb0   : > { %3873 = vmatprep.subr.bf16.mxu0 %v5595_v49  ;;  %4260 = vmatprep.subr.bf16.mxu1 %v5598_v50  ;;  %v5686_v49 = vld [vmem:[%s8023_s1 + $0x740] ss:$16 sps:$4 sm:$0xff]   ;;  %v5689_v50 = vld [vmem:[%s8023_s1 + $0x748] ss:$16 sps:$4 sm:$0xff]  }
  0xb3   : > { %3874 = vmatpush1.bf16.msra.mxu0 %v5593_v51  ;;  %4261 = vmatpush1.bf16.msra.mxu1 %v5596_v52  ;;  %v5694_v51 = vld [vmem:[%s8023_s1 + $0x764] ss:$16 sps:$4 sm:$0xff]   ;;  %v5697_v52 = vld [vmem:[%s8023_s1 + $0x76c] ss:$16 sps:$4 sm:$0xff]  }
  0xb4   : > { %3875 = vmatprep.subr.bf16.mxu0 %v5601_v53  ;;  %4262 = vmatprep.subr.bf16.mxu1 %v5604_v54  ;;  %v5692_v53 = vld [vmem:[%s8023_s1 + $0x760] ss:$16 sps:$4 sm:$0xff]   ;;  %v5695_v54 = vld [vmem:[%s8023_s1 + $0x768] ss:$16 sps:$4 sm:$0xff]  }
  0xb7   : > { %3876 = vmatpush1.bf16.msra.mxu0 %v5599_v55  ;;  %4263 = vmatpush1.bf16.msra.mxu1 %v5602_v56  ;;  %v5700_v55 = vld [vmem:[%s8023_s1 + $0x784] ss:$16 sps:$4 sm:$0xff]   ;;  %v5703_v56 = vld [vmem:[%s8023_s1 + $0x78c] ss:$16 sps:$4 sm:$0xff]  }
  0xb8   : > { %3877 = vmatprep.subr.bf16.mxu0 %v5607_v57  ;;  %4264 = vmatprep.subr.bf16.mxu1 %v5610_v58  ;;  %v5698_v57 = vld [vmem:[%s8023_s1 + $0x780] ss:$16 sps:$4 sm:$0xff]   ;;  %v5701_v58 = vld [vmem:[%s8023_s1 + $0x788] ss:$16 sps:$4 sm:$0xff]  }
  0xbb   : > { %3878 = vmatpush1.bf16.msra.mxu0 %v5605_v59  ;;  %4265 = vmatpush1.bf16.msra.mxu1 %v5608_v60  ;;  %v5706_v59 = vld [vmem:[%s8023_s1 + $0x7a4] ss:$16 sps:$4 sm:$0xff]   ;;  %v5709_v60 = vld [vmem:[%s8023_s1 + $0x7ac] ss:$16 sps:$4 sm:$0xff]  }
  0xbc   : > { %3879 = vmatprep.subr.bf16.mxu0 %v5613_v61  ;;  %4266 = vmatprep.subr.bf16.mxu1 %v5616_v62  ;;  %v5704_v61 = vld [vmem:[%s8023_s1 + $0x7a0] ss:$16 sps:$4 sm:$0xff]   ;;  %v5707_v62 = vld [vmem:[%s8023_s1 + $0x7a8] ss:$16 sps:$4 sm:$0xff]  }
  0xbf   : > { %3880 = vmatpush1.bf16.msra.mxu0 %v5611_v63  ;;  %4267 = vmatpush1.bf16.msra.mxu1 %v5614_v0  ;;  %v5712_v63 = vld [vmem:[%s8023_s1 + $0x7c4] ss:$16 sps:$4 sm:$0xff]   ;;  %v5715_v0 = vld [vmem:[%s8023_s1 + $0x7cc] ss:$16 sps:$4 sm:$0xff]  }
  0xc0   : > { %3881 = vmatprep.subr.bf16.mxu0 %v5619_v1  ;;  %4268 = vmatprep.subr.bf16.mxu1 %v5622_v2  ;;  %v5710_v1 = vld [vmem:[%s8023_s1 + $0x7c0] ss:$16 sps:$4 sm:$0xff]   ;;  %v5713_v2 = vld [vmem:[%s8023_s1 + $0x7c8] ss:$16 sps:$4 sm:$0xff]  }
  0xc3   : > { %3882 = vmatpush1.bf16.msra.mxu0 %v5617_v3  ;;  %4269 = vmatpush1.bf16.msra.mxu1 %v5620_v4  ;;  %v5718_v3 = vld [vmem:[%s8023_s1 + $0x7e4] ss:$16 sps:$4 sm:$0xff]   ;;  %v5721_v4 = vld [vmem:[%s8023_s1 + $0x7ec] ss:$16 sps:$4 sm:$0xff]  }
  0xc4   : > { %3894 = vmatprep.subr.bf16.mxu0 %v5628_v5  ;;  %4281 = vmatprep.subr.bf16.mxu1 %v5631_v6  ;;  %v5716_v5 = vld [vmem:[%s8023_s1 + $0x7e0] ss:$16 sps:$4 sm:$0xff]   ;;  %v5719_v6 = vld [vmem:[%s8023_s1 + $0x7e8] ss:$16 sps:$4 sm:$0xff]  }
  0xc6   : > { %3884 = vmatmul.mubr.bf16.vlgmr.msra.gmra.mrb[0].mxu0 %v5623_v7  ;;  %4271 = vmatmul.mubr.bf16.vlgmr.msra.gmra.mrb[0].mxu1 %v5623_v7  ;;  %v5727_v7 = vld [vmem:[%s8023_s1 + $0x804] ss:$16 sps:$4 sm:$0xff]  }
  0xc7   : > { %3895 = vmatpush1.bf16.msra.mxu0 %v5626_v8  ;;  %4282 = vmatpush1.bf16.msra.mxu1 %v5629_v9  ;;  %v5730_v8 = vld [vmem:[%s8023_s1 + $0x80c] ss:$16 sps:$4 sm:$0xff]   ;;  %v5722_v9 = vld [vmem:[%s6399_s13 + $0x18] ss:$72 sps:$4 sm:$0xff]  }
  0xc8   : > { %3896 = vmatprep.subr.bf16.mxu0 %v5634_v10  ;;  %4283 = vmatprep.subr.bf16.mxu1 %v5637_v11  ;;  %v5725_v10 = vld [vmem:[%s8023_s1 + $0x800] ss:$16 sps:$4 sm:$0xff]   ;;  %v5728_v11 = vld [vmem:[%s8023_s1 + $0x808] ss:$16 sps:$4 sm:$0xff]  }
  0xc9   : > { %3926 = vmatprep.mubr.bf16.mxu0 %v5724_v12  ;;  %4313 = vmatprep.mubr.bf16.mxu1 %v5724_v12  ;;  %v5733_v12 = vld [vmem:[%s8023_s1 + $0x824] ss:$16 sps:$4 sm:$0xff]  }
  0xcb   : > { %3897 = vmatpush1.bf16.msra.mxu0 %v5632_v13  ;;  %4284 = vmatpush1.bf16.msra.mxu1 %v5635_v14  ;;  %v5736_v13 = vld [vmem:[%s8023_s1 + $0x82c] ss:$16 sps:$4 sm:$0xff]  }
  0xcc   : > { %3898 = vmatprep.subr.bf16.mxu0 %v5640_v15  ;;  %4285 = vmatprep.subr.bf16.mxu1 %v5643_v16  ;;  %v5823_v14 = vld [vmem:[%s6399_s13 + $0x24] ss:$72 sps:$4 sm:$0xff]   ;;  %v5731_v15 = vld [vmem:[%s8023_s1 + $0x820] ss:$16 sps:$4 sm:$0xff]   ;;  %v5734_v16 = vld [vmem:[%s8023_s1 + $0x828] ss:$16 sps:$4 sm:$0xff]  }
  0xcf   : > { %3899 = vmatpush1.bf16.msra.mxu0 %v5638_v17  ;;  %4286 = vmatpush1.bf16.msra.mxu1 %v5641_v18  ;;  %v5739_v17 = vld [vmem:[%s8023_s1 + $0x844] ss:$16 sps:$4 sm:$0xff]   ;;  %v5742_v18 = vld [vmem:[%s8023_s1 + $0x84c] ss:$16 sps:$4 sm:$0xff]  }
  0xd0   : > { %3900 = vmatprep.subr.bf16.mxu0 %v5646_v19  ;;  %4287 = vmatprep.subr.bf16.mxu1 %v5649_v20  ;;  %v5737_v19 = vld [vmem:[%s8023_s1 + $0x840] ss:$16 sps:$4 sm:$0xff]   ;;  %v5740_v20 = vld [vmem:[%s8023_s1 + $0x848] ss:$16 sps:$4 sm:$0xff]  }
  0xd3   : > { %3901 = vmatpush1.bf16.msra.mxu0 %v5644_v21  ;;  %4288 = vmatpush1.bf16.msra.mxu1 %v5647_v22  ;;  %v5745_v21 = vld [vmem:[%s8023_s1 + $0x864] ss:$16 sps:$4 sm:$0xff]   ;;  %v5748_v22 = vld [vmem:[%s8023_s1 + $0x86c] ss:$16 sps:$4 sm:$0xff]  }
  0xd4   : > { %3902 = vmatprep.subr.bf16.mxu0 %v5652_v23  ;;  %4289 = vmatprep.subr.bf16.mxu1 %v5655_v24  ;;  %v5743_v23 = vld [vmem:[%s8023_s1 + $0x860] ss:$16 sps:$4 sm:$0xff]   ;;  %v5746_v24 = vld [vmem:[%s8023_s1 + $0x868] ss:$16 sps:$4 sm:$0xff]  }
  0xd7   : > { %3903 = vmatpush1.bf16.msra.mxu0 %v5650_v25  ;;  %4290 = vmatpush1.bf16.msra.mxu1 %v5653_v26  ;;  %v5751_v25 = vld [vmem:[%s8023_s1 + $0x884] ss:$16 sps:$4 sm:$0xff]   ;;  %v5754_v26 = vld [vmem:[%s8023_s1 + $0x88c] ss:$16 sps:$4 sm:$0xff]  }
  0xd8   : > { %3904 = vmatprep.subr.bf16.mxu0 %v5658_v27  ;;  %4291 = vmatprep.subr.bf16.mxu1 %v5661_v28  ;;  %v5749_v27 = vld [vmem:[%s8023_s1 + $0x880] ss:$16 sps:$4 sm:$0xff]   ;;  %v5752_v28 = vld [vmem:[%s8023_s1 + $0x888] ss:$16 sps:$4 sm:$0xff]  }
  0xdb   : > { %3905 = vmatpush1.bf16.msra.mxu0 %v5656_v29  ;;  %4292 = vmatpush1.bf16.msra.mxu1 %v5659_v30  ;;  %v5757_v29 = vld [vmem:[%s8023_s1 + $0x8a4] ss:$16 sps:$4 sm:$0xff]   ;;  %v5760_v30 = vld [vmem:[%s8023_s1 + $0x8ac] ss:$16 sps:$4 sm:$0xff]  }
  0xdc   : > { %3906 = vmatprep.subr.bf16.mxu0 %v5664_v31  ;;  %4293 = vmatprep.subr.bf16.mxu1 %v5667_v32  ;;  %v5755_v31 = vld [vmem:[%s8023_s1 + $0x8a0] ss:$16 sps:$4 sm:$0xff]   ;;  %v5758_v32 = vld [vmem:[%s8023_s1 + $0x8a8] ss:$16 sps:$4 sm:$0xff]  }
  0xdf   : > { %3907 = vmatpush1.bf16.msra.mxu0 %v5662_v33  ;;  %4294 = vmatpush1.bf16.msra.mxu1 %v5665_v34  ;;  %v5763_v33 = vld [vmem:[%s8023_s1 + $0x8c4] ss:$16 sps:$4 sm:$0xff]   ;;  %v5766_v34 = vld [vmem:[%s8023_s1 + $0x8cc] ss:$16 sps:$4 sm:$0xff]  }
  0xe0   : > { %3908 = vmatprep.subr.bf16.mxu0 %v5670_v35  ;;  %4295 = vmatprep.subr.bf16.mxu1 %v5673_v36  ;;  %v5761_v35 = vld [vmem:[%s8023_s1 + $0x8c0] ss:$16 sps:$4 sm:$0xff]   ;;  %v5764_v36 = vld [vmem:[%s8023_s1 + $0x8c8] ss:$16 sps:$4 sm:$0xff]  }
  0xe3   : > { %3909 = vmatpush1.bf16.msra.mxu0 %v5668_v37  ;;  %4296 = vmatpush1.bf16.msra.mxu1 %v5671_v38  ;;  %v5769_v37 = vld [vmem:[%s8023_s1 + $0x8e4] ss:$16 sps:$4 sm:$0xff]   ;;  %v5772_v38 = vld [vmem:[%s8023_s1 + $0x8ec] ss:$16 sps:$4 sm:$0xff]  }
  0xe4   : > { %3910 = vmatprep.subr.bf16.mxu0 %v5676_v39  ;;  %4297 = vmatprep.subr.bf16.mxu1 %v5679_v40  ;;  %v5767_v39 = vld [vmem:[%s8023_s1 + $0x8e0] ss:$16 sps:$4 sm:$0xff]   ;;  %v5770_v40 = vld [vmem:[%s8023_s1 + $0x8e8] ss:$16 sps:$4 sm:$0xff]  }
  0xe7   : > { %3911 = vmatpush1.bf16.msra.mxu0 %v5674_v41  ;;  %4298 = vmatpush1.bf16.msra.mxu1 %v5677_v42  ;;  %v5775_v41 = vld [vmem:[%s8023_s1 + $0x904] ss:$16 sps:$4 sm:$0xff]   ;;  %v5778_v42 = vld [vmem:[%s8023_s1 + $0x90c] ss:$16 sps:$4 sm:$0xff]  }
  0xe8   : > { %3912 = vmatprep.subr.bf16.mxu0 %v5682_v43  ;;  %4299 = vmatprep.subr.bf16.mxu1 %v5685_v44  ;;  %v5773_v43 = vld [vmem:[%s8023_s1 + $0x900] ss:$16 sps:$4 sm:$0xff]   ;;  %v5776_v44 = vld [vmem:[%s8023_s1 + $0x908] ss:$16 sps:$4 sm:$0xff]  }
  0xeb   : > { %3913 = vmatpush1.bf16.msra.mxu0 %v5680_v45  ;;  %4300 = vmatpush1.bf16.msra.mxu1 %v5683_v46  ;;  %v5781_v45 = vld [vmem:[%s8023_s1 + $0x924] ss:$16 sps:$4 sm:$0xff]   ;;  %v5784_v46 = vld [vmem:[%s8023_s1 + $0x92c] ss:$16 sps:$4 sm:$0xff]  }
  0xec   : > { %3914 = vmatprep.subr.bf16.mxu0 %v5688_v47  ;;  %4301 = vmatprep.subr.bf16.mxu1 %v5691_v48  ;;  %v5779_v47 = vld [vmem:[%s8023_s1 + $0x920] ss:$16 sps:$4 sm:$0xff]   ;;  %v5782_v48 = vld [vmem:[%s8023_s1 + $0x928] ss:$16 sps:$4 sm:$0xff]  }
  0xef   : > { %3915 = vmatpush1.bf16.msra.mxu0 %v5686_v49  ;;  %4302 = vmatpush1.bf16.msra.mxu1 %v5689_v50  ;;  %v5787_v49 = vld [vmem:[%s8023_s1 + $0x944] ss:$16 sps:$4 sm:$0xff]   ;;  %v5790_v50 = vld [vmem:[%s8023_s1 + $0x94c] ss:$16 sps:$4 sm:$0xff]  }
  0xf0   : > { %3916 = vmatprep.subr.bf16.mxu0 %v5694_v51  ;;  %4303 = vmatprep.subr.bf16.mxu1 %v5697_v52  ;;  %v5785_v51 = vld [vmem:[%s8023_s1 + $0x940] ss:$16 sps:$4 sm:$0xff]   ;;  %v5788_v52 = vld [vmem:[%s8023_s1 + $0x948] ss:$16 sps:$4 sm:$0xff]  }
  0xf3   : > { %3917 = vmatpush1.bf16.msra.mxu0 %v5692_v53  ;;  %4304 = vmatpush1.bf16.msra.mxu1 %v5695_v54  ;;  %v5793_v53 = vld [vmem:[%s8023_s1 + $0x964] ss:$16 sps:$4 sm:$0xff]   ;;  %v5796_v54 = vld [vmem:[%s8023_s1 + $0x96c] ss:$16 sps:$4 sm:$0xff]  }
  0xf4   : > { %3918 = vmatprep.subr.bf16.mxu0 %v5700_v55  ;;  %4305 = vmatprep.subr.bf16.mxu1 %v5703_v56  ;;  %v5791_v55 = vld [vmem:[%s8023_s1 + $0x960] ss:$16 sps:$4 sm:$0xff]   ;;  %v5794_v56 = vld [vmem:[%s8023_s1 + $0x968] ss:$16 sps:$4 sm:$0xff]  }
  0xf7   : > { %3919 = vmatpush1.bf16.msra.mxu0 %v5698_v57  ;;  %4306 = vmatpush1.bf16.msra.mxu1 %v5701_v58  ;;  %v5799_v57 = vld [vmem:[%s8023_s1 + $0x984] ss:$16 sps:$4 sm:$0xff]   ;;  %v5802_v58 = vld [vmem:[%s8023_s1 + $0x98c] ss:$16 sps:$4 sm:$0xff]  }
  0xf8   : > { %3920 = vmatprep.subr.bf16.mxu0 %v5706_v59  ;;  %4307 = vmatprep.subr.bf16.mxu1 %v5709_v60  ;;  %v5797_v59 = vld [vmem:[%s8023_s1 + $0x980] ss:$16 sps:$4 sm:$0xff]   ;;  %v5800_v60 = vld [vmem:[%s8023_s1 + $0x988] ss:$16 sps:$4 sm:$0xff]  }
  0xfb   : > { %3921 = vmatpush1.bf16.msra.mxu0 %v5704_v61  ;;  %4308 = vmatpush1.bf16.msra.mxu1 %v5707_v62  ;;  %v5805_v61 = vld [vmem:[%s8023_s1 + $0x9a4] ss:$16 sps:$4 sm:$0xff]   ;;  %v5808_v62 = vld [vmem:[%s8023_s1 + $0x9ac] ss:$16 sps:$4 sm:$0xff]  }
  0xfc   : > { %3922 = vmatprep.subr.bf16.mxu0 %v5712_v63  ;;  %4309 = vmatprep.subr.bf16.mxu1 %v5715_v0  ;;  %v5803_v63 = vld [vmem:[%s8023_s1 + $0x9a0] ss:$16 sps:$4 sm:$0xff]   ;;  %v5806_v0 = vld [vmem:[%s8023_s1 + $0x9a8] ss:$16 sps:$4 sm:$0xff]  }
  0xff   : > { %3923 = vmatpush1.bf16.msra.mxu0 %v5710_v1  ;;  %4310 = vmatpush1.bf16.msra.mxu1 %v5713_v2  ;;  %v5811_v1 = vld [vmem:[%s8023_s1 + $0x9c4] ss:$16 sps:$4 sm:$0xff]   ;;  %v5814_v2 = vld [vmem:[%s8023_s1 + $0x9cc] ss:$16 sps:$4 sm:$0xff]  }
 0x100   : > { %3924 = vmatprep.subr.bf16.mxu0 %v5718_v3  ;;  %4311 = vmatprep.subr.bf16.mxu1 %v5721_v4  ;;  %v5809_v3 = vld [vmem:[%s8023_s1 + $0x9c0] ss:$16 sps:$4 sm:$0xff]   ;;  %v5812_v4 = vld [vmem:[%s8023_s1 + $0x9c8] ss:$16 sps:$4 sm:$0xff]  }
 0x103   : > { %3925 = vmatpush1.bf16.msra.mxu0 %v5716_v5  ;;  %4312 = vmatpush1.bf16.msra.mxu1 %v5719_v6  ;;  %v5817_v5 = vld [vmem:[%s8023_s1 + $0x9e4] ss:$16 sps:$4 sm:$0xff]   ;;  %v5820_v6 = vld [vmem:[%s8023_s1 + $0x9ec] ss:$16 sps:$4 sm:$0xff]  }
 0x104   : > { %3937 = vmatprep.subr.bf16.mxu0 %v5727_v7  ;;  %4324 = vmatprep.subr.bf16.mxu1 %v5730_v8  ;;  %v5815_v7 = vld [vmem:[%s8023_s1 + $0x9e0] ss:$16 sps:$4 sm:$0xff]   ;;  %v5818_v8 = vld [vmem:[%s8023_s1 + $0x9e8] ss:$16 sps:$4 sm:$0xff]  }
 0x106   : > { %3927 = vmatmul.mubr.bf16.vlgmr.msra.gmra.mrb[0].mxu0 %v5722_v9  ;;  %4314 = vmatmul.mubr.bf16.vlgmr.msra.gmra.mrb[0].mxu1 %v5722_v9  ;;  %v5821_v9 = vld [vmem:[%s6399_s13 + $0x20] ss:$72 sps:$4 sm:$0xff]  }
 0x107   : > { %3938 = vmatpush1.bf16.msra.mxu0 %v5725_v10  ;;  %4325 = vmatpush1.bf16.msra.mxu1 %v5728_v11  ;;  %v5826_v10 = vld [vmem:[%s8023_s1 + $0xa04] ss:$16 sps:$4 sm:$0xff]   ;;  %v5829_v11 = vld [vmem:[%s8023_s1 + $0xa0c] ss:$16 sps:$4 sm:$0xff]  }
 0x108   : > { %3939 = vmatprep.subr.bf16.mxu0 %v5733_v12  ;;  %4326 = vmatprep.subr.bf16.mxu1 %v5736_v13  ;;  %v5824_v12 = vld [vmem:[%s8023_s1 + $0xa00] ss:$16 sps:$4 sm:$0xff]   ;;  %v5827_v13 = vld [vmem:[%s8023_s1 + $0xa08] ss:$16 sps:$4 sm:$0xff]  }
 0x109   : > { %3969 = vmatprep.mubr.bf16.mxu0 %v5823_v14  ;;  %4356 = vmatprep.mubr.bf16.mxu1 %v5823_v14  ;;  %v5832_v14 = vld [vmem:[%s8023_s1 + $0xa24] ss:$16 sps:$4 sm:$0xff]  }
 0x10b   : > { %3940 = vmatpush1.bf16.msra.mxu0 %v5731_v15  ;;  %4327 = vmatpush1.bf16.msra.mxu1 %v5734_v16  ;;  %v5835_v15 = vld [vmem:[%s8023_s1 + $0xa2c] ss:$16 sps:$4 sm:$0xff]  }
 0x10c   : > { %3941 = vmatprep.subr.bf16.mxu0 %v5739_v17  ;;  %4328 = vmatprep.subr.bf16.mxu1 %v5742_v18  ;;  %v5922_v16 = vld [vmem:[%s6399_s13 + $0x2c] ss:$72 sps:$4 sm:$0xff]   ;;  %v5830_v17 = vld [vmem:[%s8023_s1 + $0xa20] ss:$16 sps:$4 sm:$0xff]   ;;  %v5833_v18 = vld [vmem:[%s8023_s1 + $0xa28] ss:$16 sps:$4 sm:$0xff]  }
 0x10f   : > { %3942 = vmatpush1.bf16.msra.mxu0 %v5737_v19  ;;  %4329 = vmatpush1.bf16.msra.mxu1 %v5740_v20  ;;  %v5838_v19 = vld [vmem:[%s8023_s1 + $0xa44] ss:$16 sps:$4 sm:$0xff]   ;;  %v5841_v20 = vld [vmem:[%s8023_s1 + $0xa4c] ss:$16 sps:$4 sm:$0xff]  }
 0x110   : > { %3943 = vmatprep.subr.bf16.mxu0 %v5745_v21  ;;  %4330 = vmatprep.subr.bf16.mxu1 %v5748_v22  ;;  %v5836_v21 = vld [vmem:[%s8023_s1 + $0xa40] ss:$16 sps:$4 sm:$0xff]   ;;  %v5839_v22 = vld [vmem:[%s8023_s1 + $0xa48] ss:$16 sps:$4 sm:$0xff]  }
 0x113   : > { %3944 = vmatpush1.bf16.msra.mxu0 %v5743_v23  ;;  %4331 = vmatpush1.bf16.msra.mxu1 %v5746_v24  ;;  %v5844_v23 = vld [vmem:[%s8023_s1 + $0xa64] ss:$16 sps:$4 sm:$0xff]   ;;  %v5847_v24 = vld [vmem:[%s8023_s1 + $0xa6c] ss:$16 sps:$4 sm:$0xff]  }
 0x114   : > { %3945 = vmatprep.subr.bf16.mxu0 %v5751_v25  ;;  %4332 = vmatprep.subr.bf16.mxu1 %v5754_v26  ;;  %v5842_v25 = vld [vmem:[%s8023_s1 + $0xa60] ss:$16 sps:$4 sm:$0xff]   ;;  %v5845_v26 = vld [vmem:[%s8023_s1 + $0xa68] ss:$16 sps:$4 sm:$0xff]  }
 0x117   : > { %3946 = vmatpush1.bf16.msra.mxu0 %v5749_v27  ;;  %4333 = vmatpush1.bf16.msra.mxu1 %v5752_v28  ;;  %v5850_v27 = vld [vmem:[%s8023_s1 + $0xa84] ss:$16 sps:$4 sm:$0xff]   ;;  %v5853_v28 = vld [vmem:[%s8023_s1 + $0xa8c] ss:$16 sps:$4 sm:$0xff]  }
 0x118   : > { %3947 = vmatprep.subr.bf16.mxu0 %v5757_v29  ;;  %4334 = vmatprep.subr.bf16.mxu1 %v5760_v30  ;;  %v5848_v29 = vld [vmem:[%s8023_s1 + $0xa80] ss:$16 sps:$4 sm:$0xff]   ;;  %v5851_v30 = vld [vmem:[%s8023_s1 + $0xa88] ss:$16 sps:$4 sm:$0xff]  }
 0x11b   : > { %3948 = vmatpush1.bf16.msra.mxu0 %v5755_v31  ;;  %4335 = vmatpush1.bf16.msra.mxu1 %v5758_v32  ;;  %v5856_v31 = vld [vmem:[%s8023_s1 + $0xaa4] ss:$16 sps:$4 sm:$0xff]   ;;  %v5859_v32 = vld [vmem:[%s8023_s1 + $0xaac] ss:$16 sps:$4 sm:$0xff]  }
 0x11c   : > { %3949 = vmatprep.subr.bf16.mxu0 %v5763_v33  ;;  %4336 = vmatprep.subr.bf16.mxu1 %v5766_v34  ;;  %v5854_v33 = vld [vmem:[%s8023_s1 + $0xaa0] ss:$16 sps:$4 sm:$0xff]   ;;  %v5857_v34 = vld [vmem:[%s8023_s1 + $0xaa8] ss:$16 sps:$4 sm:$0xff]  }
 0x11f   : > { %3950 = vmatpush1.bf16.msra.mxu0 %v5761_v35  ;;  %4337 = vmatpush1.bf16.msra.mxu1 %v5764_v36  ;;  %v5862_v35 = vld [vmem:[%s8023_s1 + $0xac4] ss:$16 sps:$4 sm:$0xff]   ;;  %v5865_v36 = vld [vmem:[%s8023_s1 + $0xacc] ss:$16 sps:$4 sm:$0xff]  }
 0x120   : > { %3951 = vmatprep.subr.bf16.mxu0 %v5769_v37  ;;  %4338 = vmatprep.subr.bf16.mxu1 %v5772_v38  ;;  %v5860_v37 = vld [vmem:[%s8023_s1 + $0xac0] ss:$16 sps:$4 sm:$0xff]   ;;  %v5863_v38 = vld [vmem:[%s8023_s1 + $0xac8] ss:$16 sps:$4 sm:$0xff]  }
 0x123   : > { %3952 = vmatpush1.bf16.msra.mxu0 %v5767_v39  ;;  %4339 = vmatpush1.bf16.msra.mxu1 %v5770_v40  ;;  %v5868_v39 = vld [vmem:[%s8023_s1 + $0xae4] ss:$16 sps:$4 sm:$0xff]   ;;  %v5871_v40 = vld [vmem:[%s8023_s1 + $0xaec] ss:$16 sps:$4 sm:$0xff]  }
 0x124   : > { %3953 = vmatprep.subr.bf16.mxu0 %v5775_v41  ;;  %4340 = vmatprep.subr.bf16.mxu1 %v5778_v42  ;;  %v5866_v41 = vld [vmem:[%s8023_s1 + $0xae0] ss:$16 sps:$4 sm:$0xff]   ;;  %v5869_v42 = vld [vmem:[%s8023_s1 + $0xae8] ss:$16 sps:$4 sm:$0xff]  }
 0x127   : > { %3954 = vmatpush1.bf16.msra.mxu0 %v5773_v43  ;;  %4341 = vmatpush1.bf16.msra.mxu1 %v5776_v44  ;;  %v5874_v43 = vld [vmem:[%s8023_s1 + $0xb04] ss:$16 sps:$4 sm:$0xff]   ;;  %v5877_v44 = vld [vmem:[%s8023_s1 + $0xb0c] ss:$16 sps:$4 sm:$0xff]  }
 0x128   : > { %3955 = vmatprep.subr.bf16.mxu0 %v5781_v45  ;;  %4342 = vmatprep.subr.bf16.mxu1 %v5784_v46  ;;  %v5872_v45 = vld [vmem:[%s8023_s1 + $0xb00] ss:$16 sps:$4 sm:$0xff]   ;;  %v5875_v46 = vld [vmem:[%s8023_s1 + $0xb08] ss:$16 sps:$4 sm:$0xff]  }
 0x12b   : > { %3956 = vmatpush1.bf16.msra.mxu0 %v5779_v47  ;;  %4343 = vmatpush1.bf16.msra.mxu1 %v5782_v48  ;;  %v5880_v47 = vld [vmem:[%s8023_s1 + $0xb24] ss:$16 sps:$4 sm:$0xff]   ;;  %v5883_v48 = vld [vmem:[%s8023_s1 + $0xb2c] ss:$16 sps:$4 sm:$0xff]  }
 0x12c   : > { %3957 = vmatprep.subr.bf16.mxu0 %v5787_v49  ;;  %4344 = vmatprep.subr.bf16.mxu1 %v5790_v50  ;;  %v5878_v49 = vld [vmem:[%s8023_s1 + $0xb20] ss:$16 sps:$4 sm:$0xff]   ;;  %v5881_v50 = vld [vmem:[%s8023_s1 + $0xb28] ss:$16 sps:$4 sm:$0xff]  }
 0x12f   : > { %3958 = vmatpush1.bf16.msra.mxu0 %v5785_v51  ;;  %4345 = vmatpush1.bf16.msra.mxu1 %v5788_v52  ;;  %v5886_v51 = vld [vmem:[%s8023_s1 + $0xb44] ss:$16 sps:$4 sm:$0xff]   ;;  %v5889_v52 = vld [vmem:[%s8023_s1 + $0xb4c] ss:$16 sps:$4 sm:$0xff]  }
 0x130   : > { %3959 = vmatprep.subr.bf16.mxu0 %v5793_v53  ;;  %4346 = vmatprep.subr.bf16.mxu1 %v5796_v54  ;;  %v5884_v53 = vld [vmem:[%s8023_s1 + $0xb40] ss:$16 sps:$4 sm:$0xff]   ;;  %v5887_v54 = vld [vmem:[%s8023_s1 + $0xb48] ss:$16 sps:$4 sm:$0xff]  }
 0x133   : > { %3960 = vmatpush1.bf16.msra.mxu0 %v5791_v55  ;;  %4347 = vmatpush1.bf16.msra.mxu1 %v5794_v56  ;;  %v5892_v55 = vld [vmem:[%s8023_s1 + $0xb64] ss:$16 sps:$4 sm:$0xff]   ;;  %v5895_v56 = vld [vmem:[%s8023_s1 + $0xb6c] ss:$16 sps:$4 sm:$0xff]  }
 0x134   : > { %3961 = vmatprep.subr.bf16.mxu0 %v5799_v57  ;;  %4348 = vmatprep.subr.bf16.mxu1 %v5802_v58  ;;  %v5890_v57 = vld [vmem:[%s8023_s1 + $0xb60] ss:$16 sps:$4 sm:$0xff]   ;;  %v5893_v58 = vld [vmem:[%s8023_s1 + $0xb68] ss:$16 sps:$4 sm:$0xff]  }
 0x137   : > { %3962 = vmatpush1.bf16.msra.mxu0 %v5797_v59  ;;  %4349 = vmatpush1.bf16.msra.mxu1 %v5800_v60  ;;  %v5898_v59 = vld [vmem:[%s8023_s1 + $0xb84] ss:$16 sps:$4 sm:$0xff]   ;;  %v5901_v60 = vld [vmem:[%s8023_s1 + $0xb8c] ss:$16 sps:$4 sm:$0xff]  }
 0x138   : > { %3963 = vmatprep.subr.bf16.mxu0 %v5805_v61  ;;  %4350 = vmatprep.subr.bf16.mxu1 %v5808_v62  ;;  %v5896_v61 = vld [vmem:[%s8023_s1 + $0xb80] ss:$16 sps:$4 sm:$0xff]   ;;  %v5899_v62 = vld [vmem:[%s8023_s1 + $0xb88] ss:$16 sps:$4 sm:$0xff]  }
 0x13b   : > { %3964 = vmatpush1.bf16.msra.mxu0 %v5803_v63  ;;  %4351 = vmatpush1.bf16.msra.mxu1 %v5806_v0  ;;  %v5904_v63 = vld [vmem:[%s8023_s1 + $0xba4] ss:$16 sps:$4 sm:$0xff]   ;;  %v5907_v0 = vld [vmem:[%s8023_s1 + $0xbac] ss:$16 sps:$4 sm:$0xff]  }
 0x13c   : > { %3965 = vmatprep.subr.bf16.mxu0 %v5811_v1  ;;  %4352 = vmatprep.subr.bf16.mxu1 %v5814_v2  ;;  %v5902_v1 = vld [vmem:[%s8023_s1 + $0xba0] ss:$16 sps:$4 sm:$0xff]   ;;  %v5905_v2 = vld [vmem:[%s8023_s1 + $0xba8] ss:$16 sps:$4 sm:$0xff]  }
 0x13f   : > { %3966 = vmatpush1.bf16.msra.mxu0 %v5809_v3  ;;  %4353 = vmatpush1.bf16.msra.mxu1 %v5812_v4  ;;  %v5910_v3 = vld [vmem:[%s8023_s1 + $0xbc4] ss:$16 sps:$4 sm:$0xff]   ;;  %v5913_v4 = vld [vmem:[%s8023_s1 + $0xbcc] ss:$16 sps:$4 sm:$0xff]  }
 0x140   : > { %3967 = vmatprep.subr.bf16.mxu0 %v5817_v5  ;;  %4354 = vmatprep.subr.bf16.mxu1 %v5820_v6  ;;  %v5908_v5 = vld [vmem:[%s8023_s1 + $0xbc0] ss:$16 sps:$4 sm:$0xff]   ;;  %v5911_v6 = vld [vmem:[%s8023_s1 + $0xbc8] ss:$16 sps:$4 sm:$0xff]  }
 0x143   : > { %3968 = vmatpush1.bf16.msra.mxu0 %v5815_v7  ;;  %4355 = vmatpush1.bf16.msra.mxu1 %v5818_v8  ;;  %v5916_v7 = vld [vmem:[%s8023_s1 + $0xbe4] ss:$16 sps:$4 sm:$0xff]   ;;  %v5919_v8 = vld [vmem:[%s8023_s1 + $0xbec] ss:$16 sps:$4 sm:$0xff]  }
 0x144   : > { %3980 = vmatprep.subr.bf16.mxu0 %v5826_v10  ;;  %4367 = vmatprep.subr.bf16.mxu1 %v5829_v11  ;;  %v5917_v10 = vld [vmem:[%s8023_s1 + $0xbe8] ss:$16 sps:$4 sm:$0xff]   ;;  %v5925_v11 = vld [vmem:[%s8023_s1 + $0xc04] ss:$16 sps:$4 sm:$0xff]  }
 0x146   : > { %3970 = vmatmul.mubr.bf16.vlgmr.msra.gmra.mrb[0].mxu0 %v5821_v9  ;;  %4357 = vmatmul.mubr.bf16.vlgmr.msra.gmra.mrb[0].mxu1 %v5821_v9  ;;  %v5914_v9 = vld [vmem:[%s8023_s1 + $0xbe0] ss:$16 sps:$4 sm:$0xff]  }
 0x147   : > { %3981 = vmatpush1.bf16.msra.mxu0 %v5824_v12  ;;  %4368 = vmatpush1.bf16.msra.mxu1 %v5827_v13  ;;  %v5928_v12 = vld [vmem:[%s8023_s1 + $0xc0c] ss:$16 sps:$4 sm:$0xff]   ;;  %v5920_v13 = vld [vmem:[%s6399_s13 + $0x28] ss:$72 sps:$4 sm:$0xff]  }
 0x148   : > { %3982 = vmatprep.subr.bf16.mxu0 %v5832_v14  ;;  %4369 = vmatprep.subr.bf16.mxu1 %v5835_v15  ;;  %v5923_v14 = vld [vmem:[%s8023_s1 + $0xc00] ss:$16 sps:$4 sm:$0xff]   ;;  %v5926_v15 = vld [vmem:[%s8023_s1 + $0xc08] ss:$16 sps:$4 sm:$0xff]  }
 0x149   : > { %4012 = vmatprep.mubr.bf16.mxu0 %v5922_v16  ;;  %4399 = vmatprep.mubr.bf16.mxu1 %v5922_v16  ;;  %v5931_v16 = vld [vmem:[%s8023_s1 + $0xc24] ss:$16 sps:$4 sm:$0xff]  }
 0x14b   : > { %3983 = vmatpush1.bf16.msra.mxu0 %v5830_v17  ;;  %4370 = vmatpush1.bf16.msra.mxu1 %v5833_v18  ;;  %v5934_v17 = vld [vmem:[%s8023_s1 + $0xc2c] ss:$16 sps:$4 sm:$0xff]  }
 0x14c   : > { %3984 = vmatprep.subr.bf16.mxu0 %v5838_v19  ;;  %4371 = vmatprep.subr.bf16.mxu1 %v5841_v20  ;;  %v6021_v18 = vld [vmem:[%s6399_s13 + $0x34] ss:$72 sps:$4 sm:$0xff]   ;;  %v5929_v19 = vld [vmem:[%s8023_s1 + $0xc20] ss:$16 sps:$4 sm:$0xff]   ;;  %v5932_v20 = vld [vmem:[%s8023_s1 + $0xc28] ss:$16 sps:$4 sm:$0xff]  }
 0x14f   : > { %3985 = vmatpush1.bf16.msra.mxu0 %v5836_v21  ;;  %4372 = vmatpush1.bf16.msra.mxu1 %v5839_v22  ;;  %v5937_v21 = vld [vmem:[%s8023_s1 + $0xc44] ss:$16 sps:$4 sm:$0xff]   ;;  %v5940_v22 = vld [vmem:[%s8023_s1 + $0xc4c] ss:$16 sps:$4 sm:$0xff]  }
 0x150   : > { %3986 = vmatprep.subr.bf16.mxu0 %v5844_v23  ;;  %4373 = vmatprep.subr.bf16.mxu1 %v5847_v24  ;;  %v5935_v23 = vld [vmem:[%s8023_s1 + $0xc40] ss:$16 sps:$4 sm:$0xff]   ;;  %v5938_v24 = vld [vmem:[%s8023_s1 + $0xc48] ss:$16 sps:$4 sm:$0xff]  }
 0x153   : > { %3987 = vmatpush1.bf16.msra.mxu0 %v5842_v25  ;;  %4374 = vmatpush1.bf16.msra.mxu1 %v5845_v26  ;;  %v5943_v25 = vld [vmem:[%s8023_s1 + $0xc64] ss:$16 sps:$4 sm:$0xff]   ;;  %v5946_v26 = vld [vmem:[%s8023_s1 + $0xc6c] ss:$16 sps:$4 sm:$0xff]  }
 0x154   : > { %3988 = vmatprep.subr.bf16.mxu0 %v5850_v27  ;;  %4375 = vmatprep.subr.bf16.mxu1 %v5853_v28  ;;  %v5941_v27 = vld [vmem:[%s8023_s1 + $0xc60] ss:$16 sps:$4 sm:$0xff]   ;;  %v5944_v28 = vld [vmem:[%s8023_s1 + $0xc68] ss:$16 sps:$4 sm:$0xff]  }
 0x157   : > { %3989 = vmatpush1.bf16.msra.mxu0 %v5848_v29  ;;  %4376 = vmatpush1.bf16.msra.mxu1 %v5851_v30  ;;  %v5949_v29 = vld [vmem:[%s8023_s1 + $0xc84] ss:$16 sps:$4 sm:$0xff]   ;;  %v5952_v30 = vld [vmem:[%s8023_s1 + $0xc8c] ss:$16 sps:$4 sm:$0xff]  }
 0x158   : > { %3990 = vmatprep.subr.bf16.mxu0 %v5856_v31  ;;  %4377 = vmatprep.subr.bf16.mxu1 %v5859_v32  ;;  %v5947_v31 = vld [vmem:[%s8023_s1 + $0xc80] ss:$16 sps:$4 sm:$0xff]   ;;  %v5950_v32 = vld [vmem:[%s8023_s1 + $0xc88] ss:$16 sps:$4 sm:$0xff]  }
 0x15b   : > { %3991 = vmatpush1.bf16.msra.mxu0 %v5854_v33  ;;  %4378 = vmatpush1.bf16.msra.mxu1 %v5857_v34  ;;  %v5955_v33 = vld [vmem:[%s8023_s1 + $0xca4] ss:$16 sps:$4 sm:$0xff]   ;;  %v5958_v34 = vld [vmem:[%s8023_s1 + $0xcac] ss:$16 sps:$4 sm:$0xff]  }
 0x15c   : > { %3992 = vmatprep.subr.bf16.mxu0 %v5862_v35  ;;  %4379 = vmatprep.subr.bf16.mxu1 %v5865_v36  ;;  %v5953_v35 = vld [vmem:[%s8023_s1 + $0xca0] ss:$16 sps:$4 sm:$0xff]   ;;  %v5956_v36 = vld [vmem:[%s8023_s1 + $0xca8] ss:$16 sps:$4 sm:$0xff]  }
 0x15f   : > { %3993 = vmatpush1.bf16.msra.mxu0 %v5860_v37  ;;  %4380 = vmatpush1.bf16.msra.mxu1 %v5863_v38  ;;  %v5961_v37 = vld [vmem:[%s8023_s1 + $0xcc4] ss:$16 sps:$4 sm:$0xff]   ;;  %v5964_v38 = vld [vmem:[%s8023_s1 + $0xccc] ss:$16 sps:$4 sm:$0xff]  }
 0x160   : > { %3994 = vmatprep.subr.bf16.mxu0 %v5868_v39  ;;  %4381 = vmatprep.subr.bf16.mxu1 %v5871_v40  ;;  %v5959_v39 = vld [vmem:[%s8023_s1 + $0xcc0] ss:$16 sps:$4 sm:$0xff]   ;;  %v5962_v40 = vld [vmem:[%s8023_s1 + $0xcc8] ss:$16 sps:$4 sm:$0xff]  }
 0x163   : > { %3995 = vmatpush1.bf16.msra.mxu0 %v5866_v41  ;;  %4382 = vmatpush1.bf16.msra.mxu1 %v5869_v42  ;;  %v5967_v41 = vld [vmem:[%s8023_s1 + $0xce4] ss:$16 sps:$4 sm:$0xff]   ;;  %v5970_v42 = vld [vmem:[%s8023_s1 + $0xcec] ss:$16 sps:$4 sm:$0xff]  }
 0x164   : > { %3996 = vmatprep.subr.bf16.mxu0 %v5874_v43  ;;  %4383 = vmatprep.subr.bf16.mxu1 %v5877_v44  ;;  %v5965_v43 = vld [vmem:[%s8023_s1 + $0xce0] ss:$16 sps:$4 sm:$0xff]   ;;  %v5968_v44 = vld [vmem:[%s8023_s1 + $0xce8] ss:$16 sps:$4 sm:$0xff]  }
 0x167   : > { %3997 = vmatpush1.bf16.msra.mxu0 %v5872_v45  ;;  %4384 = vmatpush1.bf16.msra.mxu1 %v5875_v46  ;;  %v5973_v45 = vld [vmem:[%s8023_s1 + $0xd04] ss:$16 sps:$4 sm:$0xff]   ;;  %v5976_v46 = vld [vmem:[%s8023_s1 + $0xd0c] ss:$16 sps:$4 sm:$0xff]  }
 0x168   : > { %3998 = vmatprep.subr.bf16.mxu0 %v5880_v47  ;;  %4385 = vmatprep.subr.bf16.mxu1 %v5883_v48  ;;  %v5971_v47 = vld [vmem:[%s8023_s1 + $0xd00] ss:$16 sps:$4 sm:$0xff]   ;;  %v5974_v48 = vld [vmem:[%s8023_s1 + $0xd08] ss:$16 sps:$4 sm:$0xff]  }
 0x16b   : > { %3999 = vmatpush1.bf16.msra.mxu0 %v5878_v49  ;;  %4386 = vmatpush1.bf16.msra.mxu1 %v5881_v50  ;;  %v5979_v49 = vld [vmem:[%s8023_s1 + $0xd24] ss:$16 sps:$4 sm:$0xff]   ;;  %v5982_v50 = vld [vmem:[%s8023_s1 + $0xd2c] ss:$16 sps:$4 sm:$0xff]  }
 0x16c   : > { %4000 = vmatprep.subr.bf16.mxu0 %v5886_v51  ;;  %4387 = vmatprep.subr.bf16.mxu1 %v5889_v52  ;;  %v5977_v51 = vld [vmem:[%s8023_s1 + $0xd20] ss:$16 sps:$4 sm:$0xff]   ;;  %v5980_v52 = vld [vmem:[%s8023_s1 + $0xd28] ss:$16 sps:$4 sm:$0xff]  }
 0x16f   : > { %4001 = vmatpush1.bf16.msra.mxu0 %v5884_v53  ;;  %4388 = vmatpush1.bf16.msra.mxu1 %v5887_v54  ;;  %v5985_v53 = vld [vmem:[%s8023_s1 + $0xd44] ss:$16 sps:$4 sm:$0xff]   ;;  %v5988_v54 = vld [vmem:[%s8023_s1 + $0xd4c] ss:$16 sps:$4 sm:$0xff]  }
 0x170   : > { %4002 = vmatprep.subr.bf16.mxu0 %v5892_v55  ;;  %4389 = vmatprep.subr.bf16.mxu1 %v5895_v56  ;;  %v5983_v55 = vld [vmem:[%s8023_s1 + $0xd40] ss:$16 sps:$4 sm:$0xff]   ;;  %v5986_v56 = vld [vmem:[%s8023_s1 + $0xd48] ss:$16 sps:$4 sm:$0xff]  }
 0x173   : > { %4003 = vmatpush1.bf16.msra.mxu0 %v5890_v57  ;;  %4390 = vmatpush1.bf16.msra.mxu1 %v5893_v58  ;;  %v5991_v57 = vld [vmem:[%s8023_s1 + $0xd64] ss:$16 sps:$4 sm:$0xff]   ;;  %v5994_v58 = vld [vmem:[%s8023_s1 + $0xd6c] ss:$16 sps:$4 sm:$0xff]  }
 0x174   : > { %4004 = vmatprep.subr.bf16.mxu0 %v5898_v59  ;;  %4391 = vmatprep.subr.bf16.mxu1 %v5901_v60  ;;  %v5989_v59 = vld [vmem:[%s8023_s1 + $0xd60] ss:$16 sps:$4 sm:$0xff]   ;;  %v5992_v60 = vld [vmem:[%s8023_s1 + $0xd68] ss:$16 sps:$4 sm:$0xff]  }
 0x177   : > { %4005 = vmatpush1.bf16.msra.mxu0 %v5896_v61  ;;  %4392 = vmatpush1.bf16.msra.mxu1 %v5899_v62  ;;  %v5997_v61 = vld [vmem:[%s8023_s1 + $0xd84] ss:$16 sps:$4 sm:$0xff]   ;;  %v6000_v62 = vld [vmem:[%s8023_s1 + $0xd8c] ss:$16 sps:$4 sm:$0xff]  }
 0x178   : > { %4006 = vmatprep.subr.bf16.mxu0 %v5904_v63  ;;  %4393 = vmatprep.subr.bf16.mxu1 %v5907_v0  ;;  %v5995_v63 = vld [vmem:[%s8023_s1 + $0xd80] ss:$16 sps:$4 sm:$0xff]   ;;  %v5998_v0 = vld [vmem:[%s8023_s1 + $0xd88] ss:$16 sps:$4 sm:$0xff]  }
 0x17b   : > { %4007 = vmatpush1.bf16.msra.mxu0 %v5902_v1  ;;  %4394 = vmatpush1.bf16.msra.mxu1 %v5905_v2  ;;  %v6003_v1 = vld [vmem:[%s8023_s1 + $0xda4] ss:$16 sps:$4 sm:$0xff]   ;;  %v6006_v2 = vld [vmem:[%s8023_s1 + $0xdac] ss:$16 sps:$4 sm:$0xff]  }
 0x17c   : > { %4008 = vmatprep.subr.bf16.mxu0 %v5910_v3  ;;  %4395 = vmatprep.subr.bf16.mxu1 %v5913_v4  ;;  %v6001_v3 = vld [vmem:[%s8023_s1 + $0xda0] ss:$16 sps:$4 sm:$0xff]   ;;  %v6004_v4 = vld [vmem:[%s8023_s1 + $0xda8] ss:$16 sps:$4 sm:$0xff]  }
 0x17f   : > { %4009 = vmatpush1.bf16.msra.mxu0 %v5908_v5  ;;  %4396 = vmatpush1.bf16.msra.mxu1 %v5911_v6  ;;  %v6009_v5 = vld [vmem:[%s8023_s1 + $0xdc4] ss:$16 sps:$4 sm:$0xff]   ;;  %v6012_v6 = vld [vmem:[%s8023_s1 + $0xdcc] ss:$16 sps:$4 sm:$0xff]  }
 0x180   : > { %4010 = vmatprep.subr.bf16.mxu0 %v5916_v7  ;;  %4397 = vmatprep.subr.bf16.mxu1 %v5919_v8  ;;  %v6007_v7 = vld [vmem:[%s8023_s1 + $0xdc0] ss:$16 sps:$4 sm:$0xff]   ;;  %v6010_v8 = vld [vmem:[%s8023_s1 + $0xdc8] ss:$16 sps:$4 sm:$0xff]  }
 0x183   : > { %4011 = vmatpush1.bf16.msra.mxu0 %v5914_v9  ;;  %4398 = vmatpush1.bf16.msra.mxu1 %v5917_v10  ;;  %v6015_v9 = vld [vmem:[%s8023_s1 + $0xde4] ss:$16 sps:$4 sm:$0xff]   ;;  %v6018_v10 = vld [vmem:[%s8023_s1 + $0xdec] ss:$16 sps:$4 sm:$0xff]  }
 0x184   : > { %4023 = vmatprep.subr.bf16.mxu0 %v5925_v11  ;;  %4410 = vmatprep.subr.bf16.mxu1 %v5928_v12  ;;  %v6013_v11 = vld [vmem:[%s8023_s1 + $0xde0] ss:$16 sps:$4 sm:$0xff]   ;;  %v6016_v12 = vld [vmem:[%s8023_s1 + $0xde8] ss:$16 sps:$4 sm:$0xff]  }
 0x186   : > { %4013 = vmatmul.mubr.bf16.vlgmr.msra.gmra.mrb[0].mxu0 %v5920_v13  ;;  %4400 = vmatmul.mubr.bf16.vlgmr.msra.gmra.mrb[0].mxu1 %v5920_v13  ;;  %v6024_v13 = vld [vmem:[%s8023_s1 + $0xe04] ss:$16 sps:$4 sm:$0xff]  }
 0x187   : > { %4024 = vmatpush1.bf16.msra.mxu0 %v5923_v14  ;;  %4411 = vmatpush1.bf16.msra.mxu1 %v5926_v15  ;;  %v6027_v14 = vld [vmem:[%s8023_s1 + $0xe0c] ss:$16 sps:$4 sm:$0xff]   ;;  %v6019_v15 = vld [vmem:[%s6399_s13 + $0x30] ss:$72 sps:$4 sm:$0xff]  }
 0x188   : > { %4025 = vmatprep.subr.bf16.mxu0 %v5931_v16  ;;  %4412 = vmatprep.subr.bf16.mxu1 %v5934_v17  ;;  %v6022_v16 = vld [vmem:[%s8023_s1 + $0xe00] ss:$16 sps:$4 sm:$0xff]   ;;  %v6025_v17 = vld [vmem:[%s8023_s1 + $0xe08] ss:$16 sps:$4 sm:$0xff]  }
 0x189   : > { %4055 = vmatprep.mubr.bf16.mxu0 %v6021_v18  ;;  %4442 = vmatprep.mubr.bf16.mxu1 %v6021_v18  ;;  %v6030_v18 = vld [vmem:[%s8023_s1 + $0xe24] ss:$16 sps:$4 sm:$0xff]  }
 0x18b   : > { %4026 = vmatpush1.bf16.msra.mxu0 %v5929_v19  ;;  %4413 = vmatpush1.bf16.msra.mxu1 %v5932_v20  ;;  %v6033_v19 = vld [vmem:[%s8023_s1 + $0xe2c] ss:$16 sps:$4 sm:$0xff]  }
 0x18c   : > { %4027 = vmatprep.subr.bf16.mxu0 %v5937_v21  ;;  %4414 = vmatprep.subr.bf16.mxu1 %v5940_v22  ;;  %v6120_v20 = vld [vmem:[%s6399_s13 + $0x3c] ss:$72 sps:$4 sm:$0xff]   ;;  %v6028_v21 = vld [vmem:[%s8023_s1 + $0xe20] ss:$16 sps:$4 sm:$0xff]   ;;  %v6031_v22 = vld [vmem:[%s8023_s1 + $0xe28] ss:$16 sps:$4 sm:$0xff]  }
 0x18f   : > { %4028 = vmatpush1.bf16.msra.mxu0 %v5935_v23  ;;  %4415 = vmatpush1.bf16.msra.mxu1 %v5938_v24  ;;  %v6036_v23 = vld [vmem:[%s8023_s1 + $0xe44] ss:$16 sps:$4 sm:$0xff]   ;;  %v6039_v24 = vld [vmem:[%s8023_s1 + $0xe4c] ss:$16 sps:$4 sm:$0xff]  }
 0x190   : > { %4029 = vmatprep.subr.bf16.mxu0 %v5943_v25  ;;  %4416 = vmatprep.subr.bf16.mxu1 %v5946_v26  ;;  %v6034_v25 = vld [vmem:[%s8023_s1 + $0xe40] ss:$16 sps:$4 sm:$0xff]   ;;  %v6037_v26 = vld [vmem:[%s8023_s1 + $0xe48] ss:$16 sps:$4 sm:$0xff]  }
 0x193   : > { %4030 = vmatpush1.bf16.msra.mxu0 %v5941_v27  ;;  %4417 = vmatpush1.bf16.msra.mxu1 %v5944_v28  ;;  %v6042_v27 = vld [vmem:[%s8023_s1 + $0xe64] ss:$16 sps:$4 sm:$0xff]   ;;  %v6045_v28 = vld [vmem:[%s8023_s1 + $0xe6c] ss:$16 sps:$4 sm:$0xff]  }
 0x194   : > { %4031 = vmatprep.subr.bf16.mxu0 %v5949_v29  ;;  %4418 = vmatprep.subr.bf16.mxu1 %v5952_v30  ;;  %v6040_v29 = vld [vmem:[%s8023_s1 + $0xe60] ss:$16 sps:$4 sm:$0xff]   ;;  %v6043_v30 = vld [vmem:[%s8023_s1 + $0xe68] ss:$16 sps:$4 sm:$0xff]  }
 0x197   : > { %4032 = vmatpush1.bf16.msra.mxu0 %v5947_v31  ;;  %4419 = vmatpush1.bf16.msra.mxu1 %v5950_v32  ;;  %v6048_v31 = vld [vmem:[%s8023_s1 + $0xe84] ss:$16 sps:$4 sm:$0xff]   ;;  %v6051_v32 = vld [vmem:[%s8023_s1 + $0xe8c] ss:$16 sps:$4 sm:$0xff]  }
 0x198   : > { %4033 = vmatprep.subr.bf16.mxu0 %v5955_v33  ;;  %4420 = vmatprep.subr.bf16.mxu1 %v5958_v34  ;;  %v6046_v33 = vld [vmem:[%s8023_s1 + $0xe80] ss:$16 sps:$4 sm:$0xff]   ;;  %v6049_v34 = vld [vmem:[%s8023_s1 + $0xe88] ss:$16 sps:$4 sm:$0xff]  }
 0x19b   : > { %4034 = vmatpush1.bf16.msra.mxu0 %v5953_v35  ;;  %4421 = vmatpush1.bf16.msra.mxu1 %v5956_v36  ;;  %v6054_v35 = vld [vmem:[%s8023_s1 + $0xea4] ss:$16 sps:$4 sm:$0xff]   ;;  %v6057_v36 = vld [vmem:[%s8023_s1 + $0xeac] ss:$16 sps:$4 sm:$0xff]  }
 0x19c   : > { %4035 = vmatprep.subr.bf16.mxu0 %v5961_v37  ;;  %4422 = vmatprep.subr.bf16.mxu1 %v5964_v38  ;;  %v6052_v37 = vld [vmem:[%s8023_s1 + $0xea0] ss:$16 sps:$4 sm:$0xff]   ;;  %v6055_v38 = vld [vmem:[%s8023_s1 + $0xea8] ss:$16 sps:$4 sm:$0xff]  }
 0x19f   : > { %4036 = vmatpush1.bf16.msra.mxu0 %v5959_v39  ;;  %4423 = vmatpush1.bf16.msra.mxu1 %v5962_v40  ;;  %v6060_v39 = vld [vmem:[%s8023_s1 + $0xec4] ss:$16 sps:$4 sm:$0xff]   ;;  %v6063_v40 = vld [vmem:[%s8023_s1 + $0xecc] ss:$16 sps:$4 sm:$0xff]  }
 0x1a0   : > { %4037 = vmatprep.subr.bf16.mxu0 %v5967_v41  ;;  %4424 = vmatprep.subr.bf16.mxu1 %v5970_v42  ;;  %v6058_v41 = vld [vmem:[%s8023_s1 + $0xec0] ss:$16 sps:$4 sm:$0xff]   ;;  %v6061_v42 = vld [vmem:[%s8023_s1 + $0xec8] ss:$16 sps:$4 sm:$0xff]  }
 0x1a3   : > { %4038 = vmatpush1.bf16.msra.mxu0 %v5965_v43  ;;  %4425 = vmatpush1.bf16.msra.mxu1 %v5968_v44  ;;  %v6066_v43 = vld [vmem:[%s8023_s1 + $0xee4] ss:$16 sps:$4 sm:$0xff]   ;;  %v6069_v44 = vld [vmem:[%s8023_s1 + $0xeec] ss:$16 sps:$4 sm:$0xff]  }
 0x1a4   : > { %4039 = vmatprep.subr.bf16.mxu0 %v5973_v45  ;;  %4426 = vmatprep.subr.bf16.mxu1 %v5976_v46  ;;  %v6064_v45 = vld [vmem:[%s8023_s1 + $0xee0] ss:$16 sps:$4 sm:$0xff]   ;;  %v6067_v46 = vld [vmem:[%s8023_s1 + $0xee8] ss:$16 sps:$4 sm:$0xff]  }
 0x1a7   : > { %4040 = vmatpush1.bf16.msra.mxu0 %v5971_v47  ;;  %4427 = vmatpush1.bf16.msra.mxu1 %v5974_v48  ;;  %v6072_v47 = vld [vmem:[%s8023_s1 + $0xf04] ss:$16 sps:$4 sm:$0xff]   ;;  %v6075_v48 = vld [vmem:[%s8023_s1 + $0xf0c] ss:$16 sps:$4 sm:$0xff]  }
 0x1a8   : > { %4041 = vmatprep.subr.bf16.mxu0 %v5979_v49  ;;  %4428 = vmatprep.subr.bf16.mxu1 %v5982_v50  ;;  %v6070_v49 = vld [vmem:[%s8023_s1 + $0xf00] ss:$16 sps:$4 sm:$0xff]   ;;  %v6073_v50 = vld [vmem:[%s8023_s1 + $0xf08] ss:$16 sps:$4 sm:$0xff]  }
 0x1ab   : > { %4042 = vmatpush1.bf16.msra.mxu0 %v5977_v51  ;;  %4429 = vmatpush1.bf16.msra.mxu1 %v5980_v52  ;;  %v6078_v51 = vld [vmem:[%s8023_s1 + $0xf24] ss:$16 sps:$4 sm:$0xff]   ;;  %v6081_v52 = vld [vmem:[%s8023_s1 + $0xf2c] ss:$16 sps:$4 sm:$0xff]  }
 0x1ac   : > { %4043 = vmatprep.subr.bf16.mxu0 %v5985_v53  ;;  %4430 = vmatprep.subr.bf16.mxu1 %v5988_v54  ;;  %v6076_v53 = vld [vmem:[%s8023_s1 + $0xf20] ss:$16 sps:$4 sm:$0xff]   ;;  %v6079_v54 = vld [vmem:[%s8023_s1 + $0xf28] ss:$16 sps:$4 sm:$0xff]  }
 0x1af   : > { %4044 = vmatpush1.bf16.msra.mxu0 %v5983_v55  ;;  %4431 = vmatpush1.bf16.msra.mxu1 %v5986_v56  ;;  %v6084_v55 = vld [vmem:[%s8023_s1 + $0xf44] ss:$16 sps:$4 sm:$0xff]   ;;  %v6087_v56 = vld [vmem:[%s8023_s1 + $0xf4c] ss:$16 sps:$4 sm:$0xff]  }
 0x1b0   : > { %4045 = vmatprep.subr.bf16.mxu0 %v5991_v57  ;;  %4432 = vmatprep.subr.bf16.mxu1 %v5994_v58  ;;  %v6082_v57 = vld [vmem:[%s8023_s1 + $0xf40] ss:$16 sps:$4 sm:$0xff]   ;;  %v6085_v58 = vld [vmem:[%s8023_s1 + $0xf48] ss:$16 sps:$4 sm:$0xff]  }
 0x1b3   : > { %4046 = vmatpush1.bf16.msra.mxu0 %v5989_v59  ;;  %4433 = vmatpush1.bf16.msra.mxu1 %v5992_v60  ;;  %v6090_v59 = vld [vmem:[%s8023_s1 + $0xf64] ss:$16 sps:$4 sm:$0xff]   ;;  %v6093_v60 = vld [vmem:[%s8023_s1 + $0xf6c] ss:$16 sps:$4 sm:$0xff]  }
 0x1b4   : > { %4047 = vmatprep.subr.bf16.mxu0 %v5997_v61  ;;  %4434 = vmatprep.subr.bf16.mxu1 %v6000_v62  ;;  %v6088_v61 = vld [vmem:[%s8023_s1 + $0xf60] ss:$16 sps:$4 sm:$0xff]   ;;  %v6091_v62 = vld [vmem:[%s8023_s1 + $0xf68] ss:$16 sps:$4 sm:$0xff]  }
 0x1b7   : > { %4048 = vmatpush1.bf16.msra.mxu0 %v5995_v63  ;;  %4435 = vmatpush1.bf16.msra.mxu1 %v5998_v0  ;;  %v6096_v63 = vld [vmem:[%s8023_s1 + $0xf84] ss:$16 sps:$4 sm:$0xff]   ;;  %v6099_v0 = vld [vmem:[%s8023_s1 + $0xf8c] ss:$16 sps:$4 sm:$0xff]  }
 0x1b8   : > { %4049 = vmatprep.subr.bf16.mxu0 %v6003_v1  ;;  %4436 = vmatprep.subr.bf16.mxu1 %v6006_v2  ;;  %v6094_v1 = vld [vmem:[%s8023_s1 + $0xf80] ss:$16 sps:$4 sm:$0xff]   ;;  %v6097_v2 = vld [vmem:[%s8023_s1 + $0xf88] ss:$16 sps:$4 sm:$0xff]  }
 0x1bb   : > { %4050 = vmatpush1.bf16.msra.mxu0 %v6001_v3  ;;  %4437 = vmatpush1.bf16.msra.mxu1 %v6004_v4  ;;  %v6102_v3 = vld [vmem:[%s8023_s1 + $0xfa4] ss:$16 sps:$4 sm:$0xff]   ;;  %v6105_v4 = vld [vmem:[%s8023_s1 + $0xfac] ss:$16 sps:$4 sm:$0xff]  }
 0x1bc   : > { %4051 = vmatprep.subr.bf16.mxu0 %v6009_v5  ;;  %4438 = vmatprep.subr.bf16.mxu1 %v6012_v6  ;;  %v6100_v5 = vld [vmem:[%s8023_s1 + $0xfa0] ss:$16 sps:$4 sm:$0xff]   ;;  %v6103_v6 = vld [vmem:[%s8023_s1 + $0xfa8] ss:$16 sps:$4 sm:$0xff]  }
 0x1bf   : > { %4052 = vmatpush1.bf16.msra.mxu0 %v6007_v7  ;;  %4439 = vmatpush1.bf16.msra.mxu1 %v6010_v8  ;;  %v6108_v7 = vld [vmem:[%s8023_s1 + $0xfc4] ss:$16 sps:$4 sm:$0xff]   ;;  %v6111_v8 = vld [vmem:[%s8023_s1 + $0xfcc] ss:$16 sps:$4 sm:$0xff]  }
 0x1c0   : > { %4053 = vmatprep.subr.bf16.mxu0 %v6015_v9  ;;  %4440 = vmatprep.subr.bf16.mxu1 %v6018_v10  ;;  %v6106_v9 = vld [vmem:[%s8023_s1 + $0xfc0] ss:$16 sps:$4 sm:$0xff]   ;;  %v6109_v10 = vld [vmem:[%s8023_s1 + $0xfc8] ss:$16 sps:$4 sm:$0xff]  }
 0x1c3   : > { %4054 = vmatpush1.bf16.msra.mxu0 %v6013_v11  ;;  %4441 = vmatpush1.bf16.msra.mxu1 %v6016_v12  ;;  %v6114_v11 = vld [vmem:[%s8023_s1 + $0xfe4] ss:$16 sps:$4 sm:$0xff]   ;;  %v6117_v12 = vld [vmem:[%s8023_s1 + $0xfec] ss:$16 sps:$4 sm:$0xff]  }
 0x1c4   : > { %4066 = vmatprep.subr.bf16.mxu0 %v6024_v13  ;;  %4453 = vmatprep.subr.bf16.mxu1 %v6027_v14  ;;  %v6112_v13 = vld [vmem:[%s8023_s1 + $0xfe0] ss:$16 sps:$4 sm:$0xff]   ;;  %v6115_v14 = vld [vmem:[%s8023_s1 + $0xfe8] ss:$16 sps:$4 sm:$0xff]  }
 0x1c6   : > { %4056 = vmatmul.mubr.bf16.vlgmr.msra.gmra.mrb[0].mxu0 %v6019_v15  ;;  %4443 = vmatmul.mubr.bf16.vlgmr.msra.gmra.mrb[0].mxu1 %v6019_v15  ;;  %v6123_v15 = vld [vmem:[%s8023_s1 + $0x1004] ss:$16 sps:$4 sm:$0xff]  }
 0x1c7   : > { %4067 = vmatpush1.bf16.msra.mxu0 %v6022_v16  ;;  %4454 = vmatpush1.bf16.msra.mxu1 %v6025_v17  ;;  %v6126_v16 = vld [vmem:[%s8023_s1 + $0x100c] ss:$16 sps:$4 sm:$0xff]   ;;  %v6118_v17 = vld [vmem:[%s6399_s13 + $0x38] ss:$72 sps:$4 sm:$0xff]  }
 0x1c8   : > { %4068 = vmatprep.subr.bf16.mxu0 %v6030_v18  ;;  %4455 = vmatprep.subr.bf16.mxu1 %v6033_v19  ;;  %v6121_v18 = vld [vmem:[%s8023_s1 + $0x1000] ss:$16 sps:$4 sm:$0xff]   ;;  %v6124_v19 = vld [vmem:[%s8023_s1 + $0x1008] ss:$16 sps:$4 sm:$0xff]  }
 0x1c9   : > { %4098 = vmatprep.mubr.bf16.mxu0 %v6120_v20  ;;  %4485 = vmatprep.mubr.bf16.mxu1 %v6120_v20  ;;  %v6129_v20 = vld [vmem:[%s8023_s1 + $0x1024] ss:$16 sps:$4 sm:$0xff]  }
 0x1cb   : > { %4069 = vmatpush1.bf16.msra.mxu0 %v6028_v21  ;;  %4456 = vmatpush1.bf16.msra.mxu1 %v6031_v22  ;;  %v6132_v21 = vld [vmem:[%s8023_s1 + $0x102c] ss:$16 sps:$4 sm:$0xff]  }
 0x1cc   : > { %4070 = vmatprep.subr.bf16.mxu0 %v6036_v23  ;;  %4457 = vmatprep.subr.bf16.mxu1 %v6039_v24  ;;  %v6219_v22 = vld [vmem:[%s6399_s13 + $0x44] ss:$72 sps:$4 sm:$0xff]   ;;  %v6127_v23 = vld [vmem:[%s8023_s1 + $0x1020] ss:$16 sps:$4 sm:$0xff]   ;;  %v6130_v24 = vld [vmem:[%s8023_s1 + $0x1028] ss:$16 sps:$4 sm:$0xff]  }
 0x1cf   : > { %4071 = vmatpush1.bf16.msra.mxu0 %v6034_v25  ;;  %4458 = vmatpush1.bf16.msra.mxu1 %v6037_v26  ;;  %v6135_v25 = vld [vmem:[%s8023_s1 + $0x1044] ss:$16 sps:$4 sm:$0xff]   ;;  %v6138_v26 = vld [vmem:[%s8023_s1 + $0x104c] ss:$16 sps:$4 sm:$0xff]  }
 0x1d0   : > { %4072 = vmatprep.subr.bf16.mxu0 %v6042_v27  ;;  %4459 = vmatprep.subr.bf16.mxu1 %v6045_v28  ;;  %v6133_v27 = vld [vmem:[%s8023_s1 + $0x1040] ss:$16 sps:$4 sm:$0xff]   ;;  %v6136_v28 = vld [vmem:[%s8023_s1 + $0x1048] ss:$16 sps:$4 sm:$0xff]  }
 0x1d3   : > { %4073 = vmatpush1.bf16.msra.mxu0 %v6040_v29  ;;  %4460 = vmatpush1.bf16.msra.mxu1 %v6043_v30  ;;  %v6141_v29 = vld [vmem:[%s8023_s1 + $0x1064] ss:$16 sps:$4 sm:$0xff]   ;;  %v6144_v30 = vld [vmem:[%s8023_s1 + $0x106c] ss:$16 sps:$4 sm:$0xff]  }
 0x1d4   : > { %4074 = vmatprep.subr.bf16.mxu0 %v6048_v31  ;;  %4461 = vmatprep.subr.bf16.mxu1 %v6051_v32  ;;  %v6139_v31 = vld [vmem:[%s8023_s1 + $0x1060] ss:$16 sps:$4 sm:$0xff]   ;;  %v6142_v32 = vld [vmem:[%s8023_s1 + $0x1068] ss:$16 sps:$4 sm:$0xff]  }
 0x1d7   : > { %4075 = vmatpush1.bf16.msra.mxu0 %v6046_v33  ;;  %4462 = vmatpush1.bf16.msra.mxu1 %v6049_v34  ;;  %v6147_v33 = vld [vmem:[%s8023_s1 + $0x1084] ss:$16 sps:$4 sm:$0xff]   ;;  %v6150_v34 = vld [vmem:[%s8023_s1 + $0x108c] ss:$16 sps:$4 sm:$0xff]  }
 0x1d8   : > { %4076 = vmatprep.subr.bf16.mxu0 %v6054_v35  ;;  %4463 = vmatprep.subr.bf16.mxu1 %v6057_v36  ;;  %v6145_v35 = vld [vmem:[%s8023_s1 + $0x1080] ss:$16 sps:$4 sm:$0xff]   ;;  %v6148_v36 = vld [vmem:[%s8023_s1 + $0x1088] ss:$16 sps:$4 sm:$0xff]  }
 0x1db   : > { %4077 = vmatpush1.bf16.msra.mxu0 %v6052_v37  ;;  %4464 = vmatpush1.bf16.msra.mxu1 %v6055_v38  ;;  %v6153_v37 = vld [vmem:[%s8023_s1 + $0x10a4] ss:$16 sps:$4 sm:$0xff]   ;;  %v6156_v38 = vld [vmem:[%s8023_s1 + $0x10ac] ss:$16 sps:$4 sm:$0xff]  }
 0x1dc   : > { %4078 = vmatprep.subr.bf16.mxu0 %v6060_v39  ;;  %4465 = vmatprep.subr.bf16.mxu1 %v6063_v40  ;;  %v6151_v39 = vld [vmem:[%s8023_s1 + $0x10a0] ss:$16 sps:$4 sm:$0xff]   ;;  %v6154_v40 = vld [vmem:[%s8023_s1 + $0x10a8] ss:$16 sps:$4 sm:$0xff]  }
 0x1df   : > { %4079 = vmatpush1.bf16.msra.mxu0 %v6058_v41  ;;  %4466 = vmatpush1.bf16.msra.mxu1 %v6061_v42  ;;  %v6159_v41 = vld [vmem:[%s8023_s1 + $0x10c4] ss:$16 sps:$4 sm:$0xff]   ;;  %v6162_v42 = vld [vmem:[%s8023_s1 + $0x10cc] ss:$16 sps:$4 sm:$0xff]  }
 0x1e0   : > { %4080 = vmatprep.subr.bf16.mxu0 %v6066_v43  ;;  %4467 = vmatprep.subr.bf16.mxu1 %v6069_v44  ;;  %v6157_v43 = vld [vmem:[%s8023_s1 + $0x10c0] ss:$16 sps:$4 sm:$0xff]   ;;  %v6160_v44 = vld [vmem:[%s8023_s1 + $0x10c8] ss:$16 sps:$4 sm:$0xff]  }
 0x1e3   : > { %4081 = vmatpush1.bf16.msra.mxu0 %v6064_v45  ;;  %4468 = vmatpush1.bf16.msra.mxu1 %v6067_v46  ;;  %v6165_v45 = vld [vmem:[%s8023_s1 + $0x10e4] ss:$16 sps:$4 sm:$0xff]   ;;  %v6168_v46 = vld [vmem:[%s8023_s1 + $0x10ec] ss:$16 sps:$4 sm:$0xff]  }
 0x1e4   : > { %4082 = vmatprep.subr.bf16.mxu0 %v6072_v47  ;;  %4469 = vmatprep.subr.bf16.mxu1 %v6075_v48  ;;  %v6163_v47 = vld [vmem:[%s8023_s1 + $0x10e0] ss:$16 sps:$4 sm:$0xff]   ;;  %v6166_v48 = vld [vmem:[%s8023_s1 + $0x10e8] ss:$16 sps:$4 sm:$0xff]  }
 0x1e7   : > { %4083 = vmatpush1.bf16.msra.mxu0 %v6070_v49  ;;  %4470 = vmatpush1.bf16.msra.mxu1 %v6073_v50  ;;  %v6171_v49 = vld [vmem:[%s8023_s1 + $0x1104] ss:$16 sps:$4 sm:$0xff]   ;;  %v6174_v50 = vld [vmem:[%s8023_s1 + $0x110c] ss:$16 sps:$4 sm:$0xff]  }
 0x1e8   : > { %4084 = vmatprep.subr.bf16.mxu0 %v6078_v51  ;;  %4471 = vmatprep.subr.bf16.mxu1 %v6081_v52  ;;  %v6169_v51 = vld [vmem:[%s8023_s1 + $0x1100] ss:$16 sps:$4 sm:$0xff]   ;;  %v6172_v52 = vld [vmem:[%s8023_s1 + $0x1108] ss:$16 sps:$4 sm:$0xff]  }
 0x1eb   : > { %4085 = vmatpush1.bf16.msra.mxu0 %v6076_v53  ;;  %4472 = vmatpush1.bf16.msra.mxu1 %v6079_v54  ;;  %v6177_v53 = vld [vmem:[%s8023_s1 + $0x1124] ss:$16 sps:$4 sm:$0xff]   ;;  %v6180_v54 = vld [vmem:[%s8023_s1 + $0x112c] ss:$16 sps:$4 sm:$0xff]  }
 0x1ec   : > { %4086 = vmatprep.subr.bf16.mxu0 %v6084_v55  ;;  %4473 = vmatprep.subr.bf16.mxu1 %v6087_v56  ;;  %v6175_v55 = vld [vmem:[%s8023_s1 + $0x1120] ss:$16 sps:$4 sm:$0xff]   ;;  %v6178_v56 = vld [vmem:[%s8023_s1 + $0x1128] ss:$16 sps:$4 sm:$0xff]  }
 0x1ef   : > { %4087 = vmatpush1.bf16.msra.mxu0 %v6082_v57  ;;  %4474 = vmatpush1.bf16.msra.mxu1 %v6085_v58  ;;  %v6183_v57 = vld [vmem:[%s8023_s1 + $0x1144] ss:$16 sps:$4 sm:$0xff]   ;;  %v6186_v58 = vld [vmem:[%s8023_s1 + $0x114c] ss:$16 sps:$4 sm:$0xff]  }
 0x1f0   : > { %4088 = vmatprep.subr.bf16.mxu0 %v6090_v59  ;;  %4475 = vmatprep.subr.bf16.mxu1 %v6093_v60  ;;  %v6181_v59 = vld [vmem:[%s8023_s1 + $0x1140] ss:$16 sps:$4 sm:$0xff]   ;;  %v6184_v60 = vld [vmem:[%s8023_s1 + $0x1148] ss:$16 sps:$4 sm:$0xff]  }
 0x1f3   : > { %4089 = vmatpush1.bf16.msra.mxu0 %v6088_v61  ;;  %4476 = vmatpush1.bf16.msra.mxu1 %v6091_v62  ;;  %v6189_v61 = vld [vmem:[%s8023_s1 + $0x1164] ss:$16 sps:$4 sm:$0xff]   ;;  %v6192_v62 = vld [vmem:[%s8023_s1 + $0x116c] ss:$16 sps:$4 sm:$0xff]  }
 0x1f4   : > { %4090 = vmatprep.subr.bf16.mxu0 %v6096_v63  ;;  %4477 = vmatprep.subr.bf16.mxu1 %v6099_v0  ;;  %v6187_v63 = vld [vmem:[%s8023_s1 + $0x1160] ss:$16 sps:$4 sm:$0xff]   ;;  %v6190_v0 = vld [vmem:[%s8023_s1 + $0x1168] ss:$16 sps:$4 sm:$0xff]  }
 0x1f7   : > { %4091 = vmatpush1.bf16.msra.mxu0 %v6094_v1  ;;  %4478 = vmatpush1.bf16.msra.mxu1 %v6097_v2  ;;  %v6195_v1 = vld [vmem:[%s8023_s1 + $0x1184] ss:$16 sps:$4 sm:$0xff]   ;;  %v6198_v2 = vld [vmem:[%s8023_s1 + $0x118c] ss:$16 sps:$4 sm:$0xff]  }
 0x1f8   : > { %4092 = vmatprep.subr.bf16.mxu0 %v6102_v3  ;;  %4479 = vmatprep.subr.bf16.mxu1 %v6105_v4  ;;  %v6193_v3 = vld [vmem:[%s8023_s1 + $0x1180] ss:$16 sps:$4 sm:$0xff]   ;;  %v6196_v4 = vld [vmem:[%s8023_s1 + $0x1188] ss:$16 sps:$4 sm:$0xff]  }
 0x1fb   : > { %4093 = vmatpush1.bf16.msra.mxu0 %v6100_v5  ;;  %4480 = vmatpush1.bf16.msra.mxu1 %v6103_v6  ;;  %v6201_v5 = vld [vmem:[%s8023_s1 + $0x11a4] ss:$16 sps:$4 sm:$0xff]   ;;  %v6204_v6 = vld [vmem:[%s8023_s1 + $0x11ac] ss:$16 sps:$4 sm:$0xff]  }
 0x1fc   : > { %4094 = vmatprep.subr.bf16.mxu0 %v6108_v7  ;;  %4481 = vmatprep.subr.bf16.mxu1 %v6111_v8  ;;  %v6199_v7 = vld [vmem:[%s8023_s1 + $0x11a0] ss:$16 sps:$4 sm:$0xff]   ;;  %v6202_v8 = vld [vmem:[%s8023_s1 + $0x11a8] ss:$16 sps:$4 sm:$0xff]  }
 0x1ff   : > { %4095 = vmatpush1.bf16.msra.mxu0 %v6106_v9  ;;  %4482 = vmatpush1.bf16.msra.mxu1 %v6109_v10  ;;  %v6207_v9 = vld [vmem:[%s8023_s1 + $0x11c4] ss:$16 sps:$4 sm:$0xff]   ;;  %v6210_v10 = vld [vmem:[%s8023_s1 + $0x11cc] ss:$16 sps:$4 sm:$0xff]  }
 0x200   : > { %4096 = vmatprep.subr.bf16.mxu0 %v6114_v11  ;;  %4483 = vmatprep.subr.bf16.mxu1 %v6117_v12  ;;  %v6205_v11 = vld [vmem:[%s8023_s1 + $0x11c0] ss:$16 sps:$4 sm:$0xff]   ;;  %v6208_v12 = vld [vmem:[%s8023_s1 + $0x11c8] ss:$16 sps:$4 sm:$0xff]  }
 0x203   : > { %4097 = vmatpush1.bf16.msra.mxu0 %v6112_v13  ;;  %4484 = vmatpush1.bf16.msra.mxu1 %v6115_v14  ;;  %v6213_v13 = vld [vmem:[%s8023_s1 + $0x11e4] ss:$16 sps:$4 sm:$0xff]   ;;  %v6216_v14 = vld [vmem:[%s8023_s1 + $0x11ec] ss:$16 sps:$4 sm:$0xff]  }
 0x204   : > { %4109 = vmatprep.subr.bf16.mxu0 %v6123_v15  ;;  %4496 = vmatprep.subr.bf16.mxu1 %v6126_v16  ;;  %v6211_v15 = vld [vmem:[%s8023_s1 + $0x11e0] ss:$16 sps:$4 sm:$0xff]   ;;  %v6214_v16 = vld [vmem:[%s8023_s1 + $0x11e8] ss:$16 sps:$4 sm:$0xff]  }
 0x206   : > { %4099 = vmatmul.mubr.bf16.vlgmr.msra.gmra.mrb[0].mxu0 %v6118_v17  ;;  %4486 = vmatmul.mubr.bf16.vlgmr.msra.gmra.mrb[0].mxu1 %v6118_v17  ;;  %v6217_v17 = vld [vmem:[%s6399_s13 + $0x40] ss:$72 sps:$4 sm:$0xff]   ;;  %s5243_s13 = sshll.u32 %s8027_s24, 4 }
 0x207   : > { %4110 = vmatpush1.bf16.msra.mxu0 %v6121_v18  ;;  %4497 = vmatpush1.bf16.msra.mxu1 %v6124_v19  ;;  %v775_v18 = vlaneseq  ;;  %s177_s18 = scalar_lea.vmem %s8025_s3, %s5243_s13 }
 0x208   : > { %4111 = vmatprep.subr.bf16.mxu0 %v6129_v20  ;;  %4498 = vmatprep.subr.bf16.mxu1 %v6132_v21 }
 0x209   : > { %4141 = vmatprep.mubr.bf16.mxu0 %v6219_v22  ;;  %4528 = vmatprep.mubr.bf16.mxu1 %v6219_v22  ;;  %v776_v19 = vshrl.u32 %v775_v18, 7  ;;  %v773_v22 = vld [vmem:[%s8024_s2] sm:$0xf] }
 0x20b   : > { %4112 = vmatpush1.bf16.msra.mxu0 %v6127_v23  ;;  %4499 = vmatpush1.bf16.msra.mxu1 %v6130_v24  ;;  %v777_v20 = vsub.s32 0, %v776_v19  ;;  %v785_v21 = vsub.s32 2, %v776_v19  ;;  %v781_v23 = vsub.s32 1, %v776_v19  ;;  %v789_v24 = vsub.s32 3, %v776_v19 }
 0x20c   : > { %4113 = vmatprep.subr.bf16.mxu0 %v6135_v25  ;;  %4500 = vmatprep.subr.bf16.mxu1 %v6138_v26 }
 0x20d   : > { %v778_v25 = vrot.slane %v773_v22, %v777_v20  ;;  %v786_v26 = vrot.slane %v773_v22, %v785_v21 }
 0x20f   : > { %4114 = vmatpush1.bf16.msra.mxu0 %v6133_v27  ;;  %4501 = vmatpush1.bf16.msra.mxu1 %v6136_v28  ;;  %v782_v27 = vrot.slane %v773_v22, %v781_v23  ;;  %v790_v28 = vrot.slane %v773_v22, %v789_v24 }
 0x210   : > { %4115 = vmatprep.subr.bf16.mxu0 %v6141_v29  ;;  %4502 = vmatprep.subr.bf16.mxu1 %v6144_v30 }
 0x213   : > { %4116 = vmatpush1.bf16.msra.mxu0 %v6139_v31  ;;  %4503 = vmatpush1.bf16.msra.mxu1 %v6142_v32 }
 0x214   : > { %4117 = vmatprep.subr.bf16.mxu0 %v6147_v33  ;;  %4504 = vmatprep.subr.bf16.mxu1 %v6150_v34 }
 0x217   : > { %4118 = vmatpush1.bf16.msra.mxu0 %v6145_v35  ;;  %4505 = vmatpush1.bf16.msra.mxu1 %v6148_v36 }
 0x218   : > { %4119 = vmatprep.subr.bf16.mxu0 %v6153_v37  ;;  %4506 = vmatprep.subr.bf16.mxu1 %v6156_v38 }
 0x21b   : > { %4120 = vmatpush1.bf16.msra.mxu0 %v6151_v39  ;;  %4507 = vmatpush1.bf16.msra.mxu1 %v6154_v40 }
 0x21c   : > { %4121 = vmatprep.subr.bf16.mxu0 %v6159_v41  ;;  %4508 = vmatprep.subr.bf16.mxu1 %v6162_v42 }
 0x21f   : > { %4122 = vmatpush1.bf16.msra.mxu0 %v6157_v43  ;;  %4509 = vmatpush1.bf16.msra.mxu1 %v6160_v44 }
 0x220   : > { %4123 = vmatprep.subr.bf16.mxu0 %v6165_v45  ;;  %4510 = vmatprep.subr.bf16.mxu1 %v6168_v46 }
 0x223   : > { %4124 = vmatpush1.bf16.msra.mxu0 %v6163_v47  ;;  %4511 = vmatpush1.bf16.msra.mxu1 %v6166_v48 }
 0x224   : > { %4125 = vmatprep.subr.bf16.mxu0 %v6171_v49  ;;  %4512 = vmatprep.subr.bf16.mxu1 %v6174_v50 }
 0x227   : > { %4126 = vmatpush1.bf16.msra.mxu0 %v6169_v51  ;;  %4513 = vmatpush1.bf16.msra.mxu1 %v6172_v52 }
 0x228   : > { %4127 = vmatprep.subr.bf16.mxu0 %v6177_v53  ;;  %4514 = vmatprep.subr.bf16.mxu1 %v6180_v54 }
 0x22b   : > { %4128 = vmatpush1.bf16.msra.mxu0 %v6175_v55  ;;  %4515 = vmatpush1.bf16.msra.mxu1 %v6178_v56 }
 0x22c   : > { %4129 = vmatprep.subr.bf16.mxu0 %v6183_v57  ;;  %4516 = vmatprep.subr.bf16.mxu1 %v6186_v58 }
 0x22f   : > { %4130 = vmatpush1.bf16.msra.mxu0 %v6181_v59  ;;  %4517 = vmatpush1.bf16.msra.mxu1 %v6184_v60 }
 0x230   : > { %4131 = vmatprep.subr.bf16.mxu0 %v6189_v61  ;;  %4518 = vmatprep.subr.bf16.mxu1 %v6192_v62 }
 0x233   : > { %4132 = vmatpush1.bf16.msra.mxu0 %v6187_v63  ;;  %4519 = vmatpush1.bf16.msra.mxu1 %v6190_v0 }
 0x234   : > { %4133 = vmatprep.subr.bf16.mxu0 %v6195_v1  ;;  %4520 = vmatprep.subr.bf16.mxu1 %v6198_v2 }
 0x237   : > { %4134 = vmatpush1.bf16.msra.mxu0 %v6193_v3  ;;  %4521 = vmatpush1.bf16.msra.mxu1 %v6196_v4 }
 0x238   : > { %4135 = vmatprep.subr.bf16.mxu0 %v6201_v5  ;;  %4522 = vmatprep.subr.bf16.mxu1 %v6204_v6 }
 0x23b   : > { %4136 = vmatpush1.bf16.msra.mxu0 %v6199_v7  ;;  %4523 = vmatpush1.bf16.msra.mxu1 %v6202_v8 }
 0x23c   : > { %4137 = vmatprep.subr.bf16.mxu0 %v6207_v9  ;;  %4524 = vmatprep.subr.bf16.mxu1 %v6210_v10 }
 0x23f   : > { %4138 = vmatpush1.bf16.msra.mxu0 %v6205_v11  ;;  %4525 = vmatpush1.bf16.msra.mxu1 %v6208_v12 }
 0x240   : > { %4139 = vmatprep.subr.bf16.mxu0 %v6213_v13  ;;  %4526 = vmatprep.subr.bf16.mxu1 %v6216_v14 }
 0x243   : > { %4140 = vmatpush1.bf16.msra.mxu0 %v6211_v15  ;;  %4527 = vmatpush1.bf16.msra.mxu1 %v6214_v16 }
 0x246   : > { %4142 = vmatmul.mubr.bf16.vlgmr.msra.gmra.mrb[0].mxu0 %v6217_v17  ;;  %4529 = vmatmul.mubr.bf16.vlgmr.msra.gmra.mrb[0].mxu1 %v6217_v17 }
 0x319   : > { %v4143_v29 = vpop.f32.mrb[0].mxu0  ;;  %v4530_v30 = vpop.f32.mrb[0].mxu1 }
 0x31a   : > { %v5248_v31 = vadd.f32 %v4143_v29, %v778_v25  ;;  %v5252_v32 = vadd.f32 %v4530_v30, %v786_v26  ;;  %v4145_v33 = vpop.f32.mrb[1].mxu0  ;;  %v4532_v34 = vpop.f32.mrb[1].mxu1 }
 0x31b   : > { %v5249_v35 = vadd.f32 %v4145_v33, %v782_v27  ;;  %v5253_v36 = vadd.f32 %v4532_v34, %v790_v28  ;;  %v4147_v37 = vpop.f32.mrb[2].mxu0  ;;  %v4534_v38 = vpop.f32.mrb[2].mxu1 }
 0x31c   : > { %v4539_v39 = vmax.f32 %v5248_v31, 0.0  ;;  %v4541_v40 = vmax.f32 %v5252_v32, 0.0  ;;  %v5250_v41 = vadd.f32 %v4147_v37, %v778_v25  ;;  %v5254_v42 = vadd.f32 %v4534_v38, %v786_v26  ;;  %v4149_v43 = vpop.f32.mrb[3].mxu0  ;;  %v4536_v44 = vpop.f32.mrb[3].mxu1 }
 0x31d   : > { %v4540_v45 = vmax.f32 %v5249_v35, 0.0  ;;  %v4542_v46 = vmax.f32 %v5253_v36, 0.0  ;;  %v5251_v47 = vadd.f32 %v4149_v43, %v782_v27  ;;  %v5255_v48 = vadd.f32 %v4536_v44, %v790_v28 }
 0x31e   : > { %v4543_v49 = vmax.f32 %v5250_v41, 0.0  ;;  %v4545_v50 = vmax.f32 %v5254_v42, 0.0 }
 0x31f   : > { %v5244_v51 = vpack.c.bf16 %v4540_v45, %v4539_v39  ;;  %v5245_v52 = vpack.c.bf16 %v4542_v46, %v4541_v40  ;;  %v4544_v53 = vmax.f32 %v5251_v47, 0.0  ;;  %v4546_v54 = vmax.f32 %v5255_v48, 0.0 }
 0x321   : > { %4571 = vst [vmem:[%s177_s18] sm:$0xff] %v5244_v51  ;;  %4572 = vst [vmem:[%s177_s18 + $0x8] sm:$0xff] %v5245_v52  ;;  %v5246_v55 = vpack.c.bf16 %v4544_v53, %v4543_v49  ;;  %v5247_v56 = vpack.c.bf16 %v4546_v54, %v4545_v50 }
 0x323   : > { %4573 = vst [vmem:[%s177_s18 + $0x10] sm:$0xff] %v5246_v55  ;;  %4574 = vst [vmem:[%s177_s18 + $0x18] sm:$0xff] %v5247_v56 }
 0x324 PF: > { %s13_s12 = sadd.s32 1, %s6226_s12  }
 0x325   : > { %p10_p4 = scmp.ge.s32.totalorder %s13_s12, 4  }
 0x327   :  { %12 = sbr.rel (!%p10_p4) target bundleno = 1 (0x1), region = 62 }

// kernel: vae_forward.12
= control target key start
LH: loop header
LB: loop body
LE: loop exit
PB: predicated region body
PF: predicated region fallthrough
CT: control target
= control target key end

     0   :  { %s2387_s12 = smov 0   ;;  %s2925_s0 = inlined_call_operand.vmem [shape: bf16[128,1152], index: 0, kind: input, shape index: {}]   ;;  %s2926_s1 = inlined_call_operand.vmem [shape: bf16[1152,256], index: 1, kind: input, shape index: {}]   ;;  %s2927_s2 = inlined_call_operand.vmem [shape: f32[1,256], index: 2, kind: input, shape index: {}]   ;;  %s2928_s3 = inlined_call_operand.vmem [shape: bf16[128,256], index: 3, kind: output, shape index: {}]  }
   0x1 LB: > { %s1775_s13 = sadd.s32 4294967295, %s2364_s12   ;;  %p1779_p0 = scmp.ge.s32.totalorder %s2364_s12, 1  ;;  %s2364_s12 = sphi %s2387_s12, %s13_s12  }
   0x2   : > { %p139_p1 = scmp.lt.s32.totalorder %s2364_s12, 3 }
   0x4   : > { %p140_p2 = pnand %p1779_p0, %p139_p1 }
   0x5   : > { %v2090_v0 = vld [vmem:[%s2926_s1 + $0x4] ss:$8 sps:$4 sm:$0xff] (!%p140_p2)   ;;  %v2094_v2 = vld [vmem:[%s2926_s1] ss:$8 sps:$4 sm:$0xff] (!%p140_p2)   ;;  %v2096_v4 = vld [vmem:[%s2926_s1 + $0x14] ss:$8 sps:$4 sm:$0xff] (!%p140_p2)  }
   0x6   : > { %143 = sbr.rel (%p140_p2) target bundleno = 397 (0x18d), region = 32  ;;  %v2092_v1 = vld [vmem:[%s2926_s1 + $0x204] ss:$8 sps:$4 sm:$0xff] (!%p140_p2)   ;;  %1280 = vmatprep.subr.bf16.mxu1 (!%p140_p2), %v2090_v0  ;;  %v2095_v3 = vld [vmem:[%s2926_s1 + $0x200] ss:$8 sps:$4 sm:$0xff] (!%p140_p2)   ;;  %s1780_s24 = sshll.u32 (!%p140_p2), %s1775_s13, 3 }
   0x7   : > { %1426 = vmatprep.subr.bf16.mxu0 (!%p140_p2), %v2092_v1  ;;  %1281 = vmatpush1.bf16.msra.mxu1 (!%p140_p2), %v2094_v2  ;;  %v2098_v5 = vld [vmem:[%s2926_s1 + $0x214] ss:$8 sps:$4 sm:$0xff] (!%p140_p2)   ;;  %v2100_v6 = vld [vmem:[%s2926_s1 + $0x10] ss:$8 sps:$4 sm:$0xff] (!%p140_p2)   ;;  %v2102_v8 = vld [vmem:[%s2926_s1 + $0x24] ss:$8 sps:$4 sm:$0xff] (!%p140_p2)  }
   0x8   : > { %1427 = vmatpush1.bf16.msra.mxu0 (!%p140_p2), %v2095_v3  ;;  %1282 = vmatprep.subr.bf16.mxu1 (!%p140_p2), %v2096_v4  ;;  %v2101_v7 = vld [vmem:[%s2926_s1 + $0x210] ss:$8 sps:$4 sm:$0xff] (!%p140_p2)   ;;  %v2104_v9 = vld [vmem:[%s2926_s1 + $0x224] ss:$8 sps:$4 sm:$0xff] (!%p140_p2)   ;;  %v2106_v10 = vld [vmem:[%s2926_s1 + $0x20] ss:$8 sps:$4 sm:$0xff] (!%p140_p2)  }
   0x9   : > { %1428 = vmatprep.subr.bf16.mxu0 (!%p140_p2), %v2098_v5  ;;  %v2107_v11 = vld [vmem:[%s2926_s1 + $0x220] ss:$8 sps:$4 sm:$0xff] (!%p140_p2)   ;;  %v2108_v12 = vld [vmem:[%s2926_s1 + $0x34] ss:$8 sps:$4 sm:$0xff] (!%p140_p2)   ;;  %v2112_v14 = vld [vmem:[%s2926_s1 + $0x30] ss:$8 sps:$4 sm:$0xff] (!%p140_p2)  }
   0xa   : > { %v2110_v13 = vld [vmem:[%s2926_s1 + $0x234] ss:$8 sps:$4 sm:$0xff] (!%p140_p2)   ;;  %v2113_v15 = vld [vmem:[%s2926_s1 + $0x230] ss:$8 sps:$4 sm:$0xff] (!%p140_p2)   ;;  %v2114_v16 = vld [vmem:[%s2926_s1 + $0x44] ss:$8 sps:$4 sm:$0xff] (!%p140_p2)  }
   0xb   : > { %1283 = vmatpush1.bf16.msra.mxu1 (!%p140_p2), %v2100_v6  ;;  %v2116_v17 = vld [vmem:[%s2926_s1 + $0x244] ss:$8 sps:$4 sm:$0xff] (!%p140_p2)   ;;  %v2118_v18 = vld [vmem:[%s2926_s1 + $0x40] ss:$8 sps:$4 sm:$0xff] (!%p140_p2)   ;;  %v2120_v20 = vld [vmem:[%s2926_s1 + $0x54] ss:$8 sps:$4 sm:$0xff] (!%p140_p2)  }
   0xc   : > { %1429 = vmatpush1.bf16.msra.mxu0 (!%p140_p2), %v2101_v7  ;;  %1284 = vmatprep.subr.bf16.mxu1 (!%p140_p2), %v2102_v8  ;;  %v2119_v19 = vld [vmem:[%s2926_s1 + $0x240] ss:$8 sps:$4 sm:$0xff] (!%p140_p2)   ;;  %v2122_v21 = vld [vmem:[%s2926_s1 + $0x254] ss:$8 sps:$4 sm:$0xff] (!%p140_p2)   ;;  %v2124_v22 = vld [vmem:[%s2926_s1 + $0x50] ss:$8 sps:$4 sm:$0xff] (!%p140_p2)  }
   0xd   : > { %1430 = vmatprep.subr.bf16.mxu0 %v2104_v9  ;;  %v2125_v23 = vld [vmem:[%s2926_s1 + $0x250] ss:$8 sps:$4 sm:$0xff]   ;;  %v2126_v24 = vld [vmem:[%s2926_s1 + $0x64] ss:$8 sps:$4 sm:$0xff]   ;;  %v2130_v26 = vld [vmem:[%s2926_s1 + $0x60] ss:$8 sps:$4 sm:$0xff]  }
   0xe   : > { %v2128_v25 = vld [vmem:[%s2926_s1 + $0x264] ss:$8 sps:$4 sm:$0xff]   ;;  %v2131_v27 = vld [vmem:[%s2926_s1 + $0x260] ss:$8 sps:$4 sm:$0xff]   ;;  %v2132_v28 = vld [vmem:[%s2926_s1 + $0x74] ss:$8 sps:$4 sm:$0xff]  }
   0xf   : > { %1285 = vmatpush1.bf16.msra.mxu1 %v2106_v10  ;;  %v2134_v29 = vld [vmem:[%s2926_s1 + $0x274] ss:$8 sps:$4 sm:$0xff]   ;;  %v2136_v30 = vld [vmem:[%s2926_s1 + $0x70] ss:$8 sps:$4 sm:$0xff]   ;;  %v2138_v32 = vld [vmem:[%s2926_s1 + $0x84] ss:$8 sps:$4 sm:$0xff]  }
  0x10   : > { %1431 = vmatpush1.bf16.msra.mxu0 %v2107_v11  ;;  %1286 = vmatprep.subr.bf16.mxu1 %v2108_v12  ;;  %v2137_v31 = vld [vmem:[%s2926_s1 + $0x270] ss:$8 sps:$4 sm:$0xff]   ;;  %p166_p3 = scmp.lt.s32.totalorder %s1780_s24, 15  ;;  %v2140_v33 = vld [vmem:[%s2926_s1 + $0x284] ss:$8 sps:$4 sm:$0xff]  }
  0x11   : > { %1432 = vmatprep.subr.bf16.mxu0 %v2110_v13  ;;  %v2142_v34 = vld [vmem:[%s2926_s1 + $0x80] ss:$8 sps:$4 sm:$0xff]   ;;  %v2144_v36 = vld [vmem:[%s2926_s1 + $0x94] ss:$8 sps:$4 sm:$0xff]   ;;  %v2148_v38 = vld [vmem:[%s2926_s1 + $0x90] ss:$8 sps:$4 sm:$0xff]  }
  0x12   : > { %v2143_v35 = vld [vmem:[%s2926_s1 + $0x280] ss:$8 sps:$4 sm:$0xff]   ;;  %s2930_s24 = smov (!%p166_p3, %s1780_s24), 15  ;;  %v2146_v37 = vld [vmem:[%s2926_s1 + $0x294] ss:$8 sps:$4 sm:$0xff]  }
  0x13   : > { %1287 = vmatpush1.bf16.msra.mxu1 %v2112_v14  ;;  %v2149_v39 = vld [vmem:[%s2926_s1 + $0x290] ss:$8 sps:$4 sm:$0xff]   ;;  %v2150_v40 = vld [vmem:[%s2926_s1 + $0xa4] ss:$8 sps:$4 sm:$0xff]   ;;  %s2080_s21 = smul.u32 36, %s2930_s24 }
  0x14   : > { %1433 = vmatpush1.bf16.msra.mxu0 %v2113_v15  ;;  %1288 = vmatprep.subr.bf16.mxu1 %v2114_v16  ;;  %v2152_v41 = vld [vmem:[%s2926_s1 + $0x2a4] ss:$8 sps:$4 sm:$0xff]   ;;  %v2154_v42 = vld [vmem:[%s2926_s1 + $0xa0] ss:$8 sps:$4 sm:$0xff]   ;;  %v2156_v44 = vld [vmem:[%s2926_s1 + $0xb4] ss:$8 sps:$4 sm:$0xff]  }
  0x15   : > { %1434 = vmatprep.subr.bf16.mxu0 %v2116_v17  ;;  %v2155_v43 = vld [vmem:[%s2926_s1 + $0x2a0] ss:$8 sps:$4 sm:$0xff]   ;;  %s2538_s13 = scalar_lea.vmem %s2925_s0, %s2080_s21  ;;  %v2158_v45 = vld [vmem:[%s2926_s1 + $0x2b4] ss:$8 sps:$4 sm:$0xff]   ;;  %v2160_v46 = vld [vmem:[%s2926_s1 + $0xb0] ss:$8 sps:$4 sm:$0xff]  }
  0x16   : > { %v2161_v47 = vld [vmem:[%s2926_s1 + $0x2b0] ss:$8 sps:$4 sm:$0xff]   ;;  %v2188_v48 = vld [vmem:[%s2538_s13 + $0x4] ss:$36 sps:$4 sm:$0xff]   ;;  %v2168_v54 = vld [vmem:[%s2926_s1 + $0xd4] ss:$8 sps:$4 sm:$0xff]  }
  0x17   : > { %1289 = vmatpush1.bf16.msra.mxu1 %v2118_v18  ;;  %v2162_v49 = vld [vmem:[%s2926_s1 + $0xc4] ss:$8 sps:$4 sm:$0xff]   ;;  %1312 = vmatprep.mubr.bf16.mxu1 %v2188_v48  ;;  %v2194_v51 = vld [vmem:[%s2538_s13 + $0x14] ss:$36 sps:$4 sm:$0xff]   ;;  %v2166_v52 = vld [vmem:[%s2926_s1 + $0xc0] ss:$8 sps:$4 sm:$0xff]  }
  0x18   : > { %1435 = vmatpush1.bf16.msra.mxu0 %v2119_v19  ;;  %1290 = vmatprep.subr.bf16.mxu1 %v2120_v20  ;;  %v2164_v50 = vld [vmem:[%s2926_s1 + $0x2c4] ss:$8 sps:$4 sm:$0xff]   ;;  %v2167_v53 = vld [vmem:[%s2926_s1 + $0x2c0] ss:$8 sps:$4 sm:$0xff]   ;;  %v2170_v55 = vld [vmem:[%s2926_s1 + $0x2d4] ss:$8 sps:$4 sm:$0xff]  }
  0x19   : > { %1436 = vmatprep.subr.bf16.mxu0 %v2122_v21  ;;  %1458 = vmatprep.mubr.bf16.mxu0 %v2194_v51  ;;  %v2172_v56 = vld [vmem:[%s2926_s1 + $0xd0] ss:$8 sps:$4 sm:$0xff]   ;;  %v2174_v58 = vld [vmem:[%s2926_s1 + $0xe4] ss:$8 sps:$4 sm:$0xff]   ;;  %v2178_v60 = vld [vmem:[%s2926_s1 + $0xe0] ss:$8 sps:$4 sm:$0xff]  }
  0x1a   : > { %v2173_v57 = vld [vmem:[%s2926_s1 + $0x2d0] ss:$8 sps:$4 sm:$0xff]   ;;  %v2176_v59 = vld [vmem:[%s2926_s1 + $0x2e4] ss:$8 sps:$4 sm:$0xff]   ;;  %v2179_v61 = vld [vmem:[%s2926_s1 + $0x2e0] ss:$8 sps:$4 sm:$0xff]  }
  0x1b   : > { %1291 = vmatpush1.bf16.msra.mxu1 %v2124_v22  ;;  %v2180_v62 = vld [vmem:[%s2926_s1 + $0xf4] ss:$8 sps:$4 sm:$0xff]   ;;  %v2184_v0 = vld [vmem:[%s2926_s1 + $0xf0] ss:$8 sps:$4 sm:$0xff]   ;;  %v2191_v2 = vld [vmem:[%s2926_s1 + $0x104] ss:$8 sps:$4 sm:$0xff]  }
  0x1c   : > { %1437 = vmatpush1.bf16.msra.mxu0 %v2125_v23  ;;  %1292 = vmatprep.subr.bf16.mxu1 %v2126_v24  ;;  %v2182_v63 = vld [vmem:[%s2926_s1 + $0x2f4] ss:$8 sps:$4 sm:$0xff]   ;;  %v2185_v1 = vld [vmem:[%s2926_s1 + $0x2f0] ss:$8 sps:$4 sm:$0xff]   ;;  %v2197_v3 = vld [vmem:[%s2926_s1 + $0x304] ss:$8 sps:$4 sm:$0xff]  }
  0x1d   : > { %1438 = vmatprep.subr.bf16.mxu0 %v2128_v25  ;;  %v2186_v4 = vld [vmem:[%s2538_s13] ss:$36 sps:$4 sm:$0xff]   ;;  %v2192_v6 = vld [vmem:[%s2538_s13 + $0x10] ss:$36 sps:$4 sm:$0xff]   ;;  %v2256_v20 = vld [vmem:[%s2538_s13 + $0x48] ss:$36 sps:$4 sm:$0xff]  }
  0x1e   : > { %v2189_v5 = vld [vmem:[%s2926_s1 + $0x100] ss:$8 sps:$4 sm:$0xff]   ;;  %v2200_v8 = vld [vmem:[%s2926_s1 + $0x114] ss:$8 sps:$4 sm:$0xff]   ;;  %v2198_v10 = vld [vmem:[%s2926_s1 + $0x110] ss:$8 sps:$4 sm:$0xff]  }
  0x1f   : > { %1293 = vmatpush1.bf16.msra.mxu1 %v2130_v26  ;;  %v2195_v7 = vld [vmem:[%s2926_s1 + $0x300] ss:$8 sps:$4 sm:$0xff]   ;;  %v2203_v9 = vld [vmem:[%s2926_s1 + $0x314] ss:$8 sps:$4 sm:$0xff]   ;;  %v2201_v11 = vld [vmem:[%s2926_s1 + $0x310] ss:$8 sps:$4 sm:$0xff]  }
  0x20   : > { %1439 = vmatpush1.bf16.msra.mxu0 %v2131_v27  ;;  %1294 = vmatprep.subr.bf16.mxu1 %v2132_v28  ;;  %v2206_v12 = vld [vmem:[%s2926_s1 + $0x124] ss:$8 sps:$4 sm:$0xff]   ;;  %v2204_v14 = vld [vmem:[%s2926_s1 + $0x120] ss:$8 sps:$4 sm:$0xff]   ;;  %v2212_v16 = vld [vmem:[%s2926_s1 + $0x134] ss:$8 sps:$4 sm:$0xff]  }
  0x21   : > { %1440 = vmatprep.subr.bf16.mxu0 %v2134_v29  ;;  %v2209_v13 = vld [vmem:[%s2926_s1 + $0x324] ss:$8 sps:$4 sm:$0xff]   ;;  %v2207_v15 = vld [vmem:[%s2926_s1 + $0x320] ss:$8 sps:$4 sm:$0xff]   ;;  %v2215_v17 = vld [vmem:[%s2926_s1 + $0x334] ss:$8 sps:$4 sm:$0xff]  }
  0x22   : > { %v2252_v18 = vld [vmem:[%s2538_s13 + $0x4c] ss:$36 sps:$4 sm:$0xff]   ;;  %v2254_v19 = vld [vmem:[%s2538_s13 + $0x5c] ss:$36 sps:$4 sm:$0xff]  }
  0x23   : > { %1295 = vmatpush1.bf16.msra.mxu1 %v2136_v30  ;;  %v2210_v21 = vld [vmem:[%s2926_s1 + $0x130] ss:$8 sps:$4 sm:$0xff]   ;;  %v2218_v24 = vld [vmem:[%s2926_s1 + $0x144] ss:$8 sps:$4 sm:$0xff]   ;;  %v2216_v26 = vld [vmem:[%s2926_s1 + $0x140] ss:$8 sps:$4 sm:$0xff]  }
  0x24   : > { %1441 = vmatpush1.bf16.msra.mxu0 %v2137_v31  ;;  %1296 = vmatprep.subr.bf16.mxu1 %v2138_v32  ;;  %v2213_v22 = vld [vmem:[%s2926_s1 + $0x330] ss:$8 sps:$4 sm:$0xff]   ;;  %v2221_v25 = vld [vmem:[%s2926_s1 + $0x344] ss:$8 sps:$4 sm:$0xff]   ;;  %v2219_v27 = vld [vmem:[%s2926_s1 + $0x340] ss:$8 sps:$4 sm:$0xff]  }
  0x25   : > { %1442 = vmatprep.subr.bf16.mxu0 %v2140_v33  ;;  %v2260_v23 = vld [vmem:[%s2538_s13 + $0x58] ss:$36 sps:$4 sm:$0xff]   ;;  %v2272_v31 = vld [vmem:[%s2538_s13 + $0xa4] ss:$36 sps:$4 sm:$0xff]   ;;  %v2274_v32 = vld [vmem:[%s2538_s13 + $0x90] ss:$36 sps:$4 sm:$0xff]  }
  0x26   : > { %v2224_v28 = vld [vmem:[%s2926_s1 + $0x154] ss:$8 sps:$4 sm:$0xff]   ;;  %v2222_v33 = vld [vmem:[%s2926_s1 + $0x150] ss:$8 sps:$4 sm:$0xff]   ;;  %v2242_v48 = vld [vmem:[%s2926_s1 + $0x184] ss:$8 sps:$4 sm:$0xff]  }
  0x27   : > { %1297 = vmatpush1.bf16.msra.mxu1 %v2142_v34  ;;  %v2227_v29 = vld [vmem:[%s2926_s1 + $0x354] ss:$8 sps:$4 sm:$0xff]   ;;  %v2225_v34 = vld [vmem:[%s2926_s1 + $0x350] ss:$8 sps:$4 sm:$0xff]   ;;  %v2243_v51 = vld [vmem:[%s2926_s1 + $0x380] ss:$8 sps:$4 sm:$0xff]  }
  0x28   : > { %1443 = vmatpush1.bf16.msra.mxu0 %v2143_v35  ;;  %1298 = vmatprep.subr.bf16.mxu1 %v2144_v36  ;;  %v2270_v30 = vld [vmem:[%s2538_s13 + $0x94] ss:$36 sps:$4 sm:$0xff]   ;;  %v2278_v35 = vld [vmem:[%s2538_s13 + $0xa0] ss:$36 sps:$4 sm:$0xff]  }
  0x29   : > { %1444 = vmatprep.subr.bf16.mxu0 %v2146_v37  ;;  %v2230_v36 = vld [vmem:[%s2926_s1 + $0x164] ss:$8 sps:$4 sm:$0xff]  }
  0x2a   : > { %v2233_v37 = vld [vmem:[%s2926_s1 + $0x364] ss:$8 sps:$4 sm:$0xff]  }
  0x2b   : > { %1299 = vmatpush1.bf16.msra.mxu1 %v2148_v38  ;;  %v2228_v38 = vld [vmem:[%s2926_s1 + $0x160] ss:$8 sps:$4 sm:$0xff]  }
  0x2c   : > { %1445 = vmatpush1.bf16.msra.mxu0 %v2149_v39  ;;  %1300 = vmatprep.subr.bf16.mxu1 %v2150_v40  ;;  %v2231_v39 = vld [vmem:[%s2926_s1 + $0x360] ss:$8 sps:$4 sm:$0xff]   ;;  %v2236_v40 = vld [vmem:[%s2926_s1 + $0x174] ss:$8 sps:$4 sm:$0xff]  }
  0x2d   : > { %1446 = vmatprep.subr.bf16.mxu0 %v2152_v41  ;;  %v2239_v41 = vld [vmem:[%s2926_s1 + $0x374] ss:$8 sps:$4 sm:$0xff]  }
  0x2f   : > { %1301 = vmatpush1.bf16.msra.mxu1 %v2154_v42  ;;  %v2288_v42 = vld [vmem:[%s2538_s13 + $0xdc] ss:$36 sps:$4 sm:$0xff]  }
  0x30   : > { %1447 = vmatpush1.bf16.msra.mxu0 %v2155_v43  ;;  %1302 = vmatprep.subr.bf16.mxu1 %v2156_v44  ;;  %v2290_v43 = vld [vmem:[%s2538_s13 + $0xec] ss:$36 sps:$4 sm:$0xff]   ;;  %v2292_v44 = vld [vmem:[%s2538_s13 + $0xd8] ss:$36 sps:$4 sm:$0xff]  }
  0x31   : > { %1448 = vmatprep.subr.bf16.mxu0 %v2158_v45  ;;  %v2234_v45 = vld [vmem:[%s2926_s1 + $0x170] ss:$8 sps:$4 sm:$0xff]  }
  0x33   : > { %1303 = vmatpush1.bf16.msra.mxu1 %v2160_v46  ;;  %v2237_v46 = vld [vmem:[%s2926_s1 + $0x370] ss:$8 sps:$4 sm:$0xff]  }
  0x34   : > { %1449 = vmatpush1.bf16.msra.mxu0 %v2161_v47  ;;  %1304 = vmatprep.subr.bf16.mxu1 %v2162_v49  ;;  %v2296_v47 = vld [vmem:[%s2538_s13 + $0xe8] ss:$36 sps:$4 sm:$0xff]  }
  0x35   : > { %1450 = vmatprep.subr.bf16.mxu0 %v2164_v50  ;;  %v2245_v49 = vld [vmem:[%s2926_s1 + $0x384] ss:$8 sps:$4 sm:$0xff]   ;;  %v2240_v50 = vld [vmem:[%s2926_s1 + $0x180] ss:$8 sps:$4 sm:$0xff]  }
  0x37   : > { %1305 = vmatpush1.bf16.msra.mxu1 %v2166_v52  ;;  %v2248_v52 = vld [vmem:[%s2926_s1 + $0x194] ss:$8 sps:$4 sm:$0xff]  }
  0x38   : > { %1451 = vmatpush1.bf16.msra.mxu0 %v2167_v53  ;;  %1306 = vmatprep.subr.bf16.mxu1 %v2168_v54  ;;  %v2251_v53 = vld [vmem:[%s2926_s1 + $0x394] ss:$8 sps:$4 sm:$0xff]   ;;  %v2308_v54 = vld [vmem:[%s2538_s13 + $0xc] ss:$36 sps:$4 sm:$0xff]  }
  0x39   : > { %1452 = vmatprep.subr.bf16.mxu0 %v2170_v55  ;;  %v2311_v55 = vld [vmem:[%s2538_s13 + $0x1c] ss:$36 sps:$4 sm:$0xff]  }
  0x3b   : > { %1307 = vmatpush1.bf16.msra.mxu1 %v2172_v56  ;;  %v2246_v56 = vld [vmem:[%s2926_s1 + $0x190] ss:$8 sps:$4 sm:$0xff]  }
  0x3c   : > { %1453 = vmatpush1.bf16.msra.mxu0 %v2173_v57  ;;  %1308 = vmatprep.subr.bf16.mxu1 %v2174_v58  ;;  %v2249_v57 = vld [vmem:[%s2926_s1 + $0x390] ss:$8 sps:$4 sm:$0xff]   ;;  %v2259_v58 = vld [vmem:[%s2926_s1 + $0x1a4] ss:$8 sps:$4 sm:$0xff]  }
  0x3d   : > { %1454 = vmatprep.subr.bf16.mxu0 %v2176_v59  ;;  %v2263_v59 = vld [vmem:[%s2926_s1 + $0x3a4] ss:$8 sps:$4 sm:$0xff]  }
  0x3f   : > { %1309 = vmatpush1.bf16.msra.mxu1 %v2178_v60  ;;  %v2257_v60 = vld [vmem:[%s2926_s1 + $0x1a0] ss:$8 sps:$4 sm:$0xff]  }
  0x40   : > { %1455 = vmatpush1.bf16.msra.mxu0 %v2179_v61  ;;  %1310 = vmatprep.subr.bf16.mxu1 %v2180_v62  ;;  %v2261_v61 = vld [vmem:[%s2926_s1 + $0x3a0] ss:$8 sps:$4 sm:$0xff]   ;;  %v2266_v62 = vld [vmem:[%s2926_s1 + $0x1b4] ss:$8 sps:$4 sm:$0xff]  }
  0x41   : > { %1456 = vmatprep.subr.bf16.mxu0 %v2182_v63  ;;  %v2269_v63 = vld [vmem:[%s2926_s1 + $0x3b4] ss:$8 sps:$4 sm:$0xff]  }
  0x43   : > { %1311 = vmatpush1.bf16.msra.mxu1 %v2184_v0  ;;  %v2264_v0 = vld [vmem:[%s2926_s1 + $0x1b0] ss:$8 sps:$4 sm:$0xff]  }
  0x44   : > { %1457 = vmatpush1.bf16.msra.mxu0 %v2185_v1  ;;  %1353 = vmatprep.subr.bf16.mxu1 %v2191_v2  ;;  %v2267_v1 = vld [vmem:[%s2926_s1 + $0x3b0] ss:$8 sps:$4 sm:$0xff]   ;;  %v2277_v2 = vld [vmem:[%s2926_s1 + $0x1c4] ss:$8 sps:$4 sm:$0xff]  }
  0x45   : > { %1499 = vmatprep.subr.bf16.mxu0 %v2197_v3  ;;  %v2281_v3 = vld [vmem:[%s2926_s1 + $0x3c4] ss:$8 sps:$4 sm:$0xff]  }
  0x46   : > { %1313 = vmatmul.mubr.bf16.vlgmr.msra.gmra.mrb[0].mxu1 %v2186_v4  ;;  %v2275_v4 = vld [vmem:[%s2926_s1 + $0x1c0] ss:$8 sps:$4 sm:$0xff]  }
  0x47   : > { %1459 = vmatmul.mubr.bf16.vlgmr.msra.gmra.mrb[0].mxu0 %v2192_v6  ;;  %1354 = vmatpush1.bf16.msra.mxu1 %v2189_v5  ;;  %v2279_v5 = vld [vmem:[%s2926_s1 + $0x3c0] ss:$8 sps:$4 sm:$0xff]   ;;  %v2284_v6 = vld [vmem:[%s2926_s1 + $0x1d4] ss:$8 sps:$4 sm:$0xff]  }
  0x48   : > { %1500 = vmatpush1.bf16.msra.mxu0 %v2195_v7  ;;  %1355 = vmatprep.subr.bf16.mxu1 %v2200_v8  ;;  %v2287_v7 = vld [vmem:[%s2926_s1 + $0x3d4] ss:$8 sps:$4 sm:$0xff]   ;;  %v2282_v8 = vld [vmem:[%s2926_s1 + $0x1d0] ss:$8 sps:$4 sm:$0xff]  }
  0x49   : > { %1501 = vmatprep.subr.bf16.mxu0 %v2203_v9  ;;  %1322 = vmatprep.mubr.bf16.mxu1 %v2252_v18  ;;  %v2285_v9 = vld [vmem:[%s2926_s1 + $0x3d0] ss:$8 sps:$4 sm:$0xff]   ;;  %v2314_v18 = vld [vmem:[%s2926_s1 + $0x404] ss:$8 sps:$4 sm:$0xff]  }
  0x4a   : > { %1468 = vmatprep.mubr.bf16.mxu0 %v2254_v19  ;;  %v2306_v19 = vld [vmem:[%s2538_s13 + $0x8] ss:$36 sps:$4 sm:$0xff]  }
  0x4b   : > { %1356 = vmatpush1.bf16.msra.mxu1 %v2198_v10  ;;  %v2295_v10 = vld [vmem:[%s2926_s1 + $0x1e4] ss:$8 sps:$4 sm:$0xff]  }
  0x4c   : > { %1502 = vmatpush1.bf16.msra.mxu0 %v2201_v11  ;;  %1357 = vmatprep.subr.bf16.mxu1 %v2206_v12  ;;  %v2299_v11 = vld [vmem:[%s2926_s1 + $0x3e4] ss:$8 sps:$4 sm:$0xff]   ;;  %v2293_v12 = vld [vmem:[%s2926_s1 + $0x1e0] ss:$8 sps:$4 sm:$0xff]  }
  0x4d   : > { %1503 = vmatprep.subr.bf16.mxu0 %v2209_v13  ;;  %v2297_v13 = vld [vmem:[%s2926_s1 + $0x3e0] ss:$8 sps:$4 sm:$0xff]  }
  0x4e   : > { %1323 = vmatmul.mubr.bf16.gmra.mrb[4].mxu1 %v2256_v20  ;;  %v2309_v20 = vld [vmem:[%s2538_s13 + $0x18] ss:$36 sps:$4 sm:$0xff]  }
  0x4f   : > { %1358 = vmatpush1.bf16.msra.mxu1 %v2204_v14  ;;  %1469 = vmatmul.mubr.bf16.gmra.mrb[4].mxu0 %v2260_v23  ;;  %v2302_v14 = vld [vmem:[%s2926_s1 + $0x1f4] ss:$8 sps:$4 sm:$0xff]  }
  0x50   : > { %1504 = vmatpush1.bf16.msra.mxu0 %v2207_v15  ;;  %1359 = vmatprep.subr.bf16.mxu1 %v2212_v16  ;;  %v2305_v15 = vld [vmem:[%s2926_s1 + $0x3f4] ss:$8 sps:$4 sm:$0xff]   ;;  %v2300_v16 = vld [vmem:[%s2926_s1 + $0x1f0] ss:$8 sps:$4 sm:$0xff]  }
  0x51   : > { %1505 = vmatprep.subr.bf16.mxu0 %v2215_v17  ;;  %1332 = vmatprep.mubr.bf16.mxu1 %v2270_v30  ;;  %v2303_v17 = vld [vmem:[%s2926_s1 + $0x3f0] ss:$8 sps:$4 sm:$0xff]   ;;  %v2329_v30 = vld [vmem:[%s2926_s1 + $0x434] ss:$8 sps:$4 sm:$0xff]  }
  0x52   : > { %1478 = vmatprep.mubr.bf16.mxu0 %v2272_v31  ;;  %v2318_v23 = vld [vmem:[%s2538_s13 + $0x54] ss:$36 sps:$4 sm:$0xff]   ;;  %v2330_v31 = vld [vmem:[%s2538_s13 + $0x9c] ss:$36 sps:$4 sm:$0xff]  }
  0x53   : > { %1360 = vmatpush1.bf16.msra.mxu1 %v2210_v21  ;;  %v2312_v21 = vld [vmem:[%s2926_s1 + $0x400] ss:$8 sps:$4 sm:$0xff]  }
  0x54   : > { %1506 = vmatpush1.bf16.msra.mxu0 %v2213_v22  ;;  %1361 = vmatprep.subr.bf16.mxu1 %v2218_v24  ;;  %v2317_v22 = vld [vmem:[%s2926_s1 + $0x414] ss:$8 sps:$4 sm:$0xff]   ;;  %v2320_v24 = vld [vmem:[%s2538_s13 + $0x64] ss:$36 sps:$4 sm:$0xff]  }
  0x55   : > { %1507 = vmatprep.subr.bf16.mxu0 %v2221_v25  ;;  %v2315_v25 = vld [vmem:[%s2926_s1 + $0x410] ss:$8 sps:$4 sm:$0xff]  }
  0x56   : > { %1333 = vmatmul.mubr.bf16.gmra.mrb[8].mxu1 %v2274_v32  ;;  %v2332_v32 = vld [vmem:[%s2538_s13 + $0xac] ss:$36 sps:$4 sm:$0xff]  }
  0x57   : > { %1362 = vmatpush1.bf16.msra.mxu1 %v2216_v26  ;;  %1479 = vmatmul.mubr.bf16.gmra.mrb[8].mxu0 %v2278_v35  ;;  %v2326_v26 = vld [vmem:[%s2926_s1 + $0x424] ss:$8 sps:$4 sm:$0xff]   ;;  %v2334_v35 = vld [vmem:[%s2538_s13 + $0x98] ss:$36 sps:$4 sm:$0xff]  }
  0x58   : > { %1508 = vmatpush1.bf16.msra.mxu0 %v2219_v27  ;;  %1363 = vmatprep.subr.bf16.mxu1 %v2224_v28  ;;  %v2322_v27 = vld [vmem:[%s2538_s13 + $0x50] ss:$36 sps:$4 sm:$0xff]   ;;  %v2323_v28 = vld [vmem:[%s2538_s13 + $0x60] ss:$36 sps:$4 sm:$0xff]  }
  0x59   : > { %1509 = vmatprep.subr.bf16.mxu0 %v2227_v29  ;;  %1342 = vmatprep.mubr.bf16.mxu1 %v2288_v42  ;;  %v2324_v29 = vld [vmem:[%s2926_s1 + $0x420] ss:$8 sps:$4 sm:$0xff]   ;;  %v2350_v42 = vld [vmem:[%s2926_s1 + $0x464] ss:$8 sps:$4 sm:$0xff]  }
  0x5a   : > { %1488 = vmatprep.mubr.bf16.mxu0 %v2290_v43  ;;  %v2346_v43 = vld [vmem:[%s2538_s13 + $0xe0] ss:$36 sps:$4 sm:$0xff]  }
  0x5b   : > { %1364 = vmatpush1.bf16.msra.mxu1 %v2222_v33  ;;  %v2327_v33 = vld [vmem:[%s2926_s1 + $0x430] ss:$8 sps:$4 sm:$0xff]  }
  0x5c   : > { %1510 = vmatpush1.bf16.msra.mxu0 %v2225_v34  ;;  %1365 = vmatprep.subr.bf16.mxu1 %v2230_v36  ;;  %v2338_v34 = vld [vmem:[%s2926_s1 + $0x444] ss:$8 sps:$4 sm:$0xff]  }
  0x5d   : > { %1511 = vmatprep.subr.bf16.mxu0 %v2233_v37  ;;  %v2335_v36 = vld [vmem:[%s2538_s13 + $0xa8] ss:$36 sps:$4 sm:$0xff]  }
  0x5e   : > { %1343 = vmatmul.mubr.bf16.gmra.mrb[12].mxu1 %v2292_v44  ;;  %v2336_v37 = vld [vmem:[%s2926_s1 + $0x440] ss:$8 sps:$4 sm:$0xff]   ;;  %v2347_v44 = vld [vmem:[%s2538_s13 + $0xf0] ss:$36 sps:$4 sm:$0xff]  }
  0x5f   : > { %1366 = vmatpush1.bf16.msra.mxu1 %v2228_v38  ;;  %1489 = vmatmul.mubr.bf16.gmra.mrb[12].mxu0 %v2296_v47  ;;  %v2341_v38 = vld [vmem:[%s2926_s1 + $0x454] ss:$8 sps:$4 sm:$0xff]   ;;  %v2351_v47 = vld [vmem:[%s2926_s1 + $0x470] ss:$8 sps:$4 sm:$0xff]  }
  0x60   : > { %1512 = vmatpush1.bf16.msra.mxu0 %v2231_v39  ;;  %1367 = vmatprep.subr.bf16.mxu1 %v2236_v40  ;;  %v2342_v39 = vld [vmem:[%s2538_s13 + $0xe4] ss:$36 sps:$4 sm:$0xff]   ;;  %v2344_v40 = vld [vmem:[%s2538_s13 + $0xf4] ss:$36 sps:$4 sm:$0xff]  }
  0x61   : > { %1513 = vmatprep.subr.bf16.mxu0 %v2239_v41  ;;  %1385 = vmatprep.mubr.bf16.mxu1 %v2308_v54  ;;  %v2339_v41 = vld [vmem:[%s2926_s1 + $0x450] ss:$8 sps:$4 sm:$0xff]  }
  0x62   : > { %1531 = vmatprep.mubr.bf16.mxu0 %v2311_v55 }
  0x63   : > { %1368 = vmatpush1.bf16.msra.mxu1 %v2234_v45  ;;  %v2348_v45 = vld [vmem:[%s2926_s1 + $0x460] ss:$8 sps:$4 sm:$0xff]  }
  0x64   : > { %1514 = vmatpush1.bf16.msra.mxu0 %v2237_v46  ;;  %1369 = vmatprep.subr.bf16.mxu1 %v2242_v48  ;;  %v2353_v46 = vld [vmem:[%s2926_s1 + $0x474] ss:$8 sps:$4 sm:$0xff]   ;;  %v2366_v48 = vmov 0  }
  0x65   : > { %1515 = vmatprep.subr.bf16.mxu0 %v2245_v49  ;;  %v2354_v49 = vld [vmem:[%s2538_s13 + $0x20] ss:$36 sps:$4 sm:$0xff]  }
  0x67   : > { %1370 = vmatpush1.bf16.msra.mxu1 %v2240_v50  ;;  %v2355_v50 = vld [vmem:[%s2538_s13 + $0xb0] ss:$36 sps:$4 sm:$0xff]  }
  0x68   : > { %1516 = vmatpush1.bf16.msra.mxu0 %v2243_v51  ;;  %1371 = vmatprep.subr.bf16.mxu1 %v2248_v52  ;;  %v2356_v51 = vld [vmem:[%s2538_s13 + $0x68] ss:$36 sps:$4 sm:$0xff]   ;;  %v2357_v52 = vld [vmem:[%s2538_s13 + $0xf8] ss:$36 sps:$4 sm:$0xff]   ;;  %s1975_s13 = sshll.u32 %s2930_s24, 3 }
  0x69   : > { %1517 = vmatprep.subr.bf16.mxu0 %v2251_v53  ;;  %s2904_s18 = scalar_lea.vmem %s2928_s3, %s1975_s13 }
  0x6b   : > { %1372 = vmatpush1.bf16.msra.mxu1 %v2246_v56  ;;  %v366_v56 = vlaneseq }
  0x6c   : > { %1518 = vmatpush1.bf16.msra.mxu0 %v2249_v57  ;;  %1373 = vmatprep.subr.bf16.mxu1 %v2259_v58 }
  0x6d   : > { %1519 = vmatprep.subr.bf16.mxu0 %v2263_v59  ;;  %v367_v58 = vshrl.u32 %v366_v56, 7 }
  0x6f   : > { %1374 = vmatpush1.bf16.msra.mxu1 %v2257_v60 }
  0x70   : > { %1520 = vmatpush1.bf16.msra.mxu0 %v2261_v61  ;;  %1375 = vmatprep.subr.bf16.mxu1 %v2266_v62  ;;  %v368_v62 = vsub.s32 0, %v367_v58 }
  0x71   : > { %1521 = vmatprep.subr.bf16.mxu0 %v2269_v63 }
  0x73   : > { %1376 = vmatpush1.bf16.msra.mxu1 %v2264_v0  ;;  %v364_v0 = vld [vmem:[%s2927_s2] sm:$0x3] }
  0x74   : > { %1522 = vmatpush1.bf16.msra.mxu0 %v2267_v1  ;;  %1377 = vmatprep.subr.bf16.mxu1 %v2277_v2  ;;  %v372_v1 = vsub.s32 1, %v367_v58  ;;  %v2884_v2 = vrot.slane %v364_v0, %v368_v62 }
  0x75   : > { %1523 = vmatprep.subr.bf16.mxu0 %v2281_v3 }
  0x76   : > { %v2886_v3 = vrot.slane %v364_v0, %v372_v1 }
  0x77   : > { %1378 = vmatpush1.bf16.msra.mxu1 %v2275_v4 }
  0x78   : > { %1524 = vmatpush1.bf16.msra.mxu0 %v2279_v5  ;;  %1379 = vmatprep.subr.bf16.mxu1 %v2284_v6 }
  0x79   : > { %1525 = vmatprep.subr.bf16.mxu0 %v2287_v7 }
  0x7b   : > { %1380 = vmatpush1.bf16.msra.mxu1 %v2282_v8 }
  0x7c   : > { %1526 = vmatpush1.bf16.msra.mxu0 %v2285_v9  ;;  %1381 = vmatprep.subr.bf16.mxu1 %v2295_v10 }
  0x7d   : > { %1527 = vmatprep.subr.bf16.mxu0 %v2299_v11 }
  0x7f   : > { %1382 = vmatpush1.bf16.msra.mxu1 %v2293_v12 }
  0x80   : > { %1528 = vmatpush1.bf16.msra.mxu0 %v2297_v13  ;;  %1383 = vmatprep.subr.bf16.mxu1 %v2302_v14 }
  0x81   : > { %1529 = vmatprep.subr.bf16.mxu0 %v2305_v15 }
  0x83   : > { %1384 = vmatpush1.bf16.msra.mxu1 %v2300_v16 }
  0x84   : > { %1530 = vmatpush1.bf16.msra.mxu0 %v2303_v17  ;;  %1984 = vmatprep.subr.bf16.mxu1 %v2314_v18 }
  0x85   : > { %1572 = vmatprep.subr.bf16.mxu0 %v2314_v18 }
  0x86   : > { %1386 = vmatmul.mubr.bf16.vlgmr.msra.gmra.mrb[0].mxu1 %v2306_v19 }
  0x87   : > { %1532 = vmatmul.mubr.bf16.vlgmr.msra.gmra.mrb[0].mxu0 %v2309_v20  ;;  %1992 = vmatpush1.bf16.msra.mxu1 %v2312_v21 }
  0x88   : > { %1573 = vmatpush1.bf16.msra.mxu0 %v2312_v21  ;;  %1985 = vmatprep.subr.bf16.mxu1 %v2317_v22 }
  0x89   : > { %1574 = vmatprep.subr.bf16.mxu0 %v2317_v22  ;;  %1395 = vmatprep.mubr.bf16.mxu1 %v2318_v23 }
  0x8a   : > { %1541 = vmatprep.mubr.bf16.mxu0 %v2320_v24 }
  0x8b   : > { %1993 = vmatpush1.bf16.msra.mxu1 %v2315_v25 }
  0x8c   : > { %1575 = vmatpush1.bf16.msra.mxu0 %v2315_v25  ;;  %1986 = vmatprep.subr.bf16.mxu1 %v2326_v26 }
  0x8d   : > { %1576 = vmatprep.subr.bf16.mxu0 %v2326_v26 }
  0x8e   : > { %1396 = vmatmul.mubr.bf16.gmra.mrb[4].mxu1 %v2322_v27 }
  0x8f   : > { %1542 = vmatmul.mubr.bf16.gmra.mrb[4].mxu0 %v2323_v28  ;;  %1994 = vmatpush1.bf16.msra.mxu1 %v2324_v29 }
  0x90   : > { %1577 = vmatpush1.bf16.msra.mxu0 %v2324_v29  ;;  %1987 = vmatprep.subr.bf16.mxu1 %v2329_v30 }
  0x91   : > { %1578 = vmatprep.subr.bf16.mxu0 %v2329_v30  ;;  %1405 = vmatprep.mubr.bf16.mxu1 %v2330_v31 }
  0x92   : > { %1551 = vmatprep.mubr.bf16.mxu0 %v2332_v32 }
  0x93   : > { %1995 = vmatpush1.bf16.msra.mxu1 %v2327_v33 }
  0x94   : > { %1579 = vmatpush1.bf16.msra.mxu0 %v2327_v33  ;;  %1988 = vmatprep.subr.bf16.mxu1 %v2338_v34 }
  0x95   : > { %1580 = vmatprep.subr.bf16.mxu0 %v2338_v34 }
  0x96   : > { %1406 = vmatmul.mubr.bf16.gmra.mrb[8].mxu1 %v2334_v35 }
  0x97   : > { %1552 = vmatmul.mubr.bf16.gmra.mrb[8].mxu0 %v2335_v36  ;;  %1996 = vmatpush1.bf16.msra.mxu1 %v2336_v37 }
  0x98   : > { %1581 = vmatpush1.bf16.msra.mxu0 %v2336_v37  ;;  %1989 = vmatprep.subr.bf16.mxu1 %v2341_v38 }
  0x99   : > { %1582 = vmatprep.subr.bf16.mxu0 %v2341_v38  ;;  %1415 = vmatprep.mubr.bf16.mxu1 %v2342_v39 }
  0x9a   : > { %1561 = vmatprep.mubr.bf16.mxu0 %v2344_v40 }
  0x9b   : > { %1997 = vmatpush1.bf16.msra.mxu1 %v2339_v41 }
  0x9c   : > { %1583 = vmatpush1.bf16.msra.mxu0 %v2339_v41  ;;  %1990 = vmatprep.subr.bf16.mxu1 %v2350_v42 }
  0x9d   : > { %1584 = vmatprep.subr.bf16.mxu0 %v2350_v42 }
  0x9e   : > { %1416 = vmatmul.mubr.bf16.gmra.mrb[12].mxu1 %v2346_v43 }
  0x9f   : > { %1562 = vmatmul.mubr.bf16.gmra.mrb[12].mxu0 %v2347_v44  ;;  %1998 = vmatpush1.bf16.msra.mxu1 %v2348_v45 }
  0xa0   : > { %1585 = vmatpush1.bf16.msra.mxu0 %v2348_v45  ;;  %1991 = vmatprep.subr.bf16.mxu1 %v2353_v46 }
  0xa1   : > { %1586 = vmatprep.subr.bf16.mxu0 %v2353_v46  ;;  %1604 = vmatprep.mubr.bf16.mxu0 %v2366_v48 }
  0xa2   : > { %1624 = vmatprep.mubr.bf16.mxu1 %v2366_v48 }
  0xa3   : > { %1999 = vmatpush1.bf16.msra.mxu1 %v2351_v47 }
  0xa4   : > { %1587 = vmatpush1.bf16.msra.mxu0 %v2351_v47 }
  0xa6   : > { %1625 = vmatmul.mubr.bf16.vlgmr.msra.gmra.mrb[16].mxu1 %v2355_v50 }
  0xa7   : > { %1605 = vmatmul.mubr.bf16.vlgmr.msra.gmra.mrb[0].mxu0 %v2354_v49  ;;  %1634 = vmatprep.mubr.bf16.mxu1 %v2366_v48 }
  0xa8   : > { %1614 = vmatprep.mubr.bf16.mxu0 %v2366_v48 }
  0xae   : > { %1635 = vmatmul.mubr.bf16.gmra.mrb[20].mxu1 %v2357_v52 }
  0xaf   : > { %1615 = vmatmul.mubr.bf16.gmra.mrb[4].mxu0 %v2356_v51 }
 0x159   : > { %v1387_v53 = vpop.f32.mrb[0].mxu1 }
 0x15a   : > { %v1389_v54 = vpop.f32.mrb[1].mxu1  ;;  %v2000_v36 = vadd.f32 %v1387_v53, %v2884_v2 }
 0x15b   : > { %v1391_v55 = vpop.f32.mrb[2].mxu1  ;;  %v2002_v37 = vadd.f32 %v1389_v54, %v2886_v3 }
 0x15c   : > { %v1393_v57 = vpop.f32.mrb[3].mxu1  ;;  %v2004_v40 = vadd.f32 %v1391_v55, %v2884_v2 }
 0x15d   : > { %v2006_v45 = vadd.f32 %v1393_v57, %v2886_v3 }
 0x161   : > { %v2873_v59 = vpop.f32.mrb[4].mxu1 }
 0x162   : > { %v2875_v60 = vpop.f32.mrb[5].mxu1 }
 0x163   : > { %v2877_v61 = vpop.f32.mrb[6].mxu1 }
 0x164   : > { %v2879_v63 = vpop.f32.mrb[7].mxu1 }
 0x169   : > { %v1407_v4 = vpop.f32.mrb[8].mxu1 }
 0x16a   : > { %v1553_v5 = vpop.f32.mrb[8].mxu0  ;;  %v2016_v6 = vadd.f32 %v1407_v4, %v2884_v2  ;;  %v1409_v7 = vpop.f32.mrb[9].mxu1 }
 0x16b   : > { %v1555_v8 = vpop.f32.mrb[9].mxu0  ;;  %v2019_v9 = vadd.f32 %v1409_v7, %v2886_v3  ;;  %v1411_v10 = vpop.f32.mrb[10].mxu1 }
 0x16c   : > { %v1557_v11 = vpop.f32.mrb[10].mxu0  ;;  %v2017_v12 = vadd.f32 %v2016_v6, %v1553_v5  ;;  %v2022_v13 = vadd.f32 %v1411_v10, %v2884_v2  ;;  %v1413_v14 = vpop.f32.mrb[11].mxu1 }
 0x16d   : > { %v1559_v15 = vpop.f32.mrb[11].mxu0  ;;  %v2020_v16 = vadd.f32 %v2019_v9, %v1555_v8  ;;  %v2025_v17 = vadd.f32 %v1413_v14, %v2886_v3  ;;  %v2008_v8 = vadd.f32 %v2873_v59, %v2884_v2  ;;  %v2010_v9 = vadd.f32 %v2875_v60, %v2886_v3 }
 0x16e   : > { %v2023_v18 = vadd.f32 %v2022_v13, %v1557_v11  ;;  %v2012_v14 = vadd.f32 %v2877_v61, %v2884_v2 }
 0x16f   : > { %v2026_v19 = vadd.f32 %v2025_v17, %v1559_v15 }
 0x171   : > { %v1417_v20 = vpop.f32.mrb[12].mxu1 }
 0x172   : > { %v1563_v21 = vpop.f32.mrb[12].mxu0  ;;  %v2028_v22 = vadd.f32 %v1417_v20, %v2884_v2  ;;  %v1419_v23 = vpop.f32.mrb[13].mxu1 }
 0x173   : > { %v1565_v24 = vpop.f32.mrb[13].mxu0  ;;  %v2031_v25 = vadd.f32 %v1419_v23, %v2886_v3  ;;  %v1421_v26 = vpop.f32.mrb[14].mxu1 }
 0x174   : > { %v1567_v27 = vpop.f32.mrb[14].mxu0  ;;  %v2029_v28 = vadd.f32 %v2028_v22, %v1563_v21  ;;  %v2034_v29 = vadd.f32 %v1421_v26, %v2884_v2  ;;  %v1423_v30 = vpop.f32.mrb[15].mxu1 }
 0x175   : > { %v1569_v31 = vpop.f32.mrb[15].mxu0  ;;  %v2032_v32 = vadd.f32 %v2031_v25, %v1565_v24  ;;  %v2037_v33 = vadd.f32 %v1423_v30, %v2886_v3 }
 0x176   : > { %v2035_v34 = vadd.f32 %v2034_v29, %v1567_v27 }
 0x177   : > { %v2038_v35 = vadd.f32 %v2037_v33, %v1569_v31 }
 0x179   : > { %v1626_v39 = vpop.f32.mrb[16].mxu1 }
 0x17a   : > { %v1606_v38 = vpop.f32.mrb[0].mxu0  ;;  %v2018_v42 = vadd.f32 %v2017_v12, %v1626_v39  ;;  %v1628_v44 = vpop.f32.mrb[17].mxu1 }
 0x17b   : > { %v2001_v41 = vadd.f32 %v2000_v36, %v1606_v38  ;;  %v1608_v43 = vpop.f32.mrb[1].mxu0  ;;  %v2021_v47 = vadd.f32 %v2020_v16, %v1628_v44  ;;  %v1630_v49 = vpop.f32.mrb[18].mxu1 }
 0x17c   : > { %v2003_v46 = vadd.f32 %v2002_v37, %v1608_v43  ;;  %v1610_v48 = vpop.f32.mrb[2].mxu0  ;;  %v1653_v51 = vmax.f32 %v2018_v42, 0.0  ;;  %v2024_v53 = vadd.f32 %v2023_v18, %v1630_v49  ;;  %v1632_v56 = vpop.f32.mrb[19].mxu1 }
 0x17d   : > { %v1645_v50 = vmax.f32 %v2001_v41, 0.0  ;;  %v2005_v52 = vadd.f32 %v2004_v40, %v1610_v48  ;;  %v1612_v54 = vpop.f32.mrb[3].mxu0  ;;  %v1654_v62 = vmax.f32 %v2021_v47, 0.0  ;;  %v2027_v0 = vadd.f32 %v2026_v19, %v1632_v56 }
 0x17e   : > { %v1646_v58 = vmax.f32 %v2003_v46, 0.0  ;;  %v2007_v55 = vadd.f32 %v2006_v45, %v1612_v54  ;;  %v1655_v1 = vmax.f32 %v2024_v53, 0.0  ;;  %v2014_v19 = vadd.f32 %v2879_v63, %v2886_v3 }
 0x17f   : > { %v1647_v57 = vmax.f32 %v2005_v52, 0.0  ;;  %v1980_v5 = vpack.c.bf16 %v1654_v62, %v1653_v51  ;;  %v1656_v7 = vmax.f32 %v2027_v0, 0.0 }
 0x180   : > { %v1976_v4 = vpack.c.bf16 %v1646_v58, %v1645_v50  ;;  %v1648_v6 = vmax.f32 %v2007_v55, 0.0 }
 0x181   : > { %1713 = vst [vmem:[%s2904_s18 + $0x20] sm:$0xff] %v1980_v5  ;;  %v1981_v11 = vpack.c.bf16 %v1656_v7, %v1655_v1  ;;  %v1636_v13 = vpop.f32.mrb[20].mxu1 }
 0x182   : > { %1709 = vst [vmem:[%s2904_s18] sm:$0xff] %v1976_v4  ;;  %v1977_v10 = vpack.c.bf16 %v1648_v6, %v1647_v57  ;;  %v1616_v12 = vpop.f32.mrb[4].mxu0  ;;  %v2030_v16 = vadd.f32 %v2029_v28, %v1636_v13  ;;  %v1638_v18 = vpop.f32.mrb[21].mxu1 }
 0x183   : > { %v2009_v15 = vadd.f32 %v2008_v8, %v1616_v12  ;;  %v1618_v17 = vpop.f32.mrb[5].mxu0  ;;  %1714 = vst [vmem:[%s2904_s18 + $0x28] sm:$0xff] %v1981_v11  ;;  %v2033_v60 = vadd.f32 %v2032_v32, %v1638_v18  ;;  %v1640_v21 = vpop.f32.mrb[22].mxu1 }
 0x184   : > { %1710 = vst [vmem:[%s2904_s18 + $0x8] sm:$0xff] %v1977_v10  ;;  %v2011_v59 = vadd.f32 %v2010_v9, %v1618_v17  ;;  %v1620_v20 = vpop.f32.mrb[6].mxu0  ;;  %v1657_v23 = vmax.f32 %v2030_v16, 0.0  ;;  %v2036_v25 = vadd.f32 %v2035_v34, %v1640_v21  ;;  %v1642_v2 = vpop.f32.mrb[23].mxu1 }
 0x185   : > { %v1649_v22 = vmax.f32 %v2009_v15, 0.0  ;;  %v2013_v24 = vadd.f32 %v2012_v14, %v1620_v20  ;;  %v1622_v61 = vpop.f32.mrb[7].mxu0  ;;  %v1658_v27 = vmax.f32 %v2033_v60, 0.0  ;;  %v2039_v63 = vadd.f32 %v2038_v35, %v1642_v2 }
 0x186   : > { %v1650_v26 = vmax.f32 %v2011_v59, 0.0  ;;  %v2015_v28 = vadd.f32 %v2014_v19, %v1622_v61  ;;  %v1659_v29 = vmax.f32 %v2036_v25, 0.0 }
 0x187   : > { %v1651_v3 = vmax.f32 %v2013_v24, 0.0  ;;  %v1982_v31 = vpack.c.bf16 %v1658_v27, %v1657_v23  ;;  %v1660_v33 = vmax.f32 %v2039_v63, 0.0 }
 0x188   : > { %v1978_v30 = vpack.c.bf16 %v1650_v26, %v1649_v22  ;;  %v1652_v32 = vmax.f32 %v2015_v28, 0.0 }
 0x189   : > { %1715 = vst [vmem:[%s2904_s18 + $0x30] sm:$0xff] %v1982_v31  ;;  %v1983_v37 = vpack.c.bf16 %v1660_v33, %v1659_v29 }
 0x18a   : > { %1711 = vst [vmem:[%s2904_s18 + $0x10] sm:$0xff] %v1978_v30  ;;  %v1979_v36 = vpack.c.bf16 %v1652_v32, %v1651_v3 }
 0x18b   : > { %1716 = vst [vmem:[%s2904_s18 + $0x38] sm:$0xff] %v1983_v37 }
 0x18c   : > { %1712 = vst [vmem:[%s2904_s18 + $0x18] sm:$0xff] %v1979_v36 }
 0x18d PF: > { %s13_s12 = sadd.s32 1, %s2364_s12  }
 0x18e   : > { %p10_p4 = scmp.ge.s32.totalorder %s13_s12, 4  }
 0x190   :  { %12 = sbr.rel (!%p10_p4) target bundleno = 1 (0x1), region = 62 }

// kernel: vae_forward.13
= control target key start
LH: loop header
LB: loop body
LE: loop exit
PB: predicated region body
PF: predicated region fallthrough
CT: control target
= control target key end

     0   :  { %s1683_s12 = smov 0   ;;  %s1949_s0 = inlined_call_operand.vmem [shape: bf16[512,576], index: 0, kind: input, shape index: {}]   ;;  %s1950_s1 = inlined_call_operand.vmem [shape: bf16[576,12], index: 1, kind: input, shape index: {}]   ;;  %s1951_s2 = inlined_call_operand.vmem [shape: f32[1,12], index: 2, kind: input, shape index: {}]   ;;  %s1952_s3 = inlined_call_operand.vmem [shape: f32[512,12], index: 3, kind: output, shape index: {}]  }
   0x1 LB: > { %s1206_s13 = sadd.s32 4294967295, %s1661_s12   ;;  %p1210_p0 = scmp.ge.s32.totalorder %s1661_s12, 1  ;;  %s1661_s12 = sphi %s1683_s12, %s13_s12  }
   0x2   : > { %p139_p1 = scmp.lt.s32.totalorder %s1661_s12, 5 }
   0x4   : > { %p140_p2 = pnand %p1210_p0, %p139_p1 }
   0x5   : > { %v1499_v0 = vld [vmem:[%s1950_s1 + $0x40] sm:$0xff] (!%p140_p2)   ;;  %v1503_v4 = vld [vmem:[%s1950_s1 + $0x48] sm:$0xff] (!%p140_p2)   ;;  %v1507_v8 = vld [vmem:[%s1950_s1 + $0x50] sm:$0xff] (!%p140_p2)   ;;  %s1211_s19 = sshll.u32 (!%p140_p2), %s1206_s13, 4  ;;  %vm721_vm0 = vcmask (!%p140_p2), 523264   ;;  %vm1133_vm1 = vcmask (!%p140_p2), 97280  }
   0x6   : > { %143 = sbr.rel (%p140_p2) target bundleno = 372 (0x174), region = 32  ;;  %v1500_v1 = vld [vmem:[%s1950_s1 + $0xc0] sm:$0xff] (!%p140_p2)   ;;  %1318 = vmatprep.subr.bf16.mxu0 (!%p140_p2), %v1499_v0  ;;  %v1504_v5 = vld [vmem:[%s1950_s1 + $0xc8] sm:$0xff] (!%p140_p2)   ;;  %v1508_v9 = vld [vmem:[%s1950_s1 + $0xd0] sm:$0xff] (!%p140_p2)   ;;  %p165_p3 = scmp.lt.s32.totalorder (!%p140_p2), %s1211_s19, 63 }
   0x7   : > { %v1501_v2 = vld [vmem:[%s1950_s1] sm:$0xff] (!%p140_p2)   ;;  %1382 = vmatprep.subr.bf16.mxu1 (!%p140_p2), %v1500_v1  ;;  %v1505_v6 = vld [vmem:[%s1950_s1 + $0x8] sm:$0xff] (!%p140_p2)   ;;  %v1509_v10 = vld [vmem:[%s1950_s1 + $0x10] sm:$0xff] (!%p140_p2)  }
   0x8   : > { %v1502_v3 = vld [vmem:[%s1950_s1 + $0x80] sm:$0xff] (!%p140_p2)   ;;  %1319 = vmatpush3.bf16.msra.mxu0 (!%p140_p2), %v1501_v2  ;;  %v1506_v7 = vld [vmem:[%s1950_s1 + $0x88] sm:$0xff] (!%p140_p2)   ;;  %v1510_v11 = vld [vmem:[%s1950_s1 + $0x90] sm:$0xff] (!%p140_p2)  }
   0x9   : > { %1383 = vmatpush3.bf16.msra.mxu1 (!%p140_p2), %v1502_v3  ;;  %1320 = vmatprep.subr.bf16.mxu0 (!%p140_p2), %v1503_v4  ;;  %v1511_v12 = vld [vmem:[%s1950_s1 + $0x58] sm:$0xff] (!%p140_p2)   ;;  %v1515_v16 = vld [vmem:[%s1950_s1 + $0x60] sm:$0xff] (!%p140_p2)   ;;  %v1519_v20 = vld [vmem:[%s1950_s1 + $0x68] sm:$0xff] (!%p140_p2)  }
   0xa   : > { %1384 = vmatprep.subr.bf16.mxu1 (!%p140_p2), %v1504_v5  ;;  %v1512_v13 = vld [vmem:[%s1950_s1 + $0xd8] sm:$0xff] (!%p140_p2)   ;;  %v1516_v17 = vld [vmem:[%s1950_s1 + $0xe0] sm:$0xff] (!%p140_p2)   ;;  %v1520_v21 = vld [vmem:[%s1950_s1 + $0xe8] sm:$0xff] (!%p140_p2)  }
   0xb   : > { %v1513_v14 = vld [vmem:[%s1950_s1 + $0x18] sm:$0xff] (!%p140_p2)   ;;  %v1517_v18 = vld [vmem:[%s1950_s1 + $0x20] sm:$0xff] (!%p140_p2)   ;;  %v1521_v22 = vld [vmem:[%s1950_s1 + $0x28] sm:$0xff] (!%p140_p2)  }
   0xc   : > { %1321 = vmatpush3.bf16.msra.mxu0 (!%p140_p2), %v1505_v6  ;;  %v1514_v15 = vld [vmem:[%s1950_s1 + $0x98] sm:$0xff] (!%p140_p2)   ;;  %v1518_v19 = vld [vmem:[%s1950_s1 + $0xa0] sm:$0xff] (!%p140_p2)   ;;  %v1522_v23 = vld [vmem:[%s1950_s1 + $0xa8] sm:$0xff] (!%p140_p2)  }
   0xd   : > { %1385 = vmatpush3.bf16.msra.mxu1 %v1506_v7  ;;  %1322 = vmatprep.subr.bf16.mxu0 %v1507_v8  ;;  %s1954_s19 = smov (!%p165_p3, %s1211_s19), 63  ;;  %v1523_v24 = vld [vmem:[%s1950_s1 + $0x70] sm:$0xff]   ;;  %v1527_v28 = vld [vmem:[%s1950_s1 + $0x78] sm:$0xff]   ;;  %v1537_v36 = vld [vmem:[%s1950_s1 + $0x100] sm:$0xff]  }
   0xe   : > { %1386 = vmatprep.subr.bf16.mxu1 %v1508_v9  ;;  %v1524_v25 = vld [vmem:[%s1950_s1 + $0xf0] sm:$0xff]   ;;  %s1490_s16 = smul.u32 20, %s1954_s19  ;;  %v1528_v29 = vld [vmem:[%s1950_s1 + $0xf8] sm:$0xff]   ;;  %v1550_v42 = vld [vmem:[%s1950_s1 + $0x108] sm:$0xff]   ;;  %s1214_s17 = sshll.u32 %s1954_s19, 3 }
   0xf   : > { %v1525_v26 = vld [vmem:[%s1950_s1 + $0x30] sm:$0xff]   ;;  %v1529_v30 = vld [vmem:[%s1950_s1 + $0x38] sm:$0xff]   ;;  %s1912_s21 = scalar_lea.vmem %s1952_s3, %s1214_s17 }
  0x10   : > { %1323 = vmatpush3.bf16.msra.mxu0 %v1509_v10  ;;  %v1526_v27 = vld [vmem:[%s1950_s1 + $0xb0] sm:$0xff]   ;;  %s1789_s13 = scalar_lea.vmem %s1949_s0, %s1490_s16  ;;  %v1530_v31 = vld [vmem:[%s1950_s1 + $0xb8] sm:$0xff]  }
  0x11   : > { %1387 = vmatpush3.bf16.msra.mxu1 %v1510_v11  ;;  %1324 = vmatprep.subr.bf16.mxu0 %v1511_v12  ;;  %v1531_v32 = vld [vmem:[%s1789_s13] ss:$20 sps:$4 sm:$0xff]   ;;  %v1533_v33 = vld [vmem:[%s1789_s13 + $0x4] ss:$20 sps:$4 sm:$0xff]   ;;  %v1534_v34 = vld [vmem:[%s1789_s13 + $0x8] ss:$20 sps:$4 sm:$0xff]  }
  0x12   : > { %1388 = vmatprep.subr.bf16.mxu1 %v1512_v13  ;;  %v1536_v35 = vld [vmem:[%s1789_s13 + $0xc] ss:$20 sps:$4 sm:$0xff]   ;;  %778 = vmatprep.mubr.bf16.mxu0 %v1533_v33  ;;  %v1540_v38 = vld [vmem:[%s1789_s13 + $0x34] ss:$20 sps:$4 sm:$0xff]   ;;  %v1543_v40 = vld [vmem:[%s1789_s13 + $0x30] ss:$20 sps:$4 sm:$0xff]  }
  0x13   : > { %875 = vmatprep.mubr.bf16.mxu1 %v1536_v35  ;;  %v1538_v37 = vld [vmem:[%s1789_s13 + $0x2c] ss:$20 sps:$4 sm:$0xff]   ;;  %v1542_v39 = vld [vmem:[%s1789_s13 + $0x28] ss:$20 sps:$4 sm:$0xff]   ;;  %v1548_v44 = vld [vmem:[%s1789_s13 + $0x50] ss:$20 sps:$4 sm:$0xff]  }
  0x14   : > { %1325 = vmatpush3.bf16.msra.mxu0 %v1513_v14  ;;  %v1544_v41 = vld [vmem:[%s1789_s13 + $0x54] ss:$20 sps:$4 sm:$0xff]   ;;  %v1546_v43 = vld [vmem:[%s1789_s13 + $0x5c] ss:$20 sps:$4 sm:$0xff]   ;;  %v1549_v45 = vld [vmem:[%s1789_s13 + $0x58] ss:$20 sps:$4 sm:$0xff]  }
  0x15   : > { %1389 = vmatpush3.bf16.msra.mxu1 %v1514_v15  ;;  %1326 = vmatprep.subr.bf16.mxu0 %v1515_v16  ;;  %v1563_v46 = vld [vmem:[%s1950_s1 + $0x110] sm:$0xff]   ;;  %v1553_v48 = vld [vmem:[%s1789_s13 + $0x84] ss:$20 sps:$4 sm:$0xff]   ;;  %v1559_v53 = vld [vmem:[%s1789_s13 + $0xac] ss:$20 sps:$4 sm:$0xff]  }
  0x16   : > { %1390 = vmatprep.subr.bf16.mxu1 %v1516_v17  ;;  %v1551_v47 = vld [vmem:[%s1789_s13 + $0x7c] ss:$20 sps:$4 sm:$0xff]   ;;  %v1555_v50 = vld [vmem:[%s1789_s13 + $0x78] ss:$20 sps:$4 sm:$0xff]   ;;  %v1556_v51 = vld [vmem:[%s1789_s13 + $0x80] ss:$20 sps:$4 sm:$0xff]  }
  0x17   : > { %v1576_v49 = vld [vmem:[%s1950_s1 + $0x118] sm:$0xff]   ;;  %v1561_v54 = vld [vmem:[%s1789_s13 + $0xa0] ss:$20 sps:$4 sm:$0xff]   ;;  %v1569_v59 = vld [vmem:[%s1789_s13 + $0xd0] ss:$20 sps:$4 sm:$0xff]  }
  0x18   : > { %1327 = vmatpush3.bf16.msra.mxu0 %v1517_v18  ;;  %v1557_v52 = vld [vmem:[%s1789_s13 + $0xa4] ss:$20 sps:$4 sm:$0xff]   ;;  %v1562_v55 = vld [vmem:[%s1789_s13 + $0xa8] ss:$20 sps:$4 sm:$0xff]   ;;  %v1564_v56 = vld [vmem:[%s1789_s13 + $0xcc] ss:$20 sps:$4 sm:$0xff]  }
  0x19   : > { %1391 = vmatpush3.bf16.msra.mxu1 %v1518_v19  ;;  %1328 = vmatprep.subr.bf16.mxu0 %v1519_v20  ;;  %v1566_v57 = vld [vmem:[%s1789_s13 + $0xd4] ss:$20 sps:$4 sm:$0xff]   ;;  %v1572_v61 = vld [vmem:[%s1789_s13 + $0xfc] ss:$20 sps:$4 sm:$0xff]   ;;  %v1575_v63 = vld [vmem:[%s1789_s13 + $0xf8] ss:$20 sps:$4 sm:$0xff]  }
  0x1a   : > { %1392 = vmatprep.subr.bf16.mxu1 %v1520_v21  ;;  %v1568_v58 = vld [vmem:[%s1789_s13 + $0xc8] ss:$20 sps:$4 sm:$0xff]   ;;  %v1574_v62 = vld [vmem:[%s1789_s13 + $0xf0] ss:$20 sps:$4 sm:$0xff]   ;;  %v1581_v2 = vld [vmem:[%s1789_s13 + $0x118] ss:$20 sps:$4 sm:$0xff]  }
  0x1b   : > { %v1570_v60 = vld [vmem:[%s1789_s13 + $0xf4] ss:$20 sps:$4 sm:$0xff]   ;;  %v1577_v0 = vld [vmem:[%s1789_s13 + $0x11c] ss:$20 sps:$4 sm:$0xff]   ;;  %v1579_v1 = vld [vmem:[%s1789_s13 + $0x124] ss:$20 sps:$4 sm:$0xff]  }
  0x1c   : > { %1329 = vmatpush3.bf16.msra.mxu0 %v1521_v22  ;;  %v1582_v3 = vld [vmem:[%s1789_s13 + $0x120] ss:$20 sps:$4 sm:$0xff]   ;;  %v1583_v4 = vld [vmem:[%s1789_s13 + $0x10] ss:$20 sps:$4 sm:$0xff]   ;;  %v1585_v6 = vld [vmem:[%s1789_s13 + $0x38] ss:$20 sps:$4 sm:$0xff]  }
  0x1d   : > { %1393 = vmatpush3.bf16.msra.mxu1 %v1522_v23  ;;  %1330 = vmatprep.subr.bf16.mxu0 %v1523_v24  ;;  %v1584_v5 = vld [vmem:[%s1789_s13 + $0xb0] ss:$20 sps:$4 sm:$0xff]   ;;  %v1586_v7 = vld [vmem:[%s1789_s13 + $0xd8] ss:$20 sps:$4 sm:$0xff]   ;;  %v1587_v8 = vld [vmem:[%s1789_s13 + $0x60] ss:$20 sps:$4 sm:$0xff]  }
  0x1e   : > { %1394 = vmatprep.subr.bf16.mxu1 %v1524_v25  ;;  %v1588_v9 = vld [vmem:[%s1789_s13 + $0x100] ss:$20 sps:$4 sm:$0xff]   ;;  %v1589_v10 = vld [vmem:[%s1789_s13 + $0x88] ss:$20 sps:$4 sm:$0xff]  }
  0x1f   : > { %v1590_v11 = vld [vmem:[%s1789_s13 + $0x128] ss:$20 sps:$4 sm:$0xff]   ;;  %v1860_v14 = vld [vmem:[%s1951_s2] ss:$0 sm:$0xff] }
  0x20   : > { %1331 = vmatpush3.bf16.msra.mxu0 %v1525_v26 }
  0x21   : > { %1395 = vmatpush3.bf16.msra.mxu1 %v1526_v27  ;;  %1332 = vmatprep.subr.bf16.mxu0 %v1527_v28 }
  0x22   : > { %1396 = vmatprep.subr.bf16.mxu1 %v1528_v29 }
  0x24   : > { %1333 = vmatpush3.bf16.msra.mxu0 %v1529_v30 }
  0x25   : > { %1397 = vmatpush3.bf16.msra.mxu1 %v1530_v31  ;;  %1458 = vmatprep.subr.bf16.mxu0 %v1537_v36 }
  0x26   : > { %1482 = vmatprep.subr.bf16.mxu1 %v1537_v36 }
  0x27   : > { %779 = vmatmul.mubr.bf16.vlgmr.msra.gmra.mrb[0].mxu0 %v1531_v32 }
  0x28   : > { %876 = vmatmul.mubr.bf16.vlgmr.msra.gmra.mrb[0].mxu1 %v1534_v34  ;;  %1459 = vmatpush3.bf16.msra.mxu0 %v1537_v36 }
  0x29   : > { %1486 = vmatpush3.bf16.msra.mxu1 %v1537_v36  ;;  %786 = vmatprep.mubr.bf16.mxu0 %v1538_v37 }
  0x2a   : > { %883 = vmatprep.mubr.bf16.mxu1 %v1540_v38  ;;  %1460 = vmatprep.subr.bf16.mxu0 %v1550_v42 }
  0x2b   : > { %1483 = vmatprep.subr.bf16.mxu1 %v1550_v42 }
  0x2c   : > { %1461 = vmatpush3.bf16.msra.mxu0 %v1550_v42 }
  0x2d   : > { %1487 = vmatpush3.bf16.msra.mxu1 %v1550_v42  ;;  %1462 = vmatprep.subr.bf16.mxu0 %v1563_v46 }
  0x2e   : > { %1484 = vmatprep.subr.bf16.mxu1 %v1563_v46 }
  0x2f   : > { %787 = vmatmul.mubr.bf16.gmra.mrb[4].mxu0 %v1542_v39 }
  0x30   : > { %884 = vmatmul.mubr.bf16.gmra.mrb[4].mxu1 %v1543_v40  ;;  %794 = vmatprep.mubr.bf16.mxu0 %v1544_v41 }
  0x31   : > { %891 = vmatprep.mubr.bf16.mxu1 %v1546_v43  ;;  %1463 = vmatpush3.bf16.msra.mxu0 %v1563_v46 }
  0x32   : > { %1488 = vmatpush3.bf16.msra.mxu1 %v1563_v46  ;;  %1464 = vmatprep.subr.bf16.mxu0 %v1576_v49 }
  0x33   : > { %1485 = vmatprep.subr.bf16.mxu1 %v1576_v49 }
  0x35   : > { %1465 = vmatpush3.bf16.msra.mxu0 %v1576_v49 }
  0x36   : > { %1489 = vmatpush3.bf16.msra.mxu1 %v1576_v49 }
  0x37   : > { %795 = vmatmul.mubr.bf16.gmra.mrb[8].mxu0 %v1548_v44 }
  0x38   : > { %892 = vmatmul.mubr.bf16.gmra.mrb[8].mxu1 %v1549_v45  ;;  %802 = vmatprep.mubr.bf16.mxu0 %v1551_v47 }
  0x39   : > { %899 = vmatprep.mubr.bf16.mxu1 %v1553_v48 }
  0x3f   : > { %803 = vmatmul.mubr.bf16.gmra.mrb[12].mxu0 %v1555_v50 }
  0x40   : > { %900 = vmatmul.mubr.bf16.gmra.mrb[12].mxu1 %v1556_v51  ;;  %810 = vmatprep.mubr.bf16.mxu0 %v1557_v52 }
  0x41   : > { %907 = vmatprep.mubr.bf16.mxu1 %v1559_v53 }
  0x47   : > { %811 = vmatmul.mubr.bf16.gmra.mrb[16].mxu0 %v1561_v54 }
  0x48   : > { %908 = vmatmul.mubr.bf16.gmra.mrb[16].mxu1 %v1562_v55  ;;  %818 = vmatprep.mubr.bf16.mxu0 %v1564_v56 }
  0x49   : > { %915 = vmatprep.mubr.bf16.mxu1 %v1566_v57 }
  0x4f   : > { %819 = vmatmul.mubr.bf16.gmra.mrb[20].mxu0 %v1568_v58 }
  0x50   : > { %916 = vmatmul.mubr.bf16.gmra.mrb[20].mxu1 %v1569_v59  ;;  %826 = vmatprep.mubr.bf16.mxu0 %v1570_v60 }
  0x51   : > { %923 = vmatprep.mubr.bf16.mxu1 %v1572_v61 }
  0x57   : > { %827 = vmatmul.mubr.bf16.gmra.mrb[24].mxu0 %v1574_v62 }
  0x58   : > { %924 = vmatmul.mubr.bf16.gmra.mrb[24].mxu1 %v1575_v63  ;;  %834 = vmatprep.mubr.bf16.mxu0 %v1577_v0 }
  0x59   : > { %931 = vmatprep.mubr.bf16.mxu1 %v1579_v1 }
  0x5f   : > { %835 = vmatmul.mubr.bf16.gmra.mrb[28].mxu0 %v1581_v2 }
  0x60   : > { %932 = vmatmul.mubr.bf16.gmra.mrb[28].mxu1 %v1582_v3  ;;  %1466 = vmatprep.mubr.msk.bf16.mxu0 %vm721_vm0, %v1583_v4 }
  0x61   : > { %1474 = vmatprep.mubr.msk.bf16.mxu1 %vm721_vm0, %v1584_v5 }
  0x67   : > { %1467 = vmatmul.mubr.msk.bf16.vlgmr.msra.gmra.mrb[32].mxu0 %vm721_vm0, %v1585_v6 }
  0x68   : > { %1475 = vmatmul.mubr.msk.bf16.vlgmr.msra.gmra.mrb[32].mxu1 %vm721_vm0, %v1586_v7  ;;  %1470 = vmatprep.mubr.msk.bf16.mxu0 %vm721_vm0, %v1587_v8 }
  0x69   : > { %1478 = vmatprep.mubr.msk.bf16.mxu1 %vm721_vm0, %v1588_v9 }
  0x6f   : > { %1471 = vmatmul.mubr.msk.bf16.gmra.mrb[36].mxu0 %vm721_vm0, %v1589_v10 }
  0x70   : > { %1479 = vmatmul.mubr.msk.bf16.gmra.mrb[36].mxu1 %vm721_vm0, %v1590_v11 }
  0xfa   : > { %v1334_v12 = vpop.f32.mrb[0].mxu0 }
  0xfb   : > { %v1398_v13 = vpop.f32.mrb[0].mxu1  ;;  %v1335_v15 = vpop.f32.mrb[1].mxu0 }
  0xfc   : > { %v1336_v16 = vadd.f32 %v1335_v15, %v1334_v12  ;;  %v1399_v17 = vpop.f32.mrb[1].mxu1  ;;  %v1337_v18 = vpop.f32.mrb[2].mxu0 }
  0xfd   : > { %v1400_v19 = vadd.f32 %v1399_v17, %v1398_v13  ;;  %v1401_v20 = vpop.f32.mrb[2].mxu1  ;;  %v1338_v21 = vpop.f32.mrb[3].mxu0 }
  0xfe   : > { %v781_v22 = vadd.f32 %v1336_v16, %v1860_v14  ;;  %v1339_v23 = vadd.f32 %v1338_v21, %v1337_v18  ;;  %v1402_v24 = vpop.f32.mrb[3].mxu1 }
  0xff   : > { %v1403_v25 = vadd.f32 %v1402_v24, %v1401_v20 }
 0x100   : > { %v784_v26 = vadd.f32 %v1339_v23, %v1860_v14  ;;  %v1864_v27 = vadd.f32 %v1400_v19, %v781_v22 }
 0x102   : > { %v1340_v28 = vpop.f32.mrb[4].mxu0  ;;  %v1866_v29 = vadd.f32 %v1403_v25, %v784_v26 }
 0x103   : > { %v1404_v30 = vpop.f32.mrb[4].mxu1  ;;  %v1341_v31 = vpop.f32.mrb[5].mxu0 }
 0x104   : > { %v1342_v32 = vadd.f32 %v1341_v31, %v1340_v28  ;;  %v1405_v33 = vpop.f32.mrb[5].mxu1  ;;  %v1343_v34 = vpop.f32.mrb[6].mxu0 }
 0x105   : > { %v1406_v35 = vadd.f32 %v1405_v33, %v1404_v30  ;;  %v1407_v36 = vpop.f32.mrb[6].mxu1  ;;  %v1344_v37 = vpop.f32.mrb[7].mxu0 }
 0x106   : > { %v789_v38 = vadd.f32 %v1342_v32, %v1860_v14  ;;  %v1345_v39 = vadd.f32 %v1344_v37, %v1343_v34  ;;  %v1408_v40 = vpop.f32.mrb[7].mxu1 }
 0x107   : > { %v1409_v41 = vadd.f32 %v1408_v40, %v1407_v36 }
 0x108   : > { %v792_v42 = vadd.f32 %v1345_v39, %v1860_v14  ;;  %v1870_v43 = vadd.f32 %v1406_v35, %v789_v38 }
 0x10a   : > { %v1346_v44 = vpop.f32.mrb[8].mxu0  ;;  %v1872_v45 = vadd.f32 %v1409_v41, %v792_v42 }
 0x10b   : > { %v1410_v46 = vpop.f32.mrb[8].mxu1  ;;  %v1347_v47 = vpop.f32.mrb[9].mxu0 }
 0x10c   : > { %v1348_v48 = vadd.f32 %v1347_v47, %v1346_v44  ;;  %v1411_v49 = vpop.f32.mrb[9].mxu1  ;;  %v1349_v50 = vpop.f32.mrb[10].mxu0 }
 0x10d   : > { %v1412_v51 = vadd.f32 %v1411_v49, %v1410_v46  ;;  %v1413_v52 = vpop.f32.mrb[10].mxu1  ;;  %v1350_v53 = vpop.f32.mrb[11].mxu0 }
 0x10e   : > { %v797_v54 = vadd.f32 %v1348_v48, %v1860_v14  ;;  %v1351_v55 = vadd.f32 %v1350_v53, %v1349_v50  ;;  %v1414_v56 = vpop.f32.mrb[11].mxu1 }
 0x10f   : > { %v1415_v57 = vadd.f32 %v1414_v56, %v1413_v52 }
 0x110   : > { %v800_v58 = vadd.f32 %v1351_v55, %v1860_v14  ;;  %v1876_v59 = vadd.f32 %v1412_v51, %v797_v54 }
 0x112   : > { %v1352_v60 = vpop.f32.mrb[12].mxu0  ;;  %v1878_v61 = vadd.f32 %v1415_v57, %v800_v58 }
 0x113   : > { %v1416_v62 = vpop.f32.mrb[12].mxu1  ;;  %v1353_v63 = vpop.f32.mrb[13].mxu0 }
 0x114   : > { %v1354_v0 = vadd.f32 %v1353_v63, %v1352_v60  ;;  %v1417_v1 = vpop.f32.mrb[13].mxu1  ;;  %v1355_v2 = vpop.f32.mrb[14].mxu0 }
 0x115   : > { %v1418_v3 = vadd.f32 %v1417_v1, %v1416_v62  ;;  %v1419_v4 = vpop.f32.mrb[14].mxu1  ;;  %v1356_v5 = vpop.f32.mrb[15].mxu0 }
 0x116   : > { %v805_v6 = vadd.f32 %v1354_v0, %v1860_v14  ;;  %v1357_v7 = vadd.f32 %v1356_v5, %v1355_v2  ;;  %v1420_v8 = vpop.f32.mrb[15].mxu1 }
 0x117   : > { %v1421_v9 = vadd.f32 %v1420_v8, %v1419_v4 }
 0x118   : > { %v808_v10 = vadd.f32 %v1357_v7, %v1860_v14  ;;  %v1882_v11 = vadd.f32 %v1418_v3, %v805_v6 }
 0x11a   : > { %v1358_v12 = vpop.f32.mrb[16].mxu0  ;;  %v1884_v13 = vadd.f32 %v1421_v9, %v808_v10 }
 0x11b   : > { %v1422_v15 = vpop.f32.mrb[16].mxu1  ;;  %v1359_v16 = vpop.f32.mrb[17].mxu0 }
 0x11c   : > { %v1360_v17 = vadd.f32 %v1359_v16, %v1358_v12  ;;  %v1423_v18 = vpop.f32.mrb[17].mxu1  ;;  %v1361_v19 = vpop.f32.mrb[18].mxu0 }
 0x11d   : > { %v1424_v20 = vadd.f32 %v1423_v18, %v1422_v15  ;;  %v1425_v21 = vpop.f32.mrb[18].mxu1  ;;  %v1362_v22 = vpop.f32.mrb[19].mxu0 }
 0x11e   : > { %v813_v23 = vadd.f32 %v1360_v17, %v1860_v14  ;;  %v1363_v24 = vadd.f32 %v1362_v22, %v1361_v19  ;;  %v1426_v25 = vpop.f32.mrb[19].mxu1 }
 0x11f   : > { %v1427_v26 = vadd.f32 %v1426_v25, %v1425_v21 }
 0x120   : > { %v816_v28 = vadd.f32 %v1363_v24, %v1860_v14  ;;  %v910_v30 = vadd.f32 %v1424_v20, %v813_v23 }
 0x122   : > { %v1364_v31 = vpop.f32.mrb[20].mxu0  ;;  %v1888_v32 = vadd.f32 %v1427_v26, %v816_v28 }
 0x123   : > { %v1428_v33 = vpop.f32.mrb[20].mxu1  ;;  %v1365_v34 = vpop.f32.mrb[21].mxu0 }
 0x124   : > { %v1366_v35 = vadd.f32 %v1365_v34, %v1364_v31  ;;  %v1429_v36 = vpop.f32.mrb[21].mxu1  ;;  %v1367_v37 = vpop.f32.mrb[22].mxu0 }
 0x125   : > { %v1430_v38 = vadd.f32 %v1429_v36, %v1428_v33  ;;  %v1431_v39 = vpop.f32.mrb[22].mxu1  ;;  %v1368_v40 = vpop.f32.mrb[23].mxu0 }
 0x126   : > { %v821_v41 = vadd.f32 %v1366_v35, %v1860_v14  ;;  %v1369_v42 = vadd.f32 %v1368_v40, %v1367_v37  ;;  %v1432_v44 = vpop.f32.mrb[23].mxu1 }
 0x127   : > { %v1433_v46 = vadd.f32 %v1432_v44, %v1431_v39 }
 0x128   : > { %v824_v47 = vadd.f32 %v1369_v42, %v1860_v14  ;;  %v918_v48 = vadd.f32 %v1430_v38, %v821_v41 }
 0x12a   : > { %v1370_v49 = vpop.f32.mrb[24].mxu0  ;;  %v921_v50 = vadd.f32 %v1433_v46, %v824_v47 }
 0x12b   : > { %v1434_v51 = vpop.f32.mrb[24].mxu1  ;;  %v1371_v52 = vpop.f32.mrb[25].mxu0 }
 0x12c   : > { %v1372_v53 = vadd.f32 %v1371_v52, %v1370_v49  ;;  %v1435_v54 = vpop.f32.mrb[25].mxu1  ;;  %v1373_v55 = vpop.f32.mrb[26].mxu0 }
 0x12d   : > { %v1436_v56 = vadd.f32 %v1435_v54, %v1434_v51  ;;  %v1437_v57 = vpop.f32.mrb[26].mxu1  ;;  %v1374_v58 = vpop.f32.mrb[27].mxu0 }
 0x12e   : > { %v829_v60 = vadd.f32 %v1372_v53, %v1860_v14  ;;  %v1375_v62 = vadd.f32 %v1374_v58, %v1373_v55  ;;  %v1438_v63 = vpop.f32.mrb[27].mxu1 }
 0x12f   : > { %v1439_v0 = vadd.f32 %v1438_v63, %v1437_v57 }
 0x130   : > { %v832_v1 = vadd.f32 %v1375_v62, %v1860_v14  ;;  %v926_v2 = vadd.f32 %v1436_v56, %v829_v60 }
 0x132   : > { %v1376_v3 = vpop.f32.mrb[28].mxu0  ;;  %v1894_v4 = vadd.f32 %v1439_v0, %v832_v1 }
 0x133   : > { %v1440_v5 = vpop.f32.mrb[28].mxu1  ;;  %v1377_v6 = vpop.f32.mrb[29].mxu0 }
 0x134   : > { %v1378_v7 = vadd.f32 %v1377_v6, %v1376_v3  ;;  %v1441_v8 = vpop.f32.mrb[29].mxu1  ;;  %v1379_v9 = vpop.f32.mrb[30].mxu0 }
 0x135   : > { %v1442_v10 = vadd.f32 %v1441_v8, %v1440_v5  ;;  %v1443_v12 = vpop.f32.mrb[30].mxu1  ;;  %v1380_v15 = vpop.f32.mrb[31].mxu0 }
 0x136   : > { %v837_v16 = vadd.f32 %v1378_v7, %v1860_v14  ;;  %v1381_v17 = vadd.f32 %v1380_v15, %v1379_v9  ;;  %v1444_v18 = vpop.f32.mrb[31].mxu1 }
 0x137   : > { %v1445_v19 = vadd.f32 %v1444_v18, %v1443_v12 }
 0x138   : > { %v840_v20 = vadd.f32 %v1381_v17, %v1860_v14  ;;  %v934_v21 = vadd.f32 %v1442_v10, %v837_v16 }
 0x13a   : > { %v1468_v22 = vpop.f32.mrb[32].mxu0  ;;  %v937_v23 = vadd.f32 %v1445_v19, %v840_v20 }
 0x13b   : > { %v983_v24 = vadd.f32 %v1468_v22, %v1870_v43  ;;  %v1476_v25 = vpop.f32.mrb[32].mxu1  ;;  %v974_v26 = vpop.f32.mrb[33].mxu0 }
 0x13c   : > { %v1015_v28 = vadd.f32 %v1476_v25, %v918_v48  ;;  %v975_v31 = vadd.f32 %v974_v26, %v1864_v27  ;;  %v1006_v33 = vpop.f32.mrb[33].mxu1  ;;  %v1469_v34 = vpop.f32.mrb[34].mxu0 }
 0x13d   : > { %v1302_v35 = vmul.f32 -1.442695, %v983_v24  ;;  %v1007_v36 = vadd.f32 %v1006_v33, %v910_v30  ;;  %v986_v37 = vadd.f32 %v1469_v34, %v1872_v45  ;;  %v1477_v38 = vpop.f32.mrb[34].mxu1  ;;  %v977_v39 = vpop.f32.mrb[35].mxu0 }
 0x13e   : > { %v1310_v40 = vmul.f32 -1.442695, %v1015_v28  ;;  %v1300_v14 = vmul.f32 -1.442695, %v975_v31  ;;  %v1018_v41 = vadd.f32 %v1477_v38, %v921_v50  ;;  %v978_v42 = vadd.f32 %v977_v39, %v1866_v29  ;;  %v1009_v44 = vpop.f32.mrb[35].mxu1 }
 0x13f   : > { %1591 = vpow2.f32 %v1302_v35  ;;  %v1308_v43 = vmul.f32 -1.442695, %v1007_v36  ;;  %v1303_v46 = vmul.f32 -1.442695, %v986_v37  ;;  %v1010_v47 = vadd.f32 %v1009_v44, %v1888_v32 }
 0x140   : > { %1593 = vpow2.f32 %v1310_v40  ;;  %v1311_v27 = vmul.f32 -1.442695, %v1018_v41  ;;  %v1301_v48 = vmul.f32 -1.442695, %v978_v42 }
 0x141   : > { %1595 = vpow2.f32 %v1300_v14  ;;  %v1309_v30 = vmul.f32 -1.442695, %v1010_v47 }
 0x142   : > { %1597 = vpow2.f32 %v1308_v43  ;;  %v1472_v45 = vpop.f32.mrb[36].mxu0 }
 0x143   : > { %1599 = vpow2.f32 %v1303_v46  ;;  %v999_v49 = vadd.f32 %v1472_v45, %v1882_v11  ;;  %v1480_v51 = vpop.f32.mrb[36].mxu1  ;;  %v990_v50 = vpop.f32.mrb[37].mxu0 }
 0x144   : > { %1601 = vpow2.f32 %v1311_v27  ;;  %v1031_v29 = vadd.f32 %v1480_v51, %v934_v21  ;;  %v991_v52 = vadd.f32 %v990_v50, %v1876_v59  ;;  %v1022_v53 = vpop.f32.mrb[37].mxu1  ;;  %v1473_v54 = vpop.f32.mrb[38].mxu0 }
 0x145   : > { %1603 = vpow2.f32 %v1301_v48  ;;  %v1306_v32 = vmul.f32 -1.442695, %v999_v49  ;;  %v1023_v55 = vadd.f32 %v1022_v53, %v926_v2  ;;  %v1002_v56 = vadd.f32 %v1473_v54, %v1884_v13  ;;  %v1481_v57 = vpop.f32.mrb[38].mxu1  ;;  %v993_v58 = vpop.f32.mrb[39].mxu0 }
 0x146   : > { %1605 = vpow2.f32 %v1309_v30  ;;  %v1314_v60 = vmul.f32 -1.442695, %v1031_v29  ;;  %v1304_v62 = vmul.f32 -1.442695, %v991_v52  ;;  %v1034_v63 = vadd.f32 %v1481_v57, %v937_v23  ;;  %v1025_v11 = vpop.f32.mrb[39].mxu1 }
 0x147   : > { %1607 = vpow2.f32 %v1306_v32  ;;  %v1312_v0 = vmul.f32 -1.442695, %v1023_v55  ;;  %v1307_v1 = vmul.f32 -1.442695, %v1002_v56  ;;  %v994_v3 = vadd.f32 %v993_v58, %v1878_v61 }
 0x148   : > { %1609 = vpow2.f32 %v1314_v60  ;;  %v1026_v59 = vadd.f32 %v1025_v11, %v1894_v4  ;;  %v1315_v33 = vmul.f32 -1.442695, %v1034_v63 }
 0x149   : > { %v1592_v5 = vpop.eup %1591  ;;  %1611 = vpow2.f32 %v1304_v62  ;;  %v1305_v36 = vmul.f32 -1.442695, %v994_v3 }
 0x14a   : > { %v1594_v2 = vpop.eup %1593  ;;  %v1087_v6 = vadd.f32 1.0, %v1592_v5  ;;  %1613 = vpow2.f32 %v1312_v0  ;;  %v1313_v38 = vmul.f32 -1.442695, %v1026_v59 }
 0x14b   : > { %v1596_v13 = vpop.eup %1595  ;;  %v1095_v7 = vadd.f32 1.0, %v1594_v2  ;;  %1615 = vpow2.f32 %v1307_v1 }
 0x14c   : > { %v1598_v8 = vpop.eup %1597  ;;  %1617 = vrcp.f32 %v1087_v6  ;;  %v1085_v9 = vadd.f32 1.0, %v1596_v13 }
 0x14d   : > { %v1600_v10 = vpop.eup %1599  ;;  %1619 = vrcp.f32 %v1095_v7  ;;  %v1093_v12 = vadd.f32 1.0, %v1598_v8 }
 0x14e   : > { %v1602_v15 = vpop.eup %1601  ;;  %1621 = vrcp.f32 %v1085_v9  ;;  %v1088_v61 = vadd.f32 1.0, %v1600_v10 }
 0x14f   : > { %v1604_v16 = vpop.eup %1603  ;;  %1623 = vrcp.f32 %v1093_v12  ;;  %v1096_v4 = vadd.f32 1.0, %v1602_v15 }
 0x150   : > { %v1606_v17 = vpop.eup %1605  ;;  %1625 = vrcp.f32 %v1088_v61  ;;  %v1086_v18 = vadd.f32 1.0, %v1604_v16 }
 0x151   : > { %v1608_v19 = vpop.eup %1607  ;;  %1627 = vrcp.f32 %v1096_v4  ;;  %v1094_v20 = vadd.f32 1.0, %v1606_v17 }
 0x152   : > { %v1610_v21 = vpop.eup %1609  ;;  %1629 = vrcp.f32 %v1086_v18  ;;  %v1091_v22 = vadd.f32 1.0, %v1608_v19 }
 0x153   : > { %v1612_v23 = vpop.eup %1611  ;;  %1631 = vrcp.f32 %v1094_v20  ;;  %v1099_v24 = vadd.f32 1.0, %v1610_v21 }
 0x154   : > { %v1614_v25 = vpop.eup %1613  ;;  %1633 = vrcp.f32 %v1091_v22  ;;  %v1089_v26 = vadd.f32 1.0, %v1612_v23 }
 0x155   : > { %v1616_v28 = vpop.eup %1615  ;;  %1635 = vrcp.f32 %v1099_v24  ;;  %v1097_v31 = vadd.f32 1.0, %v1614_v25 }
 0x156   : > { %v1618_v34 = vpop.eup %1617  ;;  %1637 = vrcp.f32 %v1089_v26  ;;  %v1092_v35 = vadd.f32 1.0, %v1616_v28 }
 0x157   : > { %v1620_v37 = vpop.eup %1619  ;;  %1136 = vst.msk [vmem:[%s1912_s21 + $0x10] sm:$0xff] %vm1133_vm1, %v1618_v34  ;;  %1639 = vrcp.f32 %v1097_v31 }
 0x158   : > { %v1622_v39 = vpop.eup %1621  ;;  %1144 = vst.msk [vmem:[%s1912_s21 + $0x50] sm:$0xff] %vm1133_vm1, %v1620_v37  ;;  %1641 = vrcp.f32 %v1092_v35 }
 0x159   : > { %v1624_v40 = vpop.eup %1623  ;;  %1134 = vst.msk [vmem:[%s1912_s21] sm:$0xff] %vm1133_vm1, %v1622_v39  ;;  %1643 = vpow2.f32 %v1315_v33 }
 0x15a   : > { %v1626_v14 = vpop.eup %1625  ;;  %1142 = vst.msk [vmem:[%s1912_s21 + $0x40] sm:$0xff] %vm1133_vm1, %v1624_v40  ;;  %1645 = vpow2.f32 %v1305_v36 }
 0x15b   : > { %v1628_v41 = vpop.eup %1627  ;;  %1137 = vst.msk [vmem:[%s1912_s21 + $0x18] sm:$0xff] %vm1133_vm1, %v1626_v14  ;;  %1647 = vpow2.f32 %v1313_v38 }
 0x15c   : > { %v1630_v42 = vpop.eup %1629  ;;  %1145 = vst.msk [vmem:[%s1912_s21 + $0x58] sm:$0xff] %vm1133_vm1, %v1628_v41 }
 0x15d   : > { %v1632_v44 = vpop.eup %1631  ;;  %1135 = vst.msk [vmem:[%s1912_s21 + $0x8] sm:$0xff] %vm1133_vm1, %v1630_v42 }
 0x15e   : > { %v1634_v43 = vpop.eup %1633  ;;  %1143 = vst.msk [vmem:[%s1912_s21 + $0x48] sm:$0xff] %vm1133_vm1, %v1632_v44 }
 0x15f   : > { %v1636_v46 = vpop.eup %1635  ;;  %1140 = vst.msk [vmem:[%s1912_s21 + $0x30] sm:$0xff] %vm1133_vm1, %v1634_v43 }
 0x160   : > { %v1638_v47 = vpop.eup %1637  ;;  %1148 = vst.msk [vmem:[%s1912_s21 + $0x70] sm:$0xff] %vm1133_vm1, %v1636_v46 }
 0x161   : > { %v1640_v27 = vpop.eup %1639  ;;  %1138 = vst.msk [vmem:[%s1912_s21 + $0x20] sm:$0xff] %vm1133_vm1, %v1638_v47 }
 0x162   : > { %v1642_v48 = vpop.eup %1641  ;;  %1146 = vst.msk [vmem:[%s1912_s21 + $0x60] sm:$0xff] %vm1133_vm1, %v1640_v27 }
 0x163   : > { %v1644_v30 = vpop.eup %1643  ;;  %1141 = vst.msk [vmem:[%s1912_s21 + $0x38] sm:$0xff] %vm1133_vm1, %v1642_v48 }
 0x164   : > { %v1646_v45 = vpop.eup %1645  ;;  %v1100_v49 = vadd.f32 1.0, %v1644_v30 }
 0x165   : > { %v1648_v51 = vpop.eup %1647  ;;  %v1090_v50 = vadd.f32 1.0, %v1646_v45 }
 0x166   : > { %1649 = vrcp.f32 %v1100_v49  ;;  %v1098_v29 = vadd.f32 1.0, %v1648_v51 }
 0x167   : > { %1651 = vrcp.f32 %v1090_v50 }
 0x168   : > { %1653 = vrcp.f32 %v1098_v29 }
 0x170   : > { %v1650_v52 = vpop.eup %1649 }
 0x171   : > { %v1652_v53 = vpop.eup %1651  ;;  %1149 = vst.msk [vmem:[%s1912_s21 + $0x78] sm:$0xff] %vm1133_vm1, %v1650_v52 }
 0x172   : > { %v1654_v54 = vpop.eup %1653  ;;  %1139 = vst.msk [vmem:[%s1912_s21 + $0x28] sm:$0xff] %vm1133_vm1, %v1652_v53 }
 0x173   : > { %1147 = vst.msk [vmem:[%s1912_s21 + $0x68] sm:$0xff] %vm1133_vm1, %v1654_v54 }
 0x174 PF: > { %s13_s12 = sadd.s32 1, %s1661_s12  }
 0x175   : > { %p10_p4 = scmp.ge.s32.totalorder %s13_s12, 6  }
 0x177   :  { %12 = sbr.rel (!%p10_p4) target bundleno = 1 (0x1), region = 62 }

</bundles_post_ra>
